<compile_context>
chip_gen: v5e
topology: v5e:2x2
jax: 0.10.0
libtpu: 0.0.40
codegen_flags: <defaults>
</compile_context>

<pallas_src>
import math
from functools import partial

import jax
import jax.numpy as jnp
from jax.experimental import pallas as pl
from jax.experimental.pallas import tpu as pltpu


# ---------------------------------------------------------------------------
# Fused GEMM Pallas kernel:  out = maybe_relu(A @ B + bias)
#   A, B are bf16, accumulation in f32, bias per output column.
# ---------------------------------------------------------------------------
def _gemm_bias_act_kernel(a_ref, b_ref, bias_ref, o_ref, *, relu):
    acc = jnp.dot(a_ref[...], b_ref[...], preferred_element_type=jnp.float32)
    out = acc + bias_ref[...]
    if relu:
        out = jnp.maximum(out, 0.0)
    o_ref[...] = out.astype(o_ref.dtype)


def _round_up(x, m):
    return ((x + m - 1) // m) * m


def _pick_tile(dim_padded):
    """Largest of 512/256/128 dividing dim_padded; else the full (small) extent."""
    for c in (512, 256, 128):
        if dim_padded >= c and dim_padded % c == 0:
            return c
    return dim_padded


# Keep (A block + B block + out block), double-buffered, well under the scoped
# VMEM limit on every chip generation (v7x has the smallest VMEM: 64 MiB phys).
_VMEM_BUDGET = 8 * 1024 * 1024


def fused_gemm(a, b, bias, relu=False, out_dtype=jnp.bfloat16):
    """out[:M,:N] = maybe_relu(a @ b + bias); bf16 MXU operands, f32 accumulate."""
    M, K = a.shape
    K2, N = b.shape
    assert K == K2
    # Minimal K padding (bf16 sublane packing); full-K block -> no K grid axis.
    Kp = _round_up(K, 32)
    Np = _round_up(N, 128)
    Mp = _round_up(M, 16)
    if Mp > 128:
        Mp = _round_up(M, 128)
    tm = _pick_tile(Mp)
    tn = _pick_tile(Np)

    # VMEM safety cap (double-buffered inputs + output block, bf16 = 2 bytes).
    def _blk_bytes(tm_, tn_):
        return 2 * 2 * (tm_ * Kp + Kp * tn_ + tm_ * tn_)
    while _blk_bytes(tm, tn) > _VMEM_BUDGET and tn > 128:
        tn //= 2
    while _blk_bytes(tm, tn) > _VMEM_BUDGET and tm > 128:
        tm //= 2

    a_p = jnp.pad(a.astype(jnp.bfloat16), ((0, Mp - M), (0, Kp - K)))
    b_p = jnp.pad(b.astype(jnp.bfloat16), ((0, Kp - K), (0, Np - N)))
    bias_p = jnp.pad(bias.astype(jnp.float32).reshape(1, N), ((0, 0), (0, Np - N)))

    out = pl.pallas_call(
        partial(_gemm_bias_act_kernel, relu=relu),
        out_shape=jax.ShapeDtypeStruct((Mp, Np), out_dtype),
        grid_spec=pltpu.PrefetchScalarGridSpec(
            num_scalar_prefetch=0,
            grid=(Mp // tm, Np // tn),
            in_specs=[
                pl.BlockSpec((tm, Kp), lambda i, j: (i, 0)),
                pl.BlockSpec((Kp, tn), lambda i, j: (0, j)),
                pl.BlockSpec((1, tn), lambda i, j: (0, j)),
            ],
            out_specs=pl.BlockSpec((tm, tn), lambda i, j: (i, j)),
        ),
        compiler_params=pltpu.CompilerParams(
            dimension_semantics=("parallel", "parallel")),
    )(a_p, b_p, bias_p)
    if Mp != M or Np != N:
        out = out[:M, :N]
    return out


# ---------------------------------------------------------------------------
# Conv2d (NHWC) via im2col + fused Pallas GEMM
# ---------------------------------------------------------------------------
def conv2d_fused(x, p, relu, out_dtype=jnp.bfloat16):
    """x: (N, H, W, C) -> (N, OH, OW, Cout). p['w_mat'] is (kh*kw*C, Cout) with BN folded."""
    N, H, W, C = x.shape
    kh, kw, stride, padding = p['kh'], p['kw'], p['stride'], p['padding']
    if padding:
        x = jnp.pad(x, ((0, 0), (padding, padding), (padding, padding), (0, 0)))
    Hp, Wp = H + 2 * padding, W + 2 * padding
    OH = (Hp - kh) // stride + 1
    OW = (Wp - kw) // stride + 1
    if kh == 1 and kw == 1 and stride == 1:
        pat = x.reshape(N * OH * OW, C)
    else:
        cols = []
        for i in range(kh):
            for j in range(kw):
                cols.append(x[:, i:i + stride * (OH - 1) + 1:stride,
                              j:j + stride * (OW - 1) + 1:stride, :])
        pat = jnp.concatenate(cols, axis=-1).reshape(N * OH * OW, kh * kw * C)
    out = fused_gemm(pat, p['w_mat'], p['bias'], relu=relu, out_dtype=out_dtype)
    return out.reshape(N, OH, OW, -1)


# ---------------------------------------------------------------------------
# Deterministic parameter generation (BN scale folded into weights)
# ---------------------------------------------------------------------------
class ParamGen:
    def __init__(self, key):
        self.key = key
        self.count = 0

    def normal(self, shape, std):
        self.count += 1
        k = jax.random.fold_in(self.key, self.count)
        return std * jax.random.normal(k, shape, jnp.float32)


_BN_EPS = 1e-5


def make_conv_bn(pg, cin, cout, k, stride, padding, conv_bias, with_bn=True):
    w = pg.normal((cout, cin, k, k), math.sqrt(2.0 / (k * k * cout)))
    b = pg.normal((cout,), 0.05) if conv_bias else jnp.zeros((cout,), jnp.float32)
    if with_bn:
        # eval-mode BN: running_mean=0, running_var=1, gamma=1, beta=0
        s = 1.0 / math.sqrt(1.0 + _BN_EPS)
        scale = jnp.full((cout,), s, jnp.float32)
        bn_bias = jnp.zeros((cout,), jnp.float32)
    else:
        scale = jnp.ones((cout,), jnp.float32)
        bn_bias = jnp.zeros((cout,), jnp.float32)
    # NHWC im2col weight layout (kh, kw, cin, cout) with BN scale folded in.
    w_mat = (jnp.transpose(w, (2, 3, 1, 0)).reshape(k * k * cin, cout)
             * scale[None, :]).astype(jnp.bfloat16)
    bias = bn_bias + b * scale
    return {'w_mat': w_mat, 'bias': bias, 'kh': k, 'kw': k,
            'stride': stride, 'padding': padding}


# ---------------------------------------------------------------------------
# MSDNet building blocks (functional closures mirroring the PyTorch modules)
# ---------------------------------------------------------------------------
def ConvBasic(pg, nIn, nOut, kernel=3, stride=1, padding=1):
    p = make_conv_bn(pg, nIn, nOut, kernel, stride, padding, conv_bias=False)
    return lambda x: conv2d_fused(x, p, relu=True)


def ConvBN(pg, nIn, nOut, type_, bottleneck, bnWidth):
    stages = []
    nInner = nIn
    if bottleneck:
        nInner = min(nInner, bnWidth * nOut)
        stages.append(make_conv_bn(pg, nIn, nInner, 1, 1, 0, conv_bias=False))
    stride = 1 if type_ == 'normal' else 2
    stages.append(make_conv_bn(pg, nInner, nOut, 3, stride, 1, conv_bias=False))

    def fwd(x):
        for p in stages:
            x = conv2d_fused(x, p, relu=True)
        return x
    return fwd


def ConvDownNormal(pg, nIn1, nIn2, nOut, bottleneck, bnW1, bnW2):
    conv_down = ConvBN(pg, nIn1, nOut // 2, 'down', bottleneck, bnW1)
    conv_normal = ConvBN(pg, nIn2, nOut // 2, 'normal', bottleneck, bnW2)

    def fwd(x):
        return jnp.concatenate([x[1], conv_down(x[0]), conv_normal(x[1])], axis=-1)
    return fwd


def ConvNormal(pg, nIn, nOut, bottleneck, bnWidth):
    conv_normal = ConvBN(pg, nIn, nOut, 'normal', bottleneck, bnWidth)

    def fwd(x):
        if not isinstance(x, list):
            x = [x]
        return jnp.concatenate([x[0], conv_normal(x[0])], axis=-1)
    return fwd


def MSDNFirstLayer(pg, nIn, nOut, args):
    # cifar path only (args['data'].startswith('cifar'))
    layers = [ConvBasic(pg, nIn, nOut * args['grFactor'][0], 3, 1, 1)]
    nIn = nOut * args['grFactor'][0]
    for i in range(1, args['nScales']):
        layers.append(ConvBasic(pg, nIn, nOut * args['grFactor'][i], 3, 2, 1))
        nIn = nOut * args['grFactor'][i]

    def fwd(x):
        res = []
        for l in layers:
            x = l(x)
            res.append(x)
        return res
    return fwd


def MSDNLayer(pg, nIn, nOut, args, inScales=None, outScales=None):
    inScales = inScales if inScales is not None else args['nScales']
    outScales = outScales if outScales is not None else args['nScales']
    nScales = args['nScales']
    discard = inScales - outScales
    offset = nScales - outScales
    gr, bf, bt = args['grFactor'], args['bnFactor'], args['bottleneck']
    layers = []
    if discard > 0:
        layers.append(ConvDownNormal(pg, nIn * gr[offset - 1], nIn * gr[offset],
                                     nOut * gr[offset], bt, bf[offset - 1], bf[offset]))
    else:
        layers.append(ConvNormal(pg, nIn * gr[offset], nOut * gr[offset], bt, bf[offset]))
    for i in range(offset + 1, nScales):
        layers.append(ConvDownNormal(pg, nIn * gr[i - 1], nIn * gr[i],
                                     nOut * gr[i], bt, bf[i - 1], bf[i]))

    def fwd(x):
        if discard > 0:
            inp = [[x[i - 1], x[i]] for i in range(1, outScales + 1)]
        else:
            inp = [[x[0]]] + [[x[i - 1], x[i]] for i in range(1, outScales)]
        return [layers[i](inp[i]) for i in range(outScales)]
    return fwd


def ParallelModule(mods):
    def fwd(x):
        return [mods[i](x[i]) for i in range(len(x))]
    return fwd


def SELayer(pg, channel, reduction=16):
    w1 = pg.normal((channel // reduction, channel), math.sqrt(2.0 / channel)).T
    w2 = pg.normal((channel, channel // reduction),
                   math.sqrt(2.0 / (channel // reduction))).T
    z1 = jnp.zeros((channel // reduction,), jnp.float32)
    z2 = jnp.zeros((channel,), jnp.float32)

    def fwd(x):
        b, c = x.shape[0], x.shape[-1]
        y = jnp.mean(x.astype(jnp.float32), axis=(1, 2))          # (b, c) avg pool
        y = fused_gemm(y, w1, z1, relu=True, out_dtype=jnp.float32)
        y = fused_gemm(y, w2, z2, relu=False, out_dtype=jnp.float32)
        y = jax.nn.sigmoid(y)
        return x * y.reshape(b, 1, 1, c).astype(x.dtype)
    return fwd


def BottleneckSE(pg, inplanes, planes, kernel_size, stride=1, padding=0,
                 downsample=None, has_se=False):
    expansion = 4
    c1 = make_conv_bn(pg, inplanes, planes, 1, 1, 0, conv_bias=False)
    c2 = make_conv_bn(pg, planes, planes, kernel_size, stride, padding, conv_bias=True)
    c3 = make_conv_bn(pg, planes, planes * expansion, 1, 1, 0, conv_bias=False)
    se = SELayer(pg, planes * expansion) if has_se else None

    def fwd(x):
        identity = x
        out = conv2d_fused(x, c1, relu=True)
        out = conv2d_fused(out, c2, relu=True)
        out = conv2d_fused(out, c3, relu=False)
        if se is not None:
            out = se(out)
        if downsample is not None:
            identity = downsample(x)
        return jnp.maximum(out + identity, 0.0).astype(out.dtype)
    return fwd


def make_downsample(pg, cin, cout):
    p = make_conv_bn(pg, cin, cout, 1, 1, 0, conv_bias=False)
    return lambda x: conv2d_fused(x, p, relu=False)


def ClassifierModuleOurs(pg, in_channel, hidden_channel, down_scale, num_btn,
                         expansion, num_classes):
    assert 0 < num_btn < 10
    # TODO(synk): num_btn == 0 path (adaptive avgpool + linear) is unused in this config.
    if down_scale == 1:
        k, s, p = 3, 1, 1
    elif down_scale == 2:
        k, s, p = 4, 2, 1
    elif down_scale == 4:
        k, s, p = 6, 4, 1
    else:
        raise ValueError
    conv = make_conv_bn(pg, in_channel, hidden_channel, k, s, p, conv_bias=True)
    btns = []
    for _ in range(num_btn):
        ds = make_downsample(pg, hidden_channel, hidden_channel)
        btns.append(BottleneckSE(pg, hidden_channel, hidden_channel // 4, 3, 1, 1,
                                 downsample=ds, has_se=True))
    lin_in = hidden_channel * expansion
    lw = pg.normal((num_classes, lin_in), 1.0 / math.sqrt(lin_in)).T   # (in, out)
    lb = jnp.zeros((num_classes,), jnp.float32)

    def fwd(x):
        out = conv2d_fused(x, conv, relu=True)
        for btn in btns:
            out = btn(out)
        B = out.shape[0]
        # match PyTorch flatten order (C, H, W)
        out = jnp.transpose(out, (0, 3, 1, 2)).reshape(B, -1)
        return fused_gemm(out, lw, lb, relu=False, out_dtype=jnp.float32)
    return fwd


def build_classifier_cifar(pg, nIn, num_classes):
    inter1, inter2 = 128, 128
    c1 = ConvBasic(pg, nIn, inter1, 3, 2, 1)
    c2 = ConvBasic(pg, inter1, inter2, 3, 2, 1)
    lw = pg.normal((num_classes, inter2), 1.0 / math.sqrt(inter2)).T
    lb = jnp.zeros((num_classes,), jnp.float32)

    def fwd(x):
        x = c2(c1(x))
        B, H, W, C = x.shape
        x = x.reshape(B, H // 2, 2, W // 2, 2, C).astype(jnp.float32).mean(axis=(2, 4))
        x = jnp.transpose(x, (0, 3, 1, 2)).reshape(B, -1)   # (C,H,W) flatten order
        return fused_gemm(x, lw, lb, relu=False, out_dtype=jnp.float32)
    return fwd


def build_transition(pg, nIn, nOut, outScales, offset, args):
    gr = args['grFactor']
    mods = [ConvBasic(pg, nIn * gr[offset + i], nOut * gr[offset + i], 1, 1, 0)
            for i in range(outScales)]
    return ParallelModule(mods)


def build_block(pg, nIn, args, step, n_layer_all, n_layer_curr):
    layers = [MSDNFirstLayer(pg, 3, nIn, args)] if n_layer_curr == 0 else []
    for _ in range(step):
        n_layer_curr += 1
        if args['prune'] == 'min':
            inScales = min(args['nScales'], n_layer_all - n_layer_curr + 2)
            outScales = min(args['nScales'], n_layer_all - n_layer_curr + 1)
        elif args['prune'] == 'max':
            interval = math.ceil(1.0 * n_layer_all / args['nScales'])
            inScales = args['nScales'] - math.floor(1.0 * max(0, n_layer_curr - 2) / interval)
            outScales = args['nScales'] - math.floor(1.0 * (n_layer_curr - 1) / interval)
        else:
            raise ValueError
        layers.append(MSDNLayer(pg, nIn, args['growthRate'], args, inScales, outScales))
        nIn += args['growthRate']
        if args['prune'] == 'max' and inScales > outScales and args['reduction'] > 0:
            offset = args['nScales'] - outScales
            layers.append(build_transition(pg, nIn, math.floor(1.0 * args['reduction'] * nIn),
                                           outScales, offset, args))
            nIn = math.floor(1.0 * args['reduction'] * nIn)
        elif (args['prune'] == 'min' and args['reduction'] > 0 and
              (n_layer_curr == math.floor(1.0 * n_layer_all / 3) or
               n_layer_curr == math.floor(2.0 * n_layer_all / 3))):
            offset = args['nScales'] - outScales
            layers.append(build_transition(pg, nIn, math.floor(1.0 * args['reduction'] * nIn),
                                           outScales, offset, args))
            nIn = math.floor(1.0 * args['reduction'] * nIn)

    def fwd(x):
        for l in layers:
            x = l(x)
        return x
    return fwd, nIn


def build_msdnet(pg, args):
    nBlocks = args['nBlocks']
    steps = [args['base']]
    n_layers_all, n_layer_curr = args['base'], 0
    for i in range(1, nBlocks):
        steps.append(args['step'] if args['stepmode'] == 'even' else args['step'] * i + 1)
        n_layers_all += steps[-1]
    nIn = args['nChannels']
    down_scales = [2, 2, 2, 2, 2, 2]
    bottlenecks = [3, 3, 2, 2, 1, 1]
    blocks, classifiers = [], []
    for i in range(nBlocks):
        blk, nIn = build_block(pg, nIn, args, steps[i], n_layers_all, n_layer_curr)
        blocks.append(blk)
        n_layer_curr += steps[i]
        # cifar100 path
        if i != nBlocks - 1:
            classifiers.append(ClassifierModuleOurs(pg, nIn * args['grFactor'][-1], 128,
                                                    down_scales[i], bottlenecks[i],
                                                    4 * 4, 100))
        else:
            classifiers.append(build_classifier_cifar(pg, nIn * args['grFactor'][-1], 100))

    def fwd(x_nchw):
        # single I/O-boundary layout conversion: NCHW f32 -> NHWC bf16
        x = jnp.transpose(x_nchw, (0, 2, 3, 1)).astype(jnp.bfloat16)
        res = []
        for i in range(nBlocks):
            x = blocks[i](x)
            res.append(classifiers[i](x[-1]))
        return res
    return fwd


# ---------------------------------------------------------------------------
if __name__ == "__main__":
    key = jax.random.PRNGKey(0)
    pg = ParamGen(jax.random.fold_in(key, 1))

    # small cifar100-style config (spatial size 32 so classifier flatten dims line up)
    args = dict(data='cifar100', nBlocks=2, base=1, step=1, stepmode='even',
                nChannels=8, growthRate=6, nScales=3,
                grFactor=[1, 2, 4], bnFactor=[1, 2, 4],
                prune='max', reduction=0.5, bottleneck=True)

    model = build_msdnet(pg, args)
    fwd = jax.jit(model)        # whole-forward jit: fuses im2col / pad / slices around kernels

    x = jax.random.normal(jax.random.fold_in(key, 2), (2, 3, 32, 32), jnp.float32)
    outs = jax.block_until_ready(fwd(x))

    assert len(outs) == args['nBlocks']
    for o in outs:
        assert o.shape == (2, 100), o.shape
        assert bool(jnp.all(jnp.isfinite(o)))
    print("KERNEL_OK")
</pallas_src>

<mosaic_0001>
module attributes {stable_mosaic.version = 11 : i64} {
  func.func @_gemm_bias_act_kernel(%arg0: i32, %arg1: i32, %arg2: memref<512x32xbf16, #tpu.memory_space<vmem>>, %arg3: memref<32x128xbf16, #tpu.memory_space<vmem>>, %arg4: memref<1x128xf32, #tpu.memory_space<vmem>>, %arg5: memref<512x128xbf16, #tpu.memory_space<vmem>>) attributes {dimension_semantics = [#tpu.dimension_semantics<parallel>, #tpu.dimension_semantics<parallel>], iteration_bounds = array<i64: 4, 1>, scalar_prefetch = 0 : i64, scratch_operands = 0 : i64, tpu.core_type = #tpu.core_type<tc>, window_params = [{transform_indices = @transform_0, window_bounds = array<i64: 512, 32>}, {transform_indices = @transform_1, window_bounds = array<i64: 32, 128>}, {transform_indices = @transform_2, window_bounds = array<i64: 1, 128>}, {transform_indices = @transform_3, window_bounds = array<i64: 512, 128>}]} {
    %c0 = arith.constant 0 : index
    %c0_0 = arith.constant 0 : index
    %0 = vector.load %arg2[%c0, %c0_0] : memref<512x32xbf16, #tpu.memory_space<vmem>>, vector<512x32xbf16>
    %c0_1 = arith.constant 0 : index
    %c0_2 = arith.constant 0 : index
    %1 = vector.load %arg3[%c0_1, %c0_2] : memref<32x128xbf16, #tpu.memory_space<vmem>>, vector<32x128xbf16>
    %cst = arith.constant dense<0.000000e+00> : vector<512x128xf32>
    %2 = tpu.matmul %0, %1, %cst {dimension_numbers = #tpu.dot_dimension_numbers<[1], [0], [0], [1], [0, 0, 1, 1], [], []>} : vector<512x32xbf16>, vector<32x128xbf16>, vector<512x128xf32> -> vector<512x128xf32>
    %c0_3 = arith.constant 0 : index
    %c0_4 = arith.constant 0 : index
    %3 = vector.load %arg4[%c0_3, %c0_4] : memref<1x128xf32, #tpu.memory_space<vmem>>, vector<1x128xf32>
    %4 = vector.broadcast %3 : vector<1x128xf32> to vector<512x128xf32>
    %5 = arith.addf %2, %4 : vector<512x128xf32>
    %cst_5 = arith.constant 0.000000e+00 : f32
    %6 = vector.broadcast %cst_5 : f32 to vector<512x128xf32>
    %7 = arith.maximumf %5, %6 : vector<512x128xf32>
    %8 = arith.truncf %7 : vector<512x128xf32> to vector<512x128xbf16>
    %c0_6 = arith.constant 0 : index
    %c0_7 = arith.constant 0 : index
    %9 = vector.load %arg5[%c0_6, %c0_7] : memref<512x128xbf16, #tpu.memory_space<vmem>>, vector<512x128xbf16>
    tpu.vector_store %arg5[%c0_6, %c0_7], %8 {strides = array<i32>} : memref<512x128xbf16, #tpu.memory_space<vmem>>, vector<512x128xbf16>,
    return
  }
  func.func @transform_0(%arg0: i32, %arg1: i32) -> (i32, i32) {
    %c0_i32 = arith.constant 0 : i32
    %c0_i32_0 = arith.constant 0 : i32
    return %arg0, %c0_i32 : i32, i32
  }
  func.func @transform_1(%arg0: i32, %arg1: i32) -> (i32, i32) {
    %c0_i32 = arith.constant 0 : i32
    %c0_i32_0 = arith.constant 0 : i32
    return %c0_i32, %arg1 : i32, i32
  }
  func.func @transform_2(%arg0: i32, %arg1: i32) -> (i32, i32) {
    %c0_i32 = arith.constant 0 : i32
    %c0_i32_0 = arith.constant 0 : i32
    return %c0_i32, %arg1 : i32, i32
  }
  func.func @transform_3(%arg0: i32, %arg1: i32) -> (i32, i32) {
    %c0_i32 = arith.constant 0 : i32
    return %arg0, %arg1 : i32, i32
  }
}

module attributes {stable_mosaic.version = 11 : i64} {
  func.func @_gemm_bias_act_kernel(%arg0: i32, %arg1: i32, %arg2: memref<512x96xbf16, #tpu.memory_space<vmem>>, %arg3: memref<96x128xbf16, #tpu.memory_space<vmem>>, %arg4: memref<1x128xf32, #tpu.memory_space<vmem>>, %arg5: memref<512x128xbf16, #tpu.memory_space<vmem>>) attributes {dimension_semantics = [#tpu.dimension_semantics<parallel>, #tpu.dimension_semantics<parallel>], iteration_bounds = array<i64: 1, 1>, scalar_prefetch = 0 : i64, scratch_operands = 0 : i64, tpu.core_type = #tpu.core_type<tc>, window_params = [{transform_indices = @transform_0, window_bounds = array<i64: 512, 96>}, {transform_indices = @transform_1, window_bounds = array<i64: 96, 128>}, {transform_indices = @transform_2, window_bounds = array<i64: 1, 128>}, {transform_indices = @transform_3, window_bounds = array<i64: 512, 128>}]} {
    %c0 = arith.constant 0 : index
    %c0_0 = arith.constant 0 : index
    %0 = vector.load %arg2[%c0, %c0_0] : memref<512x96xbf16, #tpu.memory_space<vmem>>, vector<512x96xbf16>
    %c0_1 = arith.constant 0 : index
    %c0_2 = arith.constant 0 : index
    %1 = vector.load %arg3[%c0_1, %c0_2] : memref<96x128xbf16, #tpu.memory_space<vmem>>, vector<96x128xbf16>
    %cst = arith.constant dense<0.000000e+00> : vector<512x128xf32>
    %2 = tpu.matmul %0, %1, %cst {dimension_numbers = #tpu.dot_dimension_numbers<[1], [0], [0], [1], [0, 0, 1, 1], [], []>} : vector<512x96xbf16>, vector<96x128xbf16>, vector<512x128xf32> -> vector<512x128xf32>
    %c0_3 = arith.constant 0 : index
    %c0_4 = arith.constant 0 : index
    %3 = vector.load %arg4[%c0_3, %c0_4] : memref<1x128xf32, #tpu.memory_space<vmem>>, vector<1x128xf32>
    %4 = vector.broadcast %3 : vector<1x128xf32> to vector<512x128xf32>
    %5 = arith.addf %2, %4 : vector<512x128xf32>
    %cst_5 = arith.constant 0.000000e+00 : f32
    %6 = vector.broadcast %cst_5 : f32 to vector<512x128xf32>
    %7 = arith.maximumf %5, %6 : vector<512x128xf32>
    %8 = arith.truncf %7 : vector<512x128xf32> to vector<512x128xbf16>
    %c0_6 = arith.constant 0 : index
    %c0_7 = arith.constant 0 : index
    %9 = vector.load %arg5[%c0_6, %c0_7] : memref<512x128xbf16, #tpu.memory_space<vmem>>, vector<512x128xbf16>
    tpu.vector_store %arg5[%c0_6, %c0_7], %8 {strides = array<i32>} : memref<512x128xbf16, #tpu.memory_space<vmem>>, vector<512x128xbf16>,
    return
  }
  func.func @transform_0(%arg0: i32, %arg1: i32) -> (i32, i32) {
    %c0_i32 = arith.constant 0 : i32
    %c0_i32_0 = arith.constant 0 : i32
    return %arg0, %c0_i32 : i32, i32
  }
  func.func @transform_1(%arg0: i32, %arg1: i32) -> (i32, i32) {
    %c0_i32 = arith.constant 0 : i32
    %c0_i32_0 = arith.constant 0 : i32
    return %c0_i32, %arg1 : i32, i32
  }
  func.func @transform_2(%arg0: i32, %arg1: i32) -> (i32, i32) {
    %c0_i32 = arith.constant 0 : i32
    %c0_i32_0 = arith.constant 0 : i32
    return %c0_i32, %arg1 : i32, i32
  }
  func.func @transform_3(%arg0: i32, %arg1: i32) -> (i32, i32) {
    %c0_i32 = arith.constant 0 : i32
    return %arg0, %arg1 : i32, i32
  }
}

module attributes {stable_mosaic.version = 11 : i64} {
  func.func @_gemm_bias_act_kernel(%arg0: i32, %arg1: i32, %arg2: memref<512x32xbf16, #tpu.memory_space<vmem>>, %arg3: memref<32x128xbf16, #tpu.memory_space<vmem>>, %arg4: memref<1x128xf32, #tpu.memory_space<vmem>>, %arg5: memref<512x128xbf16, #tpu.memory_space<vmem>>) attributes {dimension_semantics = [#tpu.dimension_semantics<parallel>, #tpu.dimension_semantics<parallel>], iteration_bounds = array<i64: 1, 1>, scalar_prefetch = 0 : i64, scratch_operands = 0 : i64, tpu.core_type = #tpu.core_type<tc>, window_params = [{transform_indices = @transform_0, window_bounds = array<i64: 512, 32>}, {transform_indices = @transform_1, window_bounds = array<i64: 32, 128>}, {transform_indices = @transform_2, window_bounds = array<i64: 1, 128>}, {transform_indices = @transform_3, window_bounds = array<i64: 512, 128>}]} {
    %c0 = arith.constant 0 : index
    %c0_0 = arith.constant 0 : index
    %0 = vector.load %arg2[%c0, %c0_0] : memref<512x32xbf16, #tpu.memory_space<vmem>>, vector<512x32xbf16>
    %c0_1 = arith.constant 0 : index
    %c0_2 = arith.constant 0 : index
    %1 = vector.load %arg3[%c0_1, %c0_2] : memref<32x128xbf16, #tpu.memory_space<vmem>>, vector<32x128xbf16>
    %cst = arith.constant dense<0.000000e+00> : vector<512x128xf32>
    %2 = tpu.matmul %0, %1, %cst {dimension_numbers = #tpu.dot_dimension_numbers<[1], [0], [0], [1], [0, 0, 1, 1], [], []>} : vector<512x32xbf16>, vector<32x128xbf16>, vector<512x128xf32> -> vector<512x128xf32>
    %c0_3 = arith.constant 0 : index
    %c0_4 = arith.constant 0 : index
    %3 = vector.load %arg4[%c0_3, %c0_4] : memref<1x128xf32, #tpu.memory_space<vmem>>, vector<1x128xf32>
    %4 = vector.broadcast %3 : vector<1x128xf32> to vector<512x128xf32>
    %5 = arith.addf %2, %4 : vector<512x128xf32>
    %cst_5 = arith.constant 0.000000e+00 : f32
    %6 = vector.broadcast %cst_5 : f32 to vector<512x128xf32>
    %7 = arith.maximumf %5, %6 : vector<512x128xf32>
    %8 = arith.truncf %7 : vector<512x128xf32> to vector<512x128xbf16>
    %c0_6 = arith.constant 0 : index
    %c0_7 = arith.constant 0 : index
    %9 = vector.load %arg5[%c0_6, %c0_7] : memref<512x128xbf16, #tpu.memory_space<vmem>>, vector<512x128xbf16>
    tpu.vector_store %arg5[%c0_6, %c0_7], %8 {strides = array<i32>} : memref<512x128xbf16, #tpu.memory_space<vmem>>, vector<512x128xbf16>,
    return
  }
  func.func @transform_0(%arg0: i32, %arg1: i32) -> (i32, i32) {
    %c0_i32 = arith.constant 0 : i32
    %c0_i32_0 = arith.constant 0 : i32
    return %arg0, %c0_i32 : i32, i32
  }
  func.func @transform_1(%arg0: i32, %arg1: i32) -> (i32, i32) {
    %c0_i32 = arith.constant 0 : i32
    %c0_i32_0 = arith.constant 0 : i32
    return %c0_i32, %arg1 : i32, i32
  }
  func.func @transform_2(%arg0: i32, %arg1: i32) -> (i32, i32) {
    %c0_i32 = arith.constant 0 : i32
    %c0_i32_0 = arith.constant 0 : i32
    return %c0_i32, %arg1 : i32, i32
  }
  func.func @transform_3(%arg0: i32, %arg1: i32) -> (i32, i32) {
    %c0_i32 = arith.constant 0 : i32
    return %arg0, %arg1 : i32, i32
  }
}

module attributes {stable_mosaic.version = 11 : i64} {
  func.func @_gemm_bias_act_kernel(%arg0: i32, %arg1: i32, %arg2: memref<128x160xbf16, #tpu.memory_space<vmem>>, %arg3: memref<160x128xbf16, #tpu.memory_space<vmem>>, %arg4: memref<1x128xf32, #tpu.memory_space<vmem>>, %arg5: memref<128x128xbf16, #tpu.memory_space<vmem>>) attributes {dimension_semantics = [#tpu.dimension_semantics<parallel>, #tpu.dimension_semantics<parallel>], iteration_bounds = array<i64: 1, 1>, scalar_prefetch = 0 : i64, scratch_operands = 0 : i64, tpu.core_type = #tpu.core_type<tc>, window_params = [{transform_indices = @transform_0, window_bounds = array<i64: 128, 160>}, {transform_indices = @transform_1, window_bounds = array<i64: 160, 128>}, {transform_indices = @transform_2, window_bounds = array<i64: 1, 128>}, {transform_indices = @transform_3, window_bounds = array<i64: 128, 128>}]} {
    %c0 = arith.constant 0 : index
    %c0_0 = arith.constant 0 : index
    %0 = vector.load %arg2[%c0, %c0_0] : memref<128x160xbf16, #tpu.memory_space<vmem>>, vector<128x160xbf16>
    %c0_1 = arith.constant 0 : index
    %c0_2 = arith.constant 0 : index
    %1 = vector.load %arg3[%c0_1, %c0_2] : memref<160x128xbf16, #tpu.memory_space<vmem>>, vector<160x128xbf16>
    %cst = arith.constant dense<0.000000e+00> : vector<128x128xf32>
    %2 = tpu.matmul %0, %1, %cst {dimension_numbers = #tpu.dot_dimension_numbers<[1], [0], [0], [1], [0, 0, 1, 1], [], []>} : vector<128x160xbf16>, vector<160x128xbf16>, vector<128x128xf32> -> vector<128x128xf32>
    %c0_3 = arith.constant 0 : index
    %c0_4 = arith.constant 0 : index
    %3 = vector.load %arg4[%c0_3, %c0_4] : memref<1x128xf32, #tpu.memory_space<vmem>>, vector<1x128xf32>
    %4 = vector.broadcast %3 : vector<1x128xf32> to vector<128x128xf32>
    %5 = arith.addf %2, %4 : vector<128x128xf32>
    %cst_5 = arith.constant 0.000000e+00 : f32
    %6 = vector.broadcast %cst_5 : f32 to vector<128x128xf32>
    %7 = arith.maximumf %5, %6 : vector<128x128xf32>
    %8 = arith.truncf %7 : vector<128x128xf32> to vector<128x128xbf16>
    %c0_6 = arith.constant 0 : index
    %c0_7 = arith.constant 0 : index
    %9 = vector.load %arg5[%c0_6, %c0_7] : memref<128x128xbf16, #tpu.memory_space<vmem>>, vector<128x128xbf16>
    tpu.vector_store %arg5[%c0_6, %c0_7], %8 {strides = array<i32>} : memref<128x128xbf16, #tpu.memory_space<vmem>>, vector<128x128xbf16>,
    return
  }
  func.func @transform_0(%arg0: i32, %arg1: i32) -> (i32, i32) {
    %c0_i32 = arith.constant 0 : i32
    %c0_i32_0 = arith.constant 0 : i32
    return %arg0, %c0_i32 : i32, i32
  }
  func.func @transform_1(%arg0: i32, %arg1: i32) -> (i32, i32) {
    %c0_i32 = arith.constant 0 : i32
    %c0_i32_0 = arith.constant 0 : i32
    return %c0_i32, %arg1 : i32, i32
  }
  func.func @transform_2(%arg0: i32, %arg1: i32) -> (i32, i32) {
    %c0_i32 = arith.constant 0 : i32
    %c0_i32_0 = arith.constant 0 : i32
    return %c0_i32, %arg1 : i32, i32
  }
  func.func @transform_3(%arg0: i32, %arg1: i32) -> (i32, i32) {
    %c0_i32 = arith.constant 0 : i32
    return %arg0, %arg1 : i32, i32
  }
}

module attributes {stable_mosaic.version = 11 : i64} {
  func.func @_gemm_bias_act_kernel(%arg0: i32, %arg1: i32, %arg2: memref<128x32xbf16, #tpu.memory_space<vmem>>, %arg3: memref<32x128xbf16, #tpu.memory_space<vmem>>, %arg4: memref<1x128xf32, #tpu.memory_space<vmem>>, %arg5: memref<128x128xbf16, #tpu.memory_space<vmem>>) attributes {dimension_semantics = [#tpu.dimension_semantics<parallel>, #tpu.dimension_semantics<parallel>], iteration_bounds = array<i64: 1, 1>, scalar_prefetch = 0 : i64, scratch_operands = 0 : i64, tpu.core_type = #tpu.core_type<tc>, window_params = [{transform_indices = @transform_0, window_bounds = array<i64: 128, 32>}, {transform_indices = @transform_1, window_bounds = array<i64: 32, 128>}, {transform_indices = @transform_2, window_bounds = array<i64: 1, 128>}, {transform_indices = @transform_3, window_bounds = array<i64: 128, 128>}]} {
    %c0 = arith.constant 0 : index
    %c0_0 = arith.constant 0 : index
    %0 = vector.load %arg2[%c0, %c0_0] : memref<128x32xbf16, #tpu.memory_space<vmem>>, vector<128x32xbf16>
    %c0_1 = arith.constant 0 : index
    %c0_2 = arith.constant 0 : index
    %1 = vector.load %arg3[%c0_1, %c0_2] : memref<32x128xbf16, #tpu.memory_space<vmem>>, vector<32x128xbf16>
    %cst = arith.constant dense<0.000000e+00> : vector<128x128xf32>
    %2 = tpu.matmul %0, %1, %cst {dimension_numbers = #tpu.dot_dimension_numbers<[1], [0], [0], [1], [0, 0, 1, 1], [], []>} : vector<128x32xbf16>, vector<32x128xbf16>, vector<128x128xf32> -> vector<128x128xf32>
    %c0_3 = arith.constant 0 : index
    %c0_4 = arith.constant 0 : index
    %3 = vector.load %arg4[%c0_3, %c0_4] : memref<1x128xf32, #tpu.memory_space<vmem>>, vector<1x128xf32>
    %4 = vector.broadcast %3 : vector<1x128xf32> to vector<128x128xf32>
    %5 = arith.addf %2, %4 : vector<128x128xf32>
    %cst_5 = arith.constant 0.000000e+00 : f32
    %6 = vector.broadcast %cst_5 : f32 to vector<128x128xf32>
    %7 = arith.maximumf %5, %6 : vector<128x128xf32>
    %8 = arith.truncf %7 : vector<128x128xf32> to vector<128x128xbf16>
    %c0_6 = arith.constant 0 : index
    %c0_7 = arith.constant 0 : index
    %9 = vector.load %arg5[%c0_6, %c0_7] : memref<128x128xbf16, #tpu.memory_space<vmem>>, vector<128x128xbf16>
    tpu.vector_store %arg5[%c0_6, %c0_7], %8 {strides = array<i32>} : memref<128x128xbf16, #tpu.memory_space<vmem>>, vector<128x128xbf16>,
    return
  }
  func.func @transform_0(%arg0: i32, %arg1: i32) -> (i32, i32) {
    %c0_i32 = arith.constant 0 : i32
    %c0_i32_0 = arith.constant 0 : i32
    return %arg0, %c0_i32 : i32, i32
  }
  func.func @transform_1(%arg0: i32, %arg1: i32) -> (i32, i32) {
    %c0_i32 = arith.constant 0 : i32
    %c0_i32_0 = arith.constant 0 : i32
    return %c0_i32, %arg1 : i32, i32
  }
  func.func @transform_2(%arg0: i32, %arg1: i32) -> (i32, i32) {
    %c0_i32 = arith.constant 0 : i32
    %c0_i32_0 = arith.constant 0 : i32
    return %c0_i32, %arg1 : i32, i32
  }
  func.func @transform_3(%arg0: i32, %arg1: i32) -> (i32, i32) {
    %c0_i32 = arith.constant 0 : i32
    return %arg0, %arg1 : i32, i32
  }
}

module attributes {stable_mosaic.version = 11 : i64} {
  func.func @_gemm_bias_act_kernel(%arg0: i32, %arg1: i32, %arg2: memref<128x288xbf16, #tpu.memory_space<vmem>>, %arg3: memref<288x128xbf16, #tpu.memory_space<vmem>>, %arg4: memref<1x128xf32, #tpu.memory_space<vmem>>, %arg5: memref<128x128xbf16, #tpu.memory_space<vmem>>) attributes {dimension_semantics = [#tpu.dimension_semantics<parallel>, #tpu.dimension_semantics<parallel>], iteration_bounds = array<i64: 1, 1>, scalar_prefetch = 0 : i64, scratch_operands = 0 : i64, tpu.core_type = #tpu.core_type<tc>, window_params = [{transform_indices = @transform_0, window_bounds = array<i64: 128, 288>}, {transform_indices = @transform_1, window_bounds = array<i64: 288, 128>}, {transform_indices = @transform_2, window_bounds = array<i64: 1, 128>}, {transform_indices = @transform_3, window_bounds = array<i64: 128, 128>}]} {
    %c0 = arith.constant 0 : index
    %c0_0 = arith.constant 0 : index
    %0 = vector.load %arg2[%c0, %c0_0] : memref<128x288xbf16, #tpu.memory_space<vmem>>, vector<128x288xbf16>
    %c0_1 = arith.constant 0 : index
    %c0_2 = arith.constant 0 : index
    %1 = vector.load %arg3[%c0_1, %c0_2] : memref<288x128xbf16, #tpu.memory_space<vmem>>, vector<288x128xbf16>
    %cst = arith.constant dense<0.000000e+00> : vector<128x128xf32>
    %2 = tpu.matmul %0, %1, %cst {dimension_numbers = #tpu.dot_dimension_numbers<[1], [0], [0], [1], [0, 0, 1, 1], [], []>} : vector<128x288xbf16>, vector<288x128xbf16>, vector<128x128xf32> -> vector<128x128xf32>
    %c0_3 = arith.constant 0 : index
    %c0_4 = arith.constant 0 : index
    %3 = vector.load %arg4[%c0_3, %c0_4] : memref<1x128xf32, #tpu.memory_space<vmem>>, vector<1x128xf32>
    %4 = vector.broadcast %3 : vector<1x128xf32> to vector<128x128xf32>
    %5 = arith.addf %2, %4 : vector<128x128xf32>
    %cst_5 = arith.constant 0.000000e+00 : f32
    %6 = vector.broadcast %cst_5 : f32 to vector<128x128xf32>
    %7 = arith.maximumf %5, %6 : vector<128x128xf32>
    %8 = arith.truncf %7 : vector<128x128xf32> to vector<128x128xbf16>
    %c0_6 = arith.constant 0 : index
    %c0_7 = arith.constant 0 : index
    %9 = vector.load %arg5[%c0_6, %c0_7] : memref<128x128xbf16, #tpu.memory_space<vmem>>, vector<128x128xbf16>
    tpu.vector_store %arg5[%c0_6, %c0_7], %8 {strides = array<i32>} : memref<128x128xbf16, #tpu.memory_space<vmem>>, vector<128x128xbf16>,
    return
  }
  func.func @transform_0(%arg0: i32, %arg1: i32) -> (i32, i32) {
    %c0_i32 = arith.constant 0 : i32
    %c0_i32_0 = arith.constant 0 : i32
    return %arg0, %c0_i32 : i32, i32
  }
  func.func @transform_1(%arg0: i32, %arg1: i32) -> (i32, i32) {
    %c0_i32 = arith.constant 0 : i32
    %c0_i32_0 = arith.constant 0 : i32
    return %c0_i32, %arg1 : i32, i32
  }
  func.func @transform_2(%arg0: i32, %arg1: i32) -> (i32, i32) {
    %c0_i32 = arith.constant 0 : i32
    %c0_i32_0 = arith.constant 0 : i32
    return %c0_i32, %arg1 : i32, i32
  }
  func.func @transform_3(%arg0: i32, %arg1: i32) -> (i32, i32) {
    %c0_i32 = arith.constant 0 : i32
    return %arg0, %arg1 : i32, i32
  }
}

module attributes {stable_mosaic.version = 11 : i64} {
  func.func @_gemm_bias_act_kernel(%arg0: i32, %arg1: i32, %arg2: memref<128x64xbf16, #tpu.memory_space<vmem>>, %arg3: memref<64x128xbf16, #tpu.memory_space<vmem>>, %arg4: memref<1x128xf32, #tpu.memory_space<vmem>>, %arg5: memref<128x128xbf16, #tpu.memory_space<vmem>>) attributes {dimension_semantics = [#tpu.dimension_semantics<parallel>, #tpu.dimension_semantics<parallel>], iteration_bounds = array<i64: 1, 1>, scalar_prefetch = 0 : i64, scratch_operands = 0 : i64, tpu.core_type = #tpu.core_type<tc>, window_params = [{transform_indices = @transform_0, window_bounds = array<i64: 128, 64>}, {transform_indices = @transform_1, window_bounds = array<i64: 64, 128>}, {transform_indices = @transform_2, window_bounds = array<i64: 1, 128>}, {transform_indices = @transform_3, window_bounds = array<i64: 128, 128>}]} {
    %c0 = arith.constant 0 : index
    %c0_0 = arith.constant 0 : index
    %0 = vector.load %arg2[%c0, %c0_0] : memref<128x64xbf16, #tpu.memory_space<vmem>>, vector<128x64xbf16>
    %c0_1 = arith.constant 0 : index
    %c0_2 = arith.constant 0 : index
    %1 = vector.load %arg3[%c0_1, %c0_2] : memref<64x128xbf16, #tpu.memory_space<vmem>>, vector<64x128xbf16>
    %cst = arith.constant dense<0.000000e+00> : vector<128x128xf32>
    %2 = tpu.matmul %0, %1, %cst {dimension_numbers = #tpu.dot_dimension_numbers<[1], [0], [0], [1], [0, 0, 1, 1], [], []>} : vector<128x64xbf16>, vector<64x128xbf16>, vector<128x128xf32> -> vector<128x128xf32>
    %c0_3 = arith.constant 0 : index
    %c0_4 = arith.constant 0 : index
    %3 = vector.load %arg4[%c0_3, %c0_4] : memref<1x128xf32, #tpu.memory_space<vmem>>, vector<1x128xf32>
    %4 = vector.broadcast %3 : vector<1x128xf32> to vector<128x128xf32>
    %5 = arith.addf %2, %4 : vector<128x128xf32>
    %cst_5 = arith.constant 0.000000e+00 : f32
    %6 = vector.broadcast %cst_5 : f32 to vector<128x128xf32>
    %7 = arith.maximumf %5, %6 : vector<128x128xf32>
    %8 = arith.truncf %7 : vector<128x128xf32> to vector<128x128xbf16>
    %c0_6 = arith.constant 0 : index
    %c0_7 = arith.constant 0 : index
    %9 = vector.load %arg5[%c0_6, %c0_7] : memref<128x128xbf16, #tpu.memory_space<vmem>>, vector<128x128xbf16>
    tpu.vector_store %arg5[%c0_6, %c0_7], %8 {strides = array<i32>} : memref<128x128xbf16, #tpu.memory_space<vmem>>, vector<128x128xbf16>,
    return
  }
  func.func @transform_0(%arg0: i32, %arg1: i32) -> (i32, i32) {
    %c0_i32 = arith.constant 0 : i32
    %c0_i32_0 = arith.constant 0 : i32
    return %arg0, %c0_i32 : i32, i32
  }
  func.func @transform_1(%arg0: i32, %arg1: i32) -> (i32, i32) {
    %c0_i32 = arith.constant 0 : i32
    %c0_i32_0 = arith.constant 0 : i32
    return %c0_i32, %arg1 : i32, i32
  }
  func.func @transform_2(%arg0: i32, %arg1: i32) -> (i32, i32) {
    %c0_i32 = arith.constant 0 : i32
    %c0_i32_0 = arith.constant 0 : i32
    return %c0_i32, %arg1 : i32, i32
  }
  func.func @transform_3(%arg0: i32, %arg1: i32) -> (i32, i32) {
    %c0_i32 = arith.constant 0 : i32
    return %arg0, %arg1 : i32, i32
  }
}

module attributes {stable_mosaic.version = 11 : i64} {
  func.func @_gemm_bias_act_kernel(%arg0: i32, %arg1: i32, %arg2: memref<128x448xbf16, #tpu.memory_space<vmem>>, %arg3: memref<448x128xbf16, #tpu.memory_space<vmem>>, %arg4: memref<1x128xf32, #tpu.memory_space<vmem>>, %arg5: memref<128x128xbf16, #tpu.memory_space<vmem>>) attributes {dimension_semantics = [#tpu.dimension_semantics<parallel>, #tpu.dimension_semantics<parallel>], iteration_bounds = array<i64: 1, 1>, scalar_prefetch = 0 : i64, scratch_operands = 0 : i64, tpu.core_type = #tpu.core_type<tc>, window_params = [{transform_indices = @transform_0, window_bounds = array<i64: 128, 448>}, {transform_indices = @transform_1, window_bounds = array<i64: 448, 128>}, {transform_indices = @transform_2, window_bounds = array<i64: 1, 128>}, {transform_indices = @transform_3, window_bounds = array<i64: 128, 128>}]} {
    %c0 = arith.constant 0 : index
    %c0_0 = arith.constant 0 : index
    %0 = vector.load %arg2[%c0, %c0_0] : memref<128x448xbf16, #tpu.memory_space<vmem>>, vector<128x448xbf16>
    %c0_1 = arith.constant 0 : index
    %c0_2 = arith.constant 0 : index
    %1 = vector.load %arg3[%c0_1, %c0_2] : memref<448x128xbf16, #tpu.memory_space<vmem>>, vector<448x128xbf16>
    %cst = arith.constant dense<0.000000e+00> : vector<128x128xf32>
    %2 = tpu.matmul %0, %1, %cst {dimension_numbers = #tpu.dot_dimension_numbers<[1], [0], [0], [1], [0, 0, 1, 1], [], []>} : vector<128x448xbf16>, vector<448x128xbf16>, vector<128x128xf32> -> vector<128x128xf32>
    %c0_3 = arith.constant 0 : index
    %c0_4 = arith.constant 0 : index
    %3 = vector.load %arg4[%c0_3, %c0_4] : memref<1x128xf32, #tpu.memory_space<vmem>>, vector<1x128xf32>
    %4 = vector.broadcast %3 : vector<1x128xf32> to vector<128x128xf32>
    %5 = arith.addf %2, %4 : vector<128x128xf32>
    %cst_5 = arith.constant 0.000000e+00 : f32
    %6 = vector.broadcast %cst_5 : f32 to vector<128x128xf32>
    %7 = arith.maximumf %5, %6 : vector<128x128xf32>
    %8 = arith.truncf %7 : vector<128x128xf32> to vector<128x128xbf16>
    %c0_6 = arith.constant 0 : index
    %c0_7 = arith.constant 0 : index
    %9 = vector.load %arg5[%c0_6, %c0_7] : memref<128x128xbf16, #tpu.memory_space<vmem>>, vector<128x128xbf16>
    tpu.vector_store %arg5[%c0_6, %c0_7], %8 {strides = array<i32>} : memref<128x128xbf16, #tpu.memory_space<vmem>>, vector<128x128xbf16>,
    return
  }
  func.func @transform_0(%arg0: i32, %arg1: i32) -> (i32, i32) {
    %c0_i32 = arith.constant 0 : i32
    %c0_i32_0 = arith.constant 0 : i32
    return %arg0, %c0_i32 : i32, i32
  }
  func.func @transform_1(%arg0: i32, %arg1: i32) -> (i32, i32) {
    %c0_i32 = arith.constant 0 : i32
    %c0_i32_0 = arith.constant 0 : i32
    return %c0_i32, %arg1 : i32, i32
  }
  func.func @transform_2(%arg0: i32, %arg1: i32) -> (i32, i32) {
    %c0_i32 = arith.constant 0 : i32
    %c0_i32_0 = arith.constant 0 : i32
    return %c0_i32, %arg1 : i32, i32
  }
  func.func @transform_3(%arg0: i32, %arg1: i32) -> (i32, i32) {
    %c0_i32 = arith.constant 0 : i32
    return %arg0, %arg1 : i32, i32
  }
}

module attributes {stable_mosaic.version = 11 : i64} {
  func.func @_gemm_bias_act_kernel(%arg0: i32, %arg1: i32, %arg2: memref<512x64xbf16, #tpu.memory_space<vmem>>, %arg3: memref<64x128xbf16, #tpu.memory_space<vmem>>, %arg4: memref<1x128xf32, #tpu.memory_space<vmem>>, %arg5: memref<512x128xbf16, #tpu.memory_space<vmem>>) attributes {dimension_semantics = [#tpu.dimension_semantics<parallel>, #tpu.dimension_semantics<parallel>], iteration_bounds = array<i64: 1, 1>, scalar_prefetch = 0 : i64, scratch_operands = 0 : i64, tpu.core_type = #tpu.core_type<tc>, window_params = [{transform_indices = @transform_0, window_bounds = array<i64: 512, 64>}, {transform_indices = @transform_1, window_bounds = array<i64: 64, 128>}, {transform_indices = @transform_2, window_bounds = array<i64: 1, 128>}, {transform_indices = @transform_3, window_bounds = array<i64: 512, 128>}]} {
    %c0 = arith.constant 0 : index
    %c0_0 = arith.constant 0 : index
    %0 = vector.load %arg2[%c0, %c0_0] : memref<512x64xbf16, #tpu.memory_space<vmem>>, vector<512x64xbf16>
    %c0_1 = arith.constant 0 : index
    %c0_2 = arith.constant 0 : index
    %1 = vector.load %arg3[%c0_1, %c0_2] : memref<64x128xbf16, #tpu.memory_space<vmem>>, vector<64x128xbf16>
    %cst = arith.constant dense<0.000000e+00> : vector<512x128xf32>
    %2 = tpu.matmul %0, %1, %cst {dimension_numbers = #tpu.dot_dimension_numbers<[1], [0], [0], [1], [0, 0, 1, 1], [], []>} : vector<512x64xbf16>, vector<64x128xbf16>, vector<512x128xf32> -> vector<512x128xf32>
    %c0_3 = arith.constant 0 : index
    %c0_4 = arith.constant 0 : index
    %3 = vector.load %arg4[%c0_3, %c0_4] : memref<1x128xf32, #tpu.memory_space<vmem>>, vector<1x128xf32>
    %4 = vector.broadcast %3 : vector<1x128xf32> to vector<512x128xf32>
    %5 = arith.addf %2, %4 : vector<512x128xf32>
    %cst_5 = arith.constant 0.000000e+00 : f32
    %6 = vector.broadcast %cst_5 : f32 to vector<512x128xf32>
    %7 = arith.maximumf %5, %6 : vector<512x128xf32>
    %8 = arith.truncf %7 : vector<512x128xf32> to vector<512x128xbf16>
    %c0_6 = arith.constant 0 : index
    %c0_7 = arith.constant 0 : index
    %9 = vector.load %arg5[%c0_6, %c0_7] : memref<512x128xbf16, #tpu.memory_space<vmem>>, vector<512x128xbf16>
    tpu.vector_store %arg5[%c0_6, %c0_7], %8 {strides = array<i32>} : memref<512x128xbf16, #tpu.memory_space<vmem>>, vector<512x128xbf16>,
    return
  }
  func.func @transform_0(%arg0: i32, %arg1: i32) -> (i32, i32) {
    %c0_i32 = arith.constant 0 : i32
    %c0_i32_0 = arith.constant 0 : i32
    return %arg0, %c0_i32 : i32, i32
  }
  func.func @transform_1(%arg0: i32, %arg1: i32) -> (i32, i32) {
    %c0_i32 = arith.constant 0 : i32
    %c0_i32_0 = arith.constant 0 : i32
    return %c0_i32, %arg1 : i32, i32
  }
  func.func @transform_2(%arg0: i32, %arg1: i32) -> (i32, i32) {
    %c0_i32 = arith.constant 0 : i32
    %c0_i32_0 = arith.constant 0 : i32
    return %c0_i32, %arg1 : i32, i32
  }
  func.func @transform_3(%arg0: i32, %arg1: i32) -> (i32, i32) {
    %c0_i32 = arith.constant 0 : i32
    return %arg0, %arg1 : i32, i32
  }
}

module attributes {stable_mosaic.version = 11 : i64} {
  func.func @_gemm_bias_act_kernel(%arg0: i32, %arg1: i32, %arg2: memref<512x128xbf16, #tpu.memory_space<vmem>>, %arg3: memref<128x128xbf16, #tpu.memory_space<vmem>>, %arg4: memref<1x128xf32, #tpu.memory_space<vmem>>, %arg5: memref<512x128xbf16, #tpu.memory_space<vmem>>) attributes {dimension_semantics = [#tpu.dimension_semantics<parallel>, #tpu.dimension_semantics<parallel>], iteration_bounds = array<i64: 1, 1>, scalar_prefetch = 0 : i64, scratch_operands = 0 : i64, tpu.core_type = #tpu.core_type<tc>, window_params = [{transform_indices = @transform_0, window_bounds = array<i64: 512, 128>}, {transform_indices = @transform_1, window_bounds = array<i64: 128, 128>}, {transform_indices = @transform_2, window_bounds = array<i64: 1, 128>}, {transform_indices = @transform_3, window_bounds = array<i64: 512, 128>}]} {
    %c0 = arith.constant 0 : index
    %c0_0 = arith.constant 0 : index
    %0 = vector.load %arg2[%c0, %c0_0] : memref<512x128xbf16, #tpu.memory_space<vmem>>, vector<512x128xbf16>
    %c0_1 = arith.constant 0 : index
    %c0_2 = arith.constant 0 : index
    %1 = vector.load %arg3[%c0_1, %c0_2] : memref<128x128xbf16, #tpu.memory_space<vmem>>, vector<128x128xbf16>
    %cst = arith.constant dense<0.000000e+00> : vector<512x128xf32>
    %2 = tpu.matmul %0, %1, %cst {dimension_numbers = #tpu.dot_dimension_numbers<[1], [0], [0], [1], [0, 0, 1, 1], [], []>} : vector<512x128xbf16>, vector<128x128xbf16>, vector<512x128xf32> -> vector<512x128xf32>
    %c0_3 = arith.constant 0 : index
    %c0_4 = arith.constant 0 : index
    %3 = vector.load %arg4[%c0_3, %c0_4] : memref<1x128xf32, #tpu.memory_space<vmem>>, vector<1x128xf32>
    %4 = vector.broadcast %3 : vector<1x128xf32> to vector<512x128xf32>
    %5 = arith.addf %2, %4 : vector<512x128xf32>
    %cst_5 = arith.constant 0.000000e+00 : f32
    %6 = vector.broadcast %cst_5 : f32 to vector<512x128xf32>
    %7 = arith.maximumf %5, %6 : vector<512x128xf32>
    %8 = arith.truncf %7 : vector<512x128xf32> to vector<512x128xbf16>
    %c0_6 = arith.constant 0 : index
    %c0_7 = arith.constant 0 : index
    %9 = vector.load %arg5[%c0_6, %c0_7] : memref<512x128xbf16, #tpu.memory_space<vmem>>, vector<512x128xbf16>
    tpu.vector_store %arg5[%c0_6, %c0_7], %8 {strides = array<i32>} : memref<512x128xbf16, #tpu.memory_space<vmem>>, vector<512x128xbf16>,
    return
  }
  func.func @transform_0(%arg0: i32, %arg1: i32) -> (i32, i32) {
    %c0_i32 = arith.constant 0 : i32
    %c0_i32_0 = arith.constant 0 : i32
    return %arg0, %c0_i32 : i32, i32
  }
  func.func @transform_1(%arg0: i32, %arg1: i32) -> (i32, i32) {
    %c0_i32 = arith.constant 0 : i32
    %c0_i32_0 = arith.constant 0 : i32
    return %c0_i32, %arg1 : i32, i32
  }
  func.func @transform_2(%arg0: i32, %arg1: i32) -> (i32, i32) {
    %c0_i32 = arith.constant 0 : i32
    %c0_i32_0 = arith.constant 0 : i32
    return %c0_i32, %arg1 : i32, i32
  }
  func.func @transform_3(%arg0: i32, %arg1: i32) -> (i32, i32) {
    %c0_i32 = arith.constant 0 : i32
    return %arg0, %arg1 : i32, i32
  }
}

module attributes {stable_mosaic.version = 11 : i64} {
  func.func @_gemm_bias_act_kernel(%arg0: i32, %arg1: i32, %arg2: memref<128x224xbf16, #tpu.memory_space<vmem>>, %arg3: memref<224x128xbf16, #tpu.memory_space<vmem>>, %arg4: memref<1x128xf32, #tpu.memory_space<vmem>>, %arg5: memref<128x128xbf16, #tpu.memory_space<vmem>>) attributes {dimension_semantics = [#tpu.dimension_semantics<parallel>, #tpu.dimension_semantics<parallel>], iteration_bounds = array<i64: 1, 1>, scalar_prefetch = 0 : i64, scratch_operands = 0 : i64, tpu.core_type = #tpu.core_type<tc>, window_params = [{transform_indices = @transform_0, window_bounds = array<i64: 128, 224>}, {transform_indices = @transform_1, window_bounds = array<i64: 224, 128>}, {transform_indices = @transform_2, window_bounds = array<i64: 1, 128>}, {transform_indices = @transform_3, window_bounds = array<i64: 128, 128>}]} {
    %c0 = arith.constant 0 : index
    %c0_0 = arith.constant 0 : index
    %0 = vector.load %arg2[%c0, %c0_0] : memref<128x224xbf16, #tpu.memory_space<vmem>>, vector<128x224xbf16>
    %c0_1 = arith.constant 0 : index
    %c0_2 = arith.constant 0 : index
    %1 = vector.load %arg3[%c0_1, %c0_2] : memref<224x128xbf16, #tpu.memory_space<vmem>>, vector<224x128xbf16>
    %cst = arith.constant dense<0.000000e+00> : vector<128x128xf32>
    %2 = tpu.matmul %0, %1, %cst {dimension_numbers = #tpu.dot_dimension_numbers<[1], [0], [0], [1], [0, 0, 1, 1], [], []>} : vector<128x224xbf16>, vector<224x128xbf16>, vector<128x128xf32> -> vector<128x128xf32>
    %c0_3 = arith.constant 0 : index
    %c0_4 = arith.constant 0 : index
    %3 = vector.load %arg4[%c0_3, %c0_4] : memref<1x128xf32, #tpu.memory_space<vmem>>, vector<1x128xf32>
    %4 = vector.broadcast %3 : vector<1x128xf32> to vector<128x128xf32>
    %5 = arith.addf %2, %4 : vector<128x128xf32>
    %cst_5 = arith.constant 0.000000e+00 : f32
    %6 = vector.broadcast %cst_5 : f32 to vector<128x128xf32>
    %7 = arith.maximumf %5, %6 : vector<128x128xf32>
    %8 = arith.truncf %7 : vector<128x128xf32> to vector<128x128xbf16>
    %c0_6 = arith.constant 0 : index
    %c0_7 = arith.constant 0 : index
    %9 = vector.load %arg5[%c0_6, %c0_7] : memref<128x128xbf16, #tpu.memory_space<vmem>>, vector<128x128xbf16>
    tpu.vector_store %arg5[%c0_6, %c0_7], %8 {strides = array<i32>} : memref<128x128xbf16, #tpu.memory_space<vmem>>, vector<128x128xbf16>,
    return
  }
  func.func @transform_0(%arg0: i32, %arg1: i32) -> (i32, i32) {
    %c0_i32 = arith.constant 0 : i32
    %c0_i32_0 = arith.constant 0 : i32
    return %arg0, %c0_i32 : i32, i32
  }
  func.func @transform_1(%arg0: i32, %arg1: i32) -> (i32, i32) {
    %c0_i32 = arith.constant 0 : i32
    %c0_i32_0 = arith.constant 0 : i32
    return %c0_i32, %arg1 : i32, i32
  }
  func.func @transform_2(%arg0: i32, %arg1: i32) -> (i32, i32) {
    %c0_i32 = arith.constant 0 : i32
    %c0_i32_0 = arith.constant 0 : i32
    return %c0_i32, %arg1 : i32, i32
  }
  func.func @transform_3(%arg0: i32, %arg1: i32) -> (i32, i32) {
    %c0_i32 = arith.constant 0 : i32
    return %arg0, %arg1 : i32, i32
  }
}

module attributes {stable_mosaic.version = 11 : i64} {
  func.func @_gemm_bias_act_kernel(%arg0: i32, %arg1: i32, %arg2: memref<128x96xbf16, #tpu.memory_space<vmem>>, %arg3: memref<96x128xbf16, #tpu.memory_space<vmem>>, %arg4: memref<1x128xf32, #tpu.memory_space<vmem>>, %arg5: memref<128x128xbf16, #tpu.memory_space<vmem>>) attributes {dimension_semantics = [#tpu.dimension_semantics<parallel>, #tpu.dimension_semantics<parallel>], iteration_bounds = array<i64: 1, 1>, scalar_prefetch = 0 : i64, scratch_operands = 0 : i64, tpu.core_type = #tpu.core_type<tc>, window_params = [{transform_indices = @transform_0, window_bounds = array<i64: 128, 96>}, {transform_indices = @transform_1, window_bounds = array<i64: 96, 128>}, {transform_indices = @transform_2, window_bounds = array<i64: 1, 128>}, {transform_indices = @transform_3, window_bounds = array<i64: 128, 128>}]} {
    %c0 = arith.constant 0 : index
    %c0_0 = arith.constant 0 : index
    %0 = vector.load %arg2[%c0, %c0_0] : memref<128x96xbf16, #tpu.memory_space<vmem>>, vector<128x96xbf16>
    %c0_1 = arith.constant 0 : index
    %c0_2 = arith.constant 0 : index
    %1 = vector.load %arg3[%c0_1, %c0_2] : memref<96x128xbf16, #tpu.memory_space<vmem>>, vector<96x128xbf16>
    %cst = arith.constant dense<0.000000e+00> : vector<128x128xf32>
    %2 = tpu.matmul %0, %1, %cst {dimension_numbers = #tpu.dot_dimension_numbers<[1], [0], [0], [1], [0, 0, 1, 1], [], []>} : vector<128x96xbf16>, vector<96x128xbf16>, vector<128x128xf32> -> vector<128x128xf32>
    %c0_3 = arith.constant 0 : index
    %c0_4 = arith.constant 0 : index
    %3 = vector.load %arg4[%c0_3, %c0_4] : memref<1x128xf32, #tpu.memory_space<vmem>>, vector<1x128xf32>
    %4 = vector.broadcast %3 : vector<1x128xf32> to vector<128x128xf32>
    %5 = arith.addf %2, %4 : vector<128x128xf32>
    %cst_5 = arith.constant 0.000000e+00 : f32
    %6 = vector.broadcast %cst_5 : f32 to vector<128x128xf32>
    %7 = arith.maximumf %5, %6 : vector<128x128xf32>
    %8 = arith.truncf %7 : vector<128x128xf32> to vector<128x128xbf16>
    %c0_6 = arith.constant 0 : index
    %c0_7 = arith.constant 0 : index
    %9 = vector.load %arg5[%c0_6, %c0_7] : memref<128x128xbf16, #tpu.memory_space<vmem>>, vector<128x128xbf16>
    tpu.vector_store %arg5[%c0_6, %c0_7], %8 {strides = array<i32>} : memref<128x128xbf16, #tpu.memory_space<vmem>>, vector<128x128xbf16>,
    return
  }
  func.func @transform_0(%arg0: i32, %arg1: i32) -> (i32, i32) {
    %c0_i32 = arith.constant 0 : i32
    %c0_i32_0 = arith.constant 0 : i32
    return %arg0, %c0_i32 : i32, i32
  }
  func.func @transform_1(%arg0: i32, %arg1: i32) -> (i32, i32) {
    %c0_i32 = arith.constant 0 : i32
    %c0_i32_0 = arith.constant 0 : i32
    return %c0_i32, %arg1 : i32, i32
  }
  func.func @transform_2(%arg0: i32, %arg1: i32) -> (i32, i32) {
    %c0_i32 = arith.constant 0 : i32
    %c0_i32_0 = arith.constant 0 : i32
    return %c0_i32, %arg1 : i32, i32
  }
  func.func @transform_3(%arg0: i32, %arg1: i32) -> (i32, i32) {
    %c0_i32 = arith.constant 0 : i32
    return %arg0, %arg1 : i32, i32
  }
}

module attributes {stable_mosaic.version = 11 : i64} {
  func.func @_gemm_bias_act_kernel(%arg0: i32, %arg1: i32, %arg2: memref<32x384xbf16, #tpu.memory_space<vmem>>, %arg3: memref<384x128xbf16, #tpu.memory_space<vmem>>, %arg4: memref<1x128xf32, #tpu.memory_space<vmem>>, %arg5: memref<32x128xbf16, #tpu.memory_space<vmem>>) attributes {dimension_semantics = [#tpu.dimension_semantics<parallel>, #tpu.dimension_semantics<parallel>], iteration_bounds = array<i64: 1, 1>, scalar_prefetch = 0 : i64, scratch_operands = 0 : i64, tpu.core_type = #tpu.core_type<tc>, window_params = [{transform_indices = @transform_0, window_bounds = array<i64: 32, 384>}, {transform_indices = @transform_1, window_bounds = array<i64: 384, 128>}, {transform_indices = @transform_2, window_bounds = array<i64: 1, 128>}, {transform_indices = @transform_3, window_bounds = array<i64: 32, 128>}]} {
    %c0 = arith.constant 0 : index
    %c0_0 = arith.constant 0 : index
    %0 = vector.load %arg2[%c0, %c0_0] : memref<32x384xbf16, #tpu.memory_space<vmem>>, vector<32x384xbf16>
    %c0_1 = arith.constant 0 : index
    %c0_2 = arith.constant 0 : index
    %1 = vector.load %arg3[%c0_1, %c0_2] : memref<384x128xbf16, #tpu.memory_space<vmem>>, vector<384x128xbf16>
    %cst = arith.constant dense<0.000000e+00> : vector<32x128xf32>
    %2 = tpu.matmul %0, %1, %cst {dimension_numbers = #tpu.dot_dimension_numbers<[1], [0], [0], [1], [0, 0, 1, 1], [], []>} : vector<32x384xbf16>, vector<384x128xbf16>, vector<32x128xf32> -> vector<32x128xf32>
    %c0_3 = arith.constant 0 : index
    %c0_4 = arith.constant 0 : index
    %3 = vector.load %arg4[%c0_3, %c0_4] : memref<1x128xf32, #tpu.memory_space<vmem>>, vector<1x128xf32>
    %4 = vector.broadcast %3 : vector<1x128xf32> to vector<32x128xf32>
    %5 = arith.addf %2, %4 : vector<32x128xf32>
    %cst_5 = arith.constant 0.000000e+00 : f32
    %6 = vector.broadcast %cst_5 : f32 to vector<32x128xf32>
    %7 = arith.maximumf %5, %6 : vector<32x128xf32>
    %8 = arith.truncf %7 : vector<32x128xf32> to vector<32x128xbf16>
    %c0_6 = arith.constant 0 : index
    %c0_7 = arith.constant 0 : index
    %9 = vector.load %arg5[%c0_6, %c0_7] : memref<32x128xbf16, #tpu.memory_space<vmem>>, vector<32x128xbf16>
    tpu.vector_store %arg5[%c0_6, %c0_7], %8 {strides = array<i32>} : memref<32x128xbf16, #tpu.memory_space<vmem>>, vector<32x128xbf16>,
    return
  }
  func.func @transform_0(%arg0: i32, %arg1: i32) -> (i32, i32) {
    %c0_i32 = arith.constant 0 : i32
    %c0_i32_0 = arith.constant 0 : i32
    return %arg0, %c0_i32 : i32, i32
  }
  func.func @transform_1(%arg0: i32, %arg1: i32) -> (i32, i32) {
    %c0_i32 = arith.constant 0 : i32
    %c0_i32_0 = arith.constant 0 : i32
    return %c0_i32, %arg1 : i32, i32
  }
  func.func @transform_2(%arg0: i32, %arg1: i32) -> (i32, i32) {
    %c0_i32 = arith.constant 0 : i32
    %c0_i32_0 = arith.constant 0 : i32
    return %c0_i32, %arg1 : i32, i32
  }
  func.func @transform_3(%arg0: i32, %arg1: i32) -> (i32, i32) {
    %c0_i32 = arith.constant 0 : i32
    return %arg0, %arg1 : i32, i32
  }
}

module attributes {stable_mosaic.version = 11 : i64} {
  func.func @_gemm_bias_act_kernel(%arg0: i32, %arg1: i32, %arg2: memref<16x1152xbf16, #tpu.memory_space<vmem>>, %arg3: memref<1152x128xbf16, #tpu.memory_space<vmem>>, %arg4: memref<1x128xf32, #tpu.memory_space<vmem>>, %arg5: memref<16x128xbf16, #tpu.memory_space<vmem>>) attributes {dimension_semantics = [#tpu.dimension_semantics<parallel>, #tpu.dimension_semantics<parallel>], iteration_bounds = array<i64: 1, 1>, scalar_prefetch = 0 : i64, scratch_operands = 0 : i64, tpu.core_type = #tpu.core_type<tc>, window_params = [{transform_indices = @transform_0, window_bounds = array<i64: 16, 1152>}, {transform_indices = @transform_1, window_bounds = array<i64: 1152, 128>}, {transform_indices = @transform_2, window_bounds = array<i64: 1, 128>}, {transform_indices = @transform_3, window_bounds = array<i64: 16, 128>}]} {
    %c0 = arith.constant 0 : index
    %c0_0 = arith.constant 0 : index
    %0 = vector.load %arg2[%c0, %c0_0] : memref<16x1152xbf16, #tpu.memory_space<vmem>>, vector<16x1152xbf16>
    %c0_1 = arith.constant 0 : index
    %c0_2 = arith.constant 0 : index
    %1 = vector.load %arg3[%c0_1, %c0_2] : memref<1152x128xbf16, #tpu.memory_space<vmem>>, vector<1152x128xbf16>
    %cst = arith.constant dense<0.000000e+00> : vector<16x128xf32>
    %2 = tpu.matmul %0, %1, %cst {dimension_numbers = #tpu.dot_dimension_numbers<[1], [0], [0], [1], [0, 0, 1, 1], [], []>} : vector<16x1152xbf16>, vector<1152x128xbf16>, vector<16x128xf32> -> vector<16x128xf32>
    %c0_3 = arith.constant 0 : index
    %c0_4 = arith.constant 0 : index
    %3 = vector.load %arg4[%c0_3, %c0_4] : memref<1x128xf32, #tpu.memory_space<vmem>>, vector<1x128xf32>
    %4 = vector.broadcast %3 : vector<1x128xf32> to vector<16x128xf32>
    %5 = arith.addf %2, %4 : vector<16x128xf32>
    %cst_5 = arith.constant 0.000000e+00 : f32
    %6 = vector.broadcast %cst_5 : f32 to vector<16x128xf32>
    %7 = arith.maximumf %5, %6 : vector<16x128xf32>
    %8 = arith.truncf %7 : vector<16x128xf32> to vector<16x128xbf16>
    %c0_6 = arith.constant 0 : index
    %c0_7 = arith.constant 0 : index
    %9 = vector.load %arg5[%c0_6, %c0_7] : memref<16x128xbf16, #tpu.memory_space<vmem>>, vector<16x128xbf16>
    tpu.vector_store %arg5[%c0_6, %c0_7], %8 {strides = array<i32>} : memref<16x128xbf16, #tpu.memory_space<vmem>>, vector<16x128xbf16>,
    return
  }
  func.func @transform_0(%arg0: i32, %arg1: i32) -> (i32, i32) {
    %c0_i32 = arith.constant 0 : i32
    %c0_i32_0 = arith.constant 0 : i32
    return %arg0, %c0_i32 : i32, i32
  }
  func.func @transform_1(%arg0: i32, %arg1: i32) -> (i32, i32) {
    %c0_i32 = arith.constant 0 : i32
    %c0_i32_0 = arith.constant 0 : i32
    return %c0_i32, %arg1 : i32, i32
  }
  func.func @transform_2(%arg0: i32, %arg1: i32) -> (i32, i32) {
    %c0_i32 = arith.constant 0 : i32
    %c0_i32_0 = arith.constant 0 : i32
    return %c0_i32, %arg1 : i32, i32
  }
  func.func @transform_3(%arg0: i32, %arg1: i32) -> (i32, i32) {
    %c0_i32 = arith.constant 0 : i32
    return %arg0, %arg1 : i32, i32
  }
}

module attributes {stable_mosaic.version = 11 : i64} {
  func.func @_gemm_bias_act_kernel(%arg0: i32, %arg1: i32, %arg2: memref<16x128xbf16, #tpu.memory_space<vmem>>, %arg3: memref<128x128xbf16, #tpu.memory_space<vmem>>, %arg4: memref<1x128xf32, #tpu.memory_space<vmem>>, %arg5: memref<16x128xf32, #tpu.memory_space<vmem>>) attributes {dimension_semantics = [#tpu.dimension_semantics<parallel>, #tpu.dimension_semantics<parallel>], iteration_bounds = array<i64: 1, 1>, scalar_prefetch = 0 : i64, scratch_operands = 0 : i64, tpu.core_type = #tpu.core_type<tc>, window_params = [{transform_indices = @transform_0, window_bounds = array<i64: 16, 128>}, {transform_indices = @transform_1, window_bounds = array<i64: 128, 128>}, {transform_indices = @transform_2, window_bounds = array<i64: 1, 128>}, {transform_indices = @transform_3, window_bounds = array<i64: 16, 128>}]} {
    %c0 = arith.constant 0 : index
    %c0_0 = arith.constant 0 : index
    %0 = vector.load %arg2[%c0, %c0_0] : memref<16x128xbf16, #tpu.memory_space<vmem>>, vector<16x128xbf16>
    %c0_1 = arith.constant 0 : index
    %c0_2 = arith.constant 0 : index
    %1 = vector.load %arg3[%c0_1, %c0_2] : memref<128x128xbf16, #tpu.memory_space<vmem>>, vector<128x128xbf16>
    %cst = arith.constant dense<0.000000e+00> : vector<16x128xf32>
    %2 = tpu.matmul %0, %1, %cst {dimension_numbers = #tpu.dot_dimension_numbers<[1], [0], [0], [1], [0, 0, 1, 1], [], []>} : vector<16x128xbf16>, vector<128x128xbf16>, vector<16x128xf32> -> vector<16x128xf32>
    %c0_3 = arith.constant 0 : index
    %c0_4 = arith.constant 0 : index
    %3 = vector.load %arg4[%c0_3, %c0_4] : memref<1x128xf32, #tpu.memory_space<vmem>>, vector<1x128xf32>
    %4 = vector.broadcast %3 : vector<1x128xf32> to vector<16x128xf32>
    %5 = arith.addf %2, %4 : vector<16x128xf32>
    %c0_5 = arith.constant 0 : index
    %c0_6 = arith.constant 0 : index
    %6 = vector.load %arg5[%c0_5, %c0_6] : memref<16x128xf32, #tpu.memory_space<vmem>>, vector<16x128xf32>
    tpu.vector_store %arg5[%c0_5, %c0_6], %5 {strides = array<i32>} : memref<16x128xf32, #tpu.memory_space<vmem>>, vector<16x128xf32>,
    return
  }
  func.func @transform_0(%arg0: i32, %arg1: i32) -> (i32, i32) {
    %c0_i32 = arith.constant 0 : i32
    %c0_i32_0 = arith.constant 0 : i32
    return %arg0, %c0_i32 : i32, i32
  }
  func.func @transform_1(%arg0: i32, %arg1: i32) -> (i32, i32) {
    %c0_i32 = arith.constant 0 : i32
    %c0_i32_0 = arith.constant 0 : i32
    return %c0_i32, %arg1 : i32, i32
  }
  func.func @transform_2(%arg0: i32, %arg1: i32) -> (i32, i32) {
    %c0_i32 = arith.constant 0 : i32
    %c0_i32_0 = arith.constant 0 : i32
    return %c0_i32, %arg1 : i32, i32
  }
  func.func @transform_3(%arg0: i32, %arg1: i32) -> (i32, i32) {
    %c0_i32 = arith.constant 0 : i32
    return %arg0, %arg1 : i32, i32
  }
}

module attributes {stable_mosaic.version = 11 : i64} {
  func.func @_gemm_bias_act_kernel(%arg0: i32, %arg1: i32, %arg2: memref<32x128xbf16, #tpu.memory_space<vmem>>, %arg3: memref<128x128xbf16, #tpu.memory_space<vmem>>, %arg4: memref<1x128xf32, #tpu.memory_space<vmem>>, %arg5: memref<32x128xbf16, #tpu.memory_space<vmem>>) attributes {dimension_semantics = [#tpu.dimension_semantics<parallel>, #tpu.dimension_semantics<parallel>], iteration_bounds = array<i64: 1, 1>, scalar_prefetch = 0 : i64, scratch_operands = 0 : i64, tpu.core_type = #tpu.core_type<tc>, window_params = [{transform_indices = @transform_0, window_bounds = array<i64: 32, 128>}, {transform_indices = @transform_1, window_bounds = array<i64: 128, 128>}, {transform_indices = @transform_2, window_bounds = array<i64: 1, 128>}, {transform_indices = @transform_3, window_bounds = array<i64: 32, 128>}]} {
    %c0 = arith.constant 0 : index
    %c0_0 = arith.constant 0 : index
    %0 = vector.load %arg2[%c0, %c0_0] : memref<32x128xbf16, #tpu.memory_space<vmem>>, vector<32x128xbf16>
    %c0_1 = arith.constant 0 : index
    %c0_2 = arith.constant 0 : index
    %1 = vector.load %arg3[%c0_1, %c0_2] : memref<128x128xbf16, #tpu.memory_space<vmem>>, vector<128x128xbf16>
    %cst = arith.constant dense<0.000000e+00> : vector<32x128xf32>
    %2 = tpu.matmul %0, %1, %cst {dimension_numbers = #tpu.dot_dimension_numbers<[1], [0], [0], [1], [0, 0, 1, 1], [], []>} : vector<32x128xbf16>, vector<128x128xbf16>, vector<32x128xf32> -> vector<32x128xf32>
    %c0_3 = arith.constant 0 : index
    %c0_4 = arith.constant 0 : index
    %3 = vector.load %arg4[%c0_3, %c0_4] : memref<1x128xf32, #tpu.memory_space<vmem>>, vector<1x128xf32>
    %4 = vector.broadcast %3 : vector<1x128xf32> to vector<32x128xf32>
    %5 = arith.addf %2, %4 : vector<32x128xf32>
    %cst_5 = arith.constant 0.000000e+00 : f32
    %6 = vector.broadcast %cst_5 : f32 to vector<32x128xf32>
    %7 = arith.maximumf %5, %6 : vector<32x128xf32>
    %8 = arith.truncf %7 : vector<32x128xf32> to vector<32x128xbf16>
    %c0_6 = arith.constant 0 : index
    %c0_7 = arith.constant 0 : index
    %9 = vector.load %arg5[%c0_6, %c0_7] : memref<32x128xbf16, #tpu.memory_space<vmem>>, vector<32x128xbf16>
    tpu.vector_store %arg5[%c0_6, %c0_7], %8 {strides = array<i32>} : memref<32x128xbf16, #tpu.memory_space<vmem>>, vector<32x128xbf16>,
    return
  }
  func.func @transform_0(%arg0: i32, %arg1: i32) -> (i32, i32) {
    %c0_i32 = arith.constant 0 : i32
    %c0_i32_0 = arith.constant 0 : i32
    return %arg0, %c0_i32 : i32, i32
  }
  func.func @transform_1(%arg0: i32, %arg1: i32) -> (i32, i32) {
    %c0_i32 = arith.constant 0 : i32
    %c0_i32_0 = arith.constant 0 : i32
    return %c0_i32, %arg1 : i32, i32
  }
  func.func @transform_2(%arg0: i32, %arg1: i32) -> (i32, i32) {
    %c0_i32 = arith.constant 0 : i32
    %c0_i32_0 = arith.constant 0 : i32
    return %c0_i32, %arg1 : i32, i32
  }
  func.func @transform_3(%arg0: i32, %arg1: i32) -> (i32, i32) {
    %c0_i32 = arith.constant 0 : i32
    return %arg0, %arg1 : i32, i32
  }
}

module attributes {stable_mosaic.version = 11 : i64} {
  func.func @_gemm_bias_act_kernel(%arg0: i32, %arg1: i32, %arg2: memref<32x896xbf16, #tpu.memory_space<vmem>>, %arg3: memref<896x128xbf16, #tpu.memory_space<vmem>>, %arg4: memref<1x128xf32, #tpu.memory_space<vmem>>, %arg5: memref<32x128xbf16, #tpu.memory_space<vmem>>) attributes {dimension_semantics = [#tpu.dimension_semantics<parallel>, #tpu.dimension_semantics<parallel>], iteration_bounds = array<i64: 1, 1>, scalar_prefetch = 0 : i64, scratch_operands = 0 : i64, tpu.core_type = #tpu.core_type<tc>, window_params = [{transform_indices = @transform_0, window_bounds = array<i64: 32, 896>}, {transform_indices = @transform_1, window_bounds = array<i64: 896, 128>}, {transform_indices = @transform_2, window_bounds = array<i64: 1, 128>}, {transform_indices = @transform_3, window_bounds = array<i64: 32, 128>}]} {
    %c0 = arith.constant 0 : index
    %c0_0 = arith.constant 0 : index
    %0 = vector.load %arg2[%c0, %c0_0] : memref<32x896xbf16, #tpu.memory_space<vmem>>, vector<32x896xbf16>
    %c0_1 = arith.constant 0 : index
    %c0_2 = arith.constant 0 : index
    %1 = vector.load %arg3[%c0_1, %c0_2] : memref<896x128xbf16, #tpu.memory_space<vmem>>, vector<896x128xbf16>
    %cst = arith.constant dense<0.000000e+00> : vector<32x128xf32>
    %2 = tpu.matmul %0, %1, %cst {dimension_numbers = #tpu.dot_dimension_numbers<[1], [0], [0], [1], [0, 0, 1, 1], [], []>} : vector<32x896xbf16>, vector<896x128xbf16>, vector<32x128xf32> -> vector<32x128xf32>
    %c0_3 = arith.constant 0 : index
    %c0_4 = arith.constant 0 : index
    %3 = vector.load %arg4[%c0_3, %c0_4] : memref<1x128xf32, #tpu.memory_space<vmem>>, vector<1x128xf32>
    %4 = vector.broadcast %3 : vector<1x128xf32> to vector<32x128xf32>
    %5 = arith.addf %2, %4 : vector<32x128xf32>
    %cst_5 = arith.constant 0.000000e+00 : f32
    %6 = vector.broadcast %cst_5 : f32 to vector<32x128xf32>
    %7 = arith.maximumf %5, %6 : vector<32x128xf32>
    %8 = arith.truncf %7 : vector<32x128xf32> to vector<32x128xbf16>
    %c0_6 = arith.constant 0 : index
    %c0_7 = arith.constant 0 : index
    %9 = vector.load %arg5[%c0_6, %c0_7] : memref<32x128xbf16, #tpu.memory_space<vmem>>, vector<32x128xbf16>
    tpu.vector_store %arg5[%c0_6, %c0_7], %8 {strides = array<i32>} : memref<32x128xbf16, #tpu.memory_space<vmem>>, vector<32x128xbf16>,
    return
  }
  func.func @transform_0(%arg0: i32, %arg1: i32) -> (i32, i32) {
    %c0_i32 = arith.constant 0 : i32
    %c0_i32_0 = arith.constant 0 : i32
    return %arg0, %c0_i32 : i32, i32
  }
  func.func @transform_1(%arg0: i32, %arg1: i32) -> (i32, i32) {
    %c0_i32 = arith.constant 0 : i32
    %c0_i32_0 = arith.constant 0 : i32
    return %c0_i32, %arg1 : i32, i32
  }
  func.func @transform_2(%arg0: i32, %arg1: i32) -> (i32, i32) {
    %c0_i32 = arith.constant 0 : i32
    %c0_i32_0 = arith.constant 0 : i32
    return %c0_i32, %arg1 : i32, i32
  }
  func.func @transform_3(%arg0: i32, %arg1: i32) -> (i32, i32) {
    %c0_i32 = arith.constant 0 : i32
    return %arg0, %arg1 : i32, i32
  }
}

module attributes {stable_mosaic.version = 11 : i64} {
  func.func @_gemm_bias_act_kernel(%arg0: i32, %arg1: i32, %arg2: memref<32x288xbf16, #tpu.memory_space<vmem>>, %arg3: memref<288x128xbf16, #tpu.memory_space<vmem>>, %arg4: memref<1x128xf32, #tpu.memory_space<vmem>>, %arg5: memref<32x128xbf16, #tpu.memory_space<vmem>>) attributes {dimension_semantics = [#tpu.dimension_semantics<parallel>, #tpu.dimension_semantics<parallel>], iteration_bounds = array<i64: 1, 1>, scalar_prefetch = 0 : i64, scratch_operands = 0 : i64, tpu.core_type = #tpu.core_type<tc>, window_params = [{transform_indices = @transform_0, window_bounds = array<i64: 32, 288>}, {transform_indices = @transform_1, window_bounds = array<i64: 288, 128>}, {transform_indices = @transform_2, window_bounds = array<i64: 1, 128>}, {transform_indices = @transform_3, window_bounds = array<i64: 32, 128>}]} {
    %c0 = arith.constant 0 : index
    %c0_0 = arith.constant 0 : index
    %0 = vector.load %arg2[%c0, %c0_0] : memref<32x288xbf16, #tpu.memory_space<vmem>>, vector<32x288xbf16>
    %c0_1 = arith.constant 0 : index
    %c0_2 = arith.constant 0 : index
    %1 = vector.load %arg3[%c0_1, %c0_2] : memref<288x128xbf16, #tpu.memory_space<vmem>>, vector<288x128xbf16>
    %cst = arith.constant dense<0.000000e+00> : vector<32x128xf32>
    %2 = tpu.matmul %0, %1, %cst {dimension_numbers = #tpu.dot_dimension_numbers<[1], [0], [0], [1], [0, 0, 1, 1], [], []>} : vector<32x288xbf16>, vector<288x128xbf16>, vector<32x128xf32> -> vector<32x128xf32>
    %c0_3 = arith.constant 0 : index
    %c0_4 = arith.constant 0 : index
    %3 = vector.load %arg4[%c0_3, %c0_4] : memref<1x128xf32, #tpu.memory_space<vmem>>, vector<1x128xf32>
    %4 = vector.broadcast %3 : vector<1x128xf32> to vector<32x128xf32>
    %5 = arith.addf %2, %4 : vector<32x128xf32>
    %cst_5 = arith.constant 0.000000e+00 : f32
    %6 = vector.broadcast %cst_5 : f32 to vector<32x128xf32>
    %7 = arith.maximumf %5, %6 : vector<32x128xf32>
    %8 = arith.truncf %7 : vector<32x128xf32> to vector<32x128xbf16>
    %c0_6 = arith.constant 0 : index
    %c0_7 = arith.constant 0 : index
    %9 = vector.load %arg5[%c0_6, %c0_7] : memref<32x128xbf16, #tpu.memory_space<vmem>>, vector<32x128xbf16>
    tpu.vector_store %arg5[%c0_6, %c0_7], %8 {strides = array<i32>} : memref<32x128xbf16, #tpu.memory_space<vmem>>, vector<32x128xbf16>,
    return
  }
  func.func @transform_0(%arg0: i32, %arg1: i32) -> (i32, i32) {
    %c0_i32 = arith.constant 0 : i32
    %c0_i32_0 = arith.constant 0 : i32
    return %arg0, %c0_i32 : i32, i32
  }
  func.func @transform_1(%arg0: i32, %arg1: i32) -> (i32, i32) {
    %c0_i32 = arith.constant 0 : i32
    %c0_i32_0 = arith.constant 0 : i32
    return %c0_i32, %arg1 : i32, i32
  }
  func.func @transform_2(%arg0: i32, %arg1: i32) -> (i32, i32) {
    %c0_i32 = arith.constant 0 : i32
    %c0_i32_0 = arith.constant 0 : i32
    return %c0_i32, %arg1 : i32, i32
  }
  func.func @transform_3(%arg0: i32, %arg1: i32) -> (i32, i32) {
    %c0_i32 = arith.constant 0 : i32
    return %arg0, %arg1 : i32, i32
  }
}

module attributes {stable_mosaic.version = 11 : i64} {
  func.func @_gemm_bias_act_kernel(%arg0: i32, %arg1: i32, %arg2: memref<32x32xbf16, #tpu.memory_space<vmem>>, %arg3: memref<32x128xbf16, #tpu.memory_space<vmem>>, %arg4: memref<1x128xf32, #tpu.memory_space<vmem>>, %arg5: memref<32x128xbf16, #tpu.memory_space<vmem>>) attributes {dimension_semantics = [#tpu.dimension_semantics<parallel>, #tpu.dimension_semantics<parallel>], iteration_bounds = array<i64: 1, 1>, scalar_prefetch = 0 : i64, scratch_operands = 0 : i64, tpu.core_type = #tpu.core_type<tc>, window_params = [{transform_indices = @transform_0, window_bounds = array<i64: 32, 32>}, {transform_indices = @transform_1, window_bounds = array<i64: 32, 128>}, {transform_indices = @transform_2, window_bounds = array<i64: 1, 128>}, {transform_indices = @transform_3, window_bounds = array<i64: 32, 128>}]} {
    %c0 = arith.constant 0 : index
    %c0_0 = arith.constant 0 : index
    %0 = vector.load %arg2[%c0, %c0_0] : memref<32x32xbf16, #tpu.memory_space<vmem>>, vector<32x32xbf16>
    %c0_1 = arith.constant 0 : index
    %c0_2 = arith.constant 0 : index
    %1 = vector.load %arg3[%c0_1, %c0_2] : memref<32x128xbf16, #tpu.memory_space<vmem>>, vector<32x128xbf16>
    %cst = arith.constant dense<0.000000e+00> : vector<32x128xf32>
    %2 = tpu.matmul %0, %1, %cst {dimension_numbers = #tpu.dot_dimension_numbers<[1], [0], [0], [1], [0, 0, 1, 1], [], []>} : vector<32x32xbf16>, vector<32x128xbf16>, vector<32x128xf32> -> vector<32x128xf32>
    %c0_3 = arith.constant 0 : index
    %c0_4 = arith.constant 0 : index
    %3 = vector.load %arg4[%c0_3, %c0_4] : memref<1x128xf32, #tpu.memory_space<vmem>>, vector<1x128xf32>
    %4 = vector.broadcast %3 : vector<1x128xf32> to vector<32x128xf32>
    %5 = arith.addf %2, %4 : vector<32x128xf32>
    %6 = arith.truncf %5 : vector<32x128xf32> to vector<32x128xbf16>
    %c0_5 = arith.constant 0 : index
    %c0_6 = arith.constant 0 : index
    %7 = vector.load %arg5[%c0_5, %c0_6] : memref<32x128xbf16, #tpu.memory_space<vmem>>, vector<32x128xbf16>
    tpu.vector_store %arg5[%c0_5, %c0_6], %6 {strides = array<i32>} : memref<32x128xbf16, #tpu.memory_space<vmem>>, vector<32x128xbf16>,
    return
  }
  func.func @transform_0(%arg0: i32, %arg1: i32) -> (i32, i32) {
    %c0_i32 = arith.constant 0 : i32
    %c0_i32_0 = arith.constant 0 : i32
    return %arg0, %c0_i32 : i32, i32
  }
  func.func @transform_1(%arg0: i32, %arg1: i32) -> (i32, i32) {
    %c0_i32 = arith.constant 0 : i32
    %c0_i32_0 = arith.constant 0 : i32
    return %c0_i32, %arg1 : i32, i32
  }
  func.func @transform_2(%arg0: i32, %arg1: i32) -> (i32, i32) {
    %c0_i32 = arith.constant 0 : i32
    %c0_i32_0 = arith.constant 0 : i32
    return %c0_i32, %arg1 : i32, i32
  }
  func.func @transform_3(%arg0: i32, %arg1: i32) -> (i32, i32) {
    %c0_i32 = arith.constant 0 : i32
    return %arg0, %arg1 : i32, i32
  }
}

module attributes {stable_mosaic.version = 11 : i64} {
  func.func @_gemm_bias_act_kernel(%arg0: i32, %arg1: i32, %arg2: memref<16x32xbf16, #tpu.memory_space<vmem>>, %arg3: memref<32x128xbf16, #tpu.memory_space<vmem>>, %arg4: memref<1x128xf32, #tpu.memory_space<vmem>>, %arg5: memref<16x128xf32, #tpu.memory_space<vmem>>) attributes {dimension_semantics = [#tpu.dimension_semantics<parallel>, #tpu.dimension_semantics<parallel>], iteration_bounds = array<i64: 1, 1>, scalar_prefetch = 0 : i64, scratch_operands = 0 : i64, tpu.core_type = #tpu.core_type<tc>, window_params = [{transform_indices = @transform_0, window_bounds = array<i64: 16, 32>}, {transform_indices = @transform_1, window_bounds = array<i64: 32, 128>}, {transform_indices = @transform_2, window_bounds = array<i64: 1, 128>}, {transform_indices = @transform_3, window_bounds = array<i64: 16, 128>}]} {
    %c0 = arith.constant 0 : index
    %c0_0 = arith.constant 0 : index
    %0 = vector.load %arg2[%c0, %c0_0] : memref<16x32xbf16, #tpu.memory_space<vmem>>, vector<16x32xbf16>
    %c0_1 = arith.constant 0 : index
    %c0_2 = arith.constant 0 : index
    %1 = vector.load %arg3[%c0_1, %c0_2] : memref<32x128xbf16, #tpu.memory_space<vmem>>, vector<32x128xbf16>
    %cst = arith.constant dense<0.000000e+00> : vector<16x128xf32>
    %2 = tpu.matmul %0, %1, %cst {dimension_numbers = #tpu.dot_dimension_numbers<[1], [0], [0], [1], [0, 0, 1, 1], [], []>} : vector<16x32xbf16>, vector<32x128xbf16>, vector<16x128xf32> -> vector<16x128xf32>
    %c0_3 = arith.constant 0 : index
    %c0_4 = arith.constant 0 : index
    %3 = vector.load %arg4[%c0_3, %c0_4] : memref<1x128xf32, #tpu.memory_space<vmem>>, vector<1x128xf32>
    %4 = vector.broadcast %3 : vector<1x128xf32> to vector<16x128xf32>
    %5 = arith.addf %2, %4 : vector<16x128xf32>
    %c0_5 = arith.constant 0 : index
    %c0_6 = arith.constant 0 : index
    %6 = vector.load %arg5[%c0_5, %c0_6] : memref<16x128xf32, #tpu.memory_space<vmem>>, vector<16x128xf32>
    tpu.vector_store %arg5[%c0_5, %c0_6], %5 {strides = array<i32>} : memref<16x128xf32, #tpu.memory_space<vmem>>, vector<16x128xf32>,
    return
  }
  func.func @transform_0(%arg0: i32, %arg1: i32) -> (i32, i32) {
    %c0_i32 = arith.constant 0 : i32
    %c0_i32_0 = arith.constant 0 : i32
    return %arg0, %c0_i32 : i32, i32
  }
  func.func @transform_1(%arg0: i32, %arg1: i32) -> (i32, i32) {
    %c0_i32 = arith.constant 0 : i32
    %c0_i32_0 = arith.constant 0 : i32
    return %c0_i32, %arg1 : i32, i32
  }
  func.func @transform_2(%arg0: i32, %arg1: i32) -> (i32, i32) {
    %c0_i32 = arith.constant 0 : i32
    %c0_i32_0 = arith.constant 0 : i32
    return %c0_i32, %arg1 : i32, i32
  }
  func.func @transform_3(%arg0: i32, %arg1: i32) -> (i32, i32) {
    %c0_i32 = arith.constant 0 : i32
    return %arg0, %arg1 : i32, i32
  }
}

module attributes {stable_mosaic.version = 11 : i64} {
  func.func @_gemm_bias_act_kernel(%arg0: i32, %arg1: i32, %arg2: memref<16x128xbf16, #tpu.memory_space<vmem>>, %arg3: memref<128x128xbf16, #tpu.memory_space<vmem>>, %arg4: memref<1x128xf32, #tpu.memory_space<vmem>>, %arg5: memref<16x128xf32, #tpu.memory_space<vmem>>) attributes {dimension_semantics = [#tpu.dimension_semantics<parallel>, #tpu.dimension_semantics<parallel>], iteration_bounds = array<i64: 1, 1>, scalar_prefetch = 0 : i64, scratch_operands = 0 : i64, tpu.core_type = #tpu.core_type<tc>, window_params = [{transform_indices = @transform_0, window_bounds = array<i64: 16, 128>}, {transform_indices = @transform_1, window_bounds = array<i64: 128, 128>}, {transform_indices = @transform_2, window_bounds = array<i64: 1, 128>}, {transform_indices = @transform_3, window_bounds = array<i64: 16, 128>}]} {
    %c0 = arith.constant 0 : index
    %c0_0 = arith.constant 0 : index
    %0 = vector.load %arg2[%c0, %c0_0] : memref<16x128xbf16, #tpu.memory_space<vmem>>, vector<16x128xbf16>
    %c0_1 = arith.constant 0 : index
    %c0_2 = arith.constant 0 : index
    %1 = vector.load %arg3[%c0_1, %c0_2] : memref<128x128xbf16, #tpu.memory_space<vmem>>, vector<128x128xbf16>
    %cst = arith.constant dense<0.000000e+00> : vector<16x128xf32>
    %2 = tpu.matmul %0, %1, %cst {dimension_numbers = #tpu.dot_dimension_numbers<[1], [0], [0], [1], [0, 0, 1, 1], [], []>} : vector<16x128xbf16>, vector<128x128xbf16>, vector<16x128xf32> -> vector<16x128xf32>
    %c0_3 = arith.constant 0 : index
    %c0_4 = arith.constant 0 : index
    %3 = vector.load %arg4[%c0_3, %c0_4] : memref<1x128xf32, #tpu.memory_space<vmem>>, vector<1x128xf32>
    %4 = vector.broadcast %3 : vector<1x128xf32> to vector<16x128xf32>
    %5 = arith.addf %2, %4 : vector<16x128xf32>
    %cst_5 = arith.constant 0.000000e+00 : f32
    %6 = vector.broadcast %cst_5 : f32 to vector<16x128xf32>
    %7 = arith.maximumf %5, %6 : vector<16x128xf32>
    %c0_6 = arith.constant 0 : index
    %c0_7 = arith.constant 0 : index
    %8 = vector.load %arg5[%c0_6, %c0_7] : memref<16x128xf32, #tpu.memory_space<vmem>>, vector<16x128xf32>
    tpu.vector_store %arg5[%c0_6, %c0_7], %7 {strides = array<i32>} : memref<16x128xf32, #tpu.memory_space<vmem>>, vector<16x128xf32>,
    return
  }
  func.func @transform_0(%arg0: i32, %arg1: i32) -> (i32, i32) {
    %c0_i32 = arith.constant 0 : i32
    %c0_i32_0 = arith.constant 0 : i32
    return %arg0, %c0_i32 : i32, i32
  }
  func.func @transform_1(%arg0: i32, %arg1: i32) -> (i32, i32) {
    %c0_i32 = arith.constant 0 : i32
    %c0_i32_0 = arith.constant 0 : i32
    return %c0_i32, %arg1 : i32, i32
  }
  func.func @transform_2(%arg0: i32, %arg1: i32) -> (i32, i32) {
    %c0_i32 = arith.constant 0 : i32
    %c0_i32_0 = arith.constant 0 : i32
    return %c0_i32, %arg1 : i32, i32
  }
  func.func @transform_3(%arg0: i32, %arg1: i32) -> (i32, i32) {
    %c0_i32 = arith.constant 0 : i32
    return %arg0, %arg1 : i32, i32
  }
}

module attributes {stable_mosaic.version = 11 : i64} {
  func.func @_gemm_bias_act_kernel(%arg0: i32, %arg1: i32, %arg2: memref<32x128xbf16, #tpu.memory_space<vmem>>, %arg3: memref<128x128xbf16, #tpu.memory_space<vmem>>, %arg4: memref<1x128xf32, #tpu.memory_space<vmem>>, %arg5: memref<32x128xbf16, #tpu.memory_space<vmem>>) attributes {dimension_semantics = [#tpu.dimension_semantics<parallel>, #tpu.dimension_semantics<parallel>], iteration_bounds = array<i64: 1, 1>, scalar_prefetch = 0 : i64, scratch_operands = 0 : i64, tpu.core_type = #tpu.core_type<tc>, window_params = [{transform_indices = @transform_0, window_bounds = array<i64: 32, 128>}, {transform_indices = @transform_1, window_bounds = array<i64: 128, 128>}, {transform_indices = @transform_2, window_bounds = array<i64: 1, 128>}, {transform_indices = @transform_3, window_bounds = array<i64: 32, 128>}]} {
    %c0 = arith.constant 0 : index
    %c0_0 = arith.constant 0 : index
    %0 = vector.load %arg2[%c0, %c0_0] : memref<32x128xbf16, #tpu.memory_space<vmem>>, vector<32x128xbf16>
    %c0_1 = arith.constant 0 : index
    %c0_2 = arith.constant 0 : index
    %1 = vector.load %arg3[%c0_1, %c0_2] : memref<128x128xbf16, #tpu.memory_space<vmem>>, vector<128x128xbf16>
    %cst = arith.constant dense<0.000000e+00> : vector<32x128xf32>
    %2 = tpu.matmul %0, %1, %cst {dimension_numbers = #tpu.dot_dimension_numbers<[1], [0], [0], [1], [0, 0, 1, 1], [], []>} : vector<32x128xbf16>, vector<128x128xbf16>, vector<32x128xf32> -> vector<32x128xf32>
    %c0_3 = arith.constant 0 : index
    %c0_4 = arith.constant 0 : index
    %3 = vector.load %arg4[%c0_3, %c0_4] : memref<1x128xf32, #tpu.memory_space<vmem>>, vector<1x128xf32>
    %4 = vector.broadcast %3 : vector<1x128xf32> to vector<32x128xf32>
    %5 = arith.addf %2, %4 : vector<32x128xf32>
    %6 = arith.truncf %5 : vector<32x128xf32> to vector<32x128xbf16>
    %c0_5 = arith.constant 0 : index
    %c0_6 = arith.constant 0 : index
    %7 = vector.load %arg5[%c0_5, %c0_6] : memref<32x128xbf16, #tpu.memory_space<vmem>>, vector<32x128xbf16>
    tpu.vector_store %arg5[%c0_5, %c0_6], %6 {strides = array<i32>} : memref<32x128xbf16, #tpu.memory_space<vmem>>, vector<32x128xbf16>,
    return
  }
  func.func @transform_0(%arg0: i32, %arg1: i32) -> (i32, i32) {
    %c0_i32 = arith.constant 0 : i32
    %c0_i32_0 = arith.constant 0 : i32
    return %arg0, %c0_i32 : i32, i32
  }
  func.func @transform_1(%arg0: i32, %arg1: i32) -> (i32, i32) {
    %c0_i32 = arith.constant 0 : i32
    %c0_i32_0 = arith.constant 0 : i32
    return %c0_i32, %arg1 : i32, i32
  }
  func.func @transform_2(%arg0: i32, %arg1: i32) -> (i32, i32) {
    %c0_i32 = arith.constant 0 : i32
    %c0_i32_0 = arith.constant 0 : i32
    return %c0_i32, %arg1 : i32, i32
  }
  func.func @transform_3(%arg0: i32, %arg1: i32) -> (i32, i32) {
    %c0_i32 = arith.constant 0 : i32
    return %arg0, %arg1 : i32, i32
  }
}

module attributes {stable_mosaic.version = 11 : i64} {
  func.func @_gemm_bias_act_kernel(%arg0: i32, %arg1: i32, %arg2: memref<16x2048xbf16, #tpu.memory_space<vmem>>, %arg3: memref<2048x128xbf16, #tpu.memory_space<vmem>>, %arg4: memref<1x128xf32, #tpu.memory_space<vmem>>, %arg5: memref<16x128xf32, #tpu.memory_space<vmem>>) attributes {dimension_semantics = [#tpu.dimension_semantics<parallel>, #tpu.dimension_semantics<parallel>], iteration_bounds = array<i64: 1, 1>, scalar_prefetch = 0 : i64, scratch_operands = 0 : i64, tpu.core_type = #tpu.core_type<tc>, window_params = [{transform_indices = @transform_0, window_bounds = array<i64: 16, 2048>}, {transform_indices = @transform_1, window_bounds = array<i64: 2048, 128>}, {transform_indices = @transform_2, window_bounds = array<i64: 1, 128>}, {transform_indices = @transform_3, window_bounds = array<i64: 16, 128>}]} {
    %c0 = arith.constant 0 : index
    %c0_0 = arith.constant 0 : index
    %0 = vector.load %arg2[%c0, %c0_0] : memref<16x2048xbf16, #tpu.memory_space<vmem>>, vector<16x2048xbf16>
    %c0_1 = arith.constant 0 : index
    %c0_2 = arith.constant 0 : index
    %1 = vector.load %arg3[%c0_1, %c0_2] : memref<2048x128xbf16, #tpu.memory_space<vmem>>, vector<2048x128xbf16>
    %cst = arith.constant dense<0.000000e+00> : vector<16x128xf32>
    %2 = tpu.matmul %0, %1, %cst {dimension_numbers = #tpu.dot_dimension_numbers<[1], [0], [0], [1], [0, 0, 1, 1], [], []>} : vector<16x2048xbf16>, vector<2048x128xbf16>, vector<16x128xf32> -> vector<16x128xf32>
    %c0_3 = arith.constant 0 : index
    %c0_4 = arith.constant 0 : index
    %3 = vector.load %arg4[%c0_3, %c0_4] : memref<1x128xf32, #tpu.memory_space<vmem>>, vector<1x128xf32>
    %4 = vector.broadcast %3 : vector<1x128xf32> to vector<16x128xf32>
    %5 = arith.addf %2, %4 : vector<16x128xf32>
    %c0_5 = arith.constant 0 : index
    %c0_6 = arith.constant 0 : index
    %6 = vector.load %arg5[%c0_5, %c0_6] : memref<16x128xf32, #tpu.memory_space<vmem>>, vector<16x128xf32>
    tpu.vector_store %arg5[%c0_5, %c0_6], %5 {strides = array<i32>} : memref<16x128xf32, #tpu.memory_space<vmem>>, vector<16x128xf32>,
    return
  }
  func.func @transform_0(%arg0: i32, %arg1: i32) -> (i32, i32) {
    %c0_i32 = arith.constant 0 : i32
    %c0_i32_0 = arith.constant 0 : i32
    return %arg0, %c0_i32 : i32, i32
  }
  func.func @transform_1(%arg0: i32, %arg1: i32) -> (i32, i32) {
    %c0_i32 = arith.constant 0 : i32
    %c0_i32_0 = arith.constant 0 : i32
    return %c0_i32, %arg1 : i32, i32
  }
  func.func @transform_2(%arg0: i32, %arg1: i32) -> (i32, i32) {
    %c0_i32 = arith.constant 0 : i32
    %c0_i32_0 = arith.constant 0 : i32
    return %c0_i32, %arg1 : i32, i32
  }
  func.func @transform_3(%arg0: i32, %arg1: i32) -> (i32, i32) {
    %c0_i32 = arith.constant 0 : i32
    return %arg0, %arg1 : i32, i32
  }
}

</mosaic_0001>

<bundles_post_ra>
// kernel: fwd.39
= control target key start
LH: loop header
LB: loop body
LE: loop exit
PB: predicated region body
PF: predicated region fallthrough
CT: control target
= control target key end

     0   :  { %s1511_s12 = smov 0   ;;  %s1513_s13 = smov 0   ;;  %s1726_s0 = inlined_call_operand.vmem [shape: bf16[2048,32], index: 0, kind: input, shape index: {}]   ;;  %s1727_s1 = inlined_call_operand.vmem [shape: bf16[32,128], index: 1, kind: input, shape index: {}]   ;;  %s1728_s2 = inlined_call_operand.vmem [shape: f32[1,128], index: 2, kind: input, shape index: {}]   ;;  %s1729_s3 = inlined_call_operand.vmem [shape: bf16[2048,128], index: 3, kind: output, shape index: {}]  }
   0x1   :  { %s1515_s14 = smov 0  }
   0x2 LB: > { %s25_s15 = sadd.s32 1, %s1485_s13  ;;  %p1036_p0 = scmp.ge.s32.totalorder %s1489_s14, 1  ;;  %s1489_s14 = sphi %s1515_s14, %s13_s14   ;;  %s1485_s13 = sphi %s1513_s13, %s1731_s13   ;;  %s1481_s12 = sphi %s1511_s12, %s1730_s12  }
   0x3   : > { %p27_p1 = scmp.ge.s32.totalorder %s25_s15, 4  ;;  %p169_p2 = scmp.lt.s32.totalorder %s1489_s14, 5 }
   0x5   : > { %s1733_s15 = smov (%p27_p1, %s25_s15), 0  ;;  %p170_p3 = pnand %p1036_p0, %p169_p2 }
   0x6   : > { %s1037_s18 = sshll.u32 (!%p170_p3), %s1481_s12, 6 }
   0x7   : > { %173 = sbr.rel (%p170_p3) target bundleno = 281 (0x119), region = 32  ;;  %p204_p4 = scmp.lt.s32.totalorder (!%p170_p3), %s1037_s18, 255 }
   0xc   : > { %v1244_v0 = vld [vmem:[%s1727_s1 + $0x8] sm:$0xff]  ;;  %v1243_v1 = vld [vmem:[%s1727_s1] sm:$0xff]  ;;  %s1735_s18 = smov (!%p204_p4, %s1037_s18), 255  ;;  %vm470_vm0 = vcmask 261120  }
   0xd   : > { %573 = vmatpush.bf16.msra.mxu0 %v1244_v0  ;;  %1436 = vmatpush.bf16.msra.mxu1 %v1244_v0  ;;  %s1038_s21 = sshll.u32 %s1735_s18, 2  ;;  %v1612_v36 = vld [vmem:[%s1728_s2] ss:$0 sm:$0xff] }
   0xe   : > { %1437 = vmatpush.bf16.msra.mxu2 %v1244_v0  ;;  %1438 = vmatpush.bf16.msra.mxu3 %v1244_v0  ;;  %s1543_s24 = scalar_lea.vmem %s1726_s0, %s1038_s21  ;;  %s1623_s29 = scalar_lea.vmem %s1729_s3, %s1038_s21 }
   0xf   : > { %v1211_v2 = vld [vmem:[%s1543_s24] sm:$0xff]  ;;  %v1212_v6 = vld [vmem:[%s1543_s24 + $0x8] sm:$0xff]  ;;  %v1213_v10 = vld [vmem:[%s1543_s24 + $0x10] sm:$0xff] }
  0x10   : > { %v1219_v3 = vld [vmem:[%s1543_s24 + $0x40] sm:$0xff]  ;;  %v1220_v7 = vld [vmem:[%s1543_s24 + $0x48] sm:$0xff]  ;;  %v1221_v11 = vld [vmem:[%s1543_s24 + $0x50] sm:$0xff] }
  0x11   : > { %574 = vmatpush.bf16.msra.mxu0 %v1243_v1  ;;  %1439 = vmatpush.bf16.msra.mxu1 %v1243_v1  ;;  %v1227_v4 = vld [vmem:[%s1543_s24 + $0x80] sm:$0xff]  ;;  %v1228_v8 = vld [vmem:[%s1543_s24 + $0x88] sm:$0xff]  ;;  %v1229_v12 = vld [vmem:[%s1543_s24 + $0x90] sm:$0xff] }
  0x12   : > { %1440 = vmatpush.bf16.msra.mxu2 %v1243_v1  ;;  %1441 = vmatpush.bf16.msra.mxu3 %v1243_v1  ;;  %v1235_v5 = vld [vmem:[%s1543_s24 + $0xc0] sm:$0xff]  ;;  %v1236_v9 = vld [vmem:[%s1543_s24 + $0xc8] sm:$0xff]  ;;  %v1237_v13 = vld [vmem:[%s1543_s24 + $0xd0] sm:$0xff] }
  0x13   : > { %v1214_v14 = vld [vmem:[%s1543_s24 + $0x18] sm:$0xff]  ;;  %v1215_v18 = vld [vmem:[%s1543_s24 + $0x20] sm:$0xff]  ;;  %v1216_v22 = vld [vmem:[%s1543_s24 + $0x28] sm:$0xff] }
  0x14   : > { %1177 = vmatmul.msk.bf16.vlgmr.msra.gmra.mxu0 %vm470_vm0, %v1211_v2  ;;  %1185 = vmatmul.msk.bf16.vlgmr.msra.gmra.mxu1 %vm470_vm0, %v1219_v3  ;;  %v1222_v15 = vld [vmem:[%s1543_s24 + $0x58] sm:$0xff]  ;;  %v1223_v19 = vld [vmem:[%s1543_s24 + $0x60] sm:$0xff]  ;;  %v1224_v23 = vld [vmem:[%s1543_s24 + $0x68] sm:$0xff] }
  0x15   : > { %1193 = vmatmul.msk.bf16.vlgmr.msra.gmra.mxu2 %vm470_vm0, %v1227_v4  ;;  %1201 = vmatmul.msk.bf16.vlgmr.msra.gmra.mxu3 %vm470_vm0, %v1235_v5  ;;  %v1230_v16 = vld [vmem:[%s1543_s24 + $0x98] sm:$0xff]  ;;  %v1231_v20 = vld [vmem:[%s1543_s24 + $0xa0] sm:$0xff]  ;;  %v1232_v24 = vld [vmem:[%s1543_s24 + $0xa8] sm:$0xff] }
  0x16   : > { %v1238_v17 = vld [vmem:[%s1543_s24 + $0xd8] sm:$0xff]  ;;  %v1239_v21 = vld [vmem:[%s1543_s24 + $0xe0] sm:$0xff]  ;;  %v1240_v25 = vld [vmem:[%s1543_s24 + $0xe8] sm:$0xff] }
  0x17   : > { %v1217_v26 = vld [vmem:[%s1543_s24 + $0x30] sm:$0xff]  ;;  %v1218_v30 = vld [vmem:[%s1543_s24 + $0x38] sm:$0xff] }
  0x18   : > { %v1225_v27 = vld [vmem:[%s1543_s24 + $0x70] sm:$0xff]  ;;  %v1226_v31 = vld [vmem:[%s1543_s24 + $0x78] sm:$0xff] }
  0x19   : > { %v1233_v28 = vld [vmem:[%s1543_s24 + $0xb0] sm:$0xff]  ;;  %v1234_v32 = vld [vmem:[%s1543_s24 + $0xb8] sm:$0xff] }
  0x1a   : > { %v1241_v29 = vld [vmem:[%s1543_s24 + $0xf0] sm:$0xff]  ;;  %v1242_v33 = vld [vmem:[%s1543_s24 + $0xf8] sm:$0xff] }
  0x24   : > { %1178 = vmatmul.msk.bf16.gmra.mxu0 %vm470_vm0, %v1212_v6  ;;  %1186 = vmatmul.msk.bf16.gmra.mxu1 %vm470_vm0, %v1220_v7 }
  0x25   : > { %1194 = vmatmul.msk.bf16.gmra.mxu2 %vm470_vm0, %v1228_v8  ;;  %1202 = vmatmul.msk.bf16.gmra.mxu3 %vm470_vm0, %v1236_v9 }
  0x34   : > { %1179 = vmatmul.msk.bf16.gmra.mxu0 %vm470_vm0, %v1213_v10  ;;  %1187 = vmatmul.msk.bf16.gmra.mxu1 %vm470_vm0, %v1221_v11 }
  0x35   : > { %1195 = vmatmul.msk.bf16.gmra.mxu2 %vm470_vm0, %v1229_v12  ;;  %1203 = vmatmul.msk.bf16.gmra.mxu3 %vm470_vm0, %v1237_v13 }
  0x44   : > { %1180 = vmatmul.msk.bf16.gmra.mxu0 %vm470_vm0, %v1214_v14  ;;  %1188 = vmatmul.msk.bf16.gmra.mxu1 %vm470_vm0, %v1222_v15 }
  0x45   : > { %1196 = vmatmul.msk.bf16.gmra.mxu2 %vm470_vm0, %v1230_v16  ;;  %1204 = vmatmul.msk.bf16.gmra.mxu3 %vm470_vm0, %v1238_v17 }
  0x54   : > { %1181 = vmatmul.msk.bf16.gmra.mxu0 %vm470_vm0, %v1215_v18  ;;  %1189 = vmatmul.msk.bf16.gmra.mxu1 %vm470_vm0, %v1223_v19 }
  0x55   : > { %1197 = vmatmul.msk.bf16.gmra.mxu2 %vm470_vm0, %v1231_v20  ;;  %1205 = vmatmul.msk.bf16.gmra.mxu3 %vm470_vm0, %v1239_v21 }
  0x64   : > { %1182 = vmatmul.msk.bf16.gmra.mxu0 %vm470_vm0, %v1216_v22  ;;  %1190 = vmatmul.msk.bf16.gmra.mxu1 %vm470_vm0, %v1224_v23 }
  0x65   : > { %1198 = vmatmul.msk.bf16.gmra.mxu2 %vm470_vm0, %v1232_v24  ;;  %1206 = vmatmul.msk.bf16.gmra.mxu3 %vm470_vm0, %v1240_v25 }
  0x74   : > { %1183 = vmatmul.msk.bf16.gmra.mxu0 %vm470_vm0, %v1217_v26  ;;  %1191 = vmatmul.msk.bf16.gmra.mxu1 %vm470_vm0, %v1225_v27 }
  0x75   : > { %1199 = vmatmul.msk.bf16.gmra.mxu2 %vm470_vm0, %v1233_v28  ;;  %1207 = vmatmul.msk.bf16.gmra.mxu3 %vm470_vm0, %v1241_v29 }
  0x84   : > { %1184 = vmatmul.msk.bf16.gmra.mxu0 %vm470_vm0, %v1218_v30  ;;  %1192 = vmatmul.msk.bf16.gmra.mxu1 %vm470_vm0, %v1226_v31 }
  0x85   : > { %1200 = vmatmul.msk.bf16.gmra.mxu2 %vm470_vm0, %v1234_v32  ;;  %1208 = vmatmul.msk.bf16.gmra.mxu3 %vm470_vm0, %v1242_v33 }
  0x91   : > { %v576_v34 = vpop.f32.mrf.mxu0  ;;  %v616_v35 = vpop.f32.mrf.mxu1 }
  0x92   : > { %v577_v37 = vadd.f32 %v1612_v36, %v576_v34  ;;  %v617_v38 = vadd.f32 %v1612_v36, %v616_v35 }
  0x94   : > { %v736_v45 = vmax.f32 %v577_v37, 0.0  ;;  %v752_v46 = vmax.f32 %v617_v38, 0.0 }
  0x98   : > { %v656_v39 = vpop.f32.mrf.mxu2  ;;  %v696_v40 = vpop.f32.mrf.mxu3 }
  0x99   : > { %v578_v41 = vpop.f32.mrf.mxu0  ;;  %v618_v42 = vpop.f32.mrf.mxu1  ;;  %v657_v51 = vadd.f32 %v1612_v36, %v656_v39  ;;  %v697_v52 = vadd.f32 %v1612_v36, %v696_v40 }
  0x9a   : > { %v579_v43 = vadd.f32 %v1612_v36, %v578_v41  ;;  %v619_v44 = vadd.f32 %v1612_v36, %v618_v42 }
  0x9b   : > { %v768_v59 = vmax.f32 %v657_v51, 0.0  ;;  %v784_v60 = vmax.f32 %v697_v52, 0.0 }
  0x9c   : > { %v737_v47 = vmax.f32 %v579_v43, 0.0  ;;  %v753_v48 = vmax.f32 %v619_v44, 0.0 }
  0x9e   : > { %v1248_v49 = vpack.c.bf16 %v737_v47, %v736_v45  ;;  %v1288_v50 = vpack.c.bf16 %v753_v48, %v752_v46 }
  0xa0   : > { %1249 = vst [vmem:[%s1623_s29] sm:$0xff] %v1248_v49   ;;  %v658_v53 = vpop.f32.mrf.mxu2  ;;  %v698_v54 = vpop.f32.mrf.mxu3 }
  0xa1   : > { %1412 = vst [vmem:[%s1623_s29 + $0x40] sm:$0xff] %v1288_v50   ;;  %v659_v55 = vadd.f32 %v1612_v36, %v658_v53  ;;  %v699_v56 = vadd.f32 %v1612_v36, %v698_v54  ;;  %v581_v57 = vpop.f32.mrf.mxu0  ;;  %v621_v58 = vpop.f32.mrf.mxu1 }
  0xa2   : > { %v582_v1 = vadd.f32 %v1612_v36, %v581_v57  ;;  %v622_v2 = vadd.f32 %v1612_v36, %v621_v58 }
  0xa3   : > { %v769_v61 = vmax.f32 %v659_v55, 0.0  ;;  %v785_v62 = vmax.f32 %v699_v56, 0.0 }
  0xa4   : > { %v738_v9 = vmax.f32 %v582_v1, 0.0  ;;  %v754_v10 = vmax.f32 %v622_v2, 0.0 }
  0xa5   : > { %v1328_v63 = vpack.c.bf16 %v769_v61, %v768_v59  ;;  %v1368_v0 = vpack.c.bf16 %v785_v62, %v784_v60 }
  0xa7   : > { %1420 = vst [vmem:[%s1623_s29 + $0x80] sm:$0xff] %v1328_v63  }
  0xa8   : > { %1428 = vst [vmem:[%s1623_s29 + $0xc0] sm:$0xff] %v1368_v0   ;;  %v661_v3 = vpop.f32.mrf.mxu2  ;;  %v701_v4 = vpop.f32.mrf.mxu3 }
  0xa9   : > { %v583_v5 = vpop.f32.mrf.mxu0  ;;  %v623_v6 = vpop.f32.mrf.mxu1  ;;  %v662_v15 = vadd.f32 %v1612_v36, %v661_v3  ;;  %v702_v16 = vadd.f32 %v1612_v36, %v701_v4 }
  0xaa   : > { %v584_v7 = vadd.f32 %v1612_v36, %v583_v5  ;;  %v624_v8 = vadd.f32 %v1612_v36, %v623_v6 }
  0xab   : > { %v770_v23 = vmax.f32 %v662_v15, 0.0  ;;  %v786_v24 = vmax.f32 %v702_v16, 0.0 }
  0xac   : > { %v739_v11 = vmax.f32 %v584_v7, 0.0  ;;  %v755_v12 = vmax.f32 %v624_v8, 0.0 }
  0xae   : > { %v1253_v13 = vpack.c.bf16 %v739_v11, %v738_v9  ;;  %v1293_v14 = vpack.c.bf16 %v755_v12, %v754_v10 }
  0xb0   : > { %1405 = vst [vmem:[%s1623_s29 + $0x8] sm:$0xff] %v1253_v13   ;;  %v663_v17 = vpop.f32.mrf.mxu2  ;;  %v703_v18 = vpop.f32.mrf.mxu3 }
  0xb1   : > { %1413 = vst [vmem:[%s1623_s29 + $0x48] sm:$0xff] %v1293_v14   ;;  %v664_v19 = vadd.f32 %v1612_v36, %v663_v17  ;;  %v704_v20 = vadd.f32 %v1612_v36, %v703_v18  ;;  %v586_v21 = vpop.f32.mrf.mxu0  ;;  %v626_v22 = vpop.f32.mrf.mxu1 }
  0xb2   : > { %v587_v29 = vadd.f32 %v1612_v36, %v586_v21  ;;  %v627_v30 = vadd.f32 %v1612_v36, %v626_v22 }
  0xb3   : > { %v771_v25 = vmax.f32 %v664_v19, 0.0  ;;  %v787_v26 = vmax.f32 %v704_v20, 0.0 }
  0xb4   : > { %v740_v38 = vmax.f32 %v587_v29, 0.0  ;;  %v756_v39 = vmax.f32 %v627_v30, 0.0 }
  0xb5   : > { %v1333_v27 = vpack.c.bf16 %v771_v25, %v770_v23  ;;  %v1373_v28 = vpack.c.bf16 %v787_v26, %v786_v24 }
  0xb7   : > { %1421 = vst [vmem:[%s1623_s29 + $0x88] sm:$0xff] %v1333_v27  }
  0xb8   : > { %1429 = vst [vmem:[%s1623_s29 + $0xc8] sm:$0xff] %v1373_v28   ;;  %v666_v31 = vpop.f32.mrf.mxu2  ;;  %v706_v32 = vpop.f32.mrf.mxu3 }
  0xb9   : > { %v588_v33 = vpop.f32.mrf.mxu0  ;;  %v628_v34 = vpop.f32.mrf.mxu1  ;;  %v667_v44 = vadd.f32 %v1612_v36, %v666_v31  ;;  %v707_v45 = vadd.f32 %v1612_v36, %v706_v32 }
  0xba   : > { %v589_v35 = vadd.f32 %v1612_v36, %v588_v33  ;;  %v629_v37 = vadd.f32 %v1612_v36, %v628_v34 }
  0xbb   : > { %v772_v52 = vmax.f32 %v667_v44, 0.0  ;;  %v788_v53 = vmax.f32 %v707_v45, 0.0 }
  0xbc   : > { %v741_v40 = vmax.f32 %v589_v35, 0.0  ;;  %v757_v41 = vmax.f32 %v629_v37, 0.0 }
  0xbe   : > { %v1258_v42 = vpack.c.bf16 %v741_v40, %v740_v38  ;;  %v1298_v43 = vpack.c.bf16 %v757_v41, %v756_v39 }
  0xc0   : > { %1406 = vst [vmem:[%s1623_s29 + $0x10] sm:$0xff] %v1258_v42   ;;  %v668_v46 = vpop.f32.mrf.mxu2  ;;  %v708_v47 = vpop.f32.mrf.mxu3 }
  0xc1   : > { %1414 = vst [vmem:[%s1623_s29 + $0x50] sm:$0xff] %v1298_v43   ;;  %v669_v48 = vadd.f32 %v1612_v36, %v668_v46  ;;  %v709_v49 = vadd.f32 %v1612_v36, %v708_v47  ;;  %v591_v50 = vpop.f32.mrf.mxu0  ;;  %v631_v51 = vpop.f32.mrf.mxu1 }
  0xc2   : > { %v592_v58 = vadd.f32 %v1612_v36, %v591_v50  ;;  %v632_v59 = vadd.f32 %v1612_v36, %v631_v51 }
  0xc3   : > { %v773_v54 = vmax.f32 %v669_v48, 0.0  ;;  %v789_v55 = vmax.f32 %v709_v49, 0.0 }
  0xc4   : > { %v742_v2 = vmax.f32 %v592_v58, 0.0  ;;  %v758_v3 = vmax.f32 %v632_v59, 0.0 }
  0xc5   : > { %v1338_v56 = vpack.c.bf16 %v773_v54, %v772_v52  ;;  %v1378_v57 = vpack.c.bf16 %v789_v55, %v788_v53 }
  0xc7   : > { %1422 = vst [vmem:[%s1623_s29 + $0x90] sm:$0xff] %v1338_v56  }
  0xc8   : > { %1430 = vst [vmem:[%s1623_s29 + $0xd0] sm:$0xff] %v1378_v57   ;;  %v671_v60 = vpop.f32.mrf.mxu2  ;;  %v711_v61 = vpop.f32.mrf.mxu3 }
  0xc9   : > { %v593_v62 = vpop.f32.mrf.mxu0  ;;  %v633_v63 = vpop.f32.mrf.mxu1  ;;  %v672_v8 = vadd.f32 %v1612_v36, %v671_v60  ;;  %v712_v9 = vadd.f32 %v1612_v36, %v711_v61 }
  0xca   : > { %v594_v0 = vadd.f32 %v1612_v36, %v593_v62  ;;  %v634_v1 = vadd.f32 %v1612_v36, %v633_v63 }
  0xcb   : > { %v774_v16 = vmax.f32 %v672_v8, 0.0  ;;  %v790_v17 = vmax.f32 %v712_v9, 0.0 }
  0xcc   : > { %v743_v4 = vmax.f32 %v594_v0, 0.0  ;;  %v759_v5 = vmax.f32 %v634_v1, 0.0 }
  0xce   : > { %v1263_v6 = vpack.c.bf16 %v743_v4, %v742_v2  ;;  %v1303_v7 = vpack.c.bf16 %v759_v5, %v758_v3 }
  0xd0   : > { %1407 = vst [vmem:[%s1623_s29 + $0x18] sm:$0xff] %v1263_v6   ;;  %v673_v10 = vpop.f32.mrf.mxu2  ;;  %v713_v11 = vpop.f32.mrf.mxu3 }
  0xd1   : > { %1415 = vst [vmem:[%s1623_s29 + $0x58] sm:$0xff] %v1303_v7   ;;  %v674_v12 = vadd.f32 %v1612_v36, %v673_v10  ;;  %v714_v13 = vadd.f32 %v1612_v36, %v713_v11  ;;  %v596_v14 = vpop.f32.mrf.mxu0  ;;  %v636_v15 = vpop.f32.mrf.mxu1 }
  0xd2   : > { %v597_v22 = vadd.f32 %v1612_v36, %v596_v14  ;;  %v637_v23 = vadd.f32 %v1612_v36, %v636_v15 }
  0xd3   : > { %v775_v18 = vmax.f32 %v674_v12, 0.0  ;;  %v791_v19 = vmax.f32 %v714_v13, 0.0 }
  0xd4   : > { %v744_v30 = vmax.f32 %v597_v22, 0.0  ;;  %v760_v31 = vmax.f32 %v637_v23, 0.0 }
  0xd5   : > { %v1343_v20 = vpack.c.bf16 %v775_v18, %v774_v16  ;;  %v1383_v21 = vpack.c.bf16 %v791_v19, %v790_v17 }
  0xd7   : > { %1423 = vst [vmem:[%s1623_s29 + $0x98] sm:$0xff] %v1343_v20  }
  0xd8   : > { %1431 = vst [vmem:[%s1623_s29 + $0xd8] sm:$0xff] %v1383_v21   ;;  %v676_v24 = vpop.f32.mrf.mxu2  ;;  %v716_v25 = vpop.f32.mrf.mxu3 }
  0xd9   : > { %v598_v26 = vpop.f32.mrf.mxu0  ;;  %v638_v27 = vpop.f32.mrf.mxu1  ;;  %v677_v37 = vadd.f32 %v1612_v36, %v676_v24  ;;  %v717_v38 = vadd.f32 %v1612_v36, %v716_v25 }
  0xda   : > { %v599_v28 = vadd.f32 %v1612_v36, %v598_v26  ;;  %v639_v29 = vadd.f32 %v1612_v36, %v638_v27 }
  0xdb   : > { %v776_v45 = vmax.f32 %v677_v37, 0.0  ;;  %v792_v46 = vmax.f32 %v717_v38, 0.0 }
  0xdc   : > { %v745_v32 = vmax.f32 %v599_v28, 0.0  ;;  %v761_v33 = vmax.f32 %v639_v29, 0.0 }
  0xde   : > { %v1268_v34 = vpack.c.bf16 %v745_v32, %v744_v30  ;;  %v1308_v35 = vpack.c.bf16 %v761_v33, %v760_v31 }
  0xe0   : > { %1408 = vst [vmem:[%s1623_s29 + $0x20] sm:$0xff] %v1268_v34   ;;  %v678_v39 = vpop.f32.mrf.mxu2  ;;  %v718_v40 = vpop.f32.mrf.mxu3 }
  0xe1   : > { %1416 = vst [vmem:[%s1623_s29 + $0x60] sm:$0xff] %v1308_v35   ;;  %v679_v41 = vadd.f32 %v1612_v36, %v678_v39  ;;  %v719_v42 = vadd.f32 %v1612_v36, %v718_v40  ;;  %v601_v43 = vpop.f32.mrf.mxu0  ;;  %v641_v44 = vpop.f32.mrf.mxu1 }
  0xe2   : > { %v602_v51 = vadd.f32 %v1612_v36, %v601_v43  ;;  %v642_v52 = vadd.f32 %v1612_v36, %v641_v44 }
  0xe3   : > { %v777_v47 = vmax.f32 %v679_v41, 0.0  ;;  %v793_v48 = vmax.f32 %v719_v42, 0.0 }
  0xe4   : > { %v746_v59 = vmax.f32 %v602_v51, 0.0  ;;  %v762_v60 = vmax.f32 %v642_v52, 0.0 }
  0xe5   : > { %v1348_v49 = vpack.c.bf16 %v777_v47, %v776_v45  ;;  %v1388_v50 = vpack.c.bf16 %v793_v48, %v792_v46 }
  0xe7   : > { %1424 = vst [vmem:[%s1623_s29 + $0xa0] sm:$0xff] %v1348_v49  }
  0xe8   : > { %1432 = vst [vmem:[%s1623_s29 + $0xe0] sm:$0xff] %v1388_v50   ;;  %v681_v53 = vpop.f32.mrf.mxu2  ;;  %v721_v54 = vpop.f32.mrf.mxu3 }
  0xe9   : > { %v603_v55 = vpop.f32.mrf.mxu0  ;;  %v643_v56 = vpop.f32.mrf.mxu1  ;;  %v682_v1 = vadd.f32 %v1612_v36, %v681_v53  ;;  %v722_v2 = vadd.f32 %v1612_v36, %v721_v54 }
  0xea   : > { %v604_v57 = vadd.f32 %v1612_v36, %v603_v55  ;;  %v644_v58 = vadd.f32 %v1612_v36, %v643_v56 }
  0xeb   : > { %v778_v9 = vmax.f32 %v682_v1, 0.0  ;;  %v794_v10 = vmax.f32 %v722_v2, 0.0 }
  0xec   : > { %v747_v61 = vmax.f32 %v604_v57, 0.0  ;;  %v763_v62 = vmax.f32 %v644_v58, 0.0 }
  0xee   : > { %v1273_v63 = vpack.c.bf16 %v747_v61, %v746_v59  ;;  %v1313_v0 = vpack.c.bf16 %v763_v62, %v762_v60 }
  0xf0   : > { %1409 = vst [vmem:[%s1623_s29 + $0x28] sm:$0xff] %v1273_v63   ;;  %v683_v3 = vpop.f32.mrf.mxu2  ;;  %v723_v4 = vpop.f32.mrf.mxu3 }
  0xf1   : > { %1417 = vst [vmem:[%s1623_s29 + $0x68] sm:$0xff] %v1313_v0   ;;  %v684_v5 = vadd.f32 %v1612_v36, %v683_v3  ;;  %v724_v6 = vadd.f32 %v1612_v36, %v723_v4  ;;  %v606_v7 = vpop.f32.mrf.mxu0  ;;  %v646_v8 = vpop.f32.mrf.mxu1 }
  0xf2   : > { %v607_v15 = vadd.f32 %v1612_v36, %v606_v7  ;;  %v647_v16 = vadd.f32 %v1612_v36, %v646_v8 }
  0xf3   : > { %v779_v11 = vmax.f32 %v684_v5, 0.0  ;;  %v795_v12 = vmax.f32 %v724_v6, 0.0 }
  0xf4   : > { %v748_v23 = vmax.f32 %v607_v15, 0.0  ;;  %v764_v24 = vmax.f32 %v647_v16, 0.0 }
  0xf5   : > { %v1353_v13 = vpack.c.bf16 %v779_v11, %v778_v9  ;;  %v1393_v14 = vpack.c.bf16 %v795_v12, %v794_v10 }
  0xf7   : > { %1425 = vst [vmem:[%s1623_s29 + $0xa8] sm:$0xff] %v1353_v13  }
  0xf8   : > { %1433 = vst [vmem:[%s1623_s29 + $0xe8] sm:$0xff] %v1393_v14   ;;  %v686_v17 = vpop.f32.mrf.mxu2  ;;  %v726_v18 = vpop.f32.mrf.mxu3 }
  0xf9   : > { %v608_v19 = vpop.f32.mrf.mxu0  ;;  %v648_v20 = vpop.f32.mrf.mxu1  ;;  %v687_v29 = vadd.f32 %v1612_v36, %v686_v17  ;;  %v727_v30 = vadd.f32 %v1612_v36, %v726_v18 }
  0xfa   : > { %v609_v21 = vadd.f32 %v1612_v36, %v608_v19  ;;  %v649_v22 = vadd.f32 %v1612_v36, %v648_v20 }
  0xfb   : > { %v780_v38 = vmax.f32 %v687_v29, 0.0  ;;  %v796_v39 = vmax.f32 %v727_v30, 0.0 }
  0xfc   : > { %v749_v25 = vmax.f32 %v609_v21, 0.0  ;;  %v765_v26 = vmax.f32 %v649_v22, 0.0 }
  0xfe   : > { %v1278_v27 = vpack.c.bf16 %v749_v25, %v748_v23  ;;  %v1318_v28 = vpack.c.bf16 %v765_v26, %v764_v24 }
 0x100   : > { %1410 = vst [vmem:[%s1623_s29 + $0x30] sm:$0xff] %v1278_v27   ;;  %v688_v31 = vpop.f32.mrf.mxu2  ;;  %v728_v32 = vpop.f32.mrf.mxu3 }
 0x101   : > { %1418 = vst [vmem:[%s1623_s29 + $0x70] sm:$0xff] %v1318_v28   ;;  %v689_v33 = vadd.f32 %v1612_v36, %v688_v31  ;;  %v729_v34 = vadd.f32 %v1612_v36, %v728_v32  ;;  %v611_v35 = vpop.f32.mrf.mxu0  ;;  %v651_v37 = vpop.f32.mrf.mxu1 }
 0x102   : > { %v612_v44 = vadd.f32 %v1612_v36, %v611_v35  ;;  %v652_v45 = vadd.f32 %v1612_v36, %v651_v37 }
 0x103   : > { %v781_v40 = vmax.f32 %v689_v33, 0.0  ;;  %v797_v41 = vmax.f32 %v729_v34, 0.0 }
 0x104   : > { %v750_v52 = vmax.f32 %v612_v44, 0.0  ;;  %v766_v53 = vmax.f32 %v652_v45, 0.0 }
 0x105   : > { %v1358_v42 = vpack.c.bf16 %v781_v40, %v780_v38  ;;  %v1398_v43 = vpack.c.bf16 %v797_v41, %v796_v39 }
 0x107   : > { %1426 = vst [vmem:[%s1623_s29 + $0xb0] sm:$0xff] %v1358_v42  }
 0x108   : > { %1434 = vst [vmem:[%s1623_s29 + $0xf0] sm:$0xff] %v1398_v43   ;;  %v691_v46 = vpop.f32.mrf.mxu2  ;;  %v731_v47 = vpop.f32.mrf.mxu3 }
 0x109   : > { %v613_v48 = vpop.f32.mrf.mxu0  ;;  %v653_v49 = vpop.f32.mrf.mxu1  ;;  %v692_v58 = vadd.f32 %v1612_v36, %v691_v46  ;;  %v732_v59 = vadd.f32 %v1612_v36, %v731_v47 }
 0x10a   : > { %v614_v50 = vadd.f32 %v1612_v36, %v613_v48  ;;  %v654_v51 = vadd.f32 %v1612_v36, %v653_v49 }
 0x10b   : > { %v782_v0 = vmax.f32 %v692_v58, 0.0  ;;  %v798_v1 = vmax.f32 %v732_v59, 0.0 }
 0x10c   : > { %v751_v54 = vmax.f32 %v614_v50, 0.0  ;;  %v767_v55 = vmax.f32 %v654_v51, 0.0 }
 0x10e   : > { %v1283_v56 = vpack.c.bf16 %v751_v54, %v750_v52  ;;  %v1323_v57 = vpack.c.bf16 %v767_v55, %v766_v53 }
 0x110   : > { %1411 = vst [vmem:[%s1623_s29 + $0x38] sm:$0xff] %v1283_v56   ;;  %v693_v60 = vpop.f32.mrf.mxu2  ;;  %v733_v61 = vpop.f32.mrf.mxu3 }
 0x111   : > { %1419 = vst [vmem:[%s1623_s29 + $0x78] sm:$0xff] %v1323_v57   ;;  %v694_v62 = vadd.f32 %v1612_v36, %v693_v60  ;;  %v734_v63 = vadd.f32 %v1612_v36, %v733_v61 }
 0x113   : > { %v783_v2 = vmax.f32 %v694_v62, 0.0  ;;  %v799_v3 = vmax.f32 %v734_v63, 0.0 }
 0x115   : > { %v1363_v4 = vpack.c.bf16 %v783_v2, %v782_v0  ;;  %v1403_v5 = vpack.c.bf16 %v799_v3, %v798_v1 }
 0x117   : > { %1427 = vst [vmem:[%s1623_s29 + $0xb8] sm:$0xff] %v1363_v4  }
 0x118   : > { %1435 = vst [vmem:[%s1623_s29 + $0xf8] sm:$0xff] %v1403_v5  }
 0x119 PF: > { %s13_s14 = sadd.s32 1, %s1489_s14   ;;  %s1730_s12 = smov %s1485_s13 }
 0x11a   : > { %p10_p5 = scmp.ge.s32.totalorder %s13_s14, 6   ;;  %s1731_s13 = smov %s1733_s15 }
 0x11c   :  { %12 = sbr.rel (!%p10_p5) target bundleno = 2 (0x2), region = 68 }

// kernel: fwd.40
= control target key start
LH: loop header
LB: loop body
LE: loop exit
PB: predicated region body
PF: predicated region fallthrough
CT: control target
= control target key end

     0   :  { %vm291_vm0 = vcmask 785408   ;;  %s1516_s1 = inlined_call_operand.vmem [shape: bf16[96,128], index: 1, kind: input, shape index: {}]   ;;  %s1517_s2 = inlined_call_operand.vmem [shape: f32[1,128], index: 2, kind: input, shape index: {}]   ;;  %s1518_s0 = inlined_call_operand.vmem [shape: bf16[512,96], index: 0, kind: input, shape index: {}]   ;;  %s1519_s3 = inlined_call_operand.vmem [shape: bf16[512,128], index: 3, kind: output, shape index: {}]  }
   0x1   :  { %v974_v0 = vld [vmem:[%s1516_s1 + $0x28] sm:$0xff]  ;;  %v973_v1 = vld [vmem:[%s1516_s1 + $0x20] sm:$0xff]  ;;  %v972_v2 = vld [vmem:[%s1516_s1 + $0x18] sm:$0xff] }
   0x2   :  { %390 = vmatpush.bf16.msra.mxu0 %v974_v0  ;;  %1166 = vmatpush.bf16.msra.mxu1 %v974_v0  ;;  %v971_v3 = vld [vmem:[%s1516_s1 + $0x10] sm:$0xff]  ;;  %v970_v4 = vld [vmem:[%s1516_s1 + $0x8] sm:$0xff]  ;;  %v969_v5 = vld [vmem:[%s1516_s1] sm:$0xff] }
   0x3   :  { %1167 = vmatpush.bf16.msra.mxu2 %v974_v0  ;;  %1168 = vmatpush.bf16.msra.mxu3 %v974_v0  ;;  %v937_v6 = vld [vmem:[%s1518_s0] sm:$0xff]  ;;  %v938_v10 = vld [vmem:[%s1518_s0 + $0x8] sm:$0xff]  ;;  %v939_v14 = vld [vmem:[%s1518_s0 + $0x10] sm:$0xff] }
   0x4   :  { %v945_v7 = vld [vmem:[%s1518_s0 + $0x40] sm:$0xff]  ;;  %v946_v11 = vld [vmem:[%s1518_s0 + $0x48] sm:$0xff]  ;;  %v947_v15 = vld [vmem:[%s1518_s0 + $0x50] sm:$0xff] }
   0x5   :  { %v953_v8 = vld [vmem:[%s1518_s0 + $0x80] sm:$0xff]  ;;  %v954_v12 = vld [vmem:[%s1518_s0 + $0x88] sm:$0xff]  ;;  %v955_v16 = vld [vmem:[%s1518_s0 + $0x90] sm:$0xff] }
   0x6   :  { %391 = vmatpush.bf16.msra.mxu0 %v973_v1  ;;  %1169 = vmatpush.bf16.msra.mxu1 %v973_v1  ;;  %v961_v9 = vld [vmem:[%s1518_s0 + $0xc0] sm:$0xff]  ;;  %v962_v13 = vld [vmem:[%s1518_s0 + $0xc8] sm:$0xff]  ;;  %v963_v17 = vld [vmem:[%s1518_s0 + $0xd0] sm:$0xff] }
   0x7   :  { %1170 = vmatpush.bf16.msra.mxu2 %v973_v1  ;;  %1171 = vmatpush.bf16.msra.mxu3 %v973_v1  ;;  %v940_v18 = vld [vmem:[%s1518_s0 + $0x18] sm:$0xff]  ;;  %v941_v22 = vld [vmem:[%s1518_s0 + $0x20] sm:$0xff]  ;;  %v942_v26 = vld [vmem:[%s1518_s0 + $0x28] sm:$0xff] }
   0x8   :  { %v948_v19 = vld [vmem:[%s1518_s0 + $0x58] sm:$0xff]  ;;  %v949_v23 = vld [vmem:[%s1518_s0 + $0x60] sm:$0xff]  ;;  %v950_v27 = vld [vmem:[%s1518_s0 + $0x68] sm:$0xff] }
   0x9   :  { %v956_v20 = vld [vmem:[%s1518_s0 + $0x98] sm:$0xff]  ;;  %v957_v24 = vld [vmem:[%s1518_s0 + $0xa0] sm:$0xff]  ;;  %v958_v28 = vld [vmem:[%s1518_s0 + $0xa8] sm:$0xff] }
   0xa   :  { %392 = vmatpush.bf16.msra.mxu0 %v972_v2  ;;  %1172 = vmatpush.bf16.msra.mxu1 %v972_v2  ;;  %v964_v21 = vld [vmem:[%s1518_s0 + $0xd8] sm:$0xff]  ;;  %v965_v25 = vld [vmem:[%s1518_s0 + $0xe0] sm:$0xff]  ;;  %v966_v29 = vld [vmem:[%s1518_s0 + $0xe8] sm:$0xff] }
   0xb   :  { %1173 = vmatpush.bf16.msra.mxu2 %v972_v2  ;;  %1174 = vmatpush.bf16.msra.mxu3 %v972_v2  ;;  %v943_v30 = vld [vmem:[%s1518_s0 + $0x30] sm:$0xff]  ;;  %v944_v34 = vld [vmem:[%s1518_s0 + $0x38] sm:$0xff]  ;;  %v1354_v40 = vld [vmem:[%s1517_s2] ss:$0 sm:$0xff] }
   0xc   :  { %v951_v31 = vld [vmem:[%s1518_s0 + $0x70] sm:$0xff]  ;;  %v952_v35 = vld [vmem:[%s1518_s0 + $0x78] sm:$0xff] }
   0xd   :  { %v959_v32 = vld [vmem:[%s1518_s0 + $0xb0] sm:$0xff]  ;;  %v960_v36 = vld [vmem:[%s1518_s0 + $0xb8] sm:$0xff] }
   0xe   :  { %393 = vmatpush.bf16.msra.mxu0 %v971_v3  ;;  %1175 = vmatpush.bf16.msra.mxu1 %v971_v3  ;;  %v967_v33 = vld [vmem:[%s1518_s0 + $0xf0] sm:$0xff]  ;;  %v968_v37 = vld [vmem:[%s1518_s0 + $0xf8] sm:$0xff] }
   0xf   :  { %1176 = vmatpush.bf16.msra.mxu2 %v971_v3  ;;  %1177 = vmatpush.bf16.msra.mxu3 %v971_v3 }
  0x12   :  { %394 = vmatpush.bf16.msra.mxu0 %v970_v4  ;;  %1178 = vmatpush.bf16.msra.mxu1 %v970_v4 }
  0x13   :  { %1179 = vmatpush.bf16.msra.mxu2 %v970_v4  ;;  %1180 = vmatpush.bf16.msra.mxu3 %v970_v4 }
  0x16   :  { %395 = vmatpush.bf16.msra.mxu0 %v969_v5  ;;  %1181 = vmatpush.bf16.msra.mxu1 %v969_v5 }
  0x17   :  { %1182 = vmatpush.bf16.msra.mxu2 %v969_v5  ;;  %1183 = vmatpush.bf16.msra.mxu3 %v969_v5 }
  0x19   :  { %905 = vmatmul.msk.bf16.vlgmr.msra.gmra.mxu0 %vm291_vm0, %v937_v6  ;;  %913 = vmatmul.msk.bf16.vlgmr.msra.gmra.mxu1 %vm291_vm0, %v945_v7 }
  0x1a   :  { %921 = vmatmul.msk.bf16.vlgmr.msra.gmra.mxu2 %vm291_vm0, %v953_v8  ;;  %929 = vmatmul.msk.bf16.vlgmr.msra.gmra.mxu3 %vm291_vm0, %v961_v9 }
  0x29   :  { %906 = vmatmul.msk.bf16.gmra.mxu0 %vm291_vm0, %v938_v10  ;;  %914 = vmatmul.msk.bf16.gmra.mxu1 %vm291_vm0, %v946_v11 }
  0x2a   :  { %922 = vmatmul.msk.bf16.gmra.mxu2 %vm291_vm0, %v954_v12  ;;  %930 = vmatmul.msk.bf16.gmra.mxu3 %vm291_vm0, %v962_v13 }
  0x39   :  { %907 = vmatmul.msk.bf16.gmra.mxu0 %vm291_vm0, %v939_v14  ;;  %915 = vmatmul.msk.bf16.gmra.mxu1 %vm291_vm0, %v947_v15 }
  0x3a   :  { %923 = vmatmul.msk.bf16.gmra.mxu2 %vm291_vm0, %v955_v16  ;;  %931 = vmatmul.msk.bf16.gmra.mxu3 %vm291_vm0, %v963_v17 }
  0x49   :  { %908 = vmatmul.msk.bf16.gmra.mxu0 %vm291_vm0, %v940_v18  ;;  %916 = vmatmul.msk.bf16.gmra.mxu1 %vm291_vm0, %v948_v19 }
  0x4a   :  { %924 = vmatmul.msk.bf16.gmra.mxu2 %vm291_vm0, %v956_v20  ;;  %932 = vmatmul.msk.bf16.gmra.mxu3 %vm291_vm0, %v964_v21 }
  0x59   :  { %909 = vmatmul.msk.bf16.gmra.mxu0 %vm291_vm0, %v941_v22  ;;  %917 = vmatmul.msk.bf16.gmra.mxu1 %vm291_vm0, %v949_v23 }
  0x5a   :  { %925 = vmatmul.msk.bf16.gmra.mxu2 %vm291_vm0, %v957_v24  ;;  %933 = vmatmul.msk.bf16.gmra.mxu3 %vm291_vm0, %v965_v25 }
  0x69   :  { %910 = vmatmul.msk.bf16.gmra.mxu0 %vm291_vm0, %v942_v26  ;;  %918 = vmatmul.msk.bf16.gmra.mxu1 %vm291_vm0, %v950_v27 }
  0x6a   :  { %926 = vmatmul.msk.bf16.gmra.mxu2 %vm291_vm0, %v958_v28  ;;  %934 = vmatmul.msk.bf16.gmra.mxu3 %vm291_vm0, %v966_v29 }
  0x79   :  { %911 = vmatmul.msk.bf16.gmra.mxu0 %vm291_vm0, %v943_v30  ;;  %919 = vmatmul.msk.bf16.gmra.mxu1 %vm291_vm0, %v951_v31 }
  0x7a   :  { %927 = vmatmul.msk.bf16.gmra.mxu2 %vm291_vm0, %v959_v32  ;;  %935 = vmatmul.msk.bf16.gmra.mxu3 %vm291_vm0, %v967_v33 }
  0x89   :  { %912 = vmatmul.msk.bf16.gmra.mxu0 %vm291_vm0, %v944_v34  ;;  %920 = vmatmul.msk.bf16.gmra.mxu1 %vm291_vm0, %v952_v35 }
  0x8a   :  { %928 = vmatmul.msk.bf16.gmra.mxu2 %vm291_vm0, %v960_v36  ;;  %936 = vmatmul.msk.bf16.gmra.mxu3 %vm291_vm0, %v968_v37 }
  0x96   :  { %v397_v38 = vpop.f32.mrf.mxu0  ;;  %v437_v39 = vpop.f32.mrf.mxu1 }
  0x97   :  { %v398_v41 = vadd.f32 %v1354_v40, %v397_v38  ;;  %v438_v42 = vadd.f32 %v1354_v40, %v437_v39 }
  0x99   :  { %v557_v49 = vmax.f32 %v398_v41, 0.0  ;;  %v573_v50 = vmax.f32 %v438_v42, 0.0 }
  0x9d   :  { %v477_v43 = vpop.f32.mrf.mxu2  ;;  %v517_v44 = vpop.f32.mrf.mxu3 }
  0x9e   :  { %v399_v45 = vpop.f32.mrf.mxu0  ;;  %v439_v46 = vpop.f32.mrf.mxu1  ;;  %v478_v55 = vadd.f32 %v1354_v40, %v477_v43  ;;  %v518_v56 = vadd.f32 %v1354_v40, %v517_v44 }
  0x9f   :  { %v400_v47 = vadd.f32 %v1354_v40, %v399_v45  ;;  %v440_v48 = vadd.f32 %v1354_v40, %v439_v46 }
  0xa0   :  { %v589_v63 = vmax.f32 %v478_v55, 0.0  ;;  %v605_v0 = vmax.f32 %v518_v56, 0.0 }
  0xa1   :  { %v558_v51 = vmax.f32 %v400_v47, 0.0  ;;  %v574_v52 = vmax.f32 %v440_v48, 0.0 }
  0xa3   :  { %v978_v53 = vpack.c.bf16 %v558_v51, %v557_v49  ;;  %v1018_v54 = vpack.c.bf16 %v574_v52, %v573_v50 }
  0xa5   :  { %979 = vst [vmem:[%s1519_s3] sm:$0xff] %v978_v53   ;;  %v479_v57 = vpop.f32.mrf.mxu2  ;;  %v519_v58 = vpop.f32.mrf.mxu3 }
  0xa6   :  { %1142 = vst [vmem:[%s1519_s3 + $0x40] sm:$0xff] %v1018_v54   ;;  %v480_v59 = vadd.f32 %v1354_v40, %v479_v57  ;;  %v520_v60 = vadd.f32 %v1354_v40, %v519_v58  ;;  %v402_v61 = vpop.f32.mrf.mxu0  ;;  %v442_v62 = vpop.f32.mrf.mxu1 }
  0xa7   :  { %v403_v5 = vadd.f32 %v1354_v40, %v402_v61  ;;  %v443_v6 = vadd.f32 %v1354_v40, %v442_v62 }
  0xa8   :  { %v590_v1 = vmax.f32 %v480_v59, 0.0  ;;  %v606_v2 = vmax.f32 %v520_v60, 0.0 }
  0xa9   :  { %v559_v13 = vmax.f32 %v403_v5, 0.0  ;;  %v575_v14 = vmax.f32 %v443_v6, 0.0 }
  0xaa   :  { %v1058_v3 = vpack.c.bf16 %v590_v1, %v589_v63  ;;  %v1098_v4 = vpack.c.bf16 %v606_v2, %v605_v0 }
  0xac   :  { %1150 = vst [vmem:[%s1519_s3 + $0x80] sm:$0xff] %v1058_v3  }
  0xad   :  { %1158 = vst [vmem:[%s1519_s3 + $0xc0] sm:$0xff] %v1098_v4   ;;  %v482_v7 = vpop.f32.mrf.mxu2  ;;  %v522_v8 = vpop.f32.mrf.mxu3 }
  0xae   :  { %v404_v9 = vpop.f32.mrf.mxu0  ;;  %v444_v10 = vpop.f32.mrf.mxu1  ;;  %v483_v19 = vadd.f32 %v1354_v40, %v482_v7  ;;  %v523_v20 = vadd.f32 %v1354_v40, %v522_v8 }
  0xaf   :  { %v405_v11 = vadd.f32 %v1354_v40, %v404_v9  ;;  %v445_v12 = vadd.f32 %v1354_v40, %v444_v10 }
  0xb0   :  { %v591_v27 = vmax.f32 %v483_v19, 0.0  ;;  %v607_v28 = vmax.f32 %v523_v20, 0.0 }
  0xb1   :  { %v560_v15 = vmax.f32 %v405_v11, 0.0  ;;  %v576_v16 = vmax.f32 %v445_v12, 0.0 }
  0xb3   :  { %v983_v17 = vpack.c.bf16 %v560_v15, %v559_v13  ;;  %v1023_v18 = vpack.c.bf16 %v576_v16, %v575_v14 }
  0xb5   :  { %1135 = vst [vmem:[%s1519_s3 + $0x8] sm:$0xff] %v983_v17   ;;  %v484_v21 = vpop.f32.mrf.mxu2  ;;  %v524_v22 = vpop.f32.mrf.mxu3 }
  0xb6   :  { %1143 = vst [vmem:[%s1519_s3 + $0x48] sm:$0xff] %v1023_v18   ;;  %v485_v23 = vadd.f32 %v1354_v40, %v484_v21  ;;  %v525_v24 = vadd.f32 %v1354_v40, %v524_v22  ;;  %v407_v25 = vpop.f32.mrf.mxu0  ;;  %v447_v26 = vpop.f32.mrf.mxu1 }
  0xb7   :  { %v408_v33 = vadd.f32 %v1354_v40, %v407_v25  ;;  %v448_v34 = vadd.f32 %v1354_v40, %v447_v26 }
  0xb8   :  { %v592_v29 = vmax.f32 %v485_v23, 0.0  ;;  %v608_v30 = vmax.f32 %v525_v24, 0.0 }
  0xb9   :  { %v561_v42 = vmax.f32 %v408_v33, 0.0  ;;  %v577_v43 = vmax.f32 %v448_v34, 0.0 }
  0xba   :  { %v1063_v31 = vpack.c.bf16 %v592_v29, %v591_v27  ;;  %v1103_v32 = vpack.c.bf16 %v608_v30, %v607_v28 }
  0xbc   :  { %1151 = vst [vmem:[%s1519_s3 + $0x88] sm:$0xff] %v1063_v31  }
  0xbd   :  { %1159 = vst [vmem:[%s1519_s3 + $0xc8] sm:$0xff] %v1103_v32   ;;  %v487_v35 = vpop.f32.mrf.mxu2  ;;  %v527_v36 = vpop.f32.mrf.mxu3 }
  0xbe   :  { %v409_v37 = vpop.f32.mrf.mxu0  ;;  %v449_v38 = vpop.f32.mrf.mxu1  ;;  %v488_v48 = vadd.f32 %v1354_v40, %v487_v35  ;;  %v528_v49 = vadd.f32 %v1354_v40, %v527_v36 }
  0xbf   :  { %v410_v39 = vadd.f32 %v1354_v40, %v409_v37  ;;  %v450_v41 = vadd.f32 %v1354_v40, %v449_v38 }
  0xc0   :  { %v593_v56 = vmax.f32 %v488_v48, 0.0  ;;  %v609_v57 = vmax.f32 %v528_v49, 0.0 }
  0xc1   :  { %v562_v44 = vmax.f32 %v410_v39, 0.0  ;;  %v578_v45 = vmax.f32 %v450_v41, 0.0 }
  0xc3   :  { %v988_v46 = vpack.c.bf16 %v562_v44, %v561_v42  ;;  %v1028_v47 = vpack.c.bf16 %v578_v45, %v577_v43 }
  0xc5   :  { %1136 = vst [vmem:[%s1519_s3 + $0x10] sm:$0xff] %v988_v46   ;;  %v489_v50 = vpop.f32.mrf.mxu2  ;;  %v529_v51 = vpop.f32.mrf.mxu3 }
  0xc6   :  { %1144 = vst [vmem:[%s1519_s3 + $0x50] sm:$0xff] %v1028_v47   ;;  %v490_v52 = vadd.f32 %v1354_v40, %v489_v50  ;;  %v530_v53 = vadd.f32 %v1354_v40, %v529_v51  ;;  %v412_v54 = vpop.f32.mrf.mxu0  ;;  %v452_v55 = vpop.f32.mrf.mxu1 }
  0xc7   :  { %v413_v62 = vadd.f32 %v1354_v40, %v412_v54  ;;  %v453_v63 = vadd.f32 %v1354_v40, %v452_v55 }
  0xc8   :  { %v594_v58 = vmax.f32 %v490_v52, 0.0  ;;  %v610_v59 = vmax.f32 %v530_v53, 0.0 }
  0xc9   :  { %v563_v6 = vmax.f32 %v413_v62, 0.0  ;;  %v579_v7 = vmax.f32 %v453_v63, 0.0 }
  0xca   :  { %v1068_v60 = vpack.c.bf16 %v594_v58, %v593_v56  ;;  %v1108_v61 = vpack.c.bf16 %v610_v59, %v609_v57 }
  0xcc   :  { %1152 = vst [vmem:[%s1519_s3 + $0x90] sm:$0xff] %v1068_v60  }
  0xcd   :  { %1160 = vst [vmem:[%s1519_s3 + $0xd0] sm:$0xff] %v1108_v61   ;;  %v492_v0 = vpop.f32.mrf.mxu2  ;;  %v532_v1 = vpop.f32.mrf.mxu3 }
  0xce   :  { %v414_v2 = vpop.f32.mrf.mxu0  ;;  %v454_v3 = vpop.f32.mrf.mxu1  ;;  %v493_v12 = vadd.f32 %v1354_v40, %v492_v0  ;;  %v533_v13 = vadd.f32 %v1354_v40, %v532_v1 }
  0xcf   :  { %v415_v4 = vadd.f32 %v1354_v40, %v414_v2  ;;  %v455_v5 = vadd.f32 %v1354_v40, %v454_v3 }
  0xd0   :  { %v595_v20 = vmax.f32 %v493_v12, 0.0  ;;  %v611_v21 = vmax.f32 %v533_v13, 0.0 }
  0xd1   :  { %v564_v8 = vmax.f32 %v415_v4, 0.0  ;;  %v580_v9 = vmax.f32 %v455_v5, 0.0 }
  0xd3   :  { %v993_v10 = vpack.c.bf16 %v564_v8, %v563_v6  ;;  %v1033_v11 = vpack.c.bf16 %v580_v9, %v579_v7 }
  0xd5   :  { %1137 = vst [vmem:[%s1519_s3 + $0x18] sm:$0xff] %v993_v10   ;;  %v494_v14 = vpop.f32.mrf.mxu2  ;;  %v534_v15 = vpop.f32.mrf.mxu3 }
  0xd6   :  { %1145 = vst [vmem:[%s1519_s3 + $0x58] sm:$0xff] %v1033_v11   ;;  %v495_v16 = vadd.f32 %v1354_v40, %v494_v14  ;;  %v535_v17 = vadd.f32 %v1354_v40, %v534_v15  ;;  %v417_v18 = vpop.f32.mrf.mxu0  ;;  %v457_v19 = vpop.f32.mrf.mxu1 }
  0xd7   :  { %v418_v26 = vadd.f32 %v1354_v40, %v417_v18  ;;  %v458_v27 = vadd.f32 %v1354_v40, %v457_v19 }
  0xd8   :  { %v596_v22 = vmax.f32 %v495_v16, 0.0  ;;  %v612_v23 = vmax.f32 %v535_v17, 0.0 }
  0xd9   :  { %v565_v34 = vmax.f32 %v418_v26, 0.0  ;;  %v581_v35 = vmax.f32 %v458_v27, 0.0 }
  0xda   :  { %v1073_v24 = vpack.c.bf16 %v596_v22, %v595_v20  ;;  %v1113_v25 = vpack.c.bf16 %v612_v23, %v611_v21 }
  0xdc   :  { %1153 = vst [vmem:[%s1519_s3 + $0x98] sm:$0xff] %v1073_v24  }
  0xdd   :  { %1161 = vst [vmem:[%s1519_s3 + $0xd8] sm:$0xff] %v1113_v25   ;;  %v497_v28 = vpop.f32.mrf.mxu2  ;;  %v537_v29 = vpop.f32.mrf.mxu3 }
  0xde   :  { %v419_v30 = vpop.f32.mrf.mxu0  ;;  %v459_v31 = vpop.f32.mrf.mxu1  ;;  %v498_v41 = vadd.f32 %v1354_v40, %v497_v28  ;;  %v538_v42 = vadd.f32 %v1354_v40, %v537_v29 }
  0xdf   :  { %v420_v32 = vadd.f32 %v1354_v40, %v419_v30  ;;  %v460_v33 = vadd.f32 %v1354_v40, %v459_v31 }
  0xe0   :  { %v597_v49 = vmax.f32 %v498_v41, 0.0  ;;  %v613_v50 = vmax.f32 %v538_v42, 0.0 }
  0xe1   :  { %v566_v36 = vmax.f32 %v420_v32, 0.0  ;;  %v582_v37 = vmax.f32 %v460_v33, 0.0 }
  0xe3   :  { %v998_v38 = vpack.c.bf16 %v566_v36, %v565_v34  ;;  %v1038_v39 = vpack.c.bf16 %v582_v37, %v581_v35 }
  0xe5   :  { %1138 = vst [vmem:[%s1519_s3 + $0x20] sm:$0xff] %v998_v38   ;;  %v499_v43 = vpop.f32.mrf.mxu2  ;;  %v539_v44 = vpop.f32.mrf.mxu3 }
  0xe6   :  { %1146 = vst [vmem:[%s1519_s3 + $0x60] sm:$0xff] %v1038_v39   ;;  %v500_v45 = vadd.f32 %v1354_v40, %v499_v43  ;;  %v540_v46 = vadd.f32 %v1354_v40, %v539_v44  ;;  %v422_v47 = vpop.f32.mrf.mxu0  ;;  %v462_v48 = vpop.f32.mrf.mxu1 }
  0xe7   :  { %v423_v55 = vadd.f32 %v1354_v40, %v422_v47  ;;  %v463_v56 = vadd.f32 %v1354_v40, %v462_v48 }
  0xe8   :  { %v598_v51 = vmax.f32 %v500_v45, 0.0  ;;  %v614_v52 = vmax.f32 %v540_v46, 0.0 }
  0xe9   :  { %v567_v63 = vmax.f32 %v423_v55, 0.0  ;;  %v583_v0 = vmax.f32 %v463_v56, 0.0 }
  0xea   :  { %v1078_v53 = vpack.c.bf16 %v598_v51, %v597_v49  ;;  %v1118_v54 = vpack.c.bf16 %v614_v52, %v613_v50 }
  0xec   :  { %1154 = vst [vmem:[%s1519_s3 + $0xa0] sm:$0xff] %v1078_v53  }
  0xed   :  { %1162 = vst [vmem:[%s1519_s3 + $0xe0] sm:$0xff] %v1118_v54   ;;  %v502_v57 = vpop.f32.mrf.mxu2  ;;  %v542_v58 = vpop.f32.mrf.mxu3 }
  0xee   :  { %v424_v59 = vpop.f32.mrf.mxu0  ;;  %v464_v60 = vpop.f32.mrf.mxu1  ;;  %v503_v5 = vadd.f32 %v1354_v40, %v502_v57  ;;  %v543_v6 = vadd.f32 %v1354_v40, %v542_v58 }
  0xef   :  { %v425_v61 = vadd.f32 %v1354_v40, %v424_v59  ;;  %v465_v62 = vadd.f32 %v1354_v40, %v464_v60 }
  0xf0   :  { %v599_v13 = vmax.f32 %v503_v5, 0.0  ;;  %v615_v14 = vmax.f32 %v543_v6, 0.0 }
  0xf1   :  { %v568_v1 = vmax.f32 %v425_v61, 0.0  ;;  %v584_v2 = vmax.f32 %v465_v62, 0.0 }
  0xf3   :  { %v1003_v3 = vpack.c.bf16 %v568_v1, %v567_v63  ;;  %v1043_v4 = vpack.c.bf16 %v584_v2, %v583_v0 }
  0xf5   :  { %1139 = vst [vmem:[%s1519_s3 + $0x28] sm:$0xff] %v1003_v3   ;;  %v504_v7 = vpop.f32.mrf.mxu2  ;;  %v544_v8 = vpop.f32.mrf.mxu3 }
  0xf6   :  { %1147 = vst [vmem:[%s1519_s3 + $0x68] sm:$0xff] %v1043_v4   ;;  %v505_v9 = vadd.f32 %v1354_v40, %v504_v7  ;;  %v545_v10 = vadd.f32 %v1354_v40, %v544_v8  ;;  %v427_v11 = vpop.f32.mrf.mxu0  ;;  %v467_v12 = vpop.f32.mrf.mxu1 }
  0xf7   :  { %v428_v19 = vadd.f32 %v1354_v40, %v427_v11  ;;  %v468_v20 = vadd.f32 %v1354_v40, %v467_v12 }
  0xf8   :  { %v600_v15 = vmax.f32 %v505_v9, 0.0  ;;  %v616_v16 = vmax.f32 %v545_v10, 0.0 }
  0xf9   :  { %v569_v27 = vmax.f32 %v428_v19, 0.0  ;;  %v585_v28 = vmax.f32 %v468_v20, 0.0 }
  0xfa   :  { %v1083_v17 = vpack.c.bf16 %v600_v15, %v599_v13  ;;  %v1123_v18 = vpack.c.bf16 %v616_v16, %v615_v14 }
  0xfc   :  { %1155 = vst [vmem:[%s1519_s3 + $0xa8] sm:$0xff] %v1083_v17  }
  0xfd   :  { %1163 = vst [vmem:[%s1519_s3 + $0xe8] sm:$0xff] %v1123_v18   ;;  %v507_v21 = vpop.f32.mrf.mxu2  ;;  %v547_v22 = vpop.f32.mrf.mxu3 }
  0xfe   :  { %v429_v23 = vpop.f32.mrf.mxu0  ;;  %v469_v24 = vpop.f32.mrf.mxu1  ;;  %v508_v33 = vadd.f32 %v1354_v40, %v507_v21  ;;  %v548_v34 = vadd.f32 %v1354_v40, %v547_v22 }
  0xff   :  { %v430_v25 = vadd.f32 %v1354_v40, %v429_v23  ;;  %v470_v26 = vadd.f32 %v1354_v40, %v469_v24 }
 0x100   :  { %v601_v42 = vmax.f32 %v508_v33, 0.0  ;;  %v617_v43 = vmax.f32 %v548_v34, 0.0 }
 0x101   :  { %v570_v29 = vmax.f32 %v430_v25, 0.0  ;;  %v586_v30 = vmax.f32 %v470_v26, 0.0 }
 0x103   :  { %v1008_v31 = vpack.c.bf16 %v570_v29, %v569_v27  ;;  %v1048_v32 = vpack.c.bf16 %v586_v30, %v585_v28 }
 0x105   :  { %1140 = vst [vmem:[%s1519_s3 + $0x30] sm:$0xff] %v1008_v31   ;;  %v509_v35 = vpop.f32.mrf.mxu2  ;;  %v549_v36 = vpop.f32.mrf.mxu3 }
 0x106   :  { %1148 = vst [vmem:[%s1519_s3 + $0x70] sm:$0xff] %v1048_v32   ;;  %v510_v37 = vadd.f32 %v1354_v40, %v509_v35  ;;  %v550_v38 = vadd.f32 %v1354_v40, %v549_v36  ;;  %v432_v39 = vpop.f32.mrf.mxu0  ;;  %v472_v41 = vpop.f32.mrf.mxu1 }
 0x107   :  { %v433_v48 = vadd.f32 %v1354_v40, %v432_v39  ;;  %v473_v49 = vadd.f32 %v1354_v40, %v472_v41 }
 0x108   :  { %v602_v44 = vmax.f32 %v510_v37, 0.0  ;;  %v618_v45 = vmax.f32 %v550_v38, 0.0 }
 0x109   :  { %v571_v56 = vmax.f32 %v433_v48, 0.0  ;;  %v587_v57 = vmax.f32 %v473_v49, 0.0 }
 0x10a   :  { %v1088_v46 = vpack.c.bf16 %v602_v44, %v601_v42  ;;  %v1128_v47 = vpack.c.bf16 %v618_v45, %v617_v43 }
 0x10c   :  { %1156 = vst [vmem:[%s1519_s3 + $0xb0] sm:$0xff] %v1088_v46  }
 0x10d   :  { %1164 = vst [vmem:[%s1519_s3 + $0xf0] sm:$0xff] %v1128_v47   ;;  %v512_v50 = vpop.f32.mrf.mxu2  ;;  %v552_v51 = vpop.f32.mrf.mxu3 }
 0x10e   :  { %v434_v52 = vpop.f32.mrf.mxu0  ;;  %v474_v53 = vpop.f32.mrf.mxu1  ;;  %v513_v62 = vadd.f32 %v1354_v40, %v512_v50  ;;  %v553_v63 = vadd.f32 %v1354_v40, %v552_v51 }
 0x10f   :  { %v435_v54 = vadd.f32 %v1354_v40, %v434_v52  ;;  %v475_v55 = vadd.f32 %v1354_v40, %v474_v53 }
 0x110   :  { %v603_v4 = vmax.f32 %v513_v62, 0.0  ;;  %v619_v5 = vmax.f32 %v553_v63, 0.0 }
 0x111   :  { %v572_v58 = vmax.f32 %v435_v54, 0.0  ;;  %v588_v59 = vmax.f32 %v475_v55, 0.0 }
 0x113   :  { %v1013_v60 = vpack.c.bf16 %v572_v58, %v571_v56  ;;  %v1053_v61 = vpack.c.bf16 %v588_v59, %v587_v57 }
 0x115   :  { %1141 = vst [vmem:[%s1519_s3 + $0x38] sm:$0xff] %v1013_v60   ;;  %v514_v0 = vpop.f32.mrf.mxu2  ;;  %v554_v1 = vpop.f32.mrf.mxu3 }
 0x116   :  { %1149 = vst [vmem:[%s1519_s3 + $0x78] sm:$0xff] %v1053_v61   ;;  %v515_v2 = vadd.f32 %v1354_v40, %v514_v0  ;;  %v555_v3 = vadd.f32 %v1354_v40, %v554_v1 }
 0x118   :  { %v604_v6 = vmax.f32 %v515_v2, 0.0  ;;  %v620_v7 = vmax.f32 %v555_v3, 0.0 }
 0x11a   :  { %v1093_v8 = vpack.c.bf16 %v604_v6, %v603_v4  ;;  %v1133_v9 = vpack.c.bf16 %v620_v7, %v619_v5 }
 0x11c   :  { %1157 = vst [vmem:[%s1519_s3 + $0xb8] sm:$0xff] %v1093_v8  }
 0x11d   :  { %1165 = vst [vmem:[%s1519_s3 + $0xf8] sm:$0xff] %v1133_v9  }

// kernel: fwd.46
= control target key start
LH: loop header
LB: loop body
LE: loop exit
PB: predicated region body
PF: predicated region fallthrough
CT: control target
= control target key end

     0   :  { %vm259_vm0 = vcmask 261120   ;;  %s1440_s1 = inlined_call_operand.vmem [shape: bf16[32,128], index: 1, kind: input, shape index: {}]   ;;  %s1441_s0 = inlined_call_operand.vmem [shape: bf16[512,32], index: 0, kind: input, shape index: {}]   ;;  %s1442_s2 = inlined_call_operand.vmem [shape: f32[1,128], index: 2, kind: input, shape index: {}]   ;;  %s1443_s3 = inlined_call_operand.vmem [shape: bf16[512,128], index: 3, kind: output, shape index: {}]  }
   0x1   :  { %v922_v0 = vld [vmem:[%s1440_s1 + $0x8] sm:$0xff]  ;;  %v921_v1 = vld [vmem:[%s1440_s1] sm:$0xff]  ;;  %v891_v10 = vld [vmem:[%s1441_s0 + $0x10] sm:$0xff] }
   0x2   :  { %362 = vmatpush.bf16.msra.mxu0 %v922_v0  ;;  %1114 = vmatpush.bf16.msra.mxu1 %v922_v0  ;;  %v889_v2 = vld [vmem:[%s1441_s0] sm:$0xff]  ;;  %v890_v6 = vld [vmem:[%s1441_s0 + $0x8] sm:$0xff]  ;;  %v899_v11 = vld [vmem:[%s1441_s0 + $0x50] sm:$0xff] }
   0x3   :  { %1115 = vmatpush.bf16.msra.mxu2 %v922_v0  ;;  %1116 = vmatpush.bf16.msra.mxu3 %v922_v0  ;;  %v897_v3 = vld [vmem:[%s1441_s0 + $0x40] sm:$0xff]  ;;  %v898_v7 = vld [vmem:[%s1441_s0 + $0x48] sm:$0xff]  ;;  %v907_v12 = vld [vmem:[%s1441_s0 + $0x90] sm:$0xff] }
   0x4   :  { %v905_v4 = vld [vmem:[%s1441_s0 + $0x80] sm:$0xff]  ;;  %v906_v8 = vld [vmem:[%s1441_s0 + $0x88] sm:$0xff]  ;;  %v915_v13 = vld [vmem:[%s1441_s0 + $0xd0] sm:$0xff] }
   0x5   :  { %v913_v5 = vld [vmem:[%s1441_s0 + $0xc0] sm:$0xff]  ;;  %v914_v9 = vld [vmem:[%s1441_s0 + $0xc8] sm:$0xff]  ;;  %v892_v14 = vld [vmem:[%s1441_s0 + $0x18] sm:$0xff] }
   0x6   :  { %363 = vmatpush.bf16.msra.mxu0 %v921_v1  ;;  %1117 = vmatpush.bf16.msra.mxu1 %v921_v1  ;;  %v900_v15 = vld [vmem:[%s1441_s0 + $0x58] sm:$0xff]  ;;  %v893_v18 = vld [vmem:[%s1441_s0 + $0x20] sm:$0xff]  ;;  %v894_v22 = vld [vmem:[%s1441_s0 + $0x28] sm:$0xff] }
   0x7   :  { %1118 = vmatpush.bf16.msra.mxu2 %v921_v1  ;;  %1119 = vmatpush.bf16.msra.mxu3 %v921_v1  ;;  %v908_v16 = vld [vmem:[%s1441_s0 + $0x98] sm:$0xff]  ;;  %v901_v19 = vld [vmem:[%s1441_s0 + $0x60] sm:$0xff]  ;;  %v902_v23 = vld [vmem:[%s1441_s0 + $0x68] sm:$0xff] }
   0x8   :  { %v916_v17 = vld [vmem:[%s1441_s0 + $0xd8] sm:$0xff]  ;;  %v909_v20 = vld [vmem:[%s1441_s0 + $0xa0] sm:$0xff]  ;;  %v910_v24 = vld [vmem:[%s1441_s0 + $0xa8] sm:$0xff] }
   0x9   :  { %857 = vmatmul.msk.bf16.vlgmr.msra.gmra.mxu0 %vm259_vm0, %v889_v2  ;;  %865 = vmatmul.msk.bf16.vlgmr.msra.gmra.mxu1 %vm259_vm0, %v897_v3  ;;  %v917_v21 = vld [vmem:[%s1441_s0 + $0xe0] sm:$0xff]  ;;  %v918_v25 = vld [vmem:[%s1441_s0 + $0xe8] sm:$0xff]  ;;  %v895_v26 = vld [vmem:[%s1441_s0 + $0x30] sm:$0xff] }
   0xa   :  { %873 = vmatmul.msk.bf16.vlgmr.msra.gmra.mxu2 %vm259_vm0, %v905_v4  ;;  %881 = vmatmul.msk.bf16.vlgmr.msra.gmra.mxu3 %vm259_vm0, %v913_v5  ;;  %v903_v27 = vld [vmem:[%s1441_s0 + $0x70] sm:$0xff]  ;;  %v896_v30 = vld [vmem:[%s1441_s0 + $0x38] sm:$0xff]  ;;  %v1278_v36 = vld [vmem:[%s1442_s2] ss:$0 sm:$0xff] }
   0xb   :  { %v911_v28 = vld [vmem:[%s1441_s0 + $0xb0] sm:$0xff]  ;;  %v904_v31 = vld [vmem:[%s1441_s0 + $0x78] sm:$0xff] }
   0xc   :  { %v919_v29 = vld [vmem:[%s1441_s0 + $0xf0] sm:$0xff]  ;;  %v912_v32 = vld [vmem:[%s1441_s0 + $0xb8] sm:$0xff] }
   0xd   :  { %v920_v33 = vld [vmem:[%s1441_s0 + $0xf8] sm:$0xff] }
  0x19   :  { %858 = vmatmul.msk.bf16.gmra.mxu0 %vm259_vm0, %v890_v6  ;;  %866 = vmatmul.msk.bf16.gmra.mxu1 %vm259_vm0, %v898_v7 }
  0x1a   :  { %874 = vmatmul.msk.bf16.gmra.mxu2 %vm259_vm0, %v906_v8  ;;  %882 = vmatmul.msk.bf16.gmra.mxu3 %vm259_vm0, %v914_v9 }
  0x29   :  { %859 = vmatmul.msk.bf16.gmra.mxu0 %vm259_vm0, %v891_v10  ;;  %867 = vmatmul.msk.bf16.gmra.mxu1 %vm259_vm0, %v899_v11 }
  0x2a   :  { %875 = vmatmul.msk.bf16.gmra.mxu2 %vm259_vm0, %v907_v12  ;;  %883 = vmatmul.msk.bf16.gmra.mxu3 %vm259_vm0, %v915_v13 }
  0x39   :  { %860 = vmatmul.msk.bf16.gmra.mxu0 %vm259_vm0, %v892_v14  ;;  %868 = vmatmul.msk.bf16.gmra.mxu1 %vm259_vm0, %v900_v15 }
  0x3a   :  { %876 = vmatmul.msk.bf16.gmra.mxu2 %vm259_vm0, %v908_v16  ;;  %884 = vmatmul.msk.bf16.gmra.mxu3 %vm259_vm0, %v916_v17 }
  0x49   :  { %861 = vmatmul.msk.bf16.gmra.mxu0 %vm259_vm0, %v893_v18  ;;  %869 = vmatmul.msk.bf16.gmra.mxu1 %vm259_vm0, %v901_v19 }
  0x4a   :  { %877 = vmatmul.msk.bf16.gmra.mxu2 %vm259_vm0, %v909_v20  ;;  %885 = vmatmul.msk.bf16.gmra.mxu3 %vm259_vm0, %v917_v21 }
  0x59   :  { %862 = vmatmul.msk.bf16.gmra.mxu0 %vm259_vm0, %v894_v22  ;;  %870 = vmatmul.msk.bf16.gmra.mxu1 %vm259_vm0, %v902_v23 }
  0x5a   :  { %878 = vmatmul.msk.bf16.gmra.mxu2 %vm259_vm0, %v910_v24  ;;  %886 = vmatmul.msk.bf16.gmra.mxu3 %vm259_vm0, %v918_v25 }
  0x69   :  { %863 = vmatmul.msk.bf16.gmra.mxu0 %vm259_vm0, %v895_v26  ;;  %871 = vmatmul.msk.bf16.gmra.mxu1 %vm259_vm0, %v903_v27 }
  0x6a   :  { %879 = vmatmul.msk.bf16.gmra.mxu2 %vm259_vm0, %v911_v28  ;;  %887 = vmatmul.msk.bf16.gmra.mxu3 %vm259_vm0, %v919_v29 }
  0x79   :  { %864 = vmatmul.msk.bf16.gmra.mxu0 %vm259_vm0, %v896_v30  ;;  %872 = vmatmul.msk.bf16.gmra.mxu1 %vm259_vm0, %v904_v31 }
  0x7a   :  { %880 = vmatmul.msk.bf16.gmra.mxu2 %vm259_vm0, %v912_v32  ;;  %888 = vmatmul.msk.bf16.gmra.mxu3 %vm259_vm0, %v920_v33 }
  0x86   :  { %v365_v34 = vpop.f32.mrf.mxu0  ;;  %v405_v35 = vpop.f32.mrf.mxu1 }
  0x87   :  { %v366_v37 = vadd.f32 %v1278_v36, %v365_v34  ;;  %v406_v38 = vadd.f32 %v1278_v36, %v405_v35 }
  0x89   :  { %v525_v45 = vmax.f32 %v366_v37, 0.0  ;;  %v541_v46 = vmax.f32 %v406_v38, 0.0 }
  0x8d   :  { %v445_v39 = vpop.f32.mrf.mxu2  ;;  %v485_v40 = vpop.f32.mrf.mxu3 }
  0x8e   :  { %v367_v41 = vpop.f32.mrf.mxu0  ;;  %v407_v42 = vpop.f32.mrf.mxu1  ;;  %v446_v51 = vadd.f32 %v1278_v36, %v445_v39  ;;  %v486_v52 = vadd.f32 %v1278_v36, %v485_v40 }
  0x8f   :  { %v368_v43 = vadd.f32 %v1278_v36, %v367_v41  ;;  %v408_v44 = vadd.f32 %v1278_v36, %v407_v42 }
  0x90   :  { %v557_v59 = vmax.f32 %v446_v51, 0.0  ;;  %v573_v60 = vmax.f32 %v486_v52, 0.0 }
  0x91   :  { %v526_v47 = vmax.f32 %v368_v43, 0.0  ;;  %v542_v48 = vmax.f32 %v408_v44, 0.0 }
  0x93   :  { %v926_v49 = vpack.c.bf16 %v526_v47, %v525_v45  ;;  %v966_v50 = vpack.c.bf16 %v542_v48, %v541_v46 }
  0x95   :  { %927 = vst [vmem:[%s1443_s3] sm:$0xff] %v926_v49   ;;  %v447_v53 = vpop.f32.mrf.mxu2  ;;  %v487_v54 = vpop.f32.mrf.mxu3 }
  0x96   :  { %1090 = vst [vmem:[%s1443_s3 + $0x40] sm:$0xff] %v966_v50   ;;  %v448_v55 = vadd.f32 %v1278_v36, %v447_v53  ;;  %v488_v56 = vadd.f32 %v1278_v36, %v487_v54  ;;  %v370_v57 = vpop.f32.mrf.mxu0  ;;  %v410_v58 = vpop.f32.mrf.mxu1 }
  0x97   :  { %v371_v1 = vadd.f32 %v1278_v36, %v370_v57  ;;  %v411_v2 = vadd.f32 %v1278_v36, %v410_v58 }
  0x98   :  { %v558_v61 = vmax.f32 %v448_v55, 0.0  ;;  %v574_v62 = vmax.f32 %v488_v56, 0.0 }
  0x99   :  { %v527_v9 = vmax.f32 %v371_v1, 0.0  ;;  %v543_v10 = vmax.f32 %v411_v2, 0.0 }
  0x9a   :  { %v1006_v63 = vpack.c.bf16 %v558_v61, %v557_v59  ;;  %v1046_v0 = vpack.c.bf16 %v574_v62, %v573_v60 }
  0x9c   :  { %1098 = vst [vmem:[%s1443_s3 + $0x80] sm:$0xff] %v1006_v63  }
  0x9d   :  { %1106 = vst [vmem:[%s1443_s3 + $0xc0] sm:$0xff] %v1046_v0   ;;  %v450_v3 = vpop.f32.mrf.mxu2  ;;  %v490_v4 = vpop.f32.mrf.mxu3 }
  0x9e   :  { %v372_v5 = vpop.f32.mrf.mxu0  ;;  %v412_v6 = vpop.f32.mrf.mxu1  ;;  %v451_v15 = vadd.f32 %v1278_v36, %v450_v3  ;;  %v491_v16 = vadd.f32 %v1278_v36, %v490_v4 }
  0x9f   :  { %v373_v7 = vadd.f32 %v1278_v36, %v372_v5  ;;  %v413_v8 = vadd.f32 %v1278_v36, %v412_v6 }
  0xa0   :  { %v559_v23 = vmax.f32 %v451_v15, 0.0  ;;  %v575_v24 = vmax.f32 %v491_v16, 0.0 }
  0xa1   :  { %v528_v11 = vmax.f32 %v373_v7, 0.0  ;;  %v544_v12 = vmax.f32 %v413_v8, 0.0 }
  0xa3   :  { %v931_v13 = vpack.c.bf16 %v528_v11, %v527_v9  ;;  %v971_v14 = vpack.c.bf16 %v544_v12, %v543_v10 }
  0xa5   :  { %1083 = vst [vmem:[%s1443_s3 + $0x8] sm:$0xff] %v931_v13   ;;  %v452_v17 = vpop.f32.mrf.mxu2  ;;  %v492_v18 = vpop.f32.mrf.mxu3 }
  0xa6   :  { %1091 = vst [vmem:[%s1443_s3 + $0x48] sm:$0xff] %v971_v14   ;;  %v453_v19 = vadd.f32 %v1278_v36, %v452_v17  ;;  %v493_v20 = vadd.f32 %v1278_v36, %v492_v18  ;;  %v375_v21 = vpop.f32.mrf.mxu0  ;;  %v415_v22 = vpop.f32.mrf.mxu1 }
  0xa7   :  { %v376_v29 = vadd.f32 %v1278_v36, %v375_v21  ;;  %v416_v30 = vadd.f32 %v1278_v36, %v415_v22 }
  0xa8   :  { %v560_v25 = vmax.f32 %v453_v19, 0.0  ;;  %v576_v26 = vmax.f32 %v493_v20, 0.0 }
  0xa9   :  { %v529_v38 = vmax.f32 %v376_v29, 0.0  ;;  %v545_v39 = vmax.f32 %v416_v30, 0.0 }
  0xaa   :  { %v1011_v27 = vpack.c.bf16 %v560_v25, %v559_v23  ;;  %v1051_v28 = vpack.c.bf16 %v576_v26, %v575_v24 }
  0xac   :  { %1099 = vst [vmem:[%s1443_s3 + $0x88] sm:$0xff] %v1011_v27  }
  0xad   :  { %1107 = vst [vmem:[%s1443_s3 + $0xc8] sm:$0xff] %v1051_v28   ;;  %v455_v31 = vpop.f32.mrf.mxu2  ;;  %v495_v32 = vpop.f32.mrf.mxu3 }
  0xae   :  { %v377_v33 = vpop.f32.mrf.mxu0  ;;  %v417_v34 = vpop.f32.mrf.mxu1  ;;  %v456_v44 = vadd.f32 %v1278_v36, %v455_v31  ;;  %v496_v45 = vadd.f32 %v1278_v36, %v495_v32 }
  0xaf   :  { %v378_v35 = vadd.f32 %v1278_v36, %v377_v33  ;;  %v418_v37 = vadd.f32 %v1278_v36, %v417_v34 }
  0xb0   :  { %v561_v52 = vmax.f32 %v456_v44, 0.0  ;;  %v577_v53 = vmax.f32 %v496_v45, 0.0 }
  0xb1   :  { %v530_v40 = vmax.f32 %v378_v35, 0.0  ;;  %v546_v41 = vmax.f32 %v418_v37, 0.0 }
  0xb3   :  { %v936_v42 = vpack.c.bf16 %v530_v40, %v529_v38  ;;  %v976_v43 = vpack.c.bf16 %v546_v41, %v545_v39 }
  0xb5   :  { %1084 = vst [vmem:[%s1443_s3 + $0x10] sm:$0xff] %v936_v42   ;;  %v457_v46 = vpop.f32.mrf.mxu2  ;;  %v497_v47 = vpop.f32.mrf.mxu3 }
  0xb6   :  { %1092 = vst [vmem:[%s1443_s3 + $0x50] sm:$0xff] %v976_v43   ;;  %v458_v48 = vadd.f32 %v1278_v36, %v457_v46  ;;  %v498_v49 = vadd.f32 %v1278_v36, %v497_v47  ;;  %v380_v50 = vpop.f32.mrf.mxu0  ;;  %v420_v51 = vpop.f32.mrf.mxu1 }
  0xb7   :  { %v381_v58 = vadd.f32 %v1278_v36, %v380_v50  ;;  %v421_v59 = vadd.f32 %v1278_v36, %v420_v51 }
  0xb8   :  { %v562_v54 = vmax.f32 %v458_v48, 0.0  ;;  %v578_v55 = vmax.f32 %v498_v49, 0.0 }
  0xb9   :  { %v531_v2 = vmax.f32 %v381_v58, 0.0  ;;  %v547_v3 = vmax.f32 %v421_v59, 0.0 }
  0xba   :  { %v1016_v56 = vpack.c.bf16 %v562_v54, %v561_v52  ;;  %v1056_v57 = vpack.c.bf16 %v578_v55, %v577_v53 }
  0xbc   :  { %1100 = vst [vmem:[%s1443_s3 + $0x90] sm:$0xff] %v1016_v56  }
  0xbd   :  { %1108 = vst [vmem:[%s1443_s3 + $0xd0] sm:$0xff] %v1056_v57   ;;  %v460_v60 = vpop.f32.mrf.mxu2  ;;  %v500_v61 = vpop.f32.mrf.mxu3 }
  0xbe   :  { %v382_v62 = vpop.f32.mrf.mxu0  ;;  %v422_v63 = vpop.f32.mrf.mxu1  ;;  %v461_v8 = vadd.f32 %v1278_v36, %v460_v60  ;;  %v501_v9 = vadd.f32 %v1278_v36, %v500_v61 }
  0xbf   :  { %v383_v0 = vadd.f32 %v1278_v36, %v382_v62  ;;  %v423_v1 = vadd.f32 %v1278_v36, %v422_v63 }
  0xc0   :  { %v563_v16 = vmax.f32 %v461_v8, 0.0  ;;  %v579_v17 = vmax.f32 %v501_v9, 0.0 }
  0xc1   :  { %v532_v4 = vmax.f32 %v383_v0, 0.0  ;;  %v548_v5 = vmax.f32 %v423_v1, 0.0 }
  0xc3   :  { %v941_v6 = vpack.c.bf16 %v532_v4, %v531_v2  ;;  %v981_v7 = vpack.c.bf16 %v548_v5, %v547_v3 }
  0xc5   :  { %1085 = vst [vmem:[%s1443_s3 + $0x18] sm:$0xff] %v941_v6   ;;  %v462_v10 = vpop.f32.mrf.mxu2  ;;  %v502_v11 = vpop.f32.mrf.mxu3 }
  0xc6   :  { %1093 = vst [vmem:[%s1443_s3 + $0x58] sm:$0xff] %v981_v7   ;;  %v463_v12 = vadd.f32 %v1278_v36, %v462_v10  ;;  %v503_v13 = vadd.f32 %v1278_v36, %v502_v11  ;;  %v385_v14 = vpop.f32.mrf.mxu0  ;;  %v425_v15 = vpop.f32.mrf.mxu1 }
  0xc7   :  { %v386_v22 = vadd.f32 %v1278_v36, %v385_v14  ;;  %v426_v23 = vadd.f32 %v1278_v36, %v425_v15 }
  0xc8   :  { %v564_v18 = vmax.f32 %v463_v12, 0.0  ;;  %v580_v19 = vmax.f32 %v503_v13, 0.0 }
  0xc9   :  { %v533_v30 = vmax.f32 %v386_v22, 0.0  ;;  %v549_v31 = vmax.f32 %v426_v23, 0.0 }
  0xca   :  { %v1021_v20 = vpack.c.bf16 %v564_v18, %v563_v16  ;;  %v1061_v21 = vpack.c.bf16 %v580_v19, %v579_v17 }
  0xcc   :  { %1101 = vst [vmem:[%s1443_s3 + $0x98] sm:$0xff] %v1021_v20  }
  0xcd   :  { %1109 = vst [vmem:[%s1443_s3 + $0xd8] sm:$0xff] %v1061_v21   ;;  %v465_v24 = vpop.f32.mrf.mxu2  ;;  %v505_v25 = vpop.f32.mrf.mxu3 }
  0xce   :  { %v387_v26 = vpop.f32.mrf.mxu0  ;;  %v427_v27 = vpop.f32.mrf.mxu1  ;;  %v466_v37 = vadd.f32 %v1278_v36, %v465_v24  ;;  %v506_v38 = vadd.f32 %v1278_v36, %v505_v25 }
  0xcf   :  { %v388_v28 = vadd.f32 %v1278_v36, %v387_v26  ;;  %v428_v29 = vadd.f32 %v1278_v36, %v427_v27 }
  0xd0   :  { %v565_v45 = vmax.f32 %v466_v37, 0.0  ;;  %v581_v46 = vmax.f32 %v506_v38, 0.0 }
  0xd1   :  { %v534_v32 = vmax.f32 %v388_v28, 0.0  ;;  %v550_v33 = vmax.f32 %v428_v29, 0.0 }
  0xd3   :  { %v946_v34 = vpack.c.bf16 %v534_v32, %v533_v30  ;;  %v986_v35 = vpack.c.bf16 %v550_v33, %v549_v31 }
  0xd5   :  { %1086 = vst [vmem:[%s1443_s3 + $0x20] sm:$0xff] %v946_v34   ;;  %v467_v39 = vpop.f32.mrf.mxu2  ;;  %v507_v40 = vpop.f32.mrf.mxu3 }
  0xd6   :  { %1094 = vst [vmem:[%s1443_s3 + $0x60] sm:$0xff] %v986_v35   ;;  %v468_v41 = vadd.f32 %v1278_v36, %v467_v39  ;;  %v508_v42 = vadd.f32 %v1278_v36, %v507_v40  ;;  %v390_v43 = vpop.f32.mrf.mxu0  ;;  %v430_v44 = vpop.f32.mrf.mxu1 }
  0xd7   :  { %v391_v51 = vadd.f32 %v1278_v36, %v390_v43  ;;  %v431_v52 = vadd.f32 %v1278_v36, %v430_v44 }
  0xd8   :  { %v566_v47 = vmax.f32 %v468_v41, 0.0  ;;  %v582_v48 = vmax.f32 %v508_v42, 0.0 }
  0xd9   :  { %v535_v59 = vmax.f32 %v391_v51, 0.0  ;;  %v551_v60 = vmax.f32 %v431_v52, 0.0 }
  0xda   :  { %v1026_v49 = vpack.c.bf16 %v566_v47, %v565_v45  ;;  %v1066_v50 = vpack.c.bf16 %v582_v48, %v581_v46 }
  0xdc   :  { %1102 = vst [vmem:[%s1443_s3 + $0xa0] sm:$0xff] %v1026_v49  }
  0xdd   :  { %1110 = vst [vmem:[%s1443_s3 + $0xe0] sm:$0xff] %v1066_v50   ;;  %v470_v53 = vpop.f32.mrf.mxu2  ;;  %v510_v54 = vpop.f32.mrf.mxu3 }
  0xde   :  { %v392_v55 = vpop.f32.mrf.mxu0  ;;  %v432_v56 = vpop.f32.mrf.mxu1  ;;  %v471_v1 = vadd.f32 %v1278_v36, %v470_v53  ;;  %v511_v2 = vadd.f32 %v1278_v36, %v510_v54 }
  0xdf   :  { %v393_v57 = vadd.f32 %v1278_v36, %v392_v55  ;;  %v433_v58 = vadd.f32 %v1278_v36, %v432_v56 }
  0xe0   :  { %v567_v9 = vmax.f32 %v471_v1, 0.0  ;;  %v583_v10 = vmax.f32 %v511_v2, 0.0 }
  0xe1   :  { %v536_v61 = vmax.f32 %v393_v57, 0.0  ;;  %v552_v62 = vmax.f32 %v433_v58, 0.0 }
  0xe3   :  { %v951_v63 = vpack.c.bf16 %v536_v61, %v535_v59  ;;  %v991_v0 = vpack.c.bf16 %v552_v62, %v551_v60 }
  0xe5   :  { %1087 = vst [vmem:[%s1443_s3 + $0x28] sm:$0xff] %v951_v63   ;;  %v472_v3 = vpop.f32.mrf.mxu2  ;;  %v512_v4 = vpop.f32.mrf.mxu3 }
  0xe6   :  { %1095 = vst [vmem:[%s1443_s3 + $0x68] sm:$0xff] %v991_v0   ;;  %v473_v5 = vadd.f32 %v1278_v36, %v472_v3  ;;  %v513_v6 = vadd.f32 %v1278_v36, %v512_v4  ;;  %v395_v7 = vpop.f32.mrf.mxu0  ;;  %v435_v8 = vpop.f32.mrf.mxu1 }
  0xe7   :  { %v396_v15 = vadd.f32 %v1278_v36, %v395_v7  ;;  %v436_v16 = vadd.f32 %v1278_v36, %v435_v8 }
  0xe8   :  { %v568_v11 = vmax.f32 %v473_v5, 0.0  ;;  %v584_v12 = vmax.f32 %v513_v6, 0.0 }
  0xe9   :  { %v537_v23 = vmax.f32 %v396_v15, 0.0  ;;  %v553_v24 = vmax.f32 %v436_v16, 0.0 }
  0xea   :  { %v1031_v13 = vpack.c.bf16 %v568_v11, %v567_v9  ;;  %v1071_v14 = vpack.c.bf16 %v584_v12, %v583_v10 }
  0xec   :  { %1103 = vst [vmem:[%s1443_s3 + $0xa8] sm:$0xff] %v1031_v13  }
  0xed   :  { %1111 = vst [vmem:[%s1443_s3 + $0xe8] sm:$0xff] %v1071_v14   ;;  %v475_v17 = vpop.f32.mrf.mxu2  ;;  %v515_v18 = vpop.f32.mrf.mxu3 }
  0xee   :  { %v397_v19 = vpop.f32.mrf.mxu0  ;;  %v437_v20 = vpop.f32.mrf.mxu1  ;;  %v476_v29 = vadd.f32 %v1278_v36, %v475_v17  ;;  %v516_v30 = vadd.f32 %v1278_v36, %v515_v18 }
  0xef   :  { %v398_v21 = vadd.f32 %v1278_v36, %v397_v19  ;;  %v438_v22 = vadd.f32 %v1278_v36, %v437_v20 }
  0xf0   :  { %v569_v38 = vmax.f32 %v476_v29, 0.0  ;;  %v585_v39 = vmax.f32 %v516_v30, 0.0 }
  0xf1   :  { %v538_v25 = vmax.f32 %v398_v21, 0.0  ;;  %v554_v26 = vmax.f32 %v438_v22, 0.0 }
  0xf3   :  { %v956_v27 = vpack.c.bf16 %v538_v25, %v537_v23  ;;  %v996_v28 = vpack.c.bf16 %v554_v26, %v553_v24 }
  0xf5   :  { %1088 = vst [vmem:[%s1443_s3 + $0x30] sm:$0xff] %v956_v27   ;;  %v477_v31 = vpop.f32.mrf.mxu2  ;;  %v517_v32 = vpop.f32.mrf.mxu3 }
  0xf6   :  { %1096 = vst [vmem:[%s1443_s3 + $0x70] sm:$0xff] %v996_v28   ;;  %v478_v33 = vadd.f32 %v1278_v36, %v477_v31  ;;  %v518_v34 = vadd.f32 %v1278_v36, %v517_v32  ;;  %v400_v35 = vpop.f32.mrf.mxu0  ;;  %v440_v37 = vpop.f32.mrf.mxu1 }
  0xf7   :  { %v401_v44 = vadd.f32 %v1278_v36, %v400_v35  ;;  %v441_v45 = vadd.f32 %v1278_v36, %v440_v37 }
  0xf8   :  { %v570_v40 = vmax.f32 %v478_v33, 0.0  ;;  %v586_v41 = vmax.f32 %v518_v34, 0.0 }
  0xf9   :  { %v539_v52 = vmax.f32 %v401_v44, 0.0  ;;  %v555_v53 = vmax.f32 %v441_v45, 0.0 }
  0xfa   :  { %v1036_v42 = vpack.c.bf16 %v570_v40, %v569_v38  ;;  %v1076_v43 = vpack.c.bf16 %v586_v41, %v585_v39 }
  0xfc   :  { %1104 = vst [vmem:[%s1443_s3 + $0xb0] sm:$0xff] %v1036_v42  }
  0xfd   :  { %1112 = vst [vmem:[%s1443_s3 + $0xf0] sm:$0xff] %v1076_v43   ;;  %v480_v46 = vpop.f32.mrf.mxu2  ;;  %v520_v47 = vpop.f32.mrf.mxu3 }
  0xfe   :  { %v402_v48 = vpop.f32.mrf.mxu0  ;;  %v442_v49 = vpop.f32.mrf.mxu1  ;;  %v481_v58 = vadd.f32 %v1278_v36, %v480_v46  ;;  %v521_v59 = vadd.f32 %v1278_v36, %v520_v47 }
  0xff   :  { %v403_v50 = vadd.f32 %v1278_v36, %v402_v48  ;;  %v443_v51 = vadd.f32 %v1278_v36, %v442_v49 }
 0x100   :  { %v571_v0 = vmax.f32 %v481_v58, 0.0  ;;  %v587_v1 = vmax.f32 %v521_v59, 0.0 }
 0x101   :  { %v540_v54 = vmax.f32 %v403_v50, 0.0  ;;  %v556_v55 = vmax.f32 %v443_v51, 0.0 }
 0x103   :  { %v961_v56 = vpack.c.bf16 %v540_v54, %v539_v52  ;;  %v1001_v57 = vpack.c.bf16 %v556_v55, %v555_v53 }
 0x105   :  { %1089 = vst [vmem:[%s1443_s3 + $0x38] sm:$0xff] %v961_v56   ;;  %v482_v60 = vpop.f32.mrf.mxu2  ;;  %v522_v61 = vpop.f32.mrf.mxu3 }
 0x106   :  { %1097 = vst [vmem:[%s1443_s3 + $0x78] sm:$0xff] %v1001_v57   ;;  %v483_v62 = vadd.f32 %v1278_v36, %v482_v60  ;;  %v523_v63 = vadd.f32 %v1278_v36, %v522_v61 }
 0x108   :  { %v572_v2 = vmax.f32 %v483_v62, 0.0  ;;  %v588_v3 = vmax.f32 %v523_v63, 0.0 }
 0x10a   :  { %v1041_v4 = vpack.c.bf16 %v572_v2, %v571_v0  ;;  %v1081_v5 = vpack.c.bf16 %v588_v3, %v587_v1 }
 0x10c   :  { %1105 = vst [vmem:[%s1443_s3 + $0xb8] sm:$0xff] %v1041_v4  }
 0x10d   :  { %1113 = vst [vmem:[%s1443_s3 + $0xf8] sm:$0xff] %v1081_v5  }

// kernel: fwd.47
= control target key start
LH: loop header
LB: loop body
LE: loop exit
PB: predicated region body
PF: predicated region fallthrough
CT: control target
= control target key end

     0   :  { %vm187_vm0 = vcmask 261120   ;;  %s757_s1 = inlined_call_operand.vmem [shape: bf16[160,128], index: 1, kind: input, shape index: {}]   ;;  %s758_s0 = inlined_call_operand.vmem [shape: bf16[128,160], index: 0, kind: input, shape index: {}]   ;;  %s759_s2 = inlined_call_operand.vmem [shape: f32[1,128], index: 2, kind: input, shape index: {}]   ;;  %s760_s3 = inlined_call_operand.vmem [shape: bf16[128,128], index: 3, kind: output, shape index: {}]  }
   0x1   :  { %v497_v0 = vld [vmem:[%s757_s1 + $0x38] sm:$0xff]  ;;  %v499_v1 = vld [vmem:[%s757_s1 + $0x48] sm:$0xff]  ;;  %v496_v2 = vld [vmem:[%s757_s1 + $0x30] sm:$0xff] }
   0x2   :  { %212 = vmatpush.bf16.msra.mxu0 %v497_v0  ;;  %547 = vmatpush.bf16.msra.mxu2 %v497_v0  ;;  %v498_v3 = vld [vmem:[%s757_s1 + $0x40] sm:$0xff]  ;;  %v366_v5 = vld [vmem:[%s758_s0 + $0x8] sm:$0xf0]  ;;  %v484_v8 = vld [vmem:[%s758_s0 + $0x54] sm:$0xf] }
   0x3   :  { %267 = vmatpush.bf16.msra.mxu1 %v499_v1  ;;  %v474_v4 = vld [vmem:[%s758_s0 + $0x4] sm:$0xf]  ;;  %555 = vmatpush.bf16.msra.mxu3 %v499_v1  ;;  %v495_v7 = vld [vmem:[%s757_s1 + $0x28] sm:$0xff]  ;;  %v406_v9 = vld [vmem:[%s758_s0 + $0x58] sm:$0xf0] }
   0x4   :  { %v369_v6 = vor.u32 %v474_v4, %v366_v5  ;;  %v494_v10 = vld [vmem:[%s757_s1 + $0x20] sm:$0xff]  ;;  %v409_v11 = vor.u32 %v484_v8, %v406_v9  ;;  %v493_v12 = vld [vmem:[%s757_s1 + $0x18] sm:$0xff]  ;;  %v492_v13 = vld [vmem:[%s757_s1 + $0x10] sm:$0xff] }
   0x5   :  { %v476_v14 = vld [vmem:[%s758_s0 + $0x14] sm:$0xf]  ;;  %v374_v15 = vld [vmem:[%s758_s0 + $0x18] sm:$0xf0]  ;;  %v491_v17 = vld [vmem:[%s757_s1 + $0x8] sm:$0xff] }
   0x6   :  { %213 = vmatpush.bf16.msra.mxu0 %v496_v2  ;;  %548 = vmatpush.bf16.msra.mxu2 %v496_v2  ;;  %v377_v16 = vor.u32 %v476_v14, %v374_v15  ;;  %v486_v18 = vld [vmem:[%s758_s0 + $0x64] sm:$0xf]  ;;  %v414_v19 = vld [vmem:[%s758_s0 + $0x68] sm:$0xf0]  ;;  %v364_v21 = vld [vmem:[%s758_s0] sm:$0xf] }
   0x7   :  { %268 = vmatpush.bf16.msra.mxu1 %v498_v3  ;;  %556 = vmatpush.bf16.msra.mxu3 %v498_v3  ;;  %v490_v20 = vld [vmem:[%s757_s1] sm:$0xff]  ;;  %v475_v22 = vld [vmem:[%s758_s0 + $0x4] sm:$0xf0]  ;;  %v417_v23 = vor.u32 %v486_v18, %v414_v19  ;;  %v382_v29 = vld [vmem:[%s758_s0 + $0x28] sm:$0xf0] }
   0x8   :  { %v396_v24 = vld [vmem:[%s758_s0 + $0x40] sm:$0xf]  ;;  %v483_v25 = vld [vmem:[%s758_s0 + $0x44] sm:$0xf0]  ;;  %v365_v26 = vor.u32 %v475_v22, %v364_v21  ;;  %v478_v28 = vld [vmem:[%s758_s0 + $0x24] sm:$0xf] }
   0x9   :  { %v397_v27 = vor.u32 %v483_v25, %v396_v24  ;;  %v385_v30 = vor.u32 %v478_v28, %v382_v29  ;;  %v488_v31 = vld [vmem:[%s758_s0 + $0x74] sm:$0xf]  ;;  %v422_v32 = vld [vmem:[%s758_s0 + $0x78] sm:$0xf0]  ;;  %v372_v33 = vld [vmem:[%s758_s0 + $0x10] sm:$0xf] }
   0xa   :  { %466 = vmatmul.msk.bf16.vlgmr.msra.gmra.mxu1 %vm187_vm0, %v369_v6  ;;  %214 = vmatpush.bf16.msra.mxu0 %v495_v7  ;;  %v477_v34 = vld [vmem:[%s758_s0 + $0x14] sm:$0xf0]  ;;  %v425_v35 = vor.u32 %v488_v31, %v422_v32  ;;  %v404_v36 = vld [vmem:[%s758_s0 + $0x50] sm:$0xf]  ;;  %v480_v40 = vld [vmem:[%s758_s0 + $0x34] sm:$0xf] }
   0xb   :  { %549 = vmatpush.bf16.msra.mxu2 %v495_v7  ;;  %471 = vmatmul.msk.bf16.vlgmr.msra.gmra.mxu3 %vm187_vm0, %v409_v11  ;;  %v485_v37 = vld [vmem:[%s758_s0 + $0x54] sm:$0xf0]  ;;  %v373_v38 = vor.u32 %v477_v34, %v372_v33  ;;  %v390_v41 = vld [vmem:[%s758_s0 + $0x38] sm:$0xf0]  ;;  %v380_v43 = vld [vmem:[%s758_s0 + $0x20] sm:$0xf] }
   0xc   :  { %v405_v39 = vor.u32 %v485_v37, %v404_v36  ;;  %v393_v42 = vor.u32 %v480_v40, %v390_v41  ;;  %v479_v44 = vld [vmem:[%s758_s0 + $0x24] sm:$0xf0]  ;;  %v412_v45 = vld [vmem:[%s758_s0 + $0x60] sm:$0xf]  ;;  %v482_v49 = vld [vmem:[%s758_s0 + $0x44] sm:$0xf] }
   0xd   :  { %v487_v46 = vld [vmem:[%s758_s0 + $0x64] sm:$0xf0]  ;;  %v381_v47 = vor.u32 %v479_v44, %v380_v43  ;;  %v398_v50 = vld [vmem:[%s758_s0 + $0x48] sm:$0xf0]  ;;  %v388_v52 = vld [vmem:[%s758_s0 + $0x30] sm:$0xf] }
   0xe   :  { %215 = vmatpush.bf16.msra.mxu0 %v494_v10  ;;  %v413_v48 = vor.u32 %v487_v46, %v412_v45  ;;  %v401_v51 = vor.u32 %v482_v49, %v398_v50  ;;  %v481_v53 = vld [vmem:[%s758_s0 + $0x34] sm:$0xf0]  ;;  %v420_v54 = vld [vmem:[%s758_s0 + $0x70] sm:$0xf]  ;;  %v715_v62 = vld [vmem:[%s759_s2] ss:$0 sm:$0xff] }
   0xf   :  { %550 = vmatpush.bf16.msra.mxu2 %v494_v10  ;;  %v489_v55 = vld [vmem:[%s758_s0 + $0x74] sm:$0xf0]  ;;  %v389_v56 = vor.u32 %v481_v53, %v388_v52 }
  0x10   :  { %v421_v57 = vor.u32 %v489_v55, %v420_v54 }
  0x12   :  { %216 = vmatpush.bf16.msra.mxu0 %v493_v12 }
  0x13   :  { %551 = vmatpush.bf16.msra.mxu2 %v493_v12 }
  0x16   :  { %217 = vmatpush.bf16.msra.mxu0 %v492_v13 }
  0x17   :  { %552 = vmatpush.bf16.msra.mxu2 %v492_v13 }
  0x1a   :  { %467 = vmatmul.msk.bf16.gmra.mxu1 %vm187_vm0, %v377_v16  ;;  %218 = vmatpush.bf16.msra.mxu0 %v491_v17 }
  0x1b   :  { %553 = vmatpush.bf16.msra.mxu2 %v491_v17  ;;  %472 = vmatmul.msk.bf16.gmra.mxu3 %vm187_vm0, %v417_v23 }
  0x1e   :  { %219 = vmatpush.bf16.msra.mxu0 %v490_v20 }
  0x1f   :  { %554 = vmatpush.bf16.msra.mxu2 %v490_v20 }
  0x21   :  { %220 = vmatmul.bf16.vlgmr.msra.gmra.mxu0 %v365_v26 }
  0x22   :  { %240 = vmatmul.bf16.vlgmr.msra.gmra.mxu2 %v397_v27 }
  0x2a   :  { %468 = vmatmul.msk.bf16.gmra.mxu1 %vm187_vm0, %v385_v30 }
  0x2b   :  { %473 = vmatmul.msk.bf16.gmra.mxu3 %vm187_vm0, %v425_v35 }
  0x31   :  { %225 = vmatmul.bf16.gmra.mxu0 %v373_v38 }
  0x32   :  { %245 = vmatmul.bf16.gmra.mxu2 %v405_v39 }
  0x3a   :  { %469 = vmatmul.msk.bf16.gmra.mxu1 %vm187_vm0, %v393_v42 }
  0x41   :  { %230 = vmatmul.bf16.gmra.mxu0 %v381_v47 }
  0x42   :  { %250 = vmatmul.bf16.gmra.mxu2 %v413_v48 }
  0x4a   :  { %470 = vmatmul.msk.bf16.gmra.mxu1 %vm187_vm0, %v401_v51 }
  0x51   :  { %235 = vmatmul.bf16.gmra.mxu0 %v389_v56 }
  0x52   :  { %255 = vmatmul.bf16.gmra.mxu2 %v421_v57 }
  0x87   :  { %v270_v58 = vpop.f32.mrf.mxu1 }
  0x8e   :  { %v295_v11 = vpop.f32.mrf.mxu3 }
  0x8f   :  { %v272_v59 = vpop.f32.mrf.mxu1 }
  0x96   :  { %v297_v20 = vpop.f32.mrf.mxu3 }
  0x97   :  { %v275_v60 = vpop.f32.mrf.mxu1 }
  0x9e   :  { %v221_v61 = vpop.f32.mrf.mxu0  ;;  %v300_v32 = vpop.f32.mrf.mxu3 }
  0x9f   :  { %v277_v63 = vpop.f32.mrf.mxu1  ;;  %v222_v0 = vadd.f32 %v715_v62, %v221_v61 }
  0xa1   :  { %v271_v3 = vadd.f32 %v270_v58, %v222_v0 }
  0xa3   :  { %v310_v7 = vmax.f32 %v271_v3, 0.0 }
  0xa5   :  { %v241_v1 = vpop.f32.mrf.mxu2 }
  0xa6   :  { %v223_v2 = vpop.f32.mrf.mxu0  ;;  %v302_v46 = vpop.f32.mrf.mxu3  ;;  %v242_v47 = vadd.f32 %v715_v62, %v241_v1 }
  0xa7   :  { %v224_v4 = vadd.f32 %v715_v62, %v223_v2  ;;  %v280_v5 = vpop.f32.mrf.mxu1 }
  0xa9   :  { %v273_v6 = vadd.f32 %v272_v59, %v224_v4 }
  0xab   :  { %v311_v8 = vmax.f32 %v273_v6, 0.0 }
  0xad   :  { %v503_v9 = vpack.c.bf16 %v311_v8, %v310_v7  ;;  %v243_v10 = vpop.f32.mrf.mxu2 }
  0xae   :  { %v226_v12 = vpop.f32.mrf.mxu0  ;;  %v244_v50 = vadd.f32 %v715_v62, %v243_v10  ;;  %v305_v2 = vpop.f32.mrf.mxu3 }
  0xaf   :  { %504 = vst [vmem:[%s760_s3] sm:$0xff] %v503_v9   ;;  %v282_v13 = vpop.f32.mrf.mxu1  ;;  %v227_v14 = vadd.f32 %v715_v62, %v226_v12 }
  0xb1   :  { %v276_v17 = vadd.f32 %v275_v60, %v227_v14 }
  0xb3   :  { %v312_v23 = vmax.f32 %v276_v17, 0.0 }
  0xb5   :  { %v246_v15 = vpop.f32.mrf.mxu2 }
  0xb6   :  { %v228_v16 = vpop.f32.mrf.mxu0  ;;  %v247_v22 = vadd.f32 %v715_v62, %v246_v15  ;;  %v307_v15 = vpop.f32.mrf.mxu3 }
  0xb7   :  { %v229_v18 = vadd.f32 %v715_v62, %v228_v16  ;;  %v285_v19 = vpop.f32.mrf.mxu1 }
  0xb8   :  { %v296_v27 = vadd.f32 %v295_v11, %v247_v22 }
  0xb9   :  { %v278_v21 = vadd.f32 %v277_v63, %v229_v18 }
  0xba   :  { %v320_v33 = vmax.f32 %v296_v27, 0.0 }
  0xbb   :  { %v313_v24 = vmax.f32 %v278_v21, 0.0 }
  0xbd   :  { %v508_v25 = vpack.c.bf16 %v313_v24, %v312_v23  ;;  %v248_v26 = vpop.f32.mrf.mxu2 }
  0xbe   :  { %v249_v28 = vadd.f32 %v715_v62, %v248_v26  ;;  %v231_v29 = vpop.f32.mrf.mxu0 }
  0xbf   :  { %540 = vst [vmem:[%s760_s3 + $0x8] sm:$0xff] %v508_v25   ;;  %v287_v30 = vpop.f32.mrf.mxu1  ;;  %v232_v35 = vadd.f32 %v715_v62, %v231_v29 }
  0xc0   :  { %v298_v31 = vadd.f32 %v297_v20, %v249_v28 }
  0xc1   :  { %v281_v39 = vadd.f32 %v280_v5, %v232_v35 }
  0xc2   :  { %v321_v34 = vmax.f32 %v298_v31, 0.0 }
  0xc3   :  { %v314_v44 = vmax.f32 %v281_v39, 0.0 }
  0xc4   :  { %v528_v36 = vpack.c.bf16 %v321_v34, %v320_v33 }
  0xc5   :  { %v251_v37 = vpop.f32.mrf.mxu2 }
  0xc6   :  { %544 = vst [vmem:[%s760_s3 + $0x28] sm:$0xff] %v528_v36   ;;  %v233_v38 = vpop.f32.mrf.mxu0  ;;  %v252_v43 = vadd.f32 %v715_v62, %v251_v37 }
  0xc7   :  { %v234_v40 = vadd.f32 %v715_v62, %v233_v38  ;;  %v290_v41 = vpop.f32.mrf.mxu1 }
  0xc8   :  { %v301_v51 = vadd.f32 %v300_v32, %v252_v43  ;;  %v291_v52 = vadd.f32 %v290_v41, %v242_v47 }
  0xc9   :  { %v283_v42 = vadd.f32 %v282_v13, %v234_v40 }
  0xca   :  { %v322_v58 = vmax.f32 %v301_v51, 0.0  ;;  %v318_v59 = vmax.f32 %v291_v52, 0.0 }
  0xcb   :  { %v315_v45 = vmax.f32 %v283_v42, 0.0 }
  0xcd   :  { %v513_v48 = vpack.c.bf16 %v315_v45, %v314_v44  ;;  %v253_v49 = vpop.f32.mrf.mxu2 }
  0xce   :  { %v254_v53 = vadd.f32 %v715_v62, %v253_v49  ;;  %v236_v54 = vpop.f32.mrf.mxu0 }
  0xcf   :  { %541 = vst [vmem:[%s760_s3 + $0x10] sm:$0xff] %v513_v48   ;;  %v292_v55 = vpop.f32.mrf.mxu1  ;;  %v237_v63 = vadd.f32 %v715_v62, %v236_v54 }
  0xd0   :  { %v303_v56 = vadd.f32 %v302_v46, %v254_v53  ;;  %v293_v57 = vadd.f32 %v292_v55, %v244_v50 }
  0xd1   :  { %v286_v5 = vadd.f32 %v285_v19, %v237_v63 }
  0xd2   :  { %v323_v60 = vmax.f32 %v303_v56, 0.0  ;;  %v319_v61 = vmax.f32 %v293_v57, 0.0 }
  0xd3   :  { %v316_v9 = vmax.f32 %v286_v5, 0.0 }
  0xd4   :  { %v533_v0 = vpack.c.bf16 %v323_v60, %v322_v58  ;;  %v523_v1 = vpack.c.bf16 %v319_v61, %v318_v59 }
  0xd5   :  { %v256_v3 = vpop.f32.mrf.mxu2 }
  0xd6   :  { %545 = vst [vmem:[%s760_s3 + $0x30] sm:$0xff] %v533_v0   ;;  %v238_v4 = vpop.f32.mrf.mxu0  ;;  %v257_v8 = vadd.f32 %v715_v62, %v256_v3 }
  0xd7   :  { %543 = vst [vmem:[%s760_s3 + $0x20] sm:$0xff] %v523_v1   ;;  %v239_v6 = vadd.f32 %v715_v62, %v238_v4 }
  0xd8   :  { %v306_v13 = vadd.f32 %v305_v2, %v257_v8 }
  0xd9   :  { %v288_v7 = vadd.f32 %v287_v30, %v239_v6 }
  0xda   :  { %v324_v17 = vmax.f32 %v306_v13, 0.0 }
  0xdb   :  { %v317_v10 = vmax.f32 %v288_v7, 0.0 }
  0xdd   :  { %v518_v11 = vpack.c.bf16 %v317_v10, %v316_v9  ;;  %v258_v12 = vpop.f32.mrf.mxu2 }
  0xde   :  { %v259_v14 = vadd.f32 %v715_v62, %v258_v12 }
  0xdf   :  { %542 = vst [vmem:[%s760_s3 + $0x18] sm:$0xff] %v518_v11  }
  0xe0   :  { %v308_v16 = vadd.f32 %v307_v15, %v259_v14 }
  0xe2   :  { %v325_v18 = vmax.f32 %v308_v16, 0.0 }
  0xe4   :  { %v538_v19 = vpack.c.bf16 %v325_v18, %v324_v17 }
  0xe6   :  { %546 = vst [vmem:[%s760_s3 + $0x38] sm:$0xff] %v538_v19  }

// kernel: fwd.48
= control target key start
LH: loop header
LB: loop body
LE: loop exit
PB: predicated region body
PF: predicated region fallthrough
CT: control target
= control target key end

     0   :  { %vm91_vm0 = vcmask 261120   ;;  %s414_s1 = inlined_call_operand.vmem [shape: bf16[32,128], index: 1, kind: input, shape index: {}]   ;;  %s415_s0 = inlined_call_operand.vmem [shape: bf16[128,32], index: 0, kind: input, shape index: {}]   ;;  %s416_s2 = inlined_call_operand.vmem [shape: f32[1,128], index: 2, kind: input, shape index: {}]   ;;  %s417_s3 = inlined_call_operand.vmem [shape: bf16[128,128], index: 3, kind: output, shape index: {}]  }
   0x1   :  { %v274_v0 = vld [vmem:[%s414_s1 + $0x8] sm:$0xff]  ;;  %v273_v1 = vld [vmem:[%s414_s1] sm:$0xff]  ;;  %v267_v3 = vld [vmem:[%s415_s0 + $0x10] sm:$0xff] }
   0x2   :  { %122 = vmatpush.bf16.msra.mxu0 %v274_v0  ;;  %322 = vmatpush.bf16.msra.mxu1 %v274_v0  ;;  %v265_v2 = vld [vmem:[%s415_s0] sm:$0xff]  ;;  %v271_v5 = vld [vmem:[%s415_s0 + $0x30] sm:$0xff]  ;;  %v266_v6 = vld [vmem:[%s415_s0 + $0x8] sm:$0xff] }
   0x3   :  { %323 = vmatpush.bf16.msra.mxu2 %v274_v0  ;;  %324 = vmatpush.bf16.msra.mxu3 %v274_v0  ;;  %v269_v4 = vld [vmem:[%s415_s0 + $0x20] sm:$0xff]  ;;  %v268_v7 = vld [vmem:[%s415_s0 + $0x18] sm:$0xff]  ;;  %v270_v8 = vld [vmem:[%s415_s0 + $0x28] sm:$0xff] }
   0x4   :  { %v272_v9 = vld [vmem:[%s415_s0 + $0x38] sm:$0xff]  ;;  %v328_v12 = vld [vmem:[%s416_s2] ss:$0 sm:$0xff] }
   0x6   :  { %123 = vmatpush.bf16.msra.mxu0 %v273_v1  ;;  %325 = vmatpush.bf16.msra.mxu1 %v273_v1 }
   0x7   :  { %326 = vmatpush.bf16.msra.mxu2 %v273_v1  ;;  %327 = vmatpush.bf16.msra.mxu3 %v273_v1 }
   0x9   :  { %257 = vmatmul.msk.bf16.vlgmr.msra.gmra.mxu0 %vm91_vm0, %v265_v2  ;;  %259 = vmatmul.msk.bf16.vlgmr.msra.gmra.mxu1 %vm91_vm0, %v267_v3 }
   0xa   :  { %261 = vmatmul.msk.bf16.vlgmr.msra.gmra.mxu2 %vm91_vm0, %v269_v4  ;;  %263 = vmatmul.msk.bf16.vlgmr.msra.gmra.mxu3 %vm91_vm0, %v271_v5 }
  0x19   :  { %258 = vmatmul.msk.bf16.gmra.mxu0 %vm91_vm0, %v266_v6  ;;  %260 = vmatmul.msk.bf16.gmra.mxu1 %vm91_vm0, %v268_v7 }
  0x1a   :  { %262 = vmatmul.msk.bf16.gmra.mxu2 %vm91_vm0, %v270_v8  ;;  %264 = vmatmul.msk.bf16.gmra.mxu3 %vm91_vm0, %v272_v9 }
  0x86   :  { %v125_v10 = vpop.f32.mrf.mxu0  ;;  %v135_v11 = vpop.f32.mrf.mxu1 }
  0x87   :  { %v126_v13 = vadd.f32 %v328_v12, %v125_v10  ;;  %v136_v14 = vadd.f32 %v328_v12, %v135_v11 }
  0x89   :  { %v165_v21 = vmax.f32 %v126_v13, 0.0  ;;  %v169_v22 = vmax.f32 %v136_v14, 0.0 }
  0x8d   :  { %v145_v15 = vpop.f32.mrf.mxu2  ;;  %v155_v16 = vpop.f32.mrf.mxu3 }
  0x8e   :  { %v127_v17 = vpop.f32.mrf.mxu0  ;;  %v137_v18 = vpop.f32.mrf.mxu1  ;;  %v146_v27 = vadd.f32 %v328_v12, %v145_v15  ;;  %v156_v28 = vadd.f32 %v328_v12, %v155_v16 }
  0x8f   :  { %v128_v19 = vadd.f32 %v328_v12, %v127_v17  ;;  %v138_v20 = vadd.f32 %v328_v12, %v137_v18 }
  0x90   :  { %v173_v35 = vmax.f32 %v146_v27, 0.0  ;;  %v177_v36 = vmax.f32 %v156_v28, 0.0 }
  0x91   :  { %v166_v23 = vmax.f32 %v128_v19, 0.0  ;;  %v170_v24 = vmax.f32 %v138_v20, 0.0 }
  0x93   :  { %v278_v25 = vpack.c.bf16 %v166_v23, %v165_v21  ;;  %v288_v26 = vpack.c.bf16 %v170_v24, %v169_v22 }
  0x95   :  { %279 = vst [vmem:[%s417_s3] sm:$0xff] %v278_v25   ;;  %v147_v29 = vpop.f32.mrf.mxu2  ;;  %v157_v30 = vpop.f32.mrf.mxu3 }
  0x96   :  { %316 = vst [vmem:[%s417_s3 + $0x10] sm:$0xff] %v288_v26   ;;  %v148_v31 = vadd.f32 %v328_v12, %v147_v29  ;;  %v158_v32 = vadd.f32 %v328_v12, %v157_v30  ;;  %v130_v33 = vpop.f32.mrf.mxu0  ;;  %v140_v34 = vpop.f32.mrf.mxu1 }
  0x97   :  { %v131_v41 = vadd.f32 %v328_v12, %v130_v33  ;;  %v141_v42 = vadd.f32 %v328_v12, %v140_v34 }
  0x98   :  { %v174_v37 = vmax.f32 %v148_v31, 0.0  ;;  %v178_v38 = vmax.f32 %v158_v32, 0.0 }
  0x99   :  { %v167_v49 = vmax.f32 %v131_v41, 0.0  ;;  %v171_v50 = vmax.f32 %v141_v42, 0.0 }
  0x9a   :  { %v298_v39 = vpack.c.bf16 %v174_v37, %v173_v35  ;;  %v308_v40 = vpack.c.bf16 %v178_v38, %v177_v36 }
  0x9c   :  { %318 = vst [vmem:[%s417_s3 + $0x20] sm:$0xff] %v298_v39  }
  0x9d   :  { %320 = vst [vmem:[%s417_s3 + $0x30] sm:$0xff] %v308_v40   ;;  %v150_v43 = vpop.f32.mrf.mxu2  ;;  %v160_v44 = vpop.f32.mrf.mxu3 }
  0x9e   :  { %v132_v45 = vpop.f32.mrf.mxu0  ;;  %v142_v46 = vpop.f32.mrf.mxu1  ;;  %v151_v55 = vadd.f32 %v328_v12, %v150_v43  ;;  %v161_v56 = vadd.f32 %v328_v12, %v160_v44 }
  0x9f   :  { %v133_v47 = vadd.f32 %v328_v12, %v132_v45  ;;  %v143_v48 = vadd.f32 %v328_v12, %v142_v46 }
  0xa0   :  { %v175_v61 = vmax.f32 %v151_v55, 0.0  ;;  %v179_v62 = vmax.f32 %v161_v56, 0.0 }
  0xa1   :  { %v168_v51 = vmax.f32 %v133_v47, 0.0  ;;  %v172_v52 = vmax.f32 %v143_v48, 0.0 }
  0xa3   :  { %v283_v53 = vpack.c.bf16 %v168_v51, %v167_v49  ;;  %v293_v54 = vpack.c.bf16 %v172_v52, %v171_v50 }
  0xa5   :  { %315 = vst [vmem:[%s417_s3 + $0x8] sm:$0xff] %v283_v53   ;;  %v152_v57 = vpop.f32.mrf.mxu2  ;;  %v162_v58 = vpop.f32.mrf.mxu3 }
  0xa6   :  { %317 = vst [vmem:[%s417_s3 + $0x18] sm:$0xff] %v293_v54   ;;  %v153_v59 = vadd.f32 %v328_v12, %v152_v57  ;;  %v163_v60 = vadd.f32 %v328_v12, %v162_v58 }
  0xa8   :  { %v176_v63 = vmax.f32 %v153_v59, 0.0  ;;  %v180_v0 = vmax.f32 %v163_v60, 0.0 }
  0xaa   :  { %v303_v1 = vpack.c.bf16 %v176_v63, %v175_v61  ;;  %v313_v2 = vpack.c.bf16 %v180_v0, %v179_v62 }
  0xac   :  { %319 = vst [vmem:[%s417_s3 + $0x28] sm:$0xff] %v303_v1  }
  0xad   :  { %321 = vst [vmem:[%s417_s3 + $0x38] sm:$0xff] %v313_v2  }

// kernel: fwd.72
= control target key start
LH: loop header
LB: loop body
LE: loop exit
PB: predicated region body
PF: predicated region fallthrough
CT: control target
= control target key end

     0   :  { %vm107_vm0 = vcmask 523264   ;;  %s452_s1 = inlined_call_operand.vmem [shape: bf16[64,128], index: 1, kind: input, shape index: {}]   ;;  %s453_s2 = inlined_call_operand.vmem [shape: f32[1,128], index: 2, kind: input, shape index: {}]   ;;  %s454_s0 = inlined_call_operand.vmem [shape: bf16[128,64], index: 0, kind: input, shape index: {}]   ;;  %s455_s3 = inlined_call_operand.vmem [shape: bf16[128,128], index: 3, kind: output, shape index: {}]  }
   0x1   :  { %v300_v0 = vld [vmem:[%s452_s1 + $0x18] sm:$0xff]  ;;  %v299_v1 = vld [vmem:[%s452_s1 + $0x10] sm:$0xff]  ;;  %v298_v2 = vld [vmem:[%s452_s1 + $0x8] sm:$0xff] }
   0x2   :  { %136 = vmatpush.bf16.msra.mxu0 %v300_v0  ;;  %348 = vmatpush.bf16.msra.mxu1 %v300_v0  ;;  %v297_v3 = vld [vmem:[%s452_s1] sm:$0xff]  ;;  %v291_v5 = vld [vmem:[%s454_s0 + $0x10] sm:$0xff]  ;;  %v290_v8 = vld [vmem:[%s454_s0 + $0x8] sm:$0xff] }
   0x3   :  { %349 = vmatpush.bf16.msra.mxu2 %v300_v0  ;;  %350 = vmatpush.bf16.msra.mxu3 %v300_v0  ;;  %v289_v4 = vld [vmem:[%s454_s0] sm:$0xff]  ;;  %v295_v7 = vld [vmem:[%s454_s0 + $0x30] sm:$0xff]  ;;  %v292_v9 = vld [vmem:[%s454_s0 + $0x18] sm:$0xff] }
   0x4   :  { %v293_v6 = vld [vmem:[%s454_s0 + $0x20] sm:$0xff]  ;;  %v294_v10 = vld [vmem:[%s454_s0 + $0x28] sm:$0xff]  ;;  %v296_v11 = vld [vmem:[%s454_s0 + $0x38] sm:$0xff] }
   0x5   :  { %v360_v14 = vld [vmem:[%s453_s2] ss:$0 sm:$0xff] }
   0x6   :  { %137 = vmatpush.bf16.msra.mxu0 %v299_v1  ;;  %351 = vmatpush.bf16.msra.mxu1 %v299_v1 }
   0x7   :  { %352 = vmatpush.bf16.msra.mxu2 %v299_v1  ;;  %353 = vmatpush.bf16.msra.mxu3 %v299_v1 }
   0xa   :  { %138 = vmatpush.bf16.msra.mxu0 %v298_v2  ;;  %354 = vmatpush.bf16.msra.mxu1 %v298_v2 }
   0xb   :  { %355 = vmatpush.bf16.msra.mxu2 %v298_v2  ;;  %356 = vmatpush.bf16.msra.mxu3 %v298_v2 }
   0xe   :  { %139 = vmatpush.bf16.msra.mxu0 %v297_v3  ;;  %357 = vmatpush.bf16.msra.mxu1 %v297_v3 }
   0xf   :  { %358 = vmatpush.bf16.msra.mxu2 %v297_v3  ;;  %359 = vmatpush.bf16.msra.mxu3 %v297_v3 }
  0x11   :  { %281 = vmatmul.msk.bf16.vlgmr.msra.gmra.mxu0 %vm107_vm0, %v289_v4  ;;  %283 = vmatmul.msk.bf16.vlgmr.msra.gmra.mxu1 %vm107_vm0, %v291_v5 }
  0x12   :  { %285 = vmatmul.msk.bf16.vlgmr.msra.gmra.mxu2 %vm107_vm0, %v293_v6  ;;  %287 = vmatmul.msk.bf16.vlgmr.msra.gmra.mxu3 %vm107_vm0, %v295_v7 }
  0x21   :  { %282 = vmatmul.msk.bf16.gmra.mxu0 %vm107_vm0, %v290_v8  ;;  %284 = vmatmul.msk.bf16.gmra.mxu1 %vm107_vm0, %v292_v9 }
  0x22   :  { %286 = vmatmul.msk.bf16.gmra.mxu2 %vm107_vm0, %v294_v10  ;;  %288 = vmatmul.msk.bf16.gmra.mxu3 %vm107_vm0, %v296_v11 }
  0x8e   :  { %v141_v12 = vpop.f32.mrf.mxu0  ;;  %v151_v13 = vpop.f32.mrf.mxu1 }
  0x8f   :  { %v142_v15 = vadd.f32 %v360_v14, %v141_v12  ;;  %v152_v16 = vadd.f32 %v360_v14, %v151_v13 }
  0x91   :  { %v181_v23 = vmax.f32 %v142_v15, 0.0  ;;  %v185_v24 = vmax.f32 %v152_v16, 0.0 }
  0x95   :  { %v161_v17 = vpop.f32.mrf.mxu2  ;;  %v171_v18 = vpop.f32.mrf.mxu3 }
  0x96   :  { %v143_v19 = vpop.f32.mrf.mxu0  ;;  %v153_v20 = vpop.f32.mrf.mxu1  ;;  %v162_v29 = vadd.f32 %v360_v14, %v161_v17  ;;  %v172_v30 = vadd.f32 %v360_v14, %v171_v18 }
  0x97   :  { %v144_v21 = vadd.f32 %v360_v14, %v143_v19  ;;  %v154_v22 = vadd.f32 %v360_v14, %v153_v20 }
  0x98   :  { %v189_v37 = vmax.f32 %v162_v29, 0.0  ;;  %v193_v38 = vmax.f32 %v172_v30, 0.0 }
  0x99   :  { %v182_v25 = vmax.f32 %v144_v21, 0.0  ;;  %v186_v26 = vmax.f32 %v154_v22, 0.0 }
  0x9b   :  { %v304_v27 = vpack.c.bf16 %v182_v25, %v181_v23  ;;  %v314_v28 = vpack.c.bf16 %v186_v26, %v185_v24 }
  0x9d   :  { %305 = vst [vmem:[%s455_s3] sm:$0xff] %v304_v27   ;;  %v163_v31 = vpop.f32.mrf.mxu2  ;;  %v173_v32 = vpop.f32.mrf.mxu3 }
  0x9e   :  { %342 = vst [vmem:[%s455_s3 + $0x10] sm:$0xff] %v314_v28   ;;  %v164_v33 = vadd.f32 %v360_v14, %v163_v31  ;;  %v174_v34 = vadd.f32 %v360_v14, %v173_v32  ;;  %v146_v35 = vpop.f32.mrf.mxu0  ;;  %v156_v36 = vpop.f32.mrf.mxu1 }
  0x9f   :  { %v147_v43 = vadd.f32 %v360_v14, %v146_v35  ;;  %v157_v44 = vadd.f32 %v360_v14, %v156_v36 }
  0xa0   :  { %v190_v39 = vmax.f32 %v164_v33, 0.0  ;;  %v194_v40 = vmax.f32 %v174_v34, 0.0 }
  0xa1   :  { %v183_v51 = vmax.f32 %v147_v43, 0.0  ;;  %v187_v52 = vmax.f32 %v157_v44, 0.0 }
  0xa2   :  { %v324_v41 = vpack.c.bf16 %v190_v39, %v189_v37  ;;  %v334_v42 = vpack.c.bf16 %v194_v40, %v193_v38 }
  0xa4   :  { %344 = vst [vmem:[%s455_s3 + $0x20] sm:$0xff] %v324_v41  }
  0xa5   :  { %346 = vst [vmem:[%s455_s3 + $0x30] sm:$0xff] %v334_v42   ;;  %v166_v45 = vpop.f32.mrf.mxu2  ;;  %v176_v46 = vpop.f32.mrf.mxu3 }
  0xa6   :  { %v148_v47 = vpop.f32.mrf.mxu0  ;;  %v158_v48 = vpop.f32.mrf.mxu1  ;;  %v167_v57 = vadd.f32 %v360_v14, %v166_v45  ;;  %v177_v58 = vadd.f32 %v360_v14, %v176_v46 }
  0xa7   :  { %v149_v49 = vadd.f32 %v360_v14, %v148_v47  ;;  %v159_v50 = vadd.f32 %v360_v14, %v158_v48 }
  0xa8   :  { %v191_v63 = vmax.f32 %v167_v57, 0.0  ;;  %v195_v0 = vmax.f32 %v177_v58, 0.0 }
  0xa9   :  { %v184_v53 = vmax.f32 %v149_v49, 0.0  ;;  %v188_v54 = vmax.f32 %v159_v50, 0.0 }
  0xab   :  { %v309_v55 = vpack.c.bf16 %v184_v53, %v183_v51  ;;  %v319_v56 = vpack.c.bf16 %v188_v54, %v187_v52 }
  0xad   :  { %341 = vst [vmem:[%s455_s3 + $0x8] sm:$0xff] %v309_v55   ;;  %v168_v59 = vpop.f32.mrf.mxu2  ;;  %v178_v60 = vpop.f32.mrf.mxu3 }
  0xae   :  { %343 = vst [vmem:[%s455_s3 + $0x18] sm:$0xff] %v319_v56   ;;  %v169_v61 = vadd.f32 %v360_v14, %v168_v59  ;;  %v179_v62 = vadd.f32 %v360_v14, %v178_v60 }
  0xb0   :  { %v192_v1 = vmax.f32 %v169_v61, 0.0  ;;  %v196_v2 = vmax.f32 %v179_v62, 0.0 }
  0xb2   :  { %v329_v3 = vpack.c.bf16 %v192_v1, %v191_v63  ;;  %v339_v4 = vpack.c.bf16 %v196_v2, %v195_v0 }
  0xb4   :  { %345 = vst [vmem:[%s455_s3 + $0x28] sm:$0xff] %v329_v3  }
  0xb5   :  { %347 = vst [vmem:[%s455_s3 + $0x38] sm:$0xff] %v339_v4  }

// kernel: fwd.49
= control target key start
LH: loop header
LB: loop body
LE: loop exit
PB: predicated region body
PF: predicated region fallthrough
CT: control target
= control target key end

     0   :  { %vm315_vm0 = vcmask 261120   ;;  %s1092_s1 = inlined_call_operand.vmem [shape: bf16[288,128], index: 1, kind: input, shape index: {}]   ;;  %s1093_s0 = inlined_call_operand.vmem [shape: bf16[128,288], index: 0, kind: input, shape index: {}]   ;;  %s1094_s2 = inlined_call_operand.vmem [shape: f32[1,128], index: 2, kind: input, shape index: {}]   ;;  %s1095_s3 = inlined_call_operand.vmem [shape: bf16[128,128], index: 3, kind: output, shape index: {}]  }
   0x1   :  { %v746_v0 = vld [vmem:[%s1092_s1 + $0x38] sm:$0xff]  ;;  %v756_v1 = vld [vmem:[%s1092_s1 + $0x88] sm:$0xff]  ;;  %v745_v3 = vld [vmem:[%s1092_s1 + $0x30] sm:$0xff] }
   0x2   :  { %v754_v2 = vld [vmem:[%s1092_s1 + $0x78] sm:$0xff]  ;;  %340 = vmatpush.bf16.msra.mxu0 %v746_v0  ;;  %804 = vmatpush.bf16.msra.mxu3 %v746_v0  ;;  %v755_v4 = vld [vmem:[%s1092_s1 + $0x80] sm:$0xff]  ;;  %v753_v5 = vld [vmem:[%s1092_s1 + $0x70] sm:$0xff] }
   0x3   :  { %444 = vmatpush.bf16.msra.mxu2 %v756_v1  ;;  %389 = vmatpush.bf16.msra.mxu1 %v754_v2  ;;  %v549_v6 = vld [vmem:[%s1093_s0 + $0x8] sm:$0xf]  ;;  %v717_v7 = vld [vmem:[%s1093_s0 + $0x10] sm:$0xf0]  ;;  %v743_v11 = vld [vmem:[%s1092_s1 + $0x20] sm:$0xff] }
   0x4   :  { %v550_v8 = vor.u32 %v717_v7, %v549_v6  ;;  %v744_v9 = vld [vmem:[%s1092_s1 + $0x28] sm:$0xff]  ;;  %v751_v12 = vld [vmem:[%s1092_s1 + $0x60] sm:$0xff]  ;;  %v742_v13 = vld [vmem:[%s1092_s1 + $0x18] sm:$0xff] }
   0x5   :  { %v752_v10 = vld [vmem:[%s1092_s1 + $0x68] sm:$0xff]  ;;  %v750_v14 = vld [vmem:[%s1092_s1 + $0x58] sm:$0xff]  ;;  %v741_v15 = vld [vmem:[%s1092_s1 + $0x10] sm:$0xff] }
   0x6   :  { %341 = vmatpush.bf16.msra.mxu0 %v745_v3  ;;  %805 = vmatpush.bf16.msra.mxu3 %v745_v3  ;;  %v749_v16 = vld [vmem:[%s1092_s1 + $0x50] sm:$0xff]  ;;  %v561_v17 = vld [vmem:[%s1093_s0 + $0x20] sm:$0xf]  ;;  %v720_v18 = vld [vmem:[%s1093_s0 + $0x28] sm:$0xf0] }
   0x7   :  { %445 = vmatpush.bf16.msra.mxu2 %v755_v4  ;;  %390 = vmatpush.bf16.msra.mxu1 %v753_v5  ;;  %v562_v19 = vor.u32 %v720_v18, %v561_v17  ;;  %v740_v20 = vld [vmem:[%s1092_s1 + $0x8] sm:$0xff]  ;;  %v739_v22 = vld [vmem:[%s1092_s1] sm:$0xff]  ;;  %v613_v26 = vld [vmem:[%s1093_s0 + $0x90] sm:$0xf] }
   0x8   :  { %v748_v21 = vld [vmem:[%s1092_s1 + $0x48] sm:$0xff]  ;;  %v747_v23 = vld [vmem:[%s1092_s1 + $0x40] sm:$0xff]  ;;  %v734_v27 = vld [vmem:[%s1093_s0 + $0x98] sm:$0xf0] }
   0x9   :  { %v541_v24 = vld [vmem:[%s1093_s0] sm:$0xf]  ;;  %v716_v25 = vld [vmem:[%s1093_s0 + $0x8] sm:$0xf0]  ;;  %v715_v28 = vld [vmem:[%s1093_s0 + $0x4] sm:$0xf]  ;;  %v614_v31 = vor.u32 %v734_v27, %v613_v26 }
   0xa   :  { %707 = vmatmul.msk.bf16.vlgmr.msra.gmra.mxu2 %vm315_vm0, %v550_v8  ;;  %342 = vmatpush.bf16.msra.mxu0 %v744_v9  ;;  %v543_v29 = vld [vmem:[%s1093_s0 + $0xc] sm:$0xf0]  ;;  %v542_v30 = vor.u32 %v716_v25, %v541_v24  ;;  %v573_v33 = vld [vmem:[%s1093_s0 + $0x38] sm:$0xf]  ;;  %v723_v34 = vld [vmem:[%s1093_s0 + $0x40] sm:$0xf0] }
   0xb   :  { %806 = vmatpush.bf16.msra.mxu3 %v744_v9  ;;  %391 = vmatpush.bf16.msra.mxu1 %v752_v10  ;;  %v546_v32 = vor.u32 %v715_v28, %v543_v29  ;;  %v574_v35 = vor.u32 %v723_v34, %v573_v33  ;;  %v553_v36 = vld [vmem:[%s1093_s0 + $0x18] sm:$0xf]  ;;  %v719_v37 = vld [vmem:[%s1093_s0 + $0x20] sm:$0xf0]  ;;  %v625_v38 = vld [vmem:[%s1093_s0 + $0xa8] sm:$0xf] }
   0xc   :  { %v737_v39 = vld [vmem:[%s1093_s0 + $0xb0] sm:$0xf0]  ;;  %v718_v40 = vld [vmem:[%s1093_s0 + $0x1c] sm:$0xf]  ;;  %v555_v41 = vld [vmem:[%s1093_s0 + $0x24] sm:$0xf0]  ;;  %v554_v42 = vor.u32 %v719_v37, %v553_v36 }
   0xd   :  { %v626_v43 = vor.u32 %v737_v39, %v625_v38  ;;  %v558_v44 = vor.u32 %v718_v40, %v555_v41  ;;  %v585_v45 = vld [vmem:[%s1093_s0 + $0x50] sm:$0xf]  ;;  %v726_v46 = vld [vmem:[%s1093_s0 + $0x58] sm:$0xf0]  ;;  %v733_v50 = vld [vmem:[%s1093_s0 + $0x94] sm:$0xf] }
   0xe   :  { %343 = vmatpush.bf16.msra.mxu0 %v743_v11  ;;  %v586_v47 = vor.u32 %v726_v46, %v585_v45  ;;  %v565_v48 = vld [vmem:[%s1093_s0 + $0x30] sm:$0xf]  ;;  %v722_v49 = vld [vmem:[%s1093_s0 + $0x38] sm:$0xf0]  ;;  %v615_v51 = vld [vmem:[%s1093_s0 + $0x9c] sm:$0xf0] }
   0xf   :  { %807 = vmatpush.bf16.msra.mxu3 %v743_v11  ;;  %392 = vmatpush.bf16.msra.mxu1 %v751_v12  ;;  %v721_v52 = vld [vmem:[%s1093_s0 + $0x34] sm:$0xf]  ;;  %v567_v53 = vld [vmem:[%s1093_s0 + $0x3c] sm:$0xf0]  ;;  %v566_v54 = vor.u32 %v722_v49, %v565_v48  ;;  %v618_v55 = vor.u32 %v733_v50, %v615_v51  ;;  %v597_v57 = vld [vmem:[%s1093_s0 + $0x68] sm:$0xf] }
  0x10   :  { %v570_v56 = vor.u32 %v721_v52, %v567_v53  ;;  %v729_v58 = vld [vmem:[%s1093_s0 + $0x70] sm:$0xf0]  ;;  %v577_v60 = vld [vmem:[%s1093_s0 + $0x48] sm:$0xf]  ;;  %v736_v62 = vld [vmem:[%s1093_s0 + $0xac] sm:$0xf] }
  0x11   :  { %v598_v59 = vor.u32 %v729_v58, %v597_v57  ;;  %v725_v61 = vld [vmem:[%s1093_s0 + $0x50] sm:$0xf0]  ;;  %v627_v63 = vld [vmem:[%s1093_s0 + $0xb4] sm:$0xf0]  ;;  %v724_v0 = vld [vmem:[%s1093_s0 + $0x4c] sm:$0xf] }
  0x12   :  { %344 = vmatpush.bf16.msra.mxu0 %v742_v13  ;;  %v579_v1 = vld [vmem:[%s1093_s0 + $0x54] sm:$0xf0]  ;;  %v630_v3 = vor.u32 %v736_v62, %v627_v63  ;;  %v732_v6 = vld [vmem:[%s1093_s0 + $0x88] sm:$0xf0]  ;;  %v589_v8 = vld [vmem:[%s1093_s0 + $0x60] sm:$0xf] }
  0x13   :  { %808 = vmatpush.bf16.msra.mxu3 %v742_v13  ;;  %393 = vmatpush.bf16.msra.mxu1 %v750_v14  ;;  %v582_v4 = vor.u32 %v724_v0, %v579_v1  ;;  %v728_v9 = vld [vmem:[%s1093_s0 + $0x68] sm:$0xf0]  ;;  %v591_v11 = vld [vmem:[%s1093_s0 + $0x6c] sm:$0xf0]  ;;  %v601_v17 = vld [vmem:[%s1093_s0 + $0x78] sm:$0xf] }
  0x14   :  { %v731_v18 = vld [vmem:[%s1093_s0 + $0x80] sm:$0xf0]  ;;  %v738_v24 = vld [vmem:[%s1093_s0 + $0xb8] sm:$0xf0]  ;;  %v1050_v29 = vld [vmem:[%s1094_s2] ss:$0 sm:$0xff] }
  0x16   :  { %345 = vmatpush.bf16.msra.mxu0 %v741_v15 }
  0x17   :  { %809 = vmatpush.bf16.msra.mxu3 %v741_v15  ;;  %394 = vmatpush.bf16.msra.mxu1 %v749_v16  ;;  %v735_v15 = vld [vmem:[%s1093_s0 + $0xa0] sm:$0xf0] }
  0x1a   :  { %708 = vmatmul.msk.bf16.gmra.mxu2 %vm315_vm0, %v562_v19  ;;  %346 = vmatpush.bf16.msra.mxu0 %v740_v20  ;;  %v730_v19 = vld [vmem:[%s1093_s0 + $0x7c] sm:$0xf] }
  0x1b   :  { %810 = vmatpush.bf16.msra.mxu3 %v740_v20  ;;  %395 = vmatpush.bf16.msra.mxu1 %v748_v21  ;;  %v603_v20 = vld [vmem:[%s1093_s0 + $0x84] sm:$0xf0] }
  0x1e   :  { %347 = vmatpush.bf16.msra.mxu0 %v739_v22 }
  0x1f   :  { %811 = vmatpush.bf16.msra.mxu3 %v739_v22  ;;  %396 = vmatpush.bf16.msra.mxu1 %v747_v23  ;;  %v606_v22 = vor.u32 %v730_v19, %v603_v20 }
  0x21   :  { %348 = vmatmul.bf16.vlgmr.msra.gmra.mxu0 %v542_v30 }
  0x22   :  { %378 = vmatmul.bf16.vlgmr.msra.gmra.mxu3 %v614_v31  ;;  %397 = vmatmul.bf16.vlgmr.msra.gmra.mxu1 %v546_v32 }
  0x23   :  { %812 = vmatpush.bf16.msrb.mxu3 %v754_v2  ;;  %v578_v2 = vor.u32 %v725_v61, %v577_v60 }
  0x27   :  { %813 = vmatpush.bf16.msrb.mxu3 %v753_v5  ;;  %v609_v5 = vld [vmem:[%s1093_s0 + $0x80] sm:$0xf] }
  0x28   :  { %v610_v7 = vor.u32 %v732_v6, %v609_v5 }
  0x2a   :  { %709 = vmatmul.msk.bf16.gmra.mxu2 %vm315_vm0, %v574_v35 }
  0x2b   :  { %814 = vmatpush.bf16.msrb.mxu3 %v752_v10  ;;  %v727_v10 = vld [vmem:[%s1093_s0 + $0x64] sm:$0xf] }
  0x2c   :  { %v594_v13 = vor.u32 %v727_v10, %v591_v11 }
  0x2f   :  { %815 = vmatpush.bf16.msrb.mxu3 %v751_v12  ;;  %v590_v12 = vor.u32 %v728_v9, %v589_v8 }
  0x31   :  { %353 = vmatmul.bf16.gmra.mxu0 %v554_v42 }
  0x32   :  { %383 = vmatmul.bf16.gmra.mxu3 %v626_v43  ;;  %402 = vmatmul.bf16.gmra.mxu1 %v558_v44 }
  0x33   :  { %816 = vmatpush.bf16.msrb.mxu3 %v750_v14  ;;  %v621_v14 = vld [vmem:[%s1093_s0 + $0x98] sm:$0xf] }
  0x37   :  { %817 = vmatpush.bf16.msrb.mxu3 %v749_v16  ;;  %v622_v16 = vor.u32 %v735_v15, %v621_v14 }
  0x3a   :  { %710 = vmatmul.msk.bf16.gmra.mxu2 %vm315_vm0, %v586_v47 }
  0x3b   :  { %818 = vmatpush.bf16.msrb.mxu3 %v748_v21  ;;  %v602_v21 = vor.u32 %v731_v18, %v601_v17 }
  0x3f   :  { %819 = vmatpush.bf16.msrb.mxu3 %v747_v23  ;;  %v633_v23 = vld [vmem:[%s1093_s0 + $0xb0] sm:$0xf] }
  0x40   :  { %v634_v25 = vor.u32 %v738_v24, %v633_v23 }
  0x41   :  { %358 = vmatmul.bf16.gmra.mxu0 %v566_v54 }
  0x42   :  { %427 = vmatmul.bf16.vlgmr.msrb.gmra.mxu3 %v618_v55  ;;  %407 = vmatmul.bf16.gmra.mxu1 %v570_v56 }
  0x4a   :  { %711 = vmatmul.msk.bf16.gmra.mxu2 %vm315_vm0, %v598_v59 }
  0x51   :  { %363 = vmatmul.bf16.gmra.mxu0 %v578_v2 }
  0x52   :  { %432 = vmatmul.bf16.gmra.mxu3 %v630_v3  ;;  %412 = vmatmul.bf16.gmra.mxu1 %v582_v4 }
  0x5a   :  { %712 = vmatmul.msk.bf16.gmra.mxu2 %vm315_vm0, %v610_v7 }
  0x61   :  { %368 = vmatmul.bf16.gmra.mxu0 %v590_v12 }
  0x62   :  { %417 = vmatmul.bf16.gmra.mxu1 %v594_v13 }
  0x6a   :  { %713 = vmatmul.msk.bf16.gmra.mxu2 %vm315_vm0, %v622_v16 }
  0x71   :  { %373 = vmatmul.bf16.gmra.mxu0 %v602_v21 }
  0x72   :  { %422 = vmatmul.bf16.gmra.mxu1 %v606_v22 }
  0x7a   :  { %714 = vmatmul.msk.bf16.gmra.mxu2 %vm315_vm0, %v634_v25 }
  0x8d   :  { %v447_v26 = vpop.f32.mrf.mxu2 }
  0x95   :  { %v449_v27 = vpop.f32.mrf.mxu2 }
  0x9d   :  { %v452_v28 = vpop.f32.mrf.mxu2 }
  0x9e   :  { %v349_v30 = vpop.f32.mrf.mxu0 }
  0x9f   :  { %v398_v31 = vpop.f32.mrf.mxu1  ;;  %v350_v32 = vadd.f32 %v1050_v29, %v349_v30 }
  0xa1   :  { %v399_v33 = vadd.f32 %v398_v31, %v350_v32 }
  0xa3   :  { %v448_v38 = vadd.f32 %v447_v26, %v399_v33 }
  0xa5   :  { %v454_v34 = vpop.f32.mrf.mxu2  ;;  %v487_v41 = vmax.f32 %v448_v38, 0.0  ;;  %v379_v55 = vpop.f32.mrf.mxu3 }
  0xa6   :  { %v351_v35 = vpop.f32.mrf.mxu0 }
  0xa7   :  { %v352_v36 = vadd.f32 %v1050_v29, %v351_v35  ;;  %v400_v37 = vpop.f32.mrf.mxu1 }
  0xa9   :  { %v401_v39 = vadd.f32 %v400_v37, %v352_v36 }
  0xab   :  { %v450_v40 = vadd.f32 %v449_v27, %v401_v39 }
  0xad   :  { %v488_v42 = vmax.f32 %v450_v40, 0.0  ;;  %v457_v43 = vpop.f32.mrf.mxu2  ;;  %v381_v0 = vpop.f32.mrf.mxu3 }
  0xae   :  { %v354_v44 = vpop.f32.mrf.mxu0 }
  0xaf   :  { %v760_v45 = vpack.c.bf16 %v488_v42, %v487_v41  ;;  %v403_v46 = vpop.f32.mrf.mxu1  ;;  %v355_v47 = vadd.f32 %v1050_v29, %v354_v44 }
  0xb1   :  { %761 = vst [vmem:[%s1095_s3] sm:$0xff] %v760_v45   ;;  %v404_v48 = vadd.f32 %v403_v46, %v355_v47  ;;  %v380_v47 = vadd.f32 %v1050_v29, %v379_v55 }
  0xb3   :  { %v453_v53 = vadd.f32 %v452_v28, %v404_v48 }
  0xb5   :  { %v459_v49 = vpop.f32.mrf.mxu2  ;;  %v489_v57 = vmax.f32 %v453_v53, 0.0  ;;  %v384_v13 = vpop.f32.mrf.mxu3 }
  0xb6   :  { %v356_v50 = vpop.f32.mrf.mxu0 }
  0xb7   :  { %v357_v51 = vadd.f32 %v1050_v29, %v356_v50  ;;  %v405_v52 = vpop.f32.mrf.mxu1 }
  0xb9   :  { %v406_v54 = vadd.f32 %v405_v52, %v357_v51  ;;  %v382_v51 = vadd.f32 %v1050_v29, %v381_v0 }
  0xbb   :  { %v455_v56 = vadd.f32 %v454_v34, %v406_v54 }
  0xbd   :  { %v490_v58 = vmax.f32 %v455_v56, 0.0  ;;  %v462_v59 = vpop.f32.mrf.mxu2  ;;  %v386_v22 = vpop.f32.mrf.mxu3 }
  0xbe   :  { %v359_v60 = vpop.f32.mrf.mxu0 }
  0xbf   :  { %v765_v61 = vpack.c.bf16 %v490_v58, %v489_v57  ;;  %v408_v62 = vpop.f32.mrf.mxu1  ;;  %v360_v63 = vadd.f32 %v1050_v29, %v359_v60 }
  0xc1   :  { %797 = vst [vmem:[%s1095_s3 + $0x8] sm:$0xff] %v765_v61   ;;  %v409_v1 = vadd.f32 %v408_v62, %v360_v63 }
  0xc3   :  { %v458_v6 = vadd.f32 %v457_v43, %v409_v1 }
  0xc5   :  { %v464_v2 = vpop.f32.mrf.mxu2  ;;  %v491_v9 = vmax.f32 %v458_v6, 0.0  ;;  %v428_v34 = vpop.f32.mrf.mxu3 }
  0xc6   :  { %v361_v3 = vpop.f32.mrf.mxu0  ;;  %v429_v53 = vadd.f32 %v428_v34, %v380_v47 }
  0xc7   :  { %v362_v4 = vadd.f32 %v1050_v29, %v361_v3  ;;  %v410_v5 = vpop.f32.mrf.mxu1 }
  0xc9   :  { %v411_v7 = vadd.f32 %v410_v5, %v362_v4 }
  0xcb   :  { %v460_v8 = vadd.f32 %v459_v49, %v411_v7 }
  0xcd   :  { %v492_v10 = vmax.f32 %v460_v8, 0.0  ;;  %v467_v11 = vpop.f32.mrf.mxu2  ;;  %v430_v43 = vpop.f32.mrf.mxu3  ;;  %v385_v8 = vadd.f32 %v1050_v29, %v384_v13 }
  0xce   :  { %v364_v12 = vpop.f32.mrf.mxu0  ;;  %v431_v54 = vadd.f32 %v430_v43, %v382_v51 }
  0xcf   :  { %v770_v14 = vpack.c.bf16 %v492_v10, %v491_v9  ;;  %v413_v15 = vpop.f32.mrf.mxu1  ;;  %v365_v16 = vadd.f32 %v1050_v29, %v364_v12  ;;  %v387_v10 = vadd.f32 %v1050_v29, %v386_v22 }
  0xd1   :  { %798 = vst [vmem:[%s1095_s3 + $0x10] sm:$0xff] %v770_v14   ;;  %v414_v17 = vadd.f32 %v413_v15, %v365_v16 }
  0xd3   :  { %v463_v23 = vadd.f32 %v462_v59, %v414_v17 }
  0xd5   :  { %v469_v18 = vpop.f32.mrf.mxu2  ;;  %v493_v26 = vmax.f32 %v463_v23, 0.0  ;;  %v433_v61 = vpop.f32.mrf.mxu3 }
  0xd6   :  { %v366_v19 = vpop.f32.mrf.mxu0  ;;  %v434_v12 = vadd.f32 %v433_v61, %v385_v8 }
  0xd7   :  { %v367_v20 = vadd.f32 %v1050_v29, %v366_v19  ;;  %v415_v21 = vpop.f32.mrf.mxu1 }
  0xd9   :  { %v416_v24 = vadd.f32 %v415_v21, %v367_v20 }
  0xdb   :  { %v465_v25 = vadd.f32 %v464_v2, %v416_v24 }
  0xdd   :  { %v494_v27 = vmax.f32 %v465_v25, 0.0  ;;  %v472_v28 = vpop.f32.mrf.mxu2 }
  0xde   :  { %v369_v30 = vpop.f32.mrf.mxu0 }
  0xdf   :  { %v775_v31 = vpack.c.bf16 %v494_v27, %v493_v26  ;;  %v418_v32 = vpop.f32.mrf.mxu1  ;;  %v370_v33 = vadd.f32 %v1050_v29, %v369_v30 }
  0xe1   :  { %799 = vst [vmem:[%s1095_s3 + $0x18] sm:$0xff] %v775_v31   ;;  %v419_v35 = vadd.f32 %v418_v32, %v370_v33 }
  0xe3   :  { %v468_v40 = vadd.f32 %v467_v11, %v419_v35  ;;  %v435_v11 = vpop.f32.mrf.mxu3 }
  0xe4   :  { %v436_v14 = vadd.f32 %v435_v11, %v387_v10 }
  0xe5   :  { %v474_v36 = vpop.f32.mrf.mxu2  ;;  %v495_v44 = vmax.f32 %v468_v40, 0.0 }
  0xe6   :  { %v371_v37 = vpop.f32.mrf.mxu0 }
  0xe7   :  { %v372_v38 = vadd.f32 %v1050_v29, %v371_v37  ;;  %v420_v39 = vpop.f32.mrf.mxu1 }
  0xe9   :  { %v421_v41 = vadd.f32 %v420_v39, %v372_v38 }
  0xeb   :  { %v470_v42 = vadd.f32 %v469_v18, %v421_v41 }
  0xed   :  { %v496_v45 = vmax.f32 %v470_v42, 0.0  ;;  %v477_v46 = vpop.f32.mrf.mxu2 }
  0xee   :  { %v374_v48 = vpop.f32.mrf.mxu0  ;;  %v478_v56 = vadd.f32 %v477_v46, %v429_v53 }
  0xef   :  { %v780_v49 = vpack.c.bf16 %v496_v45, %v495_v44  ;;  %v423_v50 = vpop.f32.mrf.mxu1  ;;  %v375_v52 = vadd.f32 %v1050_v29, %v374_v48 }
  0xf0   :  { %v499_v63 = vmax.f32 %v478_v56, 0.0 }
  0xf1   :  { %800 = vst [vmem:[%s1095_s3 + $0x20] sm:$0xff] %v780_v49   ;;  %v424_v57 = vadd.f32 %v423_v50, %v375_v52 }
  0xf3   :  { %v473_v0 = vadd.f32 %v472_v28, %v424_v57 }
  0xf5   :  { %v479_v58 = vpop.f32.mrf.mxu2  ;;  %v497_v5 = vmax.f32 %v473_v0, 0.0 }
  0xf6   :  { %v480_v59 = vadd.f32 %v479_v58, %v431_v54  ;;  %v376_v60 = vpop.f32.mrf.mxu0 }
  0xf7   :  { %v377_v55 = vadd.f32 %v1050_v29, %v376_v60  ;;  %v425_v62 = vpop.f32.mrf.mxu1 }
  0xf8   :  { %v500_v1 = vmax.f32 %v480_v59, 0.0 }
  0xf9   :  { %v426_v2 = vadd.f32 %v425_v62, %v377_v55 }
  0xfa   :  { %v790_v3 = vpack.c.bf16 %v500_v1, %v499_v63 }
  0xfb   :  { %v475_v4 = vadd.f32 %v474_v36, %v426_v2 }
  0xfc   :  { %802 = vst [vmem:[%s1095_s3 + $0x30] sm:$0xff] %v790_v3  }
  0xfd   :  { %v498_v6 = vmax.f32 %v475_v4, 0.0  ;;  %v482_v7 = vpop.f32.mrf.mxu2 }
  0xfe   :  { %v483_v15 = vadd.f32 %v482_v7, %v434_v12 }
  0xff   :  { %v785_v9 = vpack.c.bf16 %v498_v6, %v497_v5 }
 0x100   :  { %v501_v18 = vmax.f32 %v483_v15, 0.0 }
 0x101   :  { %801 = vst [vmem:[%s1095_s3 + $0x28] sm:$0xff] %v785_v9  }
 0x105   :  { %v484_v16 = vpop.f32.mrf.mxu2 }
 0x106   :  { %v485_v17 = vadd.f32 %v484_v16, %v436_v14 }
 0x108   :  { %v502_v19 = vmax.f32 %v485_v17, 0.0 }
 0x10a   :  { %v795_v20 = vpack.c.bf16 %v502_v19, %v501_v18 }
 0x10c   :  { %803 = vst [vmem:[%s1095_s3 + $0x38] sm:$0xff] %v795_v20  }

// kernel: fwd.73
= control target key start
LH: loop header
LB: loop body
LE: loop exit
PB: predicated region body
PF: predicated region fallthrough
CT: control target
= control target key end

     0   :  { %vm427_vm0 = vcmask 523264   ;;  %s1405_s1 = inlined_call_operand.vmem [shape: bf16[448,128], index: 1, kind: input, shape index: {}]   ;;  %s1406_s0 = inlined_call_operand.vmem [shape: bf16[128,448], index: 0, kind: input, shape index: {}]   ;;  %s1407_s2 = inlined_call_operand.vmem [shape: f32[1,128], index: 2, kind: input, shape index: {}]   ;;  %s1408_s3 = inlined_call_operand.vmem [shape: bf16[128,128], index: 3, kind: output, shape index: {}]  }
   0x1   :  { %v987_v0 = vld [vmem:[%s1405_s1 + $0x38] sm:$0xff]  ;;  %v986_v3 = vld [vmem:[%s1405_s1 + $0x30] sm:$0xff]  ;;  %v985_v8 = vld [vmem:[%s1405_s1 + $0x28] sm:$0xff] }
   0x2   :  { %v995_v1 = vld [vmem:[%s1405_s1 + $0x78] sm:$0xff]  ;;  %452 = vmatpush.bf16.msra.mxu0 %v987_v0  ;;  %v994_v4 = vld [vmem:[%s1405_s1 + $0x70] sm:$0xff]  ;;  %v993_v9 = vld [vmem:[%s1405_s1 + $0x68] sm:$0xff] }
   0x3   :  { %v1003_v2 = vld [vmem:[%s1405_s1 + $0xb8] sm:$0xff]  ;;  %501 = vmatpush.bf16.msra.mxu1 %v995_v1  ;;  %v1002_v5 = vld [vmem:[%s1405_s1 + $0xb0] sm:$0xff]  ;;  %v1001_v10 = vld [vmem:[%s1405_s1 + $0xa8] sm:$0xff] }
   0x4   :  { %550 = vmatpush.bf16.msra.mxu2 %v1003_v2  ;;  %v1007_v6 = vld [vmem:[%s1405_s1 + $0xd8] sm:$0xff]  ;;  %v1006_v7 = vld [vmem:[%s1405_s1 + $0xd0] sm:$0xff]  ;;  %v1005_v11 = vld [vmem:[%s1405_s1 + $0xc8] sm:$0xff] }
   0x5   :  { %603 = vmatpush.bf16.msra.mxu3 %v1007_v6  ;;  %v984_v12 = vld [vmem:[%s1405_s1 + $0x20] sm:$0xff]  ;;  %v949_v16 = vld [vmem:[%s1406_s0 + $0xc] sm:$0xf]  ;;  %v712_v17 = vld [vmem:[%s1406_s0 + $0x18] sm:$0xf0] }
   0x6   :  { %453 = vmatpush.bf16.msra.mxu0 %v986_v3  ;;  %v992_v13 = vld [vmem:[%s1405_s1 + $0x60] sm:$0xff]  ;;  %v983_v18 = vld [vmem:[%s1405_s1 + $0x18] sm:$0xff]  ;;  %v715_v21 = vor.u32 %v949_v16, %v712_v17  ;;  %v982_v22 = vld [vmem:[%s1405_s1 + $0x10] sm:$0xff] }
   0x7   :  { %502 = vmatpush.bf16.msra.mxu1 %v994_v4  ;;  %v1000_v14 = vld [vmem:[%s1405_s1 + $0xa0] sm:$0xff]  ;;  %v991_v19 = vld [vmem:[%s1405_s1 + $0x58] sm:$0xff]  ;;  %v990_v23 = vld [vmem:[%s1405_s1 + $0x50] sm:$0xff] }
   0x8   :  { %551 = vmatpush.bf16.msra.mxu2 %v1002_v5  ;;  %v1004_v15 = vld [vmem:[%s1405_s1 + $0xc0] sm:$0xff]  ;;  %v999_v20 = vld [vmem:[%s1405_s1 + $0x98] sm:$0xff]  ;;  %v998_v24 = vld [vmem:[%s1405_s1 + $0x90] sm:$0xff] }
   0x9   :  { %604 = vmatpush.bf16.msra.mxu3 %v1006_v7  ;;  %v981_v25 = vld [vmem:[%s1405_s1 + $0x8] sm:$0xff]  ;;  %v980_v28 = vld [vmem:[%s1405_s1] sm:$0xff]  ;;  %v950_v31 = vld [vmem:[%s1406_s0 + $0xc] sm:$0xf0] }
   0xa   :  { %454 = vmatpush.bf16.msra.mxu0 %v985_v8  ;;  %v989_v26 = vld [vmem:[%s1405_s1 + $0x48] sm:$0xff]  ;;  %v988_v29 = vld [vmem:[%s1405_s1 + $0x40] sm:$0xff]  ;;  %v704_v33 = vld [vmem:[%s1406_s0 + $0x10] sm:$0xf0] }
   0xb   :  { %503 = vmatpush.bf16.msra.mxu1 %v993_v9  ;;  %v997_v27 = vld [vmem:[%s1405_s1 + $0x88] sm:$0xff]  ;;  %v702_v30 = vld [vmem:[%s1406_s0] sm:$0xf]  ;;  %v948_v32 = vld [vmem:[%s1406_s0 + $0x4] sm:$0xf] }
   0xc   :  { %552 = vmatpush.bf16.msra.mxu2 %v1001_v10  ;;  %v996_v34 = vld [vmem:[%s1405_s1 + $0x80] sm:$0xff]  ;;  %v710_v35 = vld [vmem:[%s1406_s0 + $0x8] sm:$0xf]  ;;  %v951_v36 = vld [vmem:[%s1406_s0 + $0x14] sm:$0xf0]  ;;  %v703_v37 = vor.u32 %v950_v31, %v702_v30  ;;  %v707_v38 = vor.u32 %v948_v32, %v704_v33 }
   0xd   :  { %605 = vmatpush.bf16.msra.mxu3 %v1005_v11  ;;  %v953_v39 = vld [vmem:[%s1406_s0 + $0x2c] sm:$0xf]  ;;  %v728_v40 = vld [vmem:[%s1406_s0 + $0x38] sm:$0xf0]  ;;  %v711_v41 = vor.u32 %v951_v36, %v710_v35  ;;  %v718_v43 = vld [vmem:[%s1406_s0 + $0x20] sm:$0xf] }
   0xe   :  { %455 = vmatpush.bf16.msra.mxu0 %v984_v12  ;;  %v731_v42 = vor.u32 %v953_v39, %v728_v40  ;;  %v954_v44 = vld [vmem:[%s1406_s0 + $0x2c] sm:$0xf0]  ;;  %v952_v45 = vld [vmem:[%s1406_s0 + $0x24] sm:$0xf]  ;;  %v720_v46 = vld [vmem:[%s1406_s0 + $0x30] sm:$0xf0] }
   0xf   :  { %504 = vmatpush.bf16.msra.mxu1 %v992_v13  ;;  %v726_v47 = vld [vmem:[%s1406_s0 + $0x28] sm:$0xf]  ;;  %v955_v48 = vld [vmem:[%s1406_s0 + $0x34] sm:$0xf0]  ;;  %v719_v49 = vor.u32 %v954_v44, %v718_v43  ;;  %v723_v50 = vor.u32 %v952_v45, %v720_v46  ;;  %v957_v51 = vld [vmem:[%s1406_s0 + $0x4c] sm:$0xf] }
  0x10   :  { %553 = vmatpush.bf16.msra.mxu2 %v1000_v14  ;;  %v744_v52 = vld [vmem:[%s1406_s0 + $0x58] sm:$0xf0]  ;;  %v727_v53 = vor.u32 %v955_v48, %v726_v47  ;;  %v734_v55 = vld [vmem:[%s1406_s0 + $0x40] sm:$0xf]  ;;  %v958_v56 = vld [vmem:[%s1406_s0 + $0x4c] sm:$0xf0] }
  0x11   :  { %606 = vmatpush.bf16.msra.mxu3 %v1004_v15  ;;  %v747_v54 = vor.u32 %v957_v51, %v744_v52  ;;  %v956_v57 = vld [vmem:[%s1406_s0 + $0x44] sm:$0xf]  ;;  %v736_v58 = vld [vmem:[%s1406_s0 + $0x50] sm:$0xf0]  ;;  %v742_v59 = vld [vmem:[%s1406_s0 + $0x48] sm:$0xf]  ;;  %v735_v61 = vor.u32 %v958_v56, %v734_v55 }
  0x12   :  { %456 = vmatpush.bf16.msra.mxu0 %v983_v18  ;;  %v959_v60 = vld [vmem:[%s1406_s0 + $0x54] sm:$0xf0]  ;;  %v739_v62 = vor.u32 %v956_v57, %v736_v58  ;;  %v961_v63 = vld [vmem:[%s1406_s0 + $0x6c] sm:$0xf]  ;;  %v760_v0 = vld [vmem:[%s1406_s0 + $0x78] sm:$0xf0] }
  0x13   :  { %505 = vmatpush.bf16.msra.mxu1 %v991_v19  ;;  %v743_v1 = vor.u32 %v959_v60, %v742_v59  ;;  %v763_v2 = vor.u32 %v961_v63, %v760_v0  ;;  %v750_v3 = vld [vmem:[%s1406_s0 + $0x60] sm:$0xf]  ;;  %v962_v4 = vld [vmem:[%s1406_s0 + $0x6c] sm:$0xf0]  ;;  %v960_v5 = vld [vmem:[%s1406_s0 + $0x64] sm:$0xf] }
  0x14   :  { %554 = vmatpush.bf16.msra.mxu2 %v999_v20  ;;  %940 = vmatmul.msk.bf16.vlgmr.msra.gmra.mxu3 %vm427_vm0, %v715_v21  ;;  %v752_v6 = vld [vmem:[%s1406_s0 + $0x70] sm:$0xf0]  ;;  %v758_v7 = vld [vmem:[%s1406_s0 + $0x68] sm:$0xf]  ;;  %v963_v8 = vld [vmem:[%s1406_s0 + $0x74] sm:$0xf0]  ;;  %v751_v9 = vor.u32 %v962_v4, %v750_v3 }
  0x15   :  { %v755_v10 = vor.u32 %v960_v5, %v752_v6  ;;  %v965_v11 = vld [vmem:[%s1406_s0 + $0x8c] sm:$0xf]  ;;  %v776_v12 = vld [vmem:[%s1406_s0 + $0x98] sm:$0xf0]  ;;  %v759_v13 = vor.u32 %v963_v8, %v758_v7  ;;  %v766_v15 = vld [vmem:[%s1406_s0 + $0x80] sm:$0xf] }
  0x16   :  { %457 = vmatpush.bf16.msra.mxu0 %v982_v22  ;;  %v779_v14 = vor.u32 %v965_v11, %v776_v12  ;;  %v966_v16 = vld [vmem:[%s1406_s0 + $0x8c] sm:$0xf0]  ;;  %v964_v17 = vld [vmem:[%s1406_s0 + $0x84] sm:$0xf]  ;;  %v768_v18 = vld [vmem:[%s1406_s0 + $0x90] sm:$0xf0] }
  0x17   :  { %506 = vmatpush.bf16.msra.mxu1 %v990_v23  ;;  %v774_v19 = vld [vmem:[%s1406_s0 + $0x88] sm:$0xf]  ;;  %v967_v20 = vld [vmem:[%s1406_s0 + $0x94] sm:$0xf0]  ;;  %v767_v21 = vor.u32 %v966_v16, %v766_v15  ;;  %v771_v22 = vor.u32 %v964_v17, %v768_v18  ;;  %v969_v23 = vld [vmem:[%s1406_s0 + $0xac] sm:$0xf] }
  0x18   :  { %555 = vmatpush.bf16.msra.mxu2 %v998_v24  ;;  %v792_v24 = vld [vmem:[%s1406_s0 + $0xb8] sm:$0xf0]  ;;  %v784_v30 = vld [vmem:[%s1406_s0 + $0xb0] sm:$0xf0]  ;;  %v790_v31 = vld [vmem:[%s1406_s0 + $0xa8] sm:$0xf] }
  0x19   :  { %v971_v32 = vld [vmem:[%s1406_s0 + $0xb4] sm:$0xf0]  ;;  %v973_v35 = vld [vmem:[%s1406_s0 + $0xcc] sm:$0xf]  ;;  %v808_v36 = vld [vmem:[%s1406_s0 + $0xd8] sm:$0xf0] }
  0x1a   :  { %458 = vmatpush.bf16.msra.mxu0 %v981_v25  ;;  %v775_v25 = vor.u32 %v967_v20, %v774_v19  ;;  %v798_v39 = vld [vmem:[%s1406_s0 + $0xc0] sm:$0xf]  ;;  %v974_v40 = vld [vmem:[%s1406_s0 + $0xcc] sm:$0xf0]  ;;  %v806_v43 = vld [vmem:[%s1406_s0 + $0xc8] sm:$0xf] }
  0x1b   :  { %507 = vmatpush.bf16.msra.mxu1 %v989_v26  ;;  %v795_v26 = vor.u32 %v969_v23, %v792_v24  ;;  %v975_v44 = vld [vmem:[%s1406_s0 + $0xd4] sm:$0xf0]  ;;  %v799_v45 = vor.u32 %v974_v40, %v798_v39  ;;  %v977_v47 = vld [vmem:[%s1406_s0 + $0xec] sm:$0xf]  ;;  %v824_v48 = vld [vmem:[%s1406_s0 + $0xf8] sm:$0xf0] }
  0x1c   :  { %556 = vmatpush.bf16.msra.mxu2 %v997_v27  ;;  %v782_v27 = vld [vmem:[%s1406_s0 + $0xa0] sm:$0xf]  ;;  %v978_v52 = vld [vmem:[%s1406_s0 + $0xec] sm:$0xf0]  ;;  %v822_v55 = vld [vmem:[%s1406_s0 + $0xe8] sm:$0xf] }
  0x1d   :  { %v814_v51 = vld [vmem:[%s1406_s0 + $0xe0] sm:$0xf]  ;;  %v979_v56 = vld [vmem:[%s1406_s0 + $0xf4] sm:$0xf0] }
  0x1e   :  { %459 = vmatpush.bf16.msra.mxu0 %v980_v28  ;;  %v970_v28 = vld [vmem:[%s1406_s0 + $0xac] sm:$0xf0]  ;;  %v815_v57 = vor.u32 %v978_v52, %v814_v51  ;;  %v823_v59 = vor.u32 %v979_v56, %v822_v55 }
  0x1f   :  { %508 = vmatpush.bf16.msra.mxu1 %v988_v29  ;;  %v968_v29 = vld [vmem:[%s1406_s0 + $0xa4] sm:$0xf]  ;;  %v783_v33 = vor.u32 %v970_v28, %v782_v27 }
  0x20   :  { %557 = vmatpush.bf16.msra.mxu2 %v996_v34  ;;  %v787_v34 = vor.u32 %v968_v29, %v784_v30 }
  0x21   :  { %460 = vmatmul.bf16.vlgmr.msra.gmra.mxu0 %v703_v37  ;;  %v791_v37 = vor.u32 %v971_v32, %v790_v31 }
  0x22   :  { %509 = vmatmul.bf16.vlgmr.msra.gmra.mxu1 %v707_v38  ;;  %v811_v38 = vor.u32 %v973_v35, %v808_v36 }
  0x23   :  { %558 = vmatmul.bf16.vlgmr.msra.gmra.mxu2 %v711_v41  ;;  %v972_v41 = vld [vmem:[%s1406_s0 + $0xc4] sm:$0xf] }
  0x24   :  { %941 = vmatmul.msk.bf16.gmra.mxu3 %vm427_vm0, %v731_v42  ;;  %v800_v42 = vld [vmem:[%s1406_s0 + $0xd0] sm:$0xf0] }
  0x25   :  { %v803_v46 = vor.u32 %v972_v41, %v800_v42 }
  0x31   :  { %465 = vmatmul.bf16.gmra.mxu0 %v719_v49  ;;  %v807_v49 = vor.u32 %v975_v44, %v806_v43 }
  0x32   :  { %514 = vmatmul.bf16.gmra.mxu1 %v723_v50  ;;  %v827_v50 = vor.u32 %v977_v47, %v824_v48 }
  0x33   :  { %563 = vmatmul.bf16.gmra.mxu2 %v727_v53  ;;  %v976_v53 = vld [vmem:[%s1406_s0 + $0xe4] sm:$0xf] }
  0x34   :  { %942 = vmatmul.msk.bf16.gmra.mxu3 %vm427_vm0, %v747_v54  ;;  %v816_v54 = vld [vmem:[%s1406_s0 + $0xf0] sm:$0xf0] }
  0x35   :  { %v819_v58 = vor.u32 %v976_v53, %v816_v54 }
  0x41   :  { %470 = vmatmul.bf16.gmra.mxu0 %v735_v61  ;;  %v1363_v61 = vld [vmem:[%s1407_s2] ss:$0 sm:$0xff] }
  0x42   :  { %519 = vmatmul.bf16.gmra.mxu1 %v739_v62 }
  0x43   :  { %568 = vmatmul.bf16.gmra.mxu2 %v743_v1 }
  0x44   :  { %943 = vmatmul.msk.bf16.gmra.mxu3 %vm427_vm0, %v763_v2 }
  0x51   :  { %475 = vmatmul.bf16.gmra.mxu0 %v751_v9 }
  0x52   :  { %524 = vmatmul.bf16.gmra.mxu1 %v755_v10 }
  0x53   :  { %573 = vmatmul.bf16.gmra.mxu2 %v759_v13 }
  0x54   :  { %944 = vmatmul.msk.bf16.gmra.mxu3 %vm427_vm0, %v779_v14 }
  0x61   :  { %480 = vmatmul.bf16.gmra.mxu0 %v767_v21 }
  0x62   :  { %529 = vmatmul.bf16.gmra.mxu1 %v771_v22 }
  0x63   :  { %578 = vmatmul.bf16.gmra.mxu2 %v775_v25 }
  0x64   :  { %945 = vmatmul.msk.bf16.gmra.mxu3 %vm427_vm0, %v795_v26 }
  0x71   :  { %485 = vmatmul.bf16.gmra.mxu0 %v783_v33 }
  0x72   :  { %534 = vmatmul.bf16.gmra.mxu1 %v787_v34 }
  0x73   :  { %583 = vmatmul.bf16.gmra.mxu2 %v791_v37 }
  0x74   :  { %946 = vmatmul.msk.bf16.gmra.mxu3 %vm427_vm0, %v811_v38 }
  0x81   :  { %490 = vmatmul.bf16.gmra.mxu0 %v799_v45 }
  0x82   :  { %539 = vmatmul.bf16.gmra.mxu1 %v803_v46 }
  0x83   :  { %588 = vmatmul.bf16.gmra.mxu2 %v807_v49 }
  0x84   :  { %947 = vmatmul.msk.bf16.gmra.mxu3 %vm427_vm0, %v827_v50 }
  0x91   :  { %495 = vmatmul.bf16.gmra.mxu0 %v815_v57 }
  0x92   :  { %544 = vmatmul.bf16.gmra.mxu1 %v819_v58 }
  0x93   :  { %593 = vmatmul.bf16.gmra.mxu2 %v823_v59 }
  0x97   :  { %v608_v60 = vpop.f32.mrf.mxu3 }
  0x9e   :  { %v461_v62 = vpop.f32.mrf.mxu0 }
  0x9f   :  { %v510_v63 = vpop.f32.mrf.mxu1  ;;  %v610_v0 = vpop.f32.mrf.mxu3  ;;  %v462_v1 = vadd.f32 %v1363_v61, %v461_v62 }
  0xa1   :  { %v511_v3 = vadd.f32 %v510_v63, %v462_v1 }
  0xa6   :  { %v559_v2 = vpop.f32.mrf.mxu2  ;;  %v463_v4 = vpop.f32.mrf.mxu0 }
  0xa7   :  { %v512_v5 = vpop.f32.mrf.mxu1  ;;  %v613_v6 = vpop.f32.mrf.mxu3  ;;  %v464_v7 = vadd.f32 %v1363_v61, %v463_v4  ;;  %v560_v8 = vadd.f32 %v559_v2, %v511_v3 }
  0xa9   :  { %v513_v9 = vadd.f32 %v512_v5, %v464_v7  ;;  %v609_v11 = vadd.f32 %v608_v60, %v560_v8 }
  0xab   :  { %v648_v17 = vmax.f32 %v609_v11, 0.0 }
  0xae   :  { %v561_v10 = vpop.f32.mrf.mxu2  ;;  %v466_v13 = vpop.f32.mrf.mxu0 }
  0xaf   :  { %v562_v12 = vadd.f32 %v561_v10, %v513_v9  ;;  %v515_v14 = vpop.f32.mrf.mxu1  ;;  %v615_v15 = vpop.f32.mrf.mxu3  ;;  %v467_v19 = vadd.f32 %v1363_v61, %v466_v13 }
  0xb1   :  { %v611_v16 = vadd.f32 %v610_v0, %v562_v12  ;;  %v516_v22 = vadd.f32 %v515_v14, %v467_v19 }
  0xb3   :  { %v649_v18 = vmax.f32 %v611_v16, 0.0 }
  0xb5   :  { %v1011_v20 = vpack.c.bf16 %v649_v18, %v648_v17 }
  0xb6   :  { %v564_v21 = vpop.f32.mrf.mxu2  ;;  %v468_v23 = vpop.f32.mrf.mxu0 }
  0xb7   :  { %1012 = vst [vmem:[%s1408_s3] sm:$0xff] %v1011_v20   ;;  %v517_v24 = vpop.f32.mrf.mxu1  ;;  %v618_v25 = vpop.f32.mrf.mxu3  ;;  %v469_v26 = vadd.f32 %v1363_v61, %v468_v23  ;;  %v565_v27 = vadd.f32 %v564_v21, %v516_v22 }
  0xb9   :  { %v518_v28 = vadd.f32 %v517_v24, %v469_v26  ;;  %v614_v30 = vadd.f32 %v613_v6, %v565_v27 }
  0xbb   :  { %v650_v36 = vmax.f32 %v614_v30, 0.0 }
  0xbe   :  { %v566_v29 = vpop.f32.mrf.mxu2  ;;  %v471_v32 = vpop.f32.mrf.mxu0 }
  0xbf   :  { %v567_v31 = vadd.f32 %v566_v29, %v518_v28  ;;  %v520_v33 = vpop.f32.mrf.mxu1  ;;  %v620_v34 = vpop.f32.mrf.mxu3  ;;  %v472_v38 = vadd.f32 %v1363_v61, %v471_v32 }
  0xc1   :  { %v616_v35 = vadd.f32 %v615_v15, %v567_v31  ;;  %v521_v41 = vadd.f32 %v520_v33, %v472_v38 }
  0xc3   :  { %v651_v37 = vmax.f32 %v616_v35, 0.0 }
  0xc5   :  { %v1016_v39 = vpack.c.bf16 %v651_v37, %v650_v36 }
  0xc6   :  { %v569_v40 = vpop.f32.mrf.mxu2  ;;  %v473_v42 = vpop.f32.mrf.mxu0 }
  0xc7   :  { %1048 = vst [vmem:[%s1408_s3 + $0x8] sm:$0xff] %v1016_v39   ;;  %v522_v43 = vpop.f32.mrf.mxu1  ;;  %v623_v44 = vpop.f32.mrf.mxu3  ;;  %v474_v45 = vadd.f32 %v1363_v61, %v473_v42  ;;  %v570_v46 = vadd.f32 %v569_v40, %v521_v41 }
  0xc9   :  { %v523_v47 = vadd.f32 %v522_v43, %v474_v45  ;;  %v619_v49 = vadd.f32 %v618_v25, %v570_v46 }
  0xcb   :  { %v652_v55 = vmax.f32 %v619_v49, 0.0 }
  0xce   :  { %v571_v48 = vpop.f32.mrf.mxu2  ;;  %v476_v51 = vpop.f32.mrf.mxu0 }
  0xcf   :  { %v572_v50 = vadd.f32 %v571_v48, %v523_v47  ;;  %v525_v52 = vpop.f32.mrf.mxu1  ;;  %v625_v53 = vpop.f32.mrf.mxu3  ;;  %v477_v57 = vadd.f32 %v1363_v61, %v476_v51 }
  0xd1   :  { %v621_v54 = vadd.f32 %v620_v34, %v572_v50  ;;  %v526_v60 = vadd.f32 %v525_v52, %v477_v57 }
  0xd3   :  { %v653_v56 = vmax.f32 %v621_v54, 0.0 }
  0xd5   :  { %v1021_v58 = vpack.c.bf16 %v653_v56, %v652_v55 }
  0xd6   :  { %v574_v59 = vpop.f32.mrf.mxu2  ;;  %v478_v62 = vpop.f32.mrf.mxu0 }
  0xd7   :  { %1049 = vst [vmem:[%s1408_s3 + $0x10] sm:$0xff] %v1021_v58   ;;  %v527_v63 = vpop.f32.mrf.mxu1  ;;  %v479_v0 = vadd.f32 %v1363_v61, %v478_v62  ;;  %v628_v1 = vpop.f32.mrf.mxu3  ;;  %v575_v2 = vadd.f32 %v574_v59, %v526_v60 }
  0xd9   :  { %v528_v3 = vadd.f32 %v527_v63, %v479_v0  ;;  %v624_v5 = vadd.f32 %v623_v44, %v575_v2 }
  0xdb   :  { %v654_v10 = vmax.f32 %v624_v5, 0.0 }
  0xde   :  { %v576_v4 = vpop.f32.mrf.mxu2  ;;  %v481_v7 = vpop.f32.mrf.mxu0 }
  0xdf   :  { %v577_v6 = vadd.f32 %v576_v4, %v528_v3  ;;  %v530_v8 = vpop.f32.mrf.mxu1  ;;  %v482_v12 = vadd.f32 %v1363_v61, %v481_v7  ;;  %v630_v13 = vpop.f32.mrf.mxu3 }
  0xe1   :  { %v626_v9 = vadd.f32 %v625_v53, %v577_v6  ;;  %v531_v16 = vadd.f32 %v530_v8, %v482_v12 }
  0xe3   :  { %v655_v11 = vmax.f32 %v626_v9, 0.0 }
  0xe5   :  { %v1026_v14 = vpack.c.bf16 %v655_v11, %v654_v10 }
  0xe6   :  { %v579_v15 = vpop.f32.mrf.mxu2  ;;  %v483_v17 = vpop.f32.mrf.mxu0 }
  0xe7   :  { %1050 = vst [vmem:[%s1408_s3 + $0x18] sm:$0xff] %v1026_v14   ;;  %v532_v18 = vpop.f32.mrf.mxu1  ;;  %v484_v19 = vadd.f32 %v1363_v61, %v483_v17  ;;  %v580_v20 = vadd.f32 %v579_v15, %v531_v16  ;;  %v633_v23 = vpop.f32.mrf.mxu3 }
  0xe9   :  { %v533_v21 = vadd.f32 %v532_v18, %v484_v19  ;;  %v629_v24 = vadd.f32 %v628_v1, %v580_v20 }
  0xeb   :  { %v656_v29 = vmax.f32 %v629_v24, 0.0 }
  0xee   :  { %v581_v22 = vpop.f32.mrf.mxu2  ;;  %v486_v26 = vpop.f32.mrf.mxu0 }
  0xef   :  { %v582_v25 = vadd.f32 %v581_v22, %v533_v21  ;;  %v535_v27 = vpop.f32.mrf.mxu1  ;;  %v487_v31 = vadd.f32 %v1363_v61, %v486_v26  ;;  %v635_v37 = vpop.f32.mrf.mxu3 }
  0xf1   :  { %v631_v28 = vadd.f32 %v630_v13, %v582_v25  ;;  %v536_v34 = vadd.f32 %v535_v27, %v487_v31 }
  0xf3   :  { %v657_v30 = vmax.f32 %v631_v28, 0.0 }
  0xf5   :  { %v1031_v32 = vpack.c.bf16 %v657_v30, %v656_v29 }
  0xf6   :  { %v584_v33 = vpop.f32.mrf.mxu2  ;;  %v488_v35 = vpop.f32.mrf.mxu0 }
  0xf7   :  { %1051 = vst [vmem:[%s1408_s3 + $0x20] sm:$0xff] %v1031_v32   ;;  %v537_v36 = vpop.f32.mrf.mxu1  ;;  %v489_v38 = vadd.f32 %v1363_v61, %v488_v35  ;;  %v585_v39 = vadd.f32 %v584_v33, %v536_v34  ;;  %v638_v47 = vpop.f32.mrf.mxu3 }
  0xf9   :  { %v538_v40 = vadd.f32 %v537_v36, %v489_v38  ;;  %v634_v42 = vadd.f32 %v633_v23, %v585_v39 }
  0xfb   :  { %v658_v48 = vmax.f32 %v634_v42, 0.0 }
  0xfe   :  { %v586_v41 = vpop.f32.mrf.mxu2  ;;  %v491_v44 = vpop.f32.mrf.mxu0 }
  0xff   :  { %v587_v43 = vadd.f32 %v586_v41, %v538_v40  ;;  %v540_v45 = vpop.f32.mrf.mxu1  ;;  %v492_v50 = vadd.f32 %v1363_v61, %v491_v44  ;;  %v640_v58 = vpop.f32.mrf.mxu3 }
 0x101   :  { %v636_v46 = vadd.f32 %v635_v37, %v587_v43  ;;  %v541_v53 = vadd.f32 %v540_v45, %v492_v50 }
 0x103   :  { %v659_v49 = vmax.f32 %v636_v46, 0.0 }
 0x105   :  { %v1036_v51 = vpack.c.bf16 %v659_v49, %v658_v48 }
 0x106   :  { %v589_v52 = vpop.f32.mrf.mxu2  ;;  %v493_v54 = vpop.f32.mrf.mxu0 }
 0x107   :  { %1052 = vst [vmem:[%s1408_s3 + $0x28] sm:$0xff] %v1036_v51   ;;  %v542_v55 = vpop.f32.mrf.mxu1  ;;  %v494_v56 = vadd.f32 %v1363_v61, %v493_v54  ;;  %v590_v57 = vadd.f32 %v589_v52, %v541_v53  ;;  %v643_v7 = vpop.f32.mrf.mxu3 }
 0x109   :  { %v543_v59 = vadd.f32 %v542_v55, %v494_v56  ;;  %v639_v62 = vadd.f32 %v638_v47, %v590_v57 }
 0x10b   :  { %v660_v3 = vmax.f32 %v639_v62, 0.0 }
 0x10e   :  { %v591_v60 = vpop.f32.mrf.mxu2  ;;  %v496_v0 = vpop.f32.mrf.mxu0 }
 0x10f   :  { %v592_v63 = vadd.f32 %v591_v60, %v543_v59  ;;  %v545_v2 = vpop.f32.mrf.mxu1  ;;  %v497_v5 = vadd.f32 %v1363_v61, %v496_v0  ;;  %v645_v18 = vpop.f32.mrf.mxu3 }
 0x111   :  { %v641_v1 = vadd.f32 %v640_v58, %v592_v63  ;;  %v546_v9 = vadd.f32 %v545_v2, %v497_v5 }
 0x113   :  { %v661_v4 = vmax.f32 %v641_v1, 0.0 }
 0x115   :  { %v1041_v6 = vpack.c.bf16 %v661_v4, %v660_v3 }
 0x116   :  { %v594_v8 = vpop.f32.mrf.mxu2  ;;  %v498_v10 = vpop.f32.mrf.mxu0 }
 0x117   :  { %1053 = vst [vmem:[%s1408_s3 + $0x30] sm:$0xff] %v1041_v6   ;;  %v499_v11 = vadd.f32 %v1363_v61, %v498_v10  ;;  %v595_v12 = vadd.f32 %v594_v8, %v546_v9  ;;  %v547_v13 = vpop.f32.mrf.mxu1 }
 0x119   :  { %v548_v14 = vadd.f32 %v547_v13, %v499_v11  ;;  %v644_v16 = vadd.f32 %v643_v7, %v595_v12 }
 0x11b   :  { %v662_v20 = vmax.f32 %v644_v16, 0.0 }
 0x11e   :  { %v596_v15 = vpop.f32.mrf.mxu2 }
 0x11f   :  { %v597_v17 = vadd.f32 %v596_v15, %v548_v14 }
 0x121   :  { %v646_v19 = vadd.f32 %v645_v18, %v597_v17 }
 0x123   :  { %v663_v21 = vmax.f32 %v646_v19, 0.0 }
 0x125   :  { %v1046_v22 = vpack.c.bf16 %v663_v21, %v662_v20 }
 0x127   :  { %1054 = vst [vmem:[%s1408_s3 + $0x38] sm:$0xff] %v1046_v22  }

// kernel: fwd.43
= control target key start
LH: loop header
LB: loop body
LE: loop exit
PB: predicated region body
PF: predicated region fallthrough
CT: control target
= control target key end

     0   :  { %vm275_vm0 = vcmask 523264   ;;  %s1478_s1 = inlined_call_operand.vmem [shape: bf16[64,128], index: 1, kind: input, shape index: {}]   ;;  %s1479_s2 = inlined_call_operand.vmem [shape: f32[1,128], index: 2, kind: input, shape index: {}]   ;;  %s1480_s0 = inlined_call_operand.vmem [shape: bf16[512,64], index: 0, kind: input, shape index: {}]   ;;  %s1481_s3 = inlined_call_operand.vmem [shape: bf16[512,128], index: 3, kind: output, shape index: {}]  }
   0x1   :  { %v948_v0 = vld [vmem:[%s1478_s1 + $0x18] sm:$0xff]  ;;  %v947_v1 = vld [vmem:[%s1478_s1 + $0x10] sm:$0xff]  ;;  %v946_v2 = vld [vmem:[%s1478_s1 + $0x8] sm:$0xff] }
   0x2   :  { %376 = vmatpush.bf16.msra.mxu0 %v948_v0  ;;  %1140 = vmatpush.bf16.msra.mxu1 %v948_v0  ;;  %v945_v3 = vld [vmem:[%s1478_s1] sm:$0xff]  ;;  %v914_v8 = vld [vmem:[%s1480_s0 + $0x8] sm:$0xff]  ;;  %v915_v12 = vld [vmem:[%s1480_s0 + $0x10] sm:$0xff] }
   0x3   :  { %1141 = vmatpush.bf16.msra.mxu2 %v948_v0  ;;  %1142 = vmatpush.bf16.msra.mxu3 %v948_v0  ;;  %v913_v4 = vld [vmem:[%s1480_s0] sm:$0xff]  ;;  %v922_v9 = vld [vmem:[%s1480_s0 + $0x48] sm:$0xff]  ;;  %v923_v13 = vld [vmem:[%s1480_s0 + $0x50] sm:$0xff] }
   0x4   :  { %v921_v5 = vld [vmem:[%s1480_s0 + $0x40] sm:$0xff]  ;;  %v930_v10 = vld [vmem:[%s1480_s0 + $0x88] sm:$0xff]  ;;  %v931_v14 = vld [vmem:[%s1480_s0 + $0x90] sm:$0xff] }
   0x5   :  { %v929_v6 = vld [vmem:[%s1480_s0 + $0x80] sm:$0xff]  ;;  %v938_v11 = vld [vmem:[%s1480_s0 + $0xc8] sm:$0xff]  ;;  %v939_v15 = vld [vmem:[%s1480_s0 + $0xd0] sm:$0xff] }
   0x6   :  { %377 = vmatpush.bf16.msra.mxu0 %v947_v1  ;;  %1143 = vmatpush.bf16.msra.mxu1 %v947_v1  ;;  %v937_v7 = vld [vmem:[%s1480_s0 + $0xc0] sm:$0xff]  ;;  %v916_v16 = vld [vmem:[%s1480_s0 + $0x18] sm:$0xff]  ;;  %v918_v24 = vld [vmem:[%s1480_s0 + $0x28] sm:$0xff] }
   0x7   :  { %1144 = vmatpush.bf16.msra.mxu2 %v947_v1  ;;  %1145 = vmatpush.bf16.msra.mxu3 %v947_v1  ;;  %v924_v17 = vld [vmem:[%s1480_s0 + $0x58] sm:$0xff]  ;;  %v917_v20 = vld [vmem:[%s1480_s0 + $0x20] sm:$0xff]  ;;  %v926_v25 = vld [vmem:[%s1480_s0 + $0x68] sm:$0xff] }
   0x8   :  { %v932_v18 = vld [vmem:[%s1480_s0 + $0x98] sm:$0xff]  ;;  %v925_v21 = vld [vmem:[%s1480_s0 + $0x60] sm:$0xff]  ;;  %v934_v26 = vld [vmem:[%s1480_s0 + $0xa8] sm:$0xff] }
   0x9   :  { %v940_v19 = vld [vmem:[%s1480_s0 + $0xd8] sm:$0xff]  ;;  %v933_v22 = vld [vmem:[%s1480_s0 + $0xa0] sm:$0xff]  ;;  %v942_v27 = vld [vmem:[%s1480_s0 + $0xe8] sm:$0xff] }
   0xa   :  { %378 = vmatpush.bf16.msra.mxu0 %v946_v2  ;;  %1146 = vmatpush.bf16.msra.mxu1 %v946_v2  ;;  %v941_v23 = vld [vmem:[%s1480_s0 + $0xe0] sm:$0xff]  ;;  %v919_v28 = vld [vmem:[%s1480_s0 + $0x30] sm:$0xff]  ;;  %v920_v32 = vld [vmem:[%s1480_s0 + $0x38] sm:$0xff] }
   0xb   :  { %1147 = vmatpush.bf16.msra.mxu2 %v946_v2  ;;  %1148 = vmatpush.bf16.msra.mxu3 %v946_v2  ;;  %v927_v29 = vld [vmem:[%s1480_s0 + $0x70] sm:$0xff]  ;;  %v928_v33 = vld [vmem:[%s1480_s0 + $0x78] sm:$0xff]  ;;  %v1316_v38 = vld [vmem:[%s1479_s2] ss:$0 sm:$0xff] }
   0xc   :  { %v935_v30 = vld [vmem:[%s1480_s0 + $0xb0] sm:$0xff]  ;;  %v936_v34 = vld [vmem:[%s1480_s0 + $0xb8] sm:$0xff] }
   0xd   :  { %v943_v31 = vld [vmem:[%s1480_s0 + $0xf0] sm:$0xff]  ;;  %v944_v35 = vld [vmem:[%s1480_s0 + $0xf8] sm:$0xff] }
   0xe   :  { %379 = vmatpush.bf16.msra.mxu0 %v945_v3  ;;  %1149 = vmatpush.bf16.msra.mxu1 %v945_v3 }
   0xf   :  { %1150 = vmatpush.bf16.msra.mxu2 %v945_v3  ;;  %1151 = vmatpush.bf16.msra.mxu3 %v945_v3 }
  0x11   :  { %881 = vmatmul.msk.bf16.vlgmr.msra.gmra.mxu0 %vm275_vm0, %v913_v4  ;;  %889 = vmatmul.msk.bf16.vlgmr.msra.gmra.mxu1 %vm275_vm0, %v921_v5 }
  0x12   :  { %897 = vmatmul.msk.bf16.vlgmr.msra.gmra.mxu2 %vm275_vm0, %v929_v6  ;;  %905 = vmatmul.msk.bf16.vlgmr.msra.gmra.mxu3 %vm275_vm0, %v937_v7 }
  0x21   :  { %882 = vmatmul.msk.bf16.gmra.mxu0 %vm275_vm0, %v914_v8  ;;  %890 = vmatmul.msk.bf16.gmra.mxu1 %vm275_vm0, %v922_v9 }
  0x22   :  { %898 = vmatmul.msk.bf16.gmra.mxu2 %vm275_vm0, %v930_v10  ;;  %906 = vmatmul.msk.bf16.gmra.mxu3 %vm275_vm0, %v938_v11 }
  0x31   :  { %883 = vmatmul.msk.bf16.gmra.mxu0 %vm275_vm0, %v915_v12  ;;  %891 = vmatmul.msk.bf16.gmra.mxu1 %vm275_vm0, %v923_v13 }
  0x32   :  { %899 = vmatmul.msk.bf16.gmra.mxu2 %vm275_vm0, %v931_v14  ;;  %907 = vmatmul.msk.bf16.gmra.mxu3 %vm275_vm0, %v939_v15 }
  0x41   :  { %884 = vmatmul.msk.bf16.gmra.mxu0 %vm275_vm0, %v916_v16  ;;  %892 = vmatmul.msk.bf16.gmra.mxu1 %vm275_vm0, %v924_v17 }
  0x42   :  { %900 = vmatmul.msk.bf16.gmra.mxu2 %vm275_vm0, %v932_v18  ;;  %908 = vmatmul.msk.bf16.gmra.mxu3 %vm275_vm0, %v940_v19 }
  0x51   :  { %885 = vmatmul.msk.bf16.gmra.mxu0 %vm275_vm0, %v917_v20  ;;  %893 = vmatmul.msk.bf16.gmra.mxu1 %vm275_vm0, %v925_v21 }
  0x52   :  { %901 = vmatmul.msk.bf16.gmra.mxu2 %vm275_vm0, %v933_v22  ;;  %909 = vmatmul.msk.bf16.gmra.mxu3 %vm275_vm0, %v941_v23 }
  0x61   :  { %886 = vmatmul.msk.bf16.gmra.mxu0 %vm275_vm0, %v918_v24  ;;  %894 = vmatmul.msk.bf16.gmra.mxu1 %vm275_vm0, %v926_v25 }
  0x62   :  { %902 = vmatmul.msk.bf16.gmra.mxu2 %vm275_vm0, %v934_v26  ;;  %910 = vmatmul.msk.bf16.gmra.mxu3 %vm275_vm0, %v942_v27 }
  0x71   :  { %887 = vmatmul.msk.bf16.gmra.mxu0 %vm275_vm0, %v919_v28  ;;  %895 = vmatmul.msk.bf16.gmra.mxu1 %vm275_vm0, %v927_v29 }
  0x72   :  { %903 = vmatmul.msk.bf16.gmra.mxu2 %vm275_vm0, %v935_v30  ;;  %911 = vmatmul.msk.bf16.gmra.mxu3 %vm275_vm0, %v943_v31 }
  0x81   :  { %888 = vmatmul.msk.bf16.gmra.mxu0 %vm275_vm0, %v920_v32  ;;  %896 = vmatmul.msk.bf16.gmra.mxu1 %vm275_vm0, %v928_v33 }
  0x82   :  { %904 = vmatmul.msk.bf16.gmra.mxu2 %vm275_vm0, %v936_v34  ;;  %912 = vmatmul.msk.bf16.gmra.mxu3 %vm275_vm0, %v944_v35 }
  0x8e   :  { %v381_v36 = vpop.f32.mrf.mxu0  ;;  %v421_v37 = vpop.f32.mrf.mxu1 }
  0x8f   :  { %v382_v39 = vadd.f32 %v1316_v38, %v381_v36  ;;  %v422_v40 = vadd.f32 %v1316_v38, %v421_v37 }
  0x91   :  { %v541_v47 = vmax.f32 %v382_v39, 0.0  ;;  %v557_v48 = vmax.f32 %v422_v40, 0.0 }
  0x95   :  { %v461_v41 = vpop.f32.mrf.mxu2  ;;  %v501_v42 = vpop.f32.mrf.mxu3 }
  0x96   :  { %v383_v43 = vpop.f32.mrf.mxu0  ;;  %v423_v44 = vpop.f32.mrf.mxu1  ;;  %v462_v53 = vadd.f32 %v1316_v38, %v461_v41  ;;  %v502_v54 = vadd.f32 %v1316_v38, %v501_v42 }
  0x97   :  { %v384_v45 = vadd.f32 %v1316_v38, %v383_v43  ;;  %v424_v46 = vadd.f32 %v1316_v38, %v423_v44 }
  0x98   :  { %v573_v61 = vmax.f32 %v462_v53, 0.0  ;;  %v589_v62 = vmax.f32 %v502_v54, 0.0 }
  0x99   :  { %v542_v49 = vmax.f32 %v384_v45, 0.0  ;;  %v558_v50 = vmax.f32 %v424_v46, 0.0 }
  0x9b   :  { %v952_v51 = vpack.c.bf16 %v542_v49, %v541_v47  ;;  %v992_v52 = vpack.c.bf16 %v558_v50, %v557_v48 }
  0x9d   :  { %953 = vst [vmem:[%s1481_s3] sm:$0xff] %v952_v51   ;;  %v463_v55 = vpop.f32.mrf.mxu2  ;;  %v503_v56 = vpop.f32.mrf.mxu3 }
  0x9e   :  { %1116 = vst [vmem:[%s1481_s3 + $0x40] sm:$0xff] %v992_v52   ;;  %v464_v57 = vadd.f32 %v1316_v38, %v463_v55  ;;  %v504_v58 = vadd.f32 %v1316_v38, %v503_v56  ;;  %v386_v59 = vpop.f32.mrf.mxu0  ;;  %v426_v60 = vpop.f32.mrf.mxu1 }
  0x9f   :  { %v387_v3 = vadd.f32 %v1316_v38, %v386_v59  ;;  %v427_v4 = vadd.f32 %v1316_v38, %v426_v60 }
  0xa0   :  { %v574_v63 = vmax.f32 %v464_v57, 0.0  ;;  %v590_v0 = vmax.f32 %v504_v58, 0.0 }
  0xa1   :  { %v543_v11 = vmax.f32 %v387_v3, 0.0  ;;  %v559_v12 = vmax.f32 %v427_v4, 0.0 }
  0xa2   :  { %v1032_v1 = vpack.c.bf16 %v574_v63, %v573_v61  ;;  %v1072_v2 = vpack.c.bf16 %v590_v0, %v589_v62 }
  0xa4   :  { %1124 = vst [vmem:[%s1481_s3 + $0x80] sm:$0xff] %v1032_v1  }
  0xa5   :  { %1132 = vst [vmem:[%s1481_s3 + $0xc0] sm:$0xff] %v1072_v2   ;;  %v466_v5 = vpop.f32.mrf.mxu2  ;;  %v506_v6 = vpop.f32.mrf.mxu3 }
  0xa6   :  { %v388_v7 = vpop.f32.mrf.mxu0  ;;  %v428_v8 = vpop.f32.mrf.mxu1  ;;  %v467_v17 = vadd.f32 %v1316_v38, %v466_v5  ;;  %v507_v18 = vadd.f32 %v1316_v38, %v506_v6 }
  0xa7   :  { %v389_v9 = vadd.f32 %v1316_v38, %v388_v7  ;;  %v429_v10 = vadd.f32 %v1316_v38, %v428_v8 }
  0xa8   :  { %v575_v25 = vmax.f32 %v467_v17, 0.0  ;;  %v591_v26 = vmax.f32 %v507_v18, 0.0 }
  0xa9   :  { %v544_v13 = vmax.f32 %v389_v9, 0.0  ;;  %v560_v14 = vmax.f32 %v429_v10, 0.0 }
  0xab   :  { %v957_v15 = vpack.c.bf16 %v544_v13, %v543_v11  ;;  %v997_v16 = vpack.c.bf16 %v560_v14, %v559_v12 }
  0xad   :  { %1109 = vst [vmem:[%s1481_s3 + $0x8] sm:$0xff] %v957_v15   ;;  %v468_v19 = vpop.f32.mrf.mxu2  ;;  %v508_v20 = vpop.f32.mrf.mxu3 }
  0xae   :  { %1117 = vst [vmem:[%s1481_s3 + $0x48] sm:$0xff] %v997_v16   ;;  %v469_v21 = vadd.f32 %v1316_v38, %v468_v19  ;;  %v509_v22 = vadd.f32 %v1316_v38, %v508_v20  ;;  %v391_v23 = vpop.f32.mrf.mxu0  ;;  %v431_v24 = vpop.f32.mrf.mxu1 }
  0xaf   :  { %v392_v31 = vadd.f32 %v1316_v38, %v391_v23  ;;  %v432_v32 = vadd.f32 %v1316_v38, %v431_v24 }
  0xb0   :  { %v576_v27 = vmax.f32 %v469_v21, 0.0  ;;  %v592_v28 = vmax.f32 %v509_v22, 0.0 }
  0xb1   :  { %v545_v40 = vmax.f32 %v392_v31, 0.0  ;;  %v561_v41 = vmax.f32 %v432_v32, 0.0 }
  0xb2   :  { %v1037_v29 = vpack.c.bf16 %v576_v27, %v575_v25  ;;  %v1077_v30 = vpack.c.bf16 %v592_v28, %v591_v26 }
  0xb4   :  { %1125 = vst [vmem:[%s1481_s3 + $0x88] sm:$0xff] %v1037_v29  }
  0xb5   :  { %1133 = vst [vmem:[%s1481_s3 + $0xc8] sm:$0xff] %v1077_v30   ;;  %v471_v33 = vpop.f32.mrf.mxu2  ;;  %v511_v34 = vpop.f32.mrf.mxu3 }
  0xb6   :  { %v393_v35 = vpop.f32.mrf.mxu0  ;;  %v433_v36 = vpop.f32.mrf.mxu1  ;;  %v472_v46 = vadd.f32 %v1316_v38, %v471_v33  ;;  %v512_v47 = vadd.f32 %v1316_v38, %v511_v34 }
  0xb7   :  { %v394_v37 = vadd.f32 %v1316_v38, %v393_v35  ;;  %v434_v39 = vadd.f32 %v1316_v38, %v433_v36 }
  0xb8   :  { %v577_v54 = vmax.f32 %v472_v46, 0.0  ;;  %v593_v55 = vmax.f32 %v512_v47, 0.0 }
  0xb9   :  { %v546_v42 = vmax.f32 %v394_v37, 0.0  ;;  %v562_v43 = vmax.f32 %v434_v39, 0.0 }
  0xbb   :  { %v962_v44 = vpack.c.bf16 %v546_v42, %v545_v40  ;;  %v1002_v45 = vpack.c.bf16 %v562_v43, %v561_v41 }
  0xbd   :  { %1110 = vst [vmem:[%s1481_s3 + $0x10] sm:$0xff] %v962_v44   ;;  %v473_v48 = vpop.f32.mrf.mxu2  ;;  %v513_v49 = vpop.f32.mrf.mxu3 }
  0xbe   :  { %1118 = vst [vmem:[%s1481_s3 + $0x50] sm:$0xff] %v1002_v45   ;;  %v474_v50 = vadd.f32 %v1316_v38, %v473_v48  ;;  %v514_v51 = vadd.f32 %v1316_v38, %v513_v49  ;;  %v396_v52 = vpop.f32.mrf.mxu0  ;;  %v436_v53 = vpop.f32.mrf.mxu1 }
  0xbf   :  { %v397_v60 = vadd.f32 %v1316_v38, %v396_v52  ;;  %v437_v61 = vadd.f32 %v1316_v38, %v436_v53 }
  0xc0   :  { %v578_v56 = vmax.f32 %v474_v50, 0.0  ;;  %v594_v57 = vmax.f32 %v514_v51, 0.0 }
  0xc1   :  { %v547_v4 = vmax.f32 %v397_v60, 0.0  ;;  %v563_v5 = vmax.f32 %v437_v61, 0.0 }
  0xc2   :  { %v1042_v58 = vpack.c.bf16 %v578_v56, %v577_v54  ;;  %v1082_v59 = vpack.c.bf16 %v594_v57, %v593_v55 }
  0xc4   :  { %1126 = vst [vmem:[%s1481_s3 + $0x90] sm:$0xff] %v1042_v58  }
  0xc5   :  { %1134 = vst [vmem:[%s1481_s3 + $0xd0] sm:$0xff] %v1082_v59   ;;  %v476_v62 = vpop.f32.mrf.mxu2  ;;  %v516_v63 = vpop.f32.mrf.mxu3 }
  0xc6   :  { %v398_v0 = vpop.f32.mrf.mxu0  ;;  %v438_v1 = vpop.f32.mrf.mxu1  ;;  %v477_v10 = vadd.f32 %v1316_v38, %v476_v62  ;;  %v517_v11 = vadd.f32 %v1316_v38, %v516_v63 }
  0xc7   :  { %v399_v2 = vadd.f32 %v1316_v38, %v398_v0  ;;  %v439_v3 = vadd.f32 %v1316_v38, %v438_v1 }
  0xc8   :  { %v579_v18 = vmax.f32 %v477_v10, 0.0  ;;  %v595_v19 = vmax.f32 %v517_v11, 0.0 }
  0xc9   :  { %v548_v6 = vmax.f32 %v399_v2, 0.0  ;;  %v564_v7 = vmax.f32 %v439_v3, 0.0 }
  0xcb   :  { %v967_v8 = vpack.c.bf16 %v548_v6, %v547_v4  ;;  %v1007_v9 = vpack.c.bf16 %v564_v7, %v563_v5 }
  0xcd   :  { %1111 = vst [vmem:[%s1481_s3 + $0x18] sm:$0xff] %v967_v8   ;;  %v478_v12 = vpop.f32.mrf.mxu2  ;;  %v518_v13 = vpop.f32.mrf.mxu3 }
  0xce   :  { %1119 = vst [vmem:[%s1481_s3 + $0x58] sm:$0xff] %v1007_v9   ;;  %v479_v14 = vadd.f32 %v1316_v38, %v478_v12  ;;  %v519_v15 = vadd.f32 %v1316_v38, %v518_v13  ;;  %v401_v16 = vpop.f32.mrf.mxu0  ;;  %v441_v17 = vpop.f32.mrf.mxu1 }
  0xcf   :  { %v402_v24 = vadd.f32 %v1316_v38, %v401_v16  ;;  %v442_v25 = vadd.f32 %v1316_v38, %v441_v17 }
  0xd0   :  { %v580_v20 = vmax.f32 %v479_v14, 0.0  ;;  %v596_v21 = vmax.f32 %v519_v15, 0.0 }
  0xd1   :  { %v549_v32 = vmax.f32 %v402_v24, 0.0  ;;  %v565_v33 = vmax.f32 %v442_v25, 0.0 }
  0xd2   :  { %v1047_v22 = vpack.c.bf16 %v580_v20, %v579_v18  ;;  %v1087_v23 = vpack.c.bf16 %v596_v21, %v595_v19 }
  0xd4   :  { %1127 = vst [vmem:[%s1481_s3 + $0x98] sm:$0xff] %v1047_v22  }
  0xd5   :  { %1135 = vst [vmem:[%s1481_s3 + $0xd8] sm:$0xff] %v1087_v23   ;;  %v481_v26 = vpop.f32.mrf.mxu2  ;;  %v521_v27 = vpop.f32.mrf.mxu3 }
  0xd6   :  { %v403_v28 = vpop.f32.mrf.mxu0  ;;  %v443_v29 = vpop.f32.mrf.mxu1  ;;  %v482_v39 = vadd.f32 %v1316_v38, %v481_v26  ;;  %v522_v40 = vadd.f32 %v1316_v38, %v521_v27 }
  0xd7   :  { %v404_v30 = vadd.f32 %v1316_v38, %v403_v28  ;;  %v444_v31 = vadd.f32 %v1316_v38, %v443_v29 }
  0xd8   :  { %v581_v47 = vmax.f32 %v482_v39, 0.0  ;;  %v597_v48 = vmax.f32 %v522_v40, 0.0 }
  0xd9   :  { %v550_v34 = vmax.f32 %v404_v30, 0.0  ;;  %v566_v35 = vmax.f32 %v444_v31, 0.0 }
  0xdb   :  { %v972_v36 = vpack.c.bf16 %v550_v34, %v549_v32  ;;  %v1012_v37 = vpack.c.bf16 %v566_v35, %v565_v33 }
  0xdd   :  { %1112 = vst [vmem:[%s1481_s3 + $0x20] sm:$0xff] %v972_v36   ;;  %v483_v41 = vpop.f32.mrf.mxu2  ;;  %v523_v42 = vpop.f32.mrf.mxu3 }
  0xde   :  { %1120 = vst [vmem:[%s1481_s3 + $0x60] sm:$0xff] %v1012_v37   ;;  %v484_v43 = vadd.f32 %v1316_v38, %v483_v41  ;;  %v524_v44 = vadd.f32 %v1316_v38, %v523_v42  ;;  %v406_v45 = vpop.f32.mrf.mxu0  ;;  %v446_v46 = vpop.f32.mrf.mxu1 }
  0xdf   :  { %v407_v53 = vadd.f32 %v1316_v38, %v406_v45  ;;  %v447_v54 = vadd.f32 %v1316_v38, %v446_v46 }
  0xe0   :  { %v582_v49 = vmax.f32 %v484_v43, 0.0  ;;  %v598_v50 = vmax.f32 %v524_v44, 0.0 }
  0xe1   :  { %v551_v61 = vmax.f32 %v407_v53, 0.0  ;;  %v567_v62 = vmax.f32 %v447_v54, 0.0 }
  0xe2   :  { %v1052_v51 = vpack.c.bf16 %v582_v49, %v581_v47  ;;  %v1092_v52 = vpack.c.bf16 %v598_v50, %v597_v48 }
  0xe4   :  { %1128 = vst [vmem:[%s1481_s3 + $0xa0] sm:$0xff] %v1052_v51  }
  0xe5   :  { %1136 = vst [vmem:[%s1481_s3 + $0xe0] sm:$0xff] %v1092_v52   ;;  %v486_v55 = vpop.f32.mrf.mxu2  ;;  %v526_v56 = vpop.f32.mrf.mxu3 }
  0xe6   :  { %v408_v57 = vpop.f32.mrf.mxu0  ;;  %v448_v58 = vpop.f32.mrf.mxu1  ;;  %v487_v3 = vadd.f32 %v1316_v38, %v486_v55  ;;  %v527_v4 = vadd.f32 %v1316_v38, %v526_v56 }
  0xe7   :  { %v409_v59 = vadd.f32 %v1316_v38, %v408_v57  ;;  %v449_v60 = vadd.f32 %v1316_v38, %v448_v58 }
  0xe8   :  { %v583_v11 = vmax.f32 %v487_v3, 0.0  ;;  %v599_v12 = vmax.f32 %v527_v4, 0.0 }
  0xe9   :  { %v552_v63 = vmax.f32 %v409_v59, 0.0  ;;  %v568_v0 = vmax.f32 %v449_v60, 0.0 }
  0xeb   :  { %v977_v1 = vpack.c.bf16 %v552_v63, %v551_v61  ;;  %v1017_v2 = vpack.c.bf16 %v568_v0, %v567_v62 }
  0xed   :  { %1113 = vst [vmem:[%s1481_s3 + $0x28] sm:$0xff] %v977_v1   ;;  %v488_v5 = vpop.f32.mrf.mxu2  ;;  %v528_v6 = vpop.f32.mrf.mxu3 }
  0xee   :  { %1121 = vst [vmem:[%s1481_s3 + $0x68] sm:$0xff] %v1017_v2   ;;  %v489_v7 = vadd.f32 %v1316_v38, %v488_v5  ;;  %v529_v8 = vadd.f32 %v1316_v38, %v528_v6  ;;  %v411_v9 = vpop.f32.mrf.mxu0  ;;  %v451_v10 = vpop.f32.mrf.mxu1 }
  0xef   :  { %v412_v17 = vadd.f32 %v1316_v38, %v411_v9  ;;  %v452_v18 = vadd.f32 %v1316_v38, %v451_v10 }
  0xf0   :  { %v584_v13 = vmax.f32 %v489_v7, 0.0  ;;  %v600_v14 = vmax.f32 %v529_v8, 0.0 }
  0xf1   :  { %v553_v25 = vmax.f32 %v412_v17, 0.0  ;;  %v569_v26 = vmax.f32 %v452_v18, 0.0 }
  0xf2   :  { %v1057_v15 = vpack.c.bf16 %v584_v13, %v583_v11  ;;  %v1097_v16 = vpack.c.bf16 %v600_v14, %v599_v12 }
  0xf4   :  { %1129 = vst [vmem:[%s1481_s3 + $0xa8] sm:$0xff] %v1057_v15  }
  0xf5   :  { %1137 = vst [vmem:[%s1481_s3 + $0xe8] sm:$0xff] %v1097_v16   ;;  %v491_v19 = vpop.f32.mrf.mxu2  ;;  %v531_v20 = vpop.f32.mrf.mxu3 }
  0xf6   :  { %v413_v21 = vpop.f32.mrf.mxu0  ;;  %v453_v22 = vpop.f32.mrf.mxu1  ;;  %v492_v31 = vadd.f32 %v1316_v38, %v491_v19  ;;  %v532_v32 = vadd.f32 %v1316_v38, %v531_v20 }
  0xf7   :  { %v414_v23 = vadd.f32 %v1316_v38, %v413_v21  ;;  %v454_v24 = vadd.f32 %v1316_v38, %v453_v22 }
  0xf8   :  { %v585_v40 = vmax.f32 %v492_v31, 0.0  ;;  %v601_v41 = vmax.f32 %v532_v32, 0.0 }
  0xf9   :  { %v554_v27 = vmax.f32 %v414_v23, 0.0  ;;  %v570_v28 = vmax.f32 %v454_v24, 0.0 }
  0xfb   :  { %v982_v29 = vpack.c.bf16 %v554_v27, %v553_v25  ;;  %v1022_v30 = vpack.c.bf16 %v570_v28, %v569_v26 }
  0xfd   :  { %1114 = vst [vmem:[%s1481_s3 + $0x30] sm:$0xff] %v982_v29   ;;  %v493_v33 = vpop.f32.mrf.mxu2  ;;  %v533_v34 = vpop.f32.mrf.mxu3 }
  0xfe   :  { %1122 = vst [vmem:[%s1481_s3 + $0x70] sm:$0xff] %v1022_v30   ;;  %v494_v35 = vadd.f32 %v1316_v38, %v493_v33  ;;  %v534_v36 = vadd.f32 %v1316_v38, %v533_v34  ;;  %v416_v37 = vpop.f32.mrf.mxu0  ;;  %v456_v39 = vpop.f32.mrf.mxu1 }
  0xff   :  { %v417_v46 = vadd.f32 %v1316_v38, %v416_v37  ;;  %v457_v47 = vadd.f32 %v1316_v38, %v456_v39 }
 0x100   :  { %v586_v42 = vmax.f32 %v494_v35, 0.0  ;;  %v602_v43 = vmax.f32 %v534_v36, 0.0 }
 0x101   :  { %v555_v54 = vmax.f32 %v417_v46, 0.0  ;;  %v571_v55 = vmax.f32 %v457_v47, 0.0 }
 0x102   :  { %v1062_v44 = vpack.c.bf16 %v586_v42, %v585_v40  ;;  %v1102_v45 = vpack.c.bf16 %v602_v43, %v601_v41 }
 0x104   :  { %1130 = vst [vmem:[%s1481_s3 + $0xb0] sm:$0xff] %v1062_v44  }
 0x105   :  { %1138 = vst [vmem:[%s1481_s3 + $0xf0] sm:$0xff] %v1102_v45   ;;  %v496_v48 = vpop.f32.mrf.mxu2  ;;  %v536_v49 = vpop.f32.mrf.mxu3 }
 0x106   :  { %v418_v50 = vpop.f32.mrf.mxu0  ;;  %v458_v51 = vpop.f32.mrf.mxu1  ;;  %v497_v60 = vadd.f32 %v1316_v38, %v496_v48  ;;  %v537_v61 = vadd.f32 %v1316_v38, %v536_v49 }
 0x107   :  { %v419_v52 = vadd.f32 %v1316_v38, %v418_v50  ;;  %v459_v53 = vadd.f32 %v1316_v38, %v458_v51 }
 0x108   :  { %v587_v2 = vmax.f32 %v497_v60, 0.0  ;;  %v603_v3 = vmax.f32 %v537_v61, 0.0 }
 0x109   :  { %v556_v56 = vmax.f32 %v419_v52, 0.0  ;;  %v572_v57 = vmax.f32 %v459_v53, 0.0 }
 0x10b   :  { %v987_v58 = vpack.c.bf16 %v556_v56, %v555_v54  ;;  %v1027_v59 = vpack.c.bf16 %v572_v57, %v571_v55 }
 0x10d   :  { %1115 = vst [vmem:[%s1481_s3 + $0x38] sm:$0xff] %v987_v58   ;;  %v498_v62 = vpop.f32.mrf.mxu2  ;;  %v538_v63 = vpop.f32.mrf.mxu3 }
 0x10e   :  { %1123 = vst [vmem:[%s1481_s3 + $0x78] sm:$0xff] %v1027_v59   ;;  %v499_v0 = vadd.f32 %v1316_v38, %v498_v62  ;;  %v539_v1 = vadd.f32 %v1316_v38, %v538_v63 }
 0x110   :  { %v588_v4 = vmax.f32 %v499_v0, 0.0  ;;  %v604_v5 = vmax.f32 %v539_v1, 0.0 }
 0x112   :  { %v1067_v6 = vpack.c.bf16 %v588_v4, %v587_v2  ;;  %v1107_v7 = vpack.c.bf16 %v604_v5, %v603_v3 }
 0x114   :  { %1131 = vst [vmem:[%s1481_s3 + $0xb8] sm:$0xff] %v1067_v6  }
 0x115   :  { %1139 = vst [vmem:[%s1481_s3 + $0xf8] sm:$0xff] %v1107_v7  }

// kernel: fwd.45
= control target key start
LH: loop header
LB: loop body
LE: loop exit
PB: predicated region body
PF: predicated region fallthrough
CT: control target
= control target key end

     0   :  { %s1424_s1 = inlined_call_operand.vmem [shape: bf16[128,128], index: 1, kind: input, shape index: {}]   ;;  %s1425_s2 = inlined_call_operand.vmem [shape: f32[1,128], index: 2, kind: input, shape index: {}]   ;;  %s1426_s0 = inlined_call_operand.vmem [shape: bf16[512,128], index: 0, kind: input, shape index: {}]   ;;  %s1427_s3 = inlined_call_operand.vmem [shape: bf16[512,128], index: 3, kind: output, shape index: {}]  }
   0x1   :  { %v902_v0 = vld [vmem:[%s1424_s1 + $0x38] sm:$0xff]  ;;  %v901_v1 = vld [vmem:[%s1424_s1 + $0x30] sm:$0xff]  ;;  %v900_v2 = vld [vmem:[%s1424_s1 + $0x28] sm:$0xff] }
   0x2   :  { %338 = vmatpush.bf16.msra.mxu0 %v902_v0  ;;  %1094 = vmatpush.bf16.msra.mxu1 %v902_v0  ;;  %v899_v3 = vld [vmem:[%s1424_s1 + $0x20] sm:$0xff]  ;;  %v898_v4 = vld [vmem:[%s1424_s1 + $0x18] sm:$0xff]  ;;  %v897_v5 = vld [vmem:[%s1424_s1 + $0x10] sm:$0xff] }
   0x3   :  { %1095 = vmatpush.bf16.msra.mxu2 %v902_v0  ;;  %1096 = vmatpush.bf16.msra.mxu3 %v902_v0  ;;  %v896_v6 = vld [vmem:[%s1424_s1 + $0x8] sm:$0xff]  ;;  %v895_v7 = vld [vmem:[%s1424_s1] sm:$0xff]  ;;  %v865_v16 = vld [vmem:[%s1426_s0 + $0x10] sm:$0xff] }
   0x4   :  { %v863_v8 = vld [vmem:[%s1426_s0] sm:$0xff]  ;;  %v864_v12 = vld [vmem:[%s1426_s0 + $0x8] sm:$0xff]  ;;  %v873_v17 = vld [vmem:[%s1426_s0 + $0x50] sm:$0xff] }
   0x5   :  { %v871_v9 = vld [vmem:[%s1426_s0 + $0x40] sm:$0xff]  ;;  %v872_v13 = vld [vmem:[%s1426_s0 + $0x48] sm:$0xff]  ;;  %v881_v18 = vld [vmem:[%s1426_s0 + $0x90] sm:$0xff] }
   0x6   :  { %339 = vmatpush.bf16.msra.mxu0 %v901_v1  ;;  %1097 = vmatpush.bf16.msra.mxu1 %v901_v1  ;;  %v879_v10 = vld [vmem:[%s1426_s0 + $0x80] sm:$0xff]  ;;  %v880_v14 = vld [vmem:[%s1426_s0 + $0x88] sm:$0xff]  ;;  %v889_v19 = vld [vmem:[%s1426_s0 + $0xd0] sm:$0xff] }
   0x7   :  { %1098 = vmatpush.bf16.msra.mxu2 %v901_v1  ;;  %1099 = vmatpush.bf16.msra.mxu3 %v901_v1  ;;  %v887_v11 = vld [vmem:[%s1426_s0 + $0xc0] sm:$0xff]  ;;  %v888_v15 = vld [vmem:[%s1426_s0 + $0xc8] sm:$0xff]  ;;  %v866_v20 = vld [vmem:[%s1426_s0 + $0x18] sm:$0xff] }
   0x8   :  { %v874_v21 = vld [vmem:[%s1426_s0 + $0x58] sm:$0xff]  ;;  %v867_v24 = vld [vmem:[%s1426_s0 + $0x20] sm:$0xff]  ;;  %v868_v28 = vld [vmem:[%s1426_s0 + $0x28] sm:$0xff] }
   0x9   :  { %v882_v22 = vld [vmem:[%s1426_s0 + $0x98] sm:$0xff]  ;;  %v875_v25 = vld [vmem:[%s1426_s0 + $0x60] sm:$0xff]  ;;  %v876_v29 = vld [vmem:[%s1426_s0 + $0x68] sm:$0xff] }
   0xa   :  { %340 = vmatpush.bf16.msra.mxu0 %v900_v2  ;;  %1100 = vmatpush.bf16.msra.mxu1 %v900_v2  ;;  %v890_v23 = vld [vmem:[%s1426_s0 + $0xd8] sm:$0xff]  ;;  %v883_v26 = vld [vmem:[%s1426_s0 + $0xa0] sm:$0xff]  ;;  %v884_v30 = vld [vmem:[%s1426_s0 + $0xa8] sm:$0xff] }
   0xb   :  { %1101 = vmatpush.bf16.msra.mxu2 %v900_v2  ;;  %1102 = vmatpush.bf16.msra.mxu3 %v900_v2  ;;  %v891_v27 = vld [vmem:[%s1426_s0 + $0xe0] sm:$0xff]  ;;  %v892_v31 = vld [vmem:[%s1426_s0 + $0xe8] sm:$0xff]  ;;  %v869_v32 = vld [vmem:[%s1426_s0 + $0x30] sm:$0xff] }
   0xc   :  { %v877_v33 = vld [vmem:[%s1426_s0 + $0x70] sm:$0xff]  ;;  %v870_v36 = vld [vmem:[%s1426_s0 + $0x38] sm:$0xff]  ;;  %v1262_v42 = vld [vmem:[%s1425_s2] ss:$0 sm:$0xff] }
   0xd   :  { %v885_v34 = vld [vmem:[%s1426_s0 + $0xb0] sm:$0xff]  ;;  %v878_v37 = vld [vmem:[%s1426_s0 + $0x78] sm:$0xff] }
   0xe   :  { %341 = vmatpush.bf16.msra.mxu0 %v899_v3  ;;  %1103 = vmatpush.bf16.msra.mxu1 %v899_v3  ;;  %v893_v35 = vld [vmem:[%s1426_s0 + $0xf0] sm:$0xff]  ;;  %v886_v38 = vld [vmem:[%s1426_s0 + $0xb8] sm:$0xff] }
   0xf   :  { %1104 = vmatpush.bf16.msra.mxu2 %v899_v3  ;;  %1105 = vmatpush.bf16.msra.mxu3 %v899_v3  ;;  %v894_v39 = vld [vmem:[%s1426_s0 + $0xf8] sm:$0xff] }
  0x12   :  { %342 = vmatpush.bf16.msra.mxu0 %v898_v4  ;;  %1106 = vmatpush.bf16.msra.mxu1 %v898_v4 }
  0x13   :  { %1107 = vmatpush.bf16.msra.mxu2 %v898_v4  ;;  %1108 = vmatpush.bf16.msra.mxu3 %v898_v4 }
  0x16   :  { %343 = vmatpush.bf16.msra.mxu0 %v897_v5  ;;  %1109 = vmatpush.bf16.msra.mxu1 %v897_v5 }
  0x17   :  { %1110 = vmatpush.bf16.msra.mxu2 %v897_v5  ;;  %1111 = vmatpush.bf16.msra.mxu3 %v897_v5 }
  0x1a   :  { %344 = vmatpush.bf16.msra.mxu0 %v896_v6  ;;  %1112 = vmatpush.bf16.msra.mxu1 %v896_v6 }
  0x1b   :  { %1113 = vmatpush.bf16.msra.mxu2 %v896_v6  ;;  %1114 = vmatpush.bf16.msra.mxu3 %v896_v6 }
  0x1e   :  { %345 = vmatpush.bf16.msra.mxu0 %v895_v7  ;;  %1115 = vmatpush.bf16.msra.mxu1 %v895_v7 }
  0x1f   :  { %1116 = vmatpush.bf16.msra.mxu2 %v895_v7  ;;  %1117 = vmatpush.bf16.msra.mxu3 %v895_v7 }
  0x21   :  { %346 = vmatmul.bf16.vlgmr.msra.gmra.mxu0 %v863_v8  ;;  %386 = vmatmul.bf16.vlgmr.msra.gmra.mxu1 %v871_v9 }
  0x22   :  { %426 = vmatmul.bf16.vlgmr.msra.gmra.mxu2 %v879_v10  ;;  %466 = vmatmul.bf16.vlgmr.msra.gmra.mxu3 %v887_v11 }
  0x31   :  { %351 = vmatmul.bf16.gmra.mxu0 %v864_v12  ;;  %391 = vmatmul.bf16.gmra.mxu1 %v872_v13 }
  0x32   :  { %431 = vmatmul.bf16.gmra.mxu2 %v880_v14  ;;  %471 = vmatmul.bf16.gmra.mxu3 %v888_v15 }
  0x41   :  { %356 = vmatmul.bf16.gmra.mxu0 %v865_v16  ;;  %396 = vmatmul.bf16.gmra.mxu1 %v873_v17 }
  0x42   :  { %436 = vmatmul.bf16.gmra.mxu2 %v881_v18  ;;  %476 = vmatmul.bf16.gmra.mxu3 %v889_v19 }
  0x51   :  { %361 = vmatmul.bf16.gmra.mxu0 %v866_v20  ;;  %401 = vmatmul.bf16.gmra.mxu1 %v874_v21 }
  0x52   :  { %441 = vmatmul.bf16.gmra.mxu2 %v882_v22  ;;  %481 = vmatmul.bf16.gmra.mxu3 %v890_v23 }
  0x61   :  { %366 = vmatmul.bf16.gmra.mxu0 %v867_v24  ;;  %406 = vmatmul.bf16.gmra.mxu1 %v875_v25 }
  0x62   :  { %446 = vmatmul.bf16.gmra.mxu2 %v883_v26  ;;  %486 = vmatmul.bf16.gmra.mxu3 %v891_v27 }
  0x71   :  { %371 = vmatmul.bf16.gmra.mxu0 %v868_v28  ;;  %411 = vmatmul.bf16.gmra.mxu1 %v876_v29 }
  0x72   :  { %451 = vmatmul.bf16.gmra.mxu2 %v884_v30  ;;  %491 = vmatmul.bf16.gmra.mxu3 %v892_v31 }
  0x81   :  { %376 = vmatmul.bf16.gmra.mxu0 %v869_v32  ;;  %416 = vmatmul.bf16.gmra.mxu1 %v877_v33 }
  0x82   :  { %456 = vmatmul.bf16.gmra.mxu2 %v885_v34  ;;  %496 = vmatmul.bf16.gmra.mxu3 %v893_v35 }
  0x91   :  { %381 = vmatmul.bf16.gmra.mxu0 %v870_v36  ;;  %421 = vmatmul.bf16.gmra.mxu1 %v878_v37 }
  0x92   :  { %461 = vmatmul.bf16.gmra.mxu2 %v886_v38  ;;  %501 = vmatmul.bf16.gmra.mxu3 %v894_v39 }
  0x9e   :  { %v347_v40 = vpop.f32.mrf.mxu0  ;;  %v387_v41 = vpop.f32.mrf.mxu1 }
  0x9f   :  { %v348_v43 = vadd.f32 %v1262_v42, %v347_v40  ;;  %v388_v44 = vadd.f32 %v1262_v42, %v387_v41 }
  0xa1   :  { %v507_v51 = vmax.f32 %v348_v43, 0.0  ;;  %v523_v52 = vmax.f32 %v388_v44, 0.0 }
  0xa5   :  { %v427_v45 = vpop.f32.mrf.mxu2  ;;  %v467_v46 = vpop.f32.mrf.mxu3 }
  0xa6   :  { %v349_v47 = vpop.f32.mrf.mxu0  ;;  %v389_v48 = vpop.f32.mrf.mxu1  ;;  %v428_v57 = vadd.f32 %v1262_v42, %v427_v45  ;;  %v468_v58 = vadd.f32 %v1262_v42, %v467_v46 }
  0xa7   :  { %v350_v49 = vadd.f32 %v1262_v42, %v349_v47  ;;  %v390_v50 = vadd.f32 %v1262_v42, %v389_v48 }
  0xa8   :  { %v539_v1 = vmax.f32 %v428_v57, 0.0  ;;  %v555_v2 = vmax.f32 %v468_v58, 0.0 }
  0xa9   :  { %v508_v53 = vmax.f32 %v350_v49, 0.0  ;;  %v524_v54 = vmax.f32 %v390_v50, 0.0 }
  0xab   :  { %v906_v55 = vpack.c.bf16 %v508_v53, %v507_v51  ;;  %v946_v56 = vpack.c.bf16 %v524_v54, %v523_v52 }
  0xad   :  { %907 = vst [vmem:[%s1427_s3] sm:$0xff] %v906_v55   ;;  %v429_v59 = vpop.f32.mrf.mxu2  ;;  %v469_v60 = vpop.f32.mrf.mxu3 }
  0xae   :  { %1070 = vst [vmem:[%s1427_s3 + $0x40] sm:$0xff] %v946_v56   ;;  %v430_v61 = vadd.f32 %v1262_v42, %v429_v59  ;;  %v470_v62 = vadd.f32 %v1262_v42, %v469_v60  ;;  %v352_v63 = vpop.f32.mrf.mxu0  ;;  %v392_v0 = vpop.f32.mrf.mxu1 }
  0xaf   :  { %v353_v7 = vadd.f32 %v1262_v42, %v352_v63  ;;  %v393_v8 = vadd.f32 %v1262_v42, %v392_v0 }
  0xb0   :  { %v540_v3 = vmax.f32 %v430_v61, 0.0  ;;  %v556_v4 = vmax.f32 %v470_v62, 0.0 }
  0xb1   :  { %v509_v15 = vmax.f32 %v353_v7, 0.0  ;;  %v525_v16 = vmax.f32 %v393_v8, 0.0 }
  0xb2   :  { %v986_v5 = vpack.c.bf16 %v540_v3, %v539_v1  ;;  %v1026_v6 = vpack.c.bf16 %v556_v4, %v555_v2 }
  0xb4   :  { %1078 = vst [vmem:[%s1427_s3 + $0x80] sm:$0xff] %v986_v5  }
  0xb5   :  { %1086 = vst [vmem:[%s1427_s3 + $0xc0] sm:$0xff] %v1026_v6   ;;  %v432_v9 = vpop.f32.mrf.mxu2  ;;  %v472_v10 = vpop.f32.mrf.mxu3 }
  0xb6   :  { %v354_v11 = vpop.f32.mrf.mxu0  ;;  %v394_v12 = vpop.f32.mrf.mxu1  ;;  %v433_v21 = vadd.f32 %v1262_v42, %v432_v9  ;;  %v473_v22 = vadd.f32 %v1262_v42, %v472_v10 }
  0xb7   :  { %v355_v13 = vadd.f32 %v1262_v42, %v354_v11  ;;  %v395_v14 = vadd.f32 %v1262_v42, %v394_v12 }
  0xb8   :  { %v541_v29 = vmax.f32 %v433_v21, 0.0  ;;  %v557_v30 = vmax.f32 %v473_v22, 0.0 }
  0xb9   :  { %v510_v17 = vmax.f32 %v355_v13, 0.0  ;;  %v526_v18 = vmax.f32 %v395_v14, 0.0 }
  0xbb   :  { %v911_v19 = vpack.c.bf16 %v510_v17, %v509_v15  ;;  %v951_v20 = vpack.c.bf16 %v526_v18, %v525_v16 }
  0xbd   :  { %1063 = vst [vmem:[%s1427_s3 + $0x8] sm:$0xff] %v911_v19   ;;  %v434_v23 = vpop.f32.mrf.mxu2  ;;  %v474_v24 = vpop.f32.mrf.mxu3 }
  0xbe   :  { %1071 = vst [vmem:[%s1427_s3 + $0x48] sm:$0xff] %v951_v20   ;;  %v435_v25 = vadd.f32 %v1262_v42, %v434_v23  ;;  %v475_v26 = vadd.f32 %v1262_v42, %v474_v24  ;;  %v357_v27 = vpop.f32.mrf.mxu0  ;;  %v397_v28 = vpop.f32.mrf.mxu1 }
  0xbf   :  { %v358_v35 = vadd.f32 %v1262_v42, %v357_v27  ;;  %v398_v36 = vadd.f32 %v1262_v42, %v397_v28 }
  0xc0   :  { %v542_v31 = vmax.f32 %v435_v25, 0.0  ;;  %v558_v32 = vmax.f32 %v475_v26, 0.0 }
  0xc1   :  { %v511_v44 = vmax.f32 %v358_v35, 0.0  ;;  %v527_v45 = vmax.f32 %v398_v36, 0.0 }
  0xc2   :  { %v991_v33 = vpack.c.bf16 %v542_v31, %v541_v29  ;;  %v1031_v34 = vpack.c.bf16 %v558_v32, %v557_v30 }
  0xc4   :  { %1079 = vst [vmem:[%s1427_s3 + $0x88] sm:$0xff] %v991_v33  }
  0xc5   :  { %1087 = vst [vmem:[%s1427_s3 + $0xc8] sm:$0xff] %v1031_v34   ;;  %v437_v37 = vpop.f32.mrf.mxu2  ;;  %v477_v38 = vpop.f32.mrf.mxu3 }
  0xc6   :  { %v359_v39 = vpop.f32.mrf.mxu0  ;;  %v399_v40 = vpop.f32.mrf.mxu1  ;;  %v438_v50 = vadd.f32 %v1262_v42, %v437_v37  ;;  %v478_v51 = vadd.f32 %v1262_v42, %v477_v38 }
  0xc7   :  { %v360_v41 = vadd.f32 %v1262_v42, %v359_v39  ;;  %v400_v43 = vadd.f32 %v1262_v42, %v399_v40 }
  0xc8   :  { %v543_v58 = vmax.f32 %v438_v50, 0.0  ;;  %v559_v59 = vmax.f32 %v478_v51, 0.0 }
  0xc9   :  { %v512_v46 = vmax.f32 %v360_v41, 0.0  ;;  %v528_v47 = vmax.f32 %v400_v43, 0.0 }
  0xcb   :  { %v916_v48 = vpack.c.bf16 %v512_v46, %v511_v44  ;;  %v956_v49 = vpack.c.bf16 %v528_v47, %v527_v45 }
  0xcd   :  { %1064 = vst [vmem:[%s1427_s3 + $0x10] sm:$0xff] %v916_v48   ;;  %v439_v52 = vpop.f32.mrf.mxu2  ;;  %v479_v53 = vpop.f32.mrf.mxu3 }
  0xce   :  { %1072 = vst [vmem:[%s1427_s3 + $0x50] sm:$0xff] %v956_v49   ;;  %v440_v54 = vadd.f32 %v1262_v42, %v439_v52  ;;  %v480_v55 = vadd.f32 %v1262_v42, %v479_v53  ;;  %v362_v56 = vpop.f32.mrf.mxu0  ;;  %v402_v57 = vpop.f32.mrf.mxu1 }
  0xcf   :  { %v363_v0 = vadd.f32 %v1262_v42, %v362_v56  ;;  %v403_v1 = vadd.f32 %v1262_v42, %v402_v57 }
  0xd0   :  { %v544_v60 = vmax.f32 %v440_v54, 0.0  ;;  %v560_v61 = vmax.f32 %v480_v55, 0.0 }
  0xd1   :  { %v513_v8 = vmax.f32 %v363_v0, 0.0  ;;  %v529_v9 = vmax.f32 %v403_v1, 0.0 }
  0xd2   :  { %v996_v62 = vpack.c.bf16 %v544_v60, %v543_v58  ;;  %v1036_v63 = vpack.c.bf16 %v560_v61, %v559_v59 }
  0xd4   :  { %1080 = vst [vmem:[%s1427_s3 + $0x90] sm:$0xff] %v996_v62  }
  0xd5   :  { %1088 = vst [vmem:[%s1427_s3 + $0xd0] sm:$0xff] %v1036_v63   ;;  %v442_v2 = vpop.f32.mrf.mxu2  ;;  %v482_v3 = vpop.f32.mrf.mxu3 }
  0xd6   :  { %v364_v4 = vpop.f32.mrf.mxu0  ;;  %v404_v5 = vpop.f32.mrf.mxu1  ;;  %v443_v14 = vadd.f32 %v1262_v42, %v442_v2  ;;  %v483_v15 = vadd.f32 %v1262_v42, %v482_v3 }
  0xd7   :  { %v365_v6 = vadd.f32 %v1262_v42, %v364_v4  ;;  %v405_v7 = vadd.f32 %v1262_v42, %v404_v5 }
  0xd8   :  { %v545_v22 = vmax.f32 %v443_v14, 0.0  ;;  %v561_v23 = vmax.f32 %v483_v15, 0.0 }
  0xd9   :  { %v514_v10 = vmax.f32 %v365_v6, 0.0  ;;  %v530_v11 = vmax.f32 %v405_v7, 0.0 }
  0xdb   :  { %v921_v12 = vpack.c.bf16 %v514_v10, %v513_v8  ;;  %v961_v13 = vpack.c.bf16 %v530_v11, %v529_v9 }
  0xdd   :  { %1065 = vst [vmem:[%s1427_s3 + $0x18] sm:$0xff] %v921_v12   ;;  %v444_v16 = vpop.f32.mrf.mxu2  ;;  %v484_v17 = vpop.f32.mrf.mxu3 }
  0xde   :  { %1073 = vst [vmem:[%s1427_s3 + $0x58] sm:$0xff] %v961_v13   ;;  %v445_v18 = vadd.f32 %v1262_v42, %v444_v16  ;;  %v485_v19 = vadd.f32 %v1262_v42, %v484_v17  ;;  %v367_v20 = vpop.f32.mrf.mxu0  ;;  %v407_v21 = vpop.f32.mrf.mxu1 }
  0xdf   :  { %v368_v28 = vadd.f32 %v1262_v42, %v367_v20  ;;  %v408_v29 = vadd.f32 %v1262_v42, %v407_v21 }
  0xe0   :  { %v546_v24 = vmax.f32 %v445_v18, 0.0  ;;  %v562_v25 = vmax.f32 %v485_v19, 0.0 }
  0xe1   :  { %v515_v36 = vmax.f32 %v368_v28, 0.0  ;;  %v531_v37 = vmax.f32 %v408_v29, 0.0 }
  0xe2   :  { %v1001_v26 = vpack.c.bf16 %v546_v24, %v545_v22  ;;  %v1041_v27 = vpack.c.bf16 %v562_v25, %v561_v23 }
  0xe4   :  { %1081 = vst [vmem:[%s1427_s3 + $0x98] sm:$0xff] %v1001_v26  }
  0xe5   :  { %1089 = vst [vmem:[%s1427_s3 + $0xd8] sm:$0xff] %v1041_v27   ;;  %v447_v30 = vpop.f32.mrf.mxu2  ;;  %v487_v31 = vpop.f32.mrf.mxu3 }
  0xe6   :  { %v369_v32 = vpop.f32.mrf.mxu0  ;;  %v409_v33 = vpop.f32.mrf.mxu1  ;;  %v448_v43 = vadd.f32 %v1262_v42, %v447_v30  ;;  %v488_v44 = vadd.f32 %v1262_v42, %v487_v31 }
  0xe7   :  { %v370_v34 = vadd.f32 %v1262_v42, %v369_v32  ;;  %v410_v35 = vadd.f32 %v1262_v42, %v409_v33 }
  0xe8   :  { %v547_v51 = vmax.f32 %v448_v43, 0.0  ;;  %v563_v52 = vmax.f32 %v488_v44, 0.0 }
  0xe9   :  { %v516_v38 = vmax.f32 %v370_v34, 0.0  ;;  %v532_v39 = vmax.f32 %v410_v35, 0.0 }
  0xeb   :  { %v926_v40 = vpack.c.bf16 %v516_v38, %v515_v36  ;;  %v966_v41 = vpack.c.bf16 %v532_v39, %v531_v37 }
  0xed   :  { %1066 = vst [vmem:[%s1427_s3 + $0x20] sm:$0xff] %v926_v40   ;;  %v449_v45 = vpop.f32.mrf.mxu2  ;;  %v489_v46 = vpop.f32.mrf.mxu3 }
  0xee   :  { %1074 = vst [vmem:[%s1427_s3 + $0x60] sm:$0xff] %v966_v41   ;;  %v450_v47 = vadd.f32 %v1262_v42, %v449_v45  ;;  %v490_v48 = vadd.f32 %v1262_v42, %v489_v46  ;;  %v372_v49 = vpop.f32.mrf.mxu0  ;;  %v412_v50 = vpop.f32.mrf.mxu1 }
  0xef   :  { %v373_v57 = vadd.f32 %v1262_v42, %v372_v49  ;;  %v413_v58 = vadd.f32 %v1262_v42, %v412_v50 }
  0xf0   :  { %v548_v53 = vmax.f32 %v450_v47, 0.0  ;;  %v564_v54 = vmax.f32 %v490_v48, 0.0 }
  0xf1   :  { %v517_v1 = vmax.f32 %v373_v57, 0.0  ;;  %v533_v2 = vmax.f32 %v413_v58, 0.0 }
  0xf2   :  { %v1006_v55 = vpack.c.bf16 %v548_v53, %v547_v51  ;;  %v1046_v56 = vpack.c.bf16 %v564_v54, %v563_v52 }
  0xf4   :  { %1082 = vst [vmem:[%s1427_s3 + $0xa0] sm:$0xff] %v1006_v55  }
  0xf5   :  { %1090 = vst [vmem:[%s1427_s3 + $0xe0] sm:$0xff] %v1046_v56   ;;  %v452_v59 = vpop.f32.mrf.mxu2  ;;  %v492_v60 = vpop.f32.mrf.mxu3 }
  0xf6   :  { %v374_v61 = vpop.f32.mrf.mxu0  ;;  %v414_v62 = vpop.f32.mrf.mxu1  ;;  %v453_v7 = vadd.f32 %v1262_v42, %v452_v59  ;;  %v493_v8 = vadd.f32 %v1262_v42, %v492_v60 }
  0xf7   :  { %v375_v63 = vadd.f32 %v1262_v42, %v374_v61  ;;  %v415_v0 = vadd.f32 %v1262_v42, %v414_v62 }
  0xf8   :  { %v549_v15 = vmax.f32 %v453_v7, 0.0  ;;  %v565_v16 = vmax.f32 %v493_v8, 0.0 }
  0xf9   :  { %v518_v3 = vmax.f32 %v375_v63, 0.0  ;;  %v534_v4 = vmax.f32 %v415_v0, 0.0 }
  0xfb   :  { %v931_v5 = vpack.c.bf16 %v518_v3, %v517_v1  ;;  %v971_v6 = vpack.c.bf16 %v534_v4, %v533_v2 }
  0xfd   :  { %1067 = vst [vmem:[%s1427_s3 + $0x28] sm:$0xff] %v931_v5   ;;  %v454_v9 = vpop.f32.mrf.mxu2  ;;  %v494_v10 = vpop.f32.mrf.mxu3 }
  0xfe   :  { %1075 = vst [vmem:[%s1427_s3 + $0x68] sm:$0xff] %v971_v6   ;;  %v455_v11 = vadd.f32 %v1262_v42, %v454_v9  ;;  %v495_v12 = vadd.f32 %v1262_v42, %v494_v10  ;;  %v377_v13 = vpop.f32.mrf.mxu0  ;;  %v417_v14 = vpop.f32.mrf.mxu1 }
  0xff   :  { %v378_v21 = vadd.f32 %v1262_v42, %v377_v13  ;;  %v418_v22 = vadd.f32 %v1262_v42, %v417_v14 }
 0x100   :  { %v550_v17 = vmax.f32 %v455_v11, 0.0  ;;  %v566_v18 = vmax.f32 %v495_v12, 0.0 }
 0x101   :  { %v519_v29 = vmax.f32 %v378_v21, 0.0  ;;  %v535_v30 = vmax.f32 %v418_v22, 0.0 }
 0x102   :  { %v1011_v19 = vpack.c.bf16 %v550_v17, %v549_v15  ;;  %v1051_v20 = vpack.c.bf16 %v566_v18, %v565_v16 }
 0x104   :  { %1083 = vst [vmem:[%s1427_s3 + $0xa8] sm:$0xff] %v1011_v19  }
 0x105   :  { %1091 = vst [vmem:[%s1427_s3 + $0xe8] sm:$0xff] %v1051_v20   ;;  %v457_v23 = vpop.f32.mrf.mxu2  ;;  %v497_v24 = vpop.f32.mrf.mxu3 }
 0x106   :  { %v379_v25 = vpop.f32.mrf.mxu0  ;;  %v419_v26 = vpop.f32.mrf.mxu1  ;;  %v458_v35 = vadd.f32 %v1262_v42, %v457_v23  ;;  %v498_v36 = vadd.f32 %v1262_v42, %v497_v24 }
 0x107   :  { %v380_v27 = vadd.f32 %v1262_v42, %v379_v25  ;;  %v420_v28 = vadd.f32 %v1262_v42, %v419_v26 }
 0x108   :  { %v551_v44 = vmax.f32 %v458_v35, 0.0  ;;  %v567_v45 = vmax.f32 %v498_v36, 0.0 }
 0x109   :  { %v520_v31 = vmax.f32 %v380_v27, 0.0  ;;  %v536_v32 = vmax.f32 %v420_v28, 0.0 }
 0x10b   :  { %v936_v33 = vpack.c.bf16 %v520_v31, %v519_v29  ;;  %v976_v34 = vpack.c.bf16 %v536_v32, %v535_v30 }
 0x10d   :  { %1068 = vst [vmem:[%s1427_s3 + $0x30] sm:$0xff] %v936_v33   ;;  %v459_v37 = vpop.f32.mrf.mxu2  ;;  %v499_v38 = vpop.f32.mrf.mxu3 }
 0x10e   :  { %1076 = vst [vmem:[%s1427_s3 + $0x70] sm:$0xff] %v976_v34   ;;  %v460_v39 = vadd.f32 %v1262_v42, %v459_v37  ;;  %v500_v40 = vadd.f32 %v1262_v42, %v499_v38  ;;  %v382_v41 = vpop.f32.mrf.mxu0  ;;  %v422_v43 = vpop.f32.mrf.mxu1 }
 0x10f   :  { %v383_v50 = vadd.f32 %v1262_v42, %v382_v41  ;;  %v423_v51 = vadd.f32 %v1262_v42, %v422_v43 }
 0x110   :  { %v552_v46 = vmax.f32 %v460_v39, 0.0  ;;  %v568_v47 = vmax.f32 %v500_v40, 0.0 }
 0x111   :  { %v521_v58 = vmax.f32 %v383_v50, 0.0  ;;  %v537_v59 = vmax.f32 %v423_v51, 0.0 }
 0x112   :  { %v1016_v48 = vpack.c.bf16 %v552_v46, %v551_v44  ;;  %v1056_v49 = vpack.c.bf16 %v568_v47, %v567_v45 }
 0x114   :  { %1084 = vst [vmem:[%s1427_s3 + $0xb0] sm:$0xff] %v1016_v48  }
 0x115   :  { %1092 = vst [vmem:[%s1427_s3 + $0xf0] sm:$0xff] %v1056_v49   ;;  %v462_v52 = vpop.f32.mrf.mxu2  ;;  %v502_v53 = vpop.f32.mrf.mxu3 }
 0x116   :  { %v384_v54 = vpop.f32.mrf.mxu0  ;;  %v424_v55 = vpop.f32.mrf.mxu1  ;;  %v463_v0 = vadd.f32 %v1262_v42, %v462_v52  ;;  %v503_v1 = vadd.f32 %v1262_v42, %v502_v53 }
 0x117   :  { %v385_v56 = vadd.f32 %v1262_v42, %v384_v54  ;;  %v425_v57 = vadd.f32 %v1262_v42, %v424_v55 }
 0x118   :  { %v553_v6 = vmax.f32 %v463_v0, 0.0  ;;  %v569_v7 = vmax.f32 %v503_v1, 0.0 }
 0x119   :  { %v522_v60 = vmax.f32 %v385_v56, 0.0  ;;  %v538_v61 = vmax.f32 %v425_v57, 0.0 }
 0x11b   :  { %v941_v62 = vpack.c.bf16 %v522_v60, %v521_v58  ;;  %v981_v63 = vpack.c.bf16 %v538_v61, %v537_v59 }
 0x11d   :  { %1069 = vst [vmem:[%s1427_s3 + $0x38] sm:$0xff] %v941_v62   ;;  %v464_v2 = vpop.f32.mrf.mxu2  ;;  %v504_v3 = vpop.f32.mrf.mxu3 }
 0x11e   :  { %1077 = vst [vmem:[%s1427_s3 + $0x78] sm:$0xff] %v981_v63   ;;  %v465_v4 = vadd.f32 %v1262_v42, %v464_v2  ;;  %v505_v5 = vadd.f32 %v1262_v42, %v504_v3 }
 0x120   :  { %v554_v8 = vmax.f32 %v465_v4, 0.0  ;;  %v570_v9 = vmax.f32 %v505_v5, 0.0 }
 0x122   :  { %v1021_v10 = vpack.c.bf16 %v554_v8, %v553_v6  ;;  %v1061_v11 = vpack.c.bf16 %v570_v9, %v569_v7 }
 0x124   :  { %1085 = vst [vmem:[%s1427_s3 + $0xb8] sm:$0xff] %v1021_v10  }
 0x125   :  { %1093 = vst [vmem:[%s1427_s3 + $0xf8] sm:$0xff] %v1061_v11  }

// kernel: fwd.71
= control target key start
LH: loop header
LB: loop body
LE: loop exit
PB: predicated region body
PF: predicated region fallthrough
CT: control target
= control target key end

     0   :  { %vm219_vm0 = vcmask 785408   ;;  %s831_s1 = inlined_call_operand.vmem [shape: bf16[224,128], index: 1, kind: input, shape index: {}]   ;;  %s832_s0 = inlined_call_operand.vmem [shape: bf16[128,224], index: 0, kind: input, shape index: {}]   ;;  %s833_s2 = inlined_call_operand.vmem [shape: f32[1,128], index: 2, kind: input, shape index: {}]   ;;  %s834_s3 = inlined_call_operand.vmem [shape: bf16[128,128], index: 3, kind: output, shape index: {}]  }
   0x1   :  { %v545_v0 = vld [vmem:[%s831_s1 + $0x38] sm:$0xff]  ;;  %v551_v1 = vld [vmem:[%s831_s1 + $0x68] sm:$0xff]  ;;  %v544_v2 = vld [vmem:[%s831_s1 + $0x30] sm:$0xff] }
   0x2   :  { %244 = vmatpush.bf16.msra.mxu0 %v545_v0  ;;  %599 = vmatpush.bf16.msra.mxu2 %v545_v0  ;;  %v550_v3 = vld [vmem:[%s831_s1 + $0x60] sm:$0xff]  ;;  %v543_v4 = vld [vmem:[%s831_s1 + $0x28] sm:$0xff]  ;;  %v549_v5 = vld [vmem:[%s831_s1 + $0x58] sm:$0xff] }
   0x3   :  { %295 = vmatpush.bf16.msra.mxu1 %v551_v1  ;;  %607 = vmatpush.bf16.msra.mxu3 %v551_v1  ;;  %v542_v6 = vld [vmem:[%s831_s1 + $0x20] sm:$0xff]  ;;  %v548_v7 = vld [vmem:[%s831_s1 + $0x50] sm:$0xff]  ;;  %v541_v8 = vld [vmem:[%s831_s1 + $0x18] sm:$0xff] }
   0x4   :  { %v547_v9 = vld [vmem:[%s831_s1 + $0x48] sm:$0xff]  ;;  %v540_v10 = vld [vmem:[%s831_s1 + $0x10] sm:$0xff]  ;;  %v546_v11 = vld [vmem:[%s831_s1 + $0x40] sm:$0xff] }
   0x5   :  { %v522_v12 = vld [vmem:[%s832_s0 + $0x4] sm:$0xf]  ;;  %v398_v13 = vld [vmem:[%s832_s0 + $0x8] sm:$0xf0]  ;;  %v532_v14 = vld [vmem:[%s832_s0 + $0x54] sm:$0xf] }
   0x6   :  { %245 = vmatpush.bf16.msra.mxu0 %v544_v2  ;;  %600 = vmatpush.bf16.msra.mxu2 %v544_v2  ;;  %v438_v15 = vld [vmem:[%s832_s0 + $0x58] sm:$0xf0]  ;;  %v401_v16 = vor.u32 %v522_v12, %v398_v13  ;;  %v539_v17 = vld [vmem:[%s831_s1 + $0x8] sm:$0xff]  ;;  %v538_v19 = vld [vmem:[%s831_s1] sm:$0xff] }
   0x7   :  { %296 = vmatpush.bf16.msra.mxu1 %v550_v3  ;;  %608 = vmatpush.bf16.msra.mxu3 %v550_v3  ;;  %v441_v18 = vor.u32 %v532_v14, %v438_v15  ;;  %v396_v20 = vld [vmem:[%s832_s0] sm:$0xf]  ;;  %v523_v21 = vld [vmem:[%s832_s0 + $0x4] sm:$0xf0]  ;;  %v524_v26 = vld [vmem:[%s832_s0 + $0x14] sm:$0xf] }
   0x8   :  { %v428_v22 = vld [vmem:[%s832_s0 + $0x40] sm:$0xf]  ;;  %v531_v23 = vld [vmem:[%s832_s0 + $0x44] sm:$0xf0]  ;;  %v397_v24 = vor.u32 %v523_v21, %v396_v20  ;;  %v406_v27 = vld [vmem:[%s832_s0 + $0x18] sm:$0xf0] }
   0x9   :  { %v429_v25 = vor.u32 %v531_v23, %v428_v22  ;;  %v534_v28 = vld [vmem:[%s832_s0 + $0x64] sm:$0xf]  ;;  %v446_v29 = vld [vmem:[%s832_s0 + $0x68] sm:$0xf0]  ;;  %v409_v30 = vor.u32 %v524_v26, %v406_v27  ;;  %v404_v32 = vld [vmem:[%s832_s0 + $0x10] sm:$0xf] }
   0xa   :  { %246 = vmatpush.bf16.msra.mxu0 %v543_v4  ;;  %601 = vmatpush.bf16.msra.mxu2 %v543_v4  ;;  %v449_v31 = vor.u32 %v534_v28, %v446_v29  ;;  %v525_v33 = vld [vmem:[%s832_s0 + $0x14] sm:$0xf0]  ;;  %v436_v34 = vld [vmem:[%s832_s0 + $0x50] sm:$0xf]  ;;  %v526_v38 = vld [vmem:[%s832_s0 + $0x24] sm:$0xf] }
   0xb   :  { %297 = vmatpush.bf16.msra.mxu1 %v549_v5  ;;  %609 = vmatpush.bf16.msra.mxu3 %v549_v5  ;;  %v533_v35 = vld [vmem:[%s832_s0 + $0x54] sm:$0xf0]  ;;  %v405_v36 = vor.u32 %v525_v33, %v404_v32  ;;  %v414_v39 = vld [vmem:[%s832_s0 + $0x28] sm:$0xf0]  ;;  %v536_v40 = vld [vmem:[%s832_s0 + $0x74] sm:$0xf] }
   0xc   :  { %v437_v37 = vor.u32 %v533_v35, %v436_v34  ;;  %v454_v41 = vld [vmem:[%s832_s0 + $0x78] sm:$0xf0]  ;;  %v417_v42 = vor.u32 %v526_v38, %v414_v39  ;;  %v412_v44 = vld [vmem:[%s832_s0 + $0x20] sm:$0xf]  ;;  %v527_v45 = vld [vmem:[%s832_s0 + $0x24] sm:$0xf0] }
   0xd   :  { %v457_v43 = vor.u32 %v536_v40, %v454_v41  ;;  %v444_v46 = vld [vmem:[%s832_s0 + $0x60] sm:$0xf]  ;;  %v535_v47 = vld [vmem:[%s832_s0 + $0x64] sm:$0xf0]  ;;  %v413_v48 = vor.u32 %v527_v45, %v412_v44  ;;  %v528_v50 = vld [vmem:[%s832_s0 + $0x34] sm:$0xf] }
   0xe   :  { %247 = vmatpush.bf16.msra.mxu0 %v542_v6  ;;  %602 = vmatpush.bf16.msra.mxu2 %v542_v6  ;;  %v445_v49 = vor.u32 %v535_v47, %v444_v46  ;;  %v422_v51 = vld [vmem:[%s832_s0 + $0x38] sm:$0xf0]  ;;  %v420_v53 = vld [vmem:[%s832_s0 + $0x30] sm:$0xf]  ;;  %v529_v54 = vld [vmem:[%s832_s0 + $0x34] sm:$0xf0] }
   0xf   :  { %298 = vmatpush.bf16.msra.mxu1 %v548_v7  ;;  %610 = vmatpush.bf16.msra.mxu3 %v548_v7  ;;  %v425_v52 = vor.u32 %v528_v50, %v422_v51  ;;  %v452_v55 = vld [vmem:[%s832_s0 + $0x70] sm:$0xf]  ;;  %v537_v56 = vld [vmem:[%s832_s0 + $0x74] sm:$0xf0]  ;;  %v421_v57 = vor.u32 %v529_v54, %v420_v53  ;;  %v530_v59 = vld [vmem:[%s832_s0 + $0x44] sm:$0xf] }
  0x10   :  { %v453_v58 = vor.u32 %v537_v56, %v452_v55  ;;  %v430_v60 = vld [vmem:[%s832_s0 + $0x48] sm:$0xf0]  ;;  %v783_v0 = vld [vmem:[%s833_s2] ss:$0 sm:$0xff] }
  0x11   :  { %v433_v61 = vor.u32 %v530_v59, %v430_v60 }
  0x12   :  { %248 = vmatpush.bf16.msra.mxu0 %v541_v8  ;;  %603 = vmatpush.bf16.msra.mxu2 %v541_v8 }
  0x13   :  { %299 = vmatpush.bf16.msra.mxu1 %v547_v9  ;;  %611 = vmatpush.bf16.msra.mxu3 %v547_v9 }
  0x16   :  { %249 = vmatpush.bf16.msra.mxu0 %v540_v10  ;;  %604 = vmatpush.bf16.msra.mxu2 %v540_v10 }
  0x17   :  { %300 = vmatpush.bf16.msra.mxu1 %v546_v11  ;;  %612 = vmatpush.bf16.msra.mxu3 %v546_v11 }
  0x1a   :  { %514 = vmatmul.msk.bf16.vlgmr.msra.gmra.mxu1 %vm219_vm0, %v401_v16  ;;  %250 = vmatpush.bf16.msra.mxu0 %v539_v17 }
  0x1b   :  { %605 = vmatpush.bf16.msra.mxu2 %v539_v17  ;;  %519 = vmatmul.msk.bf16.vlgmr.msra.gmra.mxu3 %vm219_vm0, %v441_v18 }
  0x1e   :  { %251 = vmatpush.bf16.msra.mxu0 %v538_v19 }
  0x1f   :  { %606 = vmatpush.bf16.msra.mxu2 %v538_v19 }
  0x21   :  { %252 = vmatmul.bf16.vlgmr.msra.gmra.mxu0 %v397_v24 }
  0x22   :  { %272 = vmatmul.bf16.vlgmr.msra.gmra.mxu2 %v429_v25 }
  0x2a   :  { %515 = vmatmul.msk.bf16.gmra.mxu1 %vm219_vm0, %v409_v30 }
  0x2b   :  { %520 = vmatmul.msk.bf16.gmra.mxu3 %vm219_vm0, %v449_v31 }
  0x31   :  { %257 = vmatmul.bf16.gmra.mxu0 %v405_v36 }
  0x32   :  { %277 = vmatmul.bf16.gmra.mxu2 %v437_v37 }
  0x3a   :  { %516 = vmatmul.msk.bf16.gmra.mxu1 %vm219_vm0, %v417_v42 }
  0x3b   :  { %521 = vmatmul.msk.bf16.gmra.mxu3 %vm219_vm0, %v457_v43 }
  0x41   :  { %262 = vmatmul.bf16.gmra.mxu0 %v413_v48 }
  0x42   :  { %282 = vmatmul.bf16.gmra.mxu2 %v445_v49 }
  0x4a   :  { %517 = vmatmul.msk.bf16.gmra.mxu1 %vm219_vm0, %v425_v52 }
  0x51   :  { %267 = vmatmul.bf16.gmra.mxu0 %v421_v57 }
  0x52   :  { %287 = vmatmul.bf16.gmra.mxu2 %v453_v58 }
  0x5a   :  { %518 = vmatmul.msk.bf16.gmra.mxu1 %vm219_vm0, %v433_v61 }
  0x97   :  { %v302_v62 = vpop.f32.mrf.mxu1 }
  0x9e   :  { %v253_v63 = vpop.f32.mrf.mxu0  ;;  %v327_v13 = vpop.f32.mrf.mxu3 }
  0x9f   :  { %v304_v1 = vpop.f32.mrf.mxu1  ;;  %v254_v2 = vadd.f32 %v783_v0, %v253_v63 }
  0xa1   :  { %v303_v5 = vadd.f32 %v302_v62, %v254_v2 }
  0xa3   :  { %v342_v9 = vmax.f32 %v303_v5, 0.0 }
  0xa5   :  { %v786_v3 = vpop.f32.mrf.mxu2 }
  0xa6   :  { %v255_v4 = vpop.f32.mrf.mxu0  ;;  %v329_v22 = vpop.f32.mrf.mxu3 }
  0xa7   :  { %v256_v6 = vadd.f32 %v783_v0, %v255_v4  ;;  %v307_v7 = vpop.f32.mrf.mxu1 }
  0xa9   :  { %v305_v8 = vadd.f32 %v304_v1, %v256_v6 }
  0xab   :  { %v343_v10 = vmax.f32 %v305_v8, 0.0  ;;  %v274_v8 = vadd.f32 %v783_v0, %v786_v3 }
  0xad   :  { %v555_v11 = vpack.c.bf16 %v343_v10, %v342_v9  ;;  %v789_v12 = vpop.f32.mrf.mxu2 }
  0xae   :  { %v258_v14 = vpop.f32.mrf.mxu0  ;;  %v332_v34 = vpop.f32.mrf.mxu3 }
  0xaf   :  { %556 = vst [vmem:[%s834_s3] sm:$0xff] %v555_v11   ;;  %v309_v15 = vpop.f32.mrf.mxu1  ;;  %v259_v16 = vadd.f32 %v783_v0, %v258_v14  ;;  %v276_v11 = vadd.f32 %v783_v0, %v789_v12 }
  0xb1   :  { %v308_v19 = vadd.f32 %v307_v7, %v259_v16 }
  0xb3   :  { %v344_v25 = vmax.f32 %v308_v19, 0.0 }
  0xb5   :  { %v278_v17 = vpop.f32.mrf.mxu2 }
  0xb6   :  { %v260_v18 = vpop.f32.mrf.mxu0  ;;  %v279_v24 = vadd.f32 %v783_v0, %v278_v17  ;;  %v334_v48 = vpop.f32.mrf.mxu3 }
  0xb7   :  { %v261_v20 = vadd.f32 %v783_v0, %v260_v18  ;;  %v312_v21 = vpop.f32.mrf.mxu1 }
  0xb8   :  { %v328_v29 = vadd.f32 %v327_v13, %v279_v24 }
  0xb9   :  { %v310_v23 = vadd.f32 %v309_v15, %v261_v20 }
  0xba   :  { %v352_v35 = vmax.f32 %v328_v29, 0.0 }
  0xbb   :  { %v345_v26 = vmax.f32 %v310_v23, 0.0 }
  0xbd   :  { %v560_v27 = vpack.c.bf16 %v345_v26, %v344_v25  ;;  %v280_v28 = vpop.f32.mrf.mxu2 }
  0xbe   :  { %v281_v30 = vadd.f32 %v783_v0, %v280_v28  ;;  %v263_v31 = vpop.f32.mrf.mxu0  ;;  %v337_v60 = vpop.f32.mrf.mxu3 }
  0xbf   :  { %592 = vst [vmem:[%s834_s3 + $0x8] sm:$0xff] %v560_v27   ;;  %v314_v32 = vpop.f32.mrf.mxu1  ;;  %v264_v37 = vadd.f32 %v783_v0, %v263_v31 }
  0xc0   :  { %v330_v33 = vadd.f32 %v329_v22, %v281_v30 }
  0xc1   :  { %v313_v41 = vadd.f32 %v312_v21, %v264_v37 }
  0xc2   :  { %v353_v36 = vmax.f32 %v330_v33, 0.0 }
  0xc3   :  { %v346_v46 = vmax.f32 %v313_v41, 0.0 }
  0xc4   :  { %v580_v38 = vpack.c.bf16 %v353_v36, %v352_v35 }
  0xc5   :  { %v283_v39 = vpop.f32.mrf.mxu2 }
  0xc6   :  { %596 = vst [vmem:[%s834_s3 + $0x28] sm:$0xff] %v580_v38   ;;  %v265_v40 = vpop.f32.mrf.mxu0  ;;  %v284_v45 = vadd.f32 %v783_v0, %v283_v39  ;;  %v339_v16 = vpop.f32.mrf.mxu3 }
  0xc7   :  { %v266_v42 = vadd.f32 %v783_v0, %v265_v40  ;;  %v317_v43 = vpop.f32.mrf.mxu1 }
  0xc8   :  { %v333_v51 = vadd.f32 %v332_v34, %v284_v45 }
  0xc9   :  { %v315_v44 = vadd.f32 %v314_v32, %v266_v42 }
  0xca   :  { %v354_v56 = vmax.f32 %v333_v51, 0.0 }
  0xcb   :  { %v347_v47 = vmax.f32 %v315_v44, 0.0 }
  0xcd   :  { %v565_v49 = vpack.c.bf16 %v347_v47, %v346_v46  ;;  %v285_v50 = vpop.f32.mrf.mxu2 }
  0xce   :  { %v286_v52 = vadd.f32 %v783_v0, %v285_v50  ;;  %v268_v53 = vpop.f32.mrf.mxu0 }
  0xcf   :  { %593 = vst [vmem:[%s834_s3 + $0x10] sm:$0xff] %v565_v49   ;;  %v319_v54 = vpop.f32.mrf.mxu1  ;;  %v269_v58 = vadd.f32 %v783_v0, %v268_v53 }
  0xd0   :  { %v335_v55 = vadd.f32 %v334_v48, %v286_v52 }
  0xd1   :  { %v318_v63 = vadd.f32 %v317_v43, %v269_v58 }
  0xd2   :  { %v355_v57 = vmax.f32 %v335_v55, 0.0 }
  0xd3   :  { %v348_v6 = vmax.f32 %v318_v63, 0.0 }
  0xd4   :  { %v585_v59 = vpack.c.bf16 %v355_v57, %v354_v56 }
  0xd5   :  { %v288_v61 = vpop.f32.mrf.mxu2 }
  0xd6   :  { %597 = vst [vmem:[%s834_s3 + $0x30] sm:$0xff] %v585_v59   ;;  %v270_v62 = vpop.f32.mrf.mxu0  ;;  %v289_v5 = vadd.f32 %v783_v0, %v288_v61 }
  0xd7   :  { %v271_v1 = vadd.f32 %v783_v0, %v270_v62  ;;  %v322_v2 = vpop.f32.mrf.mxu1 }
  0xd8   :  { %v338_v13 = vadd.f32 %v337_v60, %v289_v5  ;;  %v323_v14 = vadd.f32 %v322_v2, %v274_v8 }
  0xd9   :  { %v320_v4 = vadd.f32 %v319_v54, %v271_v1 }
  0xda   :  { %v356_v20 = vmax.f32 %v338_v13, 0.0  ;;  %v350_v21 = vmax.f32 %v323_v14, 0.0 }
  0xdb   :  { %v349_v7 = vmax.f32 %v320_v4, 0.0 }
  0xdd   :  { %v570_v9 = vpack.c.bf16 %v349_v7, %v348_v6  ;;  %v290_v10 = vpop.f32.mrf.mxu2 }
  0xde   :  { %v291_v15 = vadd.f32 %v783_v0, %v290_v10 }
  0xdf   :  { %594 = vst [vmem:[%s834_s3 + $0x18] sm:$0xff] %v570_v9   ;;  %v324_v17 = vpop.f32.mrf.mxu1 }
  0xe0   :  { %v340_v18 = vadd.f32 %v339_v16, %v291_v15  ;;  %v325_v19 = vadd.f32 %v324_v17, %v276_v11 }
  0xe2   :  { %v357_v3 = vmax.f32 %v340_v18, 0.0  ;;  %v351_v22 = vmax.f32 %v325_v19, 0.0 }
  0xe4   :  { %v590_v23 = vpack.c.bf16 %v357_v3, %v356_v20  ;;  %v575_v24 = vpack.c.bf16 %v351_v22, %v350_v21 }
  0xe6   :  { %598 = vst [vmem:[%s834_s3 + $0x38] sm:$0xff] %v590_v23  }
  0xe7   :  { %595 = vst [vmem:[%s834_s3 + $0x20] sm:$0xff] %v575_v24  }

// kernel: fwd.74
= control target key start
LH: loop header
LB: loop body
LE: loop exit
PB: predicated region body
PF: predicated region fallthrough
CT: control target
= control target key end

     0   :  { %vm123_vm0 = vcmask 785408   ;;  %s490_s1 = inlined_call_operand.vmem [shape: bf16[96,128], index: 1, kind: input, shape index: {}]   ;;  %s491_s2 = inlined_call_operand.vmem [shape: f32[1,128], index: 2, kind: input, shape index: {}]   ;;  %s492_s0 = inlined_call_operand.vmem [shape: bf16[128,96], index: 0, kind: input, shape index: {}]   ;;  %s493_s3 = inlined_call_operand.vmem [shape: bf16[128,128], index: 3, kind: output, shape index: {}]  }
   0x1   :  { %v326_v0 = vld [vmem:[%s490_s1 + $0x28] sm:$0xff]  ;;  %v325_v1 = vld [vmem:[%s490_s1 + $0x20] sm:$0xff]  ;;  %v324_v2 = vld [vmem:[%s490_s1 + $0x18] sm:$0xff] }
   0x2   :  { %150 = vmatpush.bf16.msra.mxu0 %v326_v0  ;;  %374 = vmatpush.bf16.msra.mxu1 %v326_v0  ;;  %v323_v3 = vld [vmem:[%s490_s1 + $0x10] sm:$0xff]  ;;  %v322_v4 = vld [vmem:[%s490_s1 + $0x8] sm:$0xff]  ;;  %v321_v5 = vld [vmem:[%s490_s1] sm:$0xff] }
   0x3   :  { %375 = vmatpush.bf16.msra.mxu2 %v326_v0  ;;  %376 = vmatpush.bf16.msra.mxu3 %v326_v0  ;;  %v313_v6 = vld [vmem:[%s492_s0] sm:$0xff]  ;;  %v315_v7 = vld [vmem:[%s492_s0 + $0x10] sm:$0xff]  ;;  %v314_v10 = vld [vmem:[%s492_s0 + $0x8] sm:$0xff] }
   0x4   :  { %v317_v8 = vld [vmem:[%s492_s0 + $0x20] sm:$0xff]  ;;  %v319_v9 = vld [vmem:[%s492_s0 + $0x30] sm:$0xff]  ;;  %v316_v11 = vld [vmem:[%s492_s0 + $0x18] sm:$0xff] }
   0x5   :  { %v318_v12 = vld [vmem:[%s492_s0 + $0x28] sm:$0xff]  ;;  %v320_v13 = vld [vmem:[%s492_s0 + $0x38] sm:$0xff]  ;;  %v392_v16 = vld [vmem:[%s491_s2] ss:$0 sm:$0xff] }
   0x6   :  { %151 = vmatpush.bf16.msra.mxu0 %v325_v1  ;;  %377 = vmatpush.bf16.msra.mxu1 %v325_v1 }
   0x7   :  { %378 = vmatpush.bf16.msra.mxu2 %v325_v1  ;;  %379 = vmatpush.bf16.msra.mxu3 %v325_v1 }
   0xa   :  { %152 = vmatpush.bf16.msra.mxu0 %v324_v2  ;;  %380 = vmatpush.bf16.msra.mxu1 %v324_v2 }
   0xb   :  { %381 = vmatpush.bf16.msra.mxu2 %v324_v2  ;;  %382 = vmatpush.bf16.msra.mxu3 %v324_v2 }
   0xe   :  { %153 = vmatpush.bf16.msra.mxu0 %v323_v3  ;;  %383 = vmatpush.bf16.msra.mxu1 %v323_v3 }
   0xf   :  { %384 = vmatpush.bf16.msra.mxu2 %v323_v3  ;;  %385 = vmatpush.bf16.msra.mxu3 %v323_v3 }
  0x12   :  { %154 = vmatpush.bf16.msra.mxu0 %v322_v4  ;;  %386 = vmatpush.bf16.msra.mxu1 %v322_v4 }
  0x13   :  { %387 = vmatpush.bf16.msra.mxu2 %v322_v4  ;;  %388 = vmatpush.bf16.msra.mxu3 %v322_v4 }
  0x16   :  { %155 = vmatpush.bf16.msra.mxu0 %v321_v5  ;;  %389 = vmatpush.bf16.msra.mxu1 %v321_v5 }
  0x17   :  { %390 = vmatpush.bf16.msra.mxu2 %v321_v5  ;;  %391 = vmatpush.bf16.msra.mxu3 %v321_v5 }
  0x19   :  { %305 = vmatmul.msk.bf16.vlgmr.msra.gmra.mxu0 %vm123_vm0, %v313_v6  ;;  %307 = vmatmul.msk.bf16.vlgmr.msra.gmra.mxu1 %vm123_vm0, %v315_v7 }
  0x1a   :  { %309 = vmatmul.msk.bf16.vlgmr.msra.gmra.mxu2 %vm123_vm0, %v317_v8  ;;  %311 = vmatmul.msk.bf16.vlgmr.msra.gmra.mxu3 %vm123_vm0, %v319_v9 }
  0x29   :  { %306 = vmatmul.msk.bf16.gmra.mxu0 %vm123_vm0, %v314_v10  ;;  %308 = vmatmul.msk.bf16.gmra.mxu1 %vm123_vm0, %v316_v11 }
  0x2a   :  { %310 = vmatmul.msk.bf16.gmra.mxu2 %vm123_vm0, %v318_v12  ;;  %312 = vmatmul.msk.bf16.gmra.mxu3 %vm123_vm0, %v320_v13 }
  0x96   :  { %v157_v14 = vpop.f32.mrf.mxu0  ;;  %v167_v15 = vpop.f32.mrf.mxu1 }
  0x97   :  { %v158_v17 = vadd.f32 %v392_v16, %v157_v14  ;;  %v168_v18 = vadd.f32 %v392_v16, %v167_v15 }
  0x99   :  { %v197_v25 = vmax.f32 %v158_v17, 0.0  ;;  %v201_v26 = vmax.f32 %v168_v18, 0.0 }
  0x9d   :  { %v177_v19 = vpop.f32.mrf.mxu2  ;;  %v187_v20 = vpop.f32.mrf.mxu3 }
  0x9e   :  { %v159_v21 = vpop.f32.mrf.mxu0  ;;  %v169_v22 = vpop.f32.mrf.mxu1  ;;  %v178_v31 = vadd.f32 %v392_v16, %v177_v19  ;;  %v188_v32 = vadd.f32 %v392_v16, %v187_v20 }
  0x9f   :  { %v160_v23 = vadd.f32 %v392_v16, %v159_v21  ;;  %v170_v24 = vadd.f32 %v392_v16, %v169_v22 }
  0xa0   :  { %v205_v39 = vmax.f32 %v178_v31, 0.0  ;;  %v209_v40 = vmax.f32 %v188_v32, 0.0 }
  0xa1   :  { %v198_v27 = vmax.f32 %v160_v23, 0.0  ;;  %v202_v28 = vmax.f32 %v170_v24, 0.0 }
  0xa3   :  { %v330_v29 = vpack.c.bf16 %v198_v27, %v197_v25  ;;  %v340_v30 = vpack.c.bf16 %v202_v28, %v201_v26 }
  0xa5   :  { %331 = vst [vmem:[%s493_s3] sm:$0xff] %v330_v29   ;;  %v179_v33 = vpop.f32.mrf.mxu2  ;;  %v189_v34 = vpop.f32.mrf.mxu3 }
  0xa6   :  { %368 = vst [vmem:[%s493_s3 + $0x10] sm:$0xff] %v340_v30   ;;  %v180_v35 = vadd.f32 %v392_v16, %v179_v33  ;;  %v190_v36 = vadd.f32 %v392_v16, %v189_v34  ;;  %v162_v37 = vpop.f32.mrf.mxu0  ;;  %v172_v38 = vpop.f32.mrf.mxu1 }
  0xa7   :  { %v163_v45 = vadd.f32 %v392_v16, %v162_v37  ;;  %v173_v46 = vadd.f32 %v392_v16, %v172_v38 }
  0xa8   :  { %v206_v41 = vmax.f32 %v180_v35, 0.0  ;;  %v210_v42 = vmax.f32 %v190_v36, 0.0 }
  0xa9   :  { %v199_v53 = vmax.f32 %v163_v45, 0.0  ;;  %v203_v54 = vmax.f32 %v173_v46, 0.0 }
  0xaa   :  { %v350_v43 = vpack.c.bf16 %v206_v41, %v205_v39  ;;  %v360_v44 = vpack.c.bf16 %v210_v42, %v209_v40 }
  0xac   :  { %370 = vst [vmem:[%s493_s3 + $0x20] sm:$0xff] %v350_v43  }
  0xad   :  { %372 = vst [vmem:[%s493_s3 + $0x30] sm:$0xff] %v360_v44   ;;  %v182_v47 = vpop.f32.mrf.mxu2  ;;  %v192_v48 = vpop.f32.mrf.mxu3 }
  0xae   :  { %v164_v49 = vpop.f32.mrf.mxu0  ;;  %v174_v50 = vpop.f32.mrf.mxu1  ;;  %v183_v59 = vadd.f32 %v392_v16, %v182_v47  ;;  %v193_v60 = vadd.f32 %v392_v16, %v192_v48 }
  0xaf   :  { %v165_v51 = vadd.f32 %v392_v16, %v164_v49  ;;  %v175_v52 = vadd.f32 %v392_v16, %v174_v50 }
  0xb0   :  { %v207_v1 = vmax.f32 %v183_v59, 0.0  ;;  %v211_v2 = vmax.f32 %v193_v60, 0.0 }
  0xb1   :  { %v200_v55 = vmax.f32 %v165_v51, 0.0  ;;  %v204_v56 = vmax.f32 %v175_v52, 0.0 }
  0xb3   :  { %v335_v57 = vpack.c.bf16 %v200_v55, %v199_v53  ;;  %v345_v58 = vpack.c.bf16 %v204_v56, %v203_v54 }
  0xb5   :  { %367 = vst [vmem:[%s493_s3 + $0x8] sm:$0xff] %v335_v57   ;;  %v184_v61 = vpop.f32.mrf.mxu2  ;;  %v194_v62 = vpop.f32.mrf.mxu3 }
  0xb6   :  { %369 = vst [vmem:[%s493_s3 + $0x18] sm:$0xff] %v345_v58   ;;  %v185_v63 = vadd.f32 %v392_v16, %v184_v61  ;;  %v195_v0 = vadd.f32 %v392_v16, %v194_v62 }
  0xb8   :  { %v208_v3 = vmax.f32 %v185_v63, 0.0  ;;  %v212_v4 = vmax.f32 %v195_v0, 0.0 }
  0xba   :  { %v355_v5 = vpack.c.bf16 %v208_v3, %v207_v1  ;;  %v365_v6 = vpack.c.bf16 %v212_v4, %v211_v2 }
  0xbc   :  { %371 = vst [vmem:[%s493_s3 + $0x28] sm:$0xff] %v355_v5  }
  0xbd   :  { %373 = vst [vmem:[%s493_s3 + $0x38] sm:$0xff] %v365_v6  }

// kernel: fwd.75
= control target key start
LH: loop header
LB: loop body
LE: loop exit
PB: predicated region body
PF: predicated region fallthrough
CT: control target
= control target key end

     0   :  { %s630_s1 = inlined_call_operand.vmem [shape: bf16[384,128], index: 1, kind: input, shape index: {}]   ;;  %s631_s2 = inlined_call_operand.vmem [shape: f32[1,128], index: 2, kind: input, shape index: {}]   ;;  %s632_s0 = inlined_call_operand.vmem [shape: bf16[32,384], index: 0, kind: input, shape index: {}]   ;;  %s633_s3 = inlined_call_operand.vmem [shape: bf16[32,128], index: 3, kind: output, shape index: {}]  }
   0x1   :  { %v456_v0 = vld [vmem:[%s630_s1 + $0x38] sm:$0xff]  ;;  %v455_v3 = vld [vmem:[%s630_s1 + $0x30] sm:$0xff]  ;;  %v454_v6 = vld [vmem:[%s630_s1 + $0x28] sm:$0xff] }
   0x2   :  { %v464_v1 = vld [vmem:[%s630_s1 + $0x78] sm:$0xff]  ;;  %250 = vmatpush.bf16.msra.mxu0 %v456_v0  ;;  %v463_v4 = vld [vmem:[%s630_s1 + $0x70] sm:$0xff]  ;;  %484 = vmatpush.bf16.msra.mxu3 %v456_v0  ;;  %v462_v7 = vld [vmem:[%s630_s1 + $0x68] sm:$0xff] }
   0x3   :  { %v472_v2 = vld [vmem:[%s630_s1 + $0xb8] sm:$0xff]  ;;  %269 = vmatpush.bf16.msra.mxu1 %v464_v1  ;;  %v471_v5 = vld [vmem:[%s630_s1 + $0xb0] sm:$0xff]  ;;  %v470_v8 = vld [vmem:[%s630_s1 + $0xa8] sm:$0xff] }
   0x4   :  { %288 = vmatpush.bf16.msra.mxu2 %v472_v2  ;;  %v453_v9 = vld [vmem:[%s630_s1 + $0x20] sm:$0xff]  ;;  %v452_v12 = vld [vmem:[%s630_s1 + $0x18] sm:$0xff]  ;;  %v451_v15 = vld [vmem:[%s630_s1 + $0x10] sm:$0xff] }
   0x5   :  { %v461_v10 = vld [vmem:[%s630_s1 + $0x60] sm:$0xff]  ;;  %v460_v13 = vld [vmem:[%s630_s1 + $0x58] sm:$0xff]  ;;  %v459_v16 = vld [vmem:[%s630_s1 + $0x50] sm:$0xff] }
   0x6   :  { %251 = vmatpush.bf16.msra.mxu0 %v455_v3  ;;  %485 = vmatpush.bf16.msra.mxu3 %v455_v3  ;;  %v469_v11 = vld [vmem:[%s630_s1 + $0xa0] sm:$0xff]  ;;  %v468_v14 = vld [vmem:[%s630_s1 + $0x98] sm:$0xff]  ;;  %v467_v17 = vld [vmem:[%s630_s1 + $0x90] sm:$0xff] }
   0x7   :  { %270 = vmatpush.bf16.msra.mxu1 %v463_v4  ;;  %v450_v18 = vld [vmem:[%s630_s1 + $0x8] sm:$0xff]  ;;  %v449_v21 = vld [vmem:[%s630_s1] sm:$0xff]  ;;  %v327_v27 = vld [vmem:[%s632_s0 + $0xc] sm:$0xf0] }
   0x8   :  { %289 = vmatpush.bf16.msra.mxu2 %v471_v5  ;;  %v458_v19 = vld [vmem:[%s630_s1 + $0x48] sm:$0xff]  ;;  %v457_v22 = vld [vmem:[%s630_s1 + $0x40] sm:$0xff]  ;;  %v445_v29 = vld [vmem:[%s632_s0 + $0x10] sm:$0xf0] }
   0x9   :  { %v466_v20 = vld [vmem:[%s630_s1 + $0x88] sm:$0xff]  ;;  %v465_v23 = vld [vmem:[%s630_s1 + $0x80] sm:$0xff]  ;;  %v337_v30 = vld [vmem:[%s632_s0 + $0x18] sm:$0xf] }
   0xa   :  { %252 = vmatpush.bf16.msra.mxu0 %v454_v6  ;;  %486 = vmatpush.bf16.msra.mxu3 %v454_v6  ;;  %v325_v24 = vld [vmem:[%s632_s0] sm:$0xf]  ;;  %v444_v25 = vld [vmem:[%s632_s0 + $0x8] sm:$0xf0]  ;;  %v443_v26 = vld [vmem:[%s632_s0 + $0x4] sm:$0xf] }
   0xb   :  { %271 = vmatpush.bf16.msra.mxu1 %v462_v7  ;;  %v333_v28 = vld [vmem:[%s632_s0 + $0x8] sm:$0xf]  ;;  %v447_v31 = vld [vmem:[%s632_s0 + $0x20] sm:$0xf0]  ;;  %v326_v32 = vor.u32 %v444_v25, %v325_v24  ;;  %v330_v33 = vor.u32 %v443_v26, %v327_v27  ;;  %v446_v36 = vld [vmem:[%s632_s0 + $0x1c] sm:$0xf] }
   0xc   :  { %290 = vmatpush.bf16.msra.mxu2 %v470_v8  ;;  %v334_v34 = vor.u32 %v445_v29, %v333_v28  ;;  %v338_v35 = vor.u32 %v447_v31, %v337_v30  ;;  %v339_v37 = vld [vmem:[%s632_s0 + $0x24] sm:$0xf0]  ;;  %v345_v38 = vld [vmem:[%s632_s0 + $0x20] sm:$0xf]  ;;  %v448_v39 = vld [vmem:[%s632_s0 + $0x28] sm:$0xf0] }
   0xd   :  { %v342_v40 = vor.u32 %v446_v36, %v339_v37  ;;  %v346_v41 = vor.u32 %v448_v39, %v345_v38  ;;  %v492_v44 = vld [vmem:[%s631_s2] ss:$0 sm:$0xff] }
   0xe   :  { %253 = vmatpush.bf16.msra.mxu0 %v453_v9  ;;  %487 = vmatpush.bf16.msra.mxu3 %v453_v9 }
   0xf   :  { %272 = vmatpush.bf16.msra.mxu1 %v461_v10 }
  0x10   :  { %291 = vmatpush.bf16.msra.mxu2 %v469_v11 }
  0x12   :  { %254 = vmatpush.bf16.msra.mxu0 %v452_v12  ;;  %488 = vmatpush.bf16.msra.mxu3 %v452_v12 }
  0x13   :  { %273 = vmatpush.bf16.msra.mxu1 %v460_v13 }
  0x14   :  { %292 = vmatpush.bf16.msra.mxu2 %v468_v14 }
  0x16   :  { %255 = vmatpush.bf16.msra.mxu0 %v451_v15  ;;  %489 = vmatpush.bf16.msra.mxu3 %v451_v15 }
  0x17   :  { %274 = vmatpush.bf16.msra.mxu1 %v459_v16 }
  0x18   :  { %293 = vmatpush.bf16.msra.mxu2 %v467_v17 }
  0x1a   :  { %256 = vmatpush.bf16.msra.mxu0 %v450_v18  ;;  %490 = vmatpush.bf16.msra.mxu3 %v450_v18 }
  0x1b   :  { %275 = vmatpush.bf16.msra.mxu1 %v458_v19 }
  0x1c   :  { %294 = vmatpush.bf16.msra.mxu2 %v466_v20 }
  0x1e   :  { %257 = vmatpush.bf16.msra.mxu0 %v449_v21  ;;  %491 = vmatpush.bf16.msra.mxu3 %v449_v21 }
  0x1f   :  { %276 = vmatpush.bf16.msra.mxu1 %v457_v22 }
  0x20   :  { %295 = vmatpush.bf16.msra.mxu2 %v465_v23 }
  0x21   :  { %258 = vmatmul.bf16.vlgmr.msra.gmra.mxu0 %v326_v32  ;;  %263 = vmatmul.bf16.vlgmr.msra.gmra.mxu3 %v338_v35 }
  0x22   :  { %277 = vmatmul.bf16.vlgmr.msra.gmra.mxu1 %v330_v33 }
  0x23   :  { %296 = vmatmul.bf16.vlgmr.msra.gmra.mxu2 %v334_v34 }
  0x32   :  { %282 = vmatmul.bf16.gmra.mxu1 %v342_v40 }
  0x33   :  { %301 = vmatmul.bf16.gmra.mxu2 %v346_v41 }
  0x9e   :  { %v259_v42 = vpop.f32.mrf.mxu0 }
  0x9f   :  { %v278_v43 = vpop.f32.mrf.mxu1  ;;  %v260_v45 = vadd.f32 %v492_v44, %v259_v42 }
  0xa1   :  { %v279_v49 = vadd.f32 %v278_v43, %v260_v45 }
  0xa4   :  { %v264_v53 = vpop.f32.mrf.mxu3 }
  0xa5   :  { %v265_v60 = vadd.f32 %v492_v44, %v264_v53 }
  0xa6   :  { %v297_v46 = vpop.f32.mrf.mxu2  ;;  %v261_v47 = vpop.f32.mrf.mxu0 }
  0xa7   :  { %v280_v48 = vpop.f32.mrf.mxu1  ;;  %v262_v50 = vadd.f32 %v492_v44, %v261_v47  ;;  %v298_v51 = vadd.f32 %v297_v46, %v279_v49 }
  0xa9   :  { %v281_v52 = vadd.f32 %v280_v48, %v262_v50  ;;  %v307_v57 = vmax.f32 %v298_v51, 0.0 }
  0xac   :  { %v266_v62 = vpop.f32.mrf.mxu3 }
  0xad   :  { %v267_v1 = vadd.f32 %v492_v44, %v266_v62 }
  0xae   :  { %v299_v54 = vpop.f32.mrf.mxu2 }
  0xaf   :  { %v300_v55 = vadd.f32 %v299_v54, %v281_v52  ;;  %v283_v56 = vpop.f32.mrf.mxu1 }
  0xb0   :  { %v284_v63 = vadd.f32 %v283_v56, %v265_v60 }
  0xb1   :  { %v308_v58 = vmax.f32 %v300_v55, 0.0 }
  0xb3   :  { %v476_v59 = vpack.c.bf16 %v308_v58, %v307_v57 }
  0xb5   :  { %477 = vst [vmem:[%s633_s3] sm:$0xff] %v476_v59  }
  0xb6   :  { %v302_v61 = vpop.f32.mrf.mxu2 }
  0xb7   :  { %v285_v0 = vpop.f32.mrf.mxu1  ;;  %v303_v2 = vadd.f32 %v302_v61, %v284_v63 }
  0xb8   :  { %v286_v3 = vadd.f32 %v285_v0, %v267_v1 }
  0xb9   :  { %v309_v6 = vmax.f32 %v303_v2, 0.0 }
  0xbe   :  { %v304_v4 = vpop.f32.mrf.mxu2 }
  0xbf   :  { %v305_v5 = vadd.f32 %v304_v4, %v286_v3 }
  0xc1   :  { %v310_v7 = vmax.f32 %v305_v5, 0.0 }
  0xc3   :  { %v481_v8 = vpack.c.bf16 %v310_v7, %v309_v6 }
  0xc5   :  { %483 = vst [vmem:[%s633_s3 + $0x8] sm:$0xff] %v481_v8  }

// kernel: fwd.77
= control target key start
LH: loop header
LB: loop body
LE: loop exit
PB: predicated region body
PF: predicated region fallthrough
CT: control target
= control target key end

     0   :  { %s212_s1 = inlined_call_operand.vmem [shape: bf16[128,128], index: 1, kind: input, shape index: {}]   ;;  %s213_s2 = inlined_call_operand.vmem [shape: f32[1,128], index: 2, kind: input, shape index: {}]   ;;  %s214_s0 = inlined_call_operand.vmem [shape: bf16[16,128], index: 0, kind: input, shape index: {}]   ;;  %s215_s3 = inlined_call_operand.vmem [shape: f32[16,128], index: 3, kind: output, shape index: {}]  }
   0x1   :  { %v154_v0 = vld [vmem:[%s212_s1 + $0x38] sm:$0xff]  ;;  %v153_v1 = vld [vmem:[%s212_s1 + $0x30] sm:$0xff]  ;;  %v152_v2 = vld [vmem:[%s212_s1 + $0x28] sm:$0xff] }
   0x2   :  { %90 = vmatpush.bf16.msra.mxu0 %v154_v0  ;;  %v151_v3 = vld [vmem:[%s212_s1 + $0x20] sm:$0xff]  ;;  %v150_v4 = vld [vmem:[%s212_s1 + $0x18] sm:$0xff]  ;;  %v149_v5 = vld [vmem:[%s212_s1 + $0x10] sm:$0xff] }
   0x3   :  { %v148_v6 = vld [vmem:[%s212_s1 + $0x8] sm:$0xff]  ;;  %v147_v7 = vld [vmem:[%s212_s1] sm:$0xff] }
   0x4   :  { %v146_v8 = vld [vmem:[%s214_s0] sm:$0xff] }
   0x5   :  { %v155_v9 = vld [vmem:[%s213_s2] ss:$0 sm:$0xff] }
   0x6   :  { %91 = vmatpush.bf16.msra.mxu0 %v153_v1 }
   0xa   :  { %92 = vmatpush.bf16.msra.mxu0 %v152_v2 }
   0xe   :  { %93 = vmatpush.bf16.msra.mxu0 %v151_v3 }
  0x12   :  { %94 = vmatpush.bf16.msra.mxu0 %v150_v4 }
  0x16   :  { %95 = vmatpush.bf16.msra.mxu0 %v149_v5 }
  0x1a   :  { %96 = vmatpush.bf16.msra.mxu0 %v148_v6 }
  0x1e   :  { %97 = vmatpush.bf16.msra.mxu0 %v147_v7 }
  0x21   :  { %98 = vmatmul.bf16.vlgmr.msra.gmra.mxu0 %v146_v8 }
  0x9e   :  { %v99_v10 = vpop.f32.mrf.mxu0 }
  0x9f   :  { %v100_v11 = vadd.f32 %v155_v9, %v99_v10 }
  0xa1   :  { %104 = vst [vmem:[%s215_s3] sm:$0xff] %v100_v11 }
  0xa6   :  { %v101_v12 = vpop.f32.mrf.mxu0 }
  0xa7   :  { %v102_v13 = vadd.f32 %v155_v9, %v101_v12 }
  0xa9   :  { %105 = vst [vmem:[%s215_s3 + $0x8] sm:$0xff] %v102_v13 }

// kernel: fwd.76
= control target key start
LH: loop header
LB: loop body
LE: loop exit
PB: predicated region body
PF: predicated region fallthrough
CT: control target
= control target key end

     0   :  { %s1493_s1 = inlined_call_operand.vmem [shape: bf16[1152,128], index: 1, kind: input, shape index: {}]   ;;  %s1494_s2 = inlined_call_operand.vmem [shape: f32[1,128], index: 2, kind: input, shape index: {}]   ;;  %s1495_s0 = inlined_call_operand.vmem [shape: bf16[16,1152], index: 0, kind: input, shape index: {}]   ;;  %s1496_s3 = inlined_call_operand.vmem [shape: bf16[16,128], index: 3, kind: output, shape index: {}]  }
   0x1   :  { %v1126_v0 = vld [vmem:[%s1493_s1 + $0x38] sm:$0xff]  ;;  %v1125_v4 = vld [vmem:[%s1493_s1 + $0x30] sm:$0xff]  ;;  %v1124_v8 = vld [vmem:[%s1493_s1 + $0x28] sm:$0xff] }
   0x2   :  { %v1142_v1 = vld [vmem:[%s1493_s1 + $0xb8] sm:$0xff]  ;;  %650 = vmatpush.bf16.msra.mxu0 %v1126_v0  ;;  %v1141_v5 = vld [vmem:[%s1493_s1 + $0xb0] sm:$0xff]  ;;  %v1140_v9 = vld [vmem:[%s1493_s1 + $0xa8] sm:$0xff] }
   0x3   :  { %v1134_v2 = vld [vmem:[%s1493_s1 + $0x78] sm:$0xff]  ;;  %678 = vmatpush.bf16.msra.mxu2 %v1142_v1  ;;  %v1133_v6 = vld [vmem:[%s1493_s1 + $0x70] sm:$0xff]  ;;  %v1132_v10 = vld [vmem:[%s1493_s1 + $0x68] sm:$0xff] }
   0x4   :  { %v1150_v3 = vld [vmem:[%s1493_s1 + $0xf8] sm:$0xff]  ;;  %664 = vmatpush.bf16.msra.mxu1 %v1134_v2  ;;  %v1149_v7 = vld [vmem:[%s1493_s1 + $0xf0] sm:$0xff]  ;;  %v1148_v11 = vld [vmem:[%s1493_s1 + $0xe8] sm:$0xff] }
   0x5   :  { %692 = vmatpush.bf16.msra.mxu3 %v1150_v3  ;;  %v1123_v12 = vld [vmem:[%s1493_s1 + $0x20] sm:$0xff]  ;;  %v1122_v16 = vld [vmem:[%s1493_s1 + $0x18] sm:$0xff]  ;;  %v1121_v20 = vld [vmem:[%s1493_s1 + $0x10] sm:$0xff] }
   0x6   :  { %651 = vmatpush.bf16.msra.mxu0 %v1125_v4  ;;  %v1139_v13 = vld [vmem:[%s1493_s1 + $0xa0] sm:$0xff]  ;;  %v1138_v17 = vld [vmem:[%s1493_s1 + $0x98] sm:$0xff]  ;;  %v1137_v21 = vld [vmem:[%s1493_s1 + $0x90] sm:$0xff] }
   0x7   :  { %679 = vmatpush.bf16.msra.mxu2 %v1141_v5  ;;  %v1131_v14 = vld [vmem:[%s1493_s1 + $0x60] sm:$0xff]  ;;  %v1130_v18 = vld [vmem:[%s1493_s1 + $0x58] sm:$0xff]  ;;  %v1129_v22 = vld [vmem:[%s1493_s1 + $0x50] sm:$0xff] }
   0x8   :  { %665 = vmatpush.bf16.msra.mxu1 %v1133_v6  ;;  %v1147_v15 = vld [vmem:[%s1493_s1 + $0xe0] sm:$0xff]  ;;  %v1146_v19 = vld [vmem:[%s1493_s1 + $0xd8] sm:$0xff]  ;;  %v1145_v23 = vld [vmem:[%s1493_s1 + $0xd0] sm:$0xff] }
   0x9   :  { %693 = vmatpush.bf16.msra.mxu3 %v1149_v7  ;;  %v1120_v24 = vld [vmem:[%s1493_s1 + $0x8] sm:$0xff]  ;;  %v1119_v28 = vld [vmem:[%s1493_s1] sm:$0xff]  ;;  %v1158_v30 = vld [vmem:[%s1493_s1 + $0x138] sm:$0xff] }
   0xa   :  { %652 = vmatpush.bf16.msra.mxu0 %v1124_v8  ;;  %v1136_v25 = vld [vmem:[%s1493_s1 + $0x88] sm:$0xff]  ;;  %v1135_v29 = vld [vmem:[%s1493_s1 + $0x80] sm:$0xff]  ;;  %v1174_v31 = vld [vmem:[%s1493_s1 + $0x1b8] sm:$0xff] }
   0xb   :  { %680 = vmatpush.bf16.msra.mxu2 %v1140_v9  ;;  %v1128_v26 = vld [vmem:[%s1493_s1 + $0x48] sm:$0xff]  ;;  %v1127_v32 = vld [vmem:[%s1493_s1 + $0x40] sm:$0xff]  ;;  %v1166_v38 = vld [vmem:[%s1493_s1 + $0x178] sm:$0xff] }
   0xc   :  { %666 = vmatpush.bf16.msra.mxu1 %v1132_v10  ;;  %v1144_v27 = vld [vmem:[%s1493_s1 + $0xc8] sm:$0xff]  ;;  %v1143_v33 = vld [vmem:[%s1493_s1 + $0xc0] sm:$0xff]  ;;  %v1182_v39 = vld [vmem:[%s1493_s1 + $0x1f8] sm:$0xff] }
   0xd   :  { %694 = vmatpush.bf16.msra.mxu3 %v1148_v11  ;;  %v788_v34 = vld [vmem:[%s1495_s0] sm:$0xf]  ;;  %v1114_v35 = vld [vmem:[%s1495_s0 + $0x20] sm:$0xf0]  ;;  %v796_v36 = vld [vmem:[%s1495_s0 + $0x8] sm:$0xf] }
   0xe   :  { %653 = vmatpush.bf16.msra.mxu0 %v1123_v12  ;;  %v1115_v37 = vld [vmem:[%s1495_s0 + $0x28] sm:$0xf0]  ;;  %v1110_v40 = vld [vmem:[%s1495_s0 + $0x4] sm:$0xf]  ;;  %v790_v41 = vld [vmem:[%s1495_s0 + $0x24] sm:$0xf0]  ;;  %v789_v44 = vor.u32 %v1114_v35, %v788_v34 }
   0xf   :  { %681 = vmatpush.bf16.msra.mxu2 %v1139_v13  ;;  %v1111_v42 = vld [vmem:[%s1495_s0 + $0xc] sm:$0xf]  ;;  %v798_v43 = vld [vmem:[%s1495_s0 + $0x2c] sm:$0xf0]  ;;  %v797_v45 = vor.u32 %v1115_v37, %v796_v36  ;;  %v793_v48 = vor.u32 %v1110_v40, %v790_v41  ;;  %v1155_v56 = vld [vmem:[%s1493_s1 + $0x120] sm:$0xff] }
  0x10   :  { %667 = vmatpush.bf16.msra.mxu1 %v1131_v14  ;;  %v1157_v46 = vld [vmem:[%s1493_s1 + $0x130] sm:$0xff]  ;;  %v801_v49 = vor.u32 %v1111_v42, %v798_v43  ;;  %v1156_v52 = vld [vmem:[%s1493_s1 + $0x128] sm:$0xff]  ;;  %v1171_v57 = vld [vmem:[%s1493_s1 + $0x1a0] sm:$0xff] }
  0x11   :  { %695 = vmatpush.bf16.msra.mxu3 %v1147_v15  ;;  %v1173_v47 = vld [vmem:[%s1493_s1 + $0x1b0] sm:$0xff]  ;;  %v1172_v53 = vld [vmem:[%s1493_s1 + $0x1a8] sm:$0xff]  ;;  %v1163_v58 = vld [vmem:[%s1493_s1 + $0x160] sm:$0xff] }
  0x12   :  { %654 = vmatpush.bf16.msra.mxu0 %v1122_v16  ;;  %v1165_v50 = vld [vmem:[%s1493_s1 + $0x170] sm:$0xff]  ;;  %v1164_v54 = vld [vmem:[%s1493_s1 + $0x168] sm:$0xff]  ;;  %v1179_v59 = vld [vmem:[%s1493_s1 + $0x1e0] sm:$0xff] }
  0x13   :  { %682 = vmatpush.bf16.msra.mxu2 %v1138_v17  ;;  %v1181_v51 = vld [vmem:[%s1493_s1 + $0x1f0] sm:$0xff]  ;;  %v1180_v55 = vld [vmem:[%s1493_s1 + $0x1e8] sm:$0xff]  ;;  %v1154_v60 = vld [vmem:[%s1493_s1 + $0x118] sm:$0xff] }
  0x14   :  { %668 = vmatpush.bf16.msra.mxu1 %v1130_v18  ;;  %v1170_v61 = vld [vmem:[%s1493_s1 + $0x198] sm:$0xff]  ;;  %v1153_v0 = vld [vmem:[%s1493_s1 + $0x110] sm:$0xff]  ;;  %v1152_v4 = vld [vmem:[%s1493_s1 + $0x108] sm:$0xff] }
  0x15   :  { %696 = vmatpush.bf16.msra.mxu3 %v1146_v19  ;;  %v1162_v62 = vld [vmem:[%s1493_s1 + $0x158] sm:$0xff]  ;;  %v1169_v1 = vld [vmem:[%s1493_s1 + $0x190] sm:$0xff]  ;;  %v1168_v5 = vld [vmem:[%s1493_s1 + $0x188] sm:$0xff] }
  0x16   :  { %655 = vmatpush.bf16.msra.mxu0 %v1121_v20  ;;  %v1178_v63 = vld [vmem:[%s1493_s1 + $0x1d8] sm:$0xff]  ;;  %v1161_v2 = vld [vmem:[%s1493_s1 + $0x150] sm:$0xff]  ;;  %v1160_v6 = vld [vmem:[%s1493_s1 + $0x148] sm:$0xff] }
  0x17   :  { %683 = vmatpush.bf16.msra.mxu2 %v1137_v21  ;;  %v1177_v3 = vld [vmem:[%s1493_s1 + $0x1d0] sm:$0xff]  ;;  %v1176_v7 = vld [vmem:[%s1493_s1 + $0x1c8] sm:$0xff]  ;;  %v1151_v8 = vld [vmem:[%s1493_s1 + $0x100] sm:$0xff] }
  0x18   :  { %669 = vmatpush.bf16.msra.mxu1 %v1129_v22  ;;  %v1167_v9 = vld [vmem:[%s1493_s1 + $0x180] sm:$0xff]  ;;  %v1190_v10 = vld [vmem:[%s1493_s1 + $0x238] sm:$0xff]  ;;  %v804_v11 = vld [vmem:[%s1495_s0 + $0x10] sm:$0xf] }
  0x19   :  { %697 = vmatpush.bf16.msra.mxu3 %v1145_v23  ;;  %v1116_v12 = vld [vmem:[%s1495_s0 + $0x30] sm:$0xf0]  ;;  %v812_v13 = vld [vmem:[%s1495_s0 + $0x18] sm:$0xf]  ;;  %v1117_v14 = vld [vmem:[%s1495_s0 + $0x38] sm:$0xf0] }
  0x1a   :  { %656 = vmatpush.bf16.msra.mxu0 %v1120_v24  ;;  %v1159_v15 = vld [vmem:[%s1493_s1 + $0x140] sm:$0xff]  ;;  %v1112_v17 = vld [vmem:[%s1495_s0 + $0x14] sm:$0xf]  ;;  %v806_v18 = vld [vmem:[%s1495_s0 + $0x34] sm:$0xf0]  ;;  %v805_v21 = vor.u32 %v1116_v12, %v804_v11  ;;  %v813_v22 = vor.u32 %v1117_v14, %v812_v13 }
  0x1b   :  { %684 = vmatpush.bf16.msra.mxu2 %v1136_v25  ;;  %v1175_v16 = vld [vmem:[%s1493_s1 + $0x1c0] sm:$0xff]  ;;  %v1113_v19 = vld [vmem:[%s1495_s0 + $0x1c] sm:$0xf]  ;;  %v809_v23 = vor.u32 %v1112_v17, %v806_v18  ;;  %v1189_v25 = vld [vmem:[%s1493_s1 + $0x230] sm:$0xff] }
  0x1c   :  { %670 = vmatpush.bf16.msra.mxu1 %v1128_v26  ;;  %v814_v20 = vld [vmem:[%s1495_s0 + $0x3c] sm:$0xf0]  ;;  %v1188_v26 = vld [vmem:[%s1493_s1 + $0x228] sm:$0xff] }
  0x1d   :  { %698 = vmatpush.bf16.msra.mxu3 %v1144_v27  ;;  %v817_v24 = vor.u32 %v1113_v19, %v814_v20  ;;  %v1187_v27 = vld [vmem:[%s1493_s1 + $0x220] sm:$0xff] }
  0x1e   :  { %657 = vmatpush.bf16.msra.mxu0 %v1119_v28  ;;  %v1186_v28 = vld [vmem:[%s1493_s1 + $0x218] sm:$0xff] }
  0x1f   :  { %685 = vmatpush.bf16.msra.mxu2 %v1135_v29  ;;  %v1185_v29 = vld [vmem:[%s1493_s1 + $0x210] sm:$0xff] }
  0x20   :  { %671 = vmatpush.bf16.msra.mxu1 %v1127_v32  ;;  %v820_v32 = vld [vmem:[%s1495_s0 + $0x20] sm:$0xf] }
  0x21   :  { %699 = vmatpush.bf16.msra.mxu3 %v1143_v33  ;;  %658 = vmatmul.bf16.vlgmr.msra.gmra.mxu0 %v789_v44  ;;  %v1118_v33 = vld [vmem:[%s1495_s0 + $0x40] sm:$0xf0] }
  0x22   :  { %706 = vmatpush.bf16.msrb.mxu0 %v1158_v30  ;;  %686 = vmatmul.bf16.vlgmr.msra.gmra.mxu2 %v797_v45  ;;  %v1184_v30 = vld [vmem:[%s1493_s1 + $0x208] sm:$0xff]  ;;  %v821_v34 = vor.u32 %v1118_v33, %v820_v32 }
  0x23   :  { %734 = vmatpush.bf16.msrb.mxu2 %v1174_v31  ;;  %672 = vmatmul.bf16.vlgmr.msra.gmra.mxu1 %v793_v48  ;;  %v1183_v31 = vld [vmem:[%s1493_s1 + $0x200] sm:$0xff] }
  0x24   :  { %720 = vmatpush.bf16.msrb.mxu1 %v1166_v38  ;;  %700 = vmatmul.bf16.vlgmr.msra.gmra.mxu3 %v801_v49 }
  0x25   :  { %748 = vmatpush.bf16.msrb.mxu3 %v1182_v39  ;;  %v1196_v39 = vld [vmem:[%s1494_s2] ss:$0 sm:$0xff] }
  0x26   :  { %707 = vmatpush.bf16.msrb.mxu0 %v1157_v46 }
  0x27   :  { %735 = vmatpush.bf16.msrb.mxu2 %v1173_v47 }
  0x28   :  { %721 = vmatpush.bf16.msrb.mxu1 %v1165_v50 }
  0x29   :  { %749 = vmatpush.bf16.msrb.mxu3 %v1181_v51 }
  0x2a   :  { %708 = vmatpush.bf16.msrb.mxu0 %v1156_v52 }
  0x2b   :  { %736 = vmatpush.bf16.msrb.mxu2 %v1172_v53 }
  0x2c   :  { %722 = vmatpush.bf16.msrb.mxu1 %v1164_v54 }
  0x2d   :  { %750 = vmatpush.bf16.msrb.mxu3 %v1180_v55 }
  0x2e   :  { %709 = vmatpush.bf16.msrb.mxu0 %v1155_v56 }
  0x2f   :  { %737 = vmatpush.bf16.msrb.mxu2 %v1171_v57 }
  0x30   :  { %723 = vmatpush.bf16.msrb.mxu1 %v1163_v58 }
  0x31   :  { %751 = vmatpush.bf16.msrb.mxu3 %v1179_v59 }
  0x32   :  { %710 = vmatpush.bf16.msrb.mxu0 %v1154_v60 }
  0x33   :  { %738 = vmatpush.bf16.msrb.mxu2 %v1170_v61 }
  0x34   :  { %724 = vmatpush.bf16.msrb.mxu1 %v1162_v62 }
  0x35   :  { %752 = vmatpush.bf16.msrb.mxu3 %v1178_v63 }
  0x36   :  { %711 = vmatpush.bf16.msrb.mxu0 %v1153_v0 }
  0x37   :  { %739 = vmatpush.bf16.msrb.mxu2 %v1169_v1 }
  0x38   :  { %725 = vmatpush.bf16.msrb.mxu1 %v1161_v2 }
  0x39   :  { %753 = vmatpush.bf16.msrb.mxu3 %v1177_v3 }
  0x3a   :  { %712 = vmatpush.bf16.msrb.mxu0 %v1152_v4 }
  0x3b   :  { %740 = vmatpush.bf16.msrb.mxu2 %v1168_v5 }
  0x3c   :  { %726 = vmatpush.bf16.msrb.mxu1 %v1160_v6 }
  0x3d   :  { %754 = vmatpush.bf16.msrb.mxu3 %v1176_v7 }
  0x3e   :  { %713 = vmatpush.bf16.msrb.mxu0 %v1151_v8 }
  0x3f   :  { %741 = vmatpush.bf16.msrb.mxu2 %v1167_v9 }
  0x40   :  { %727 = vmatpush.bf16.msrb.mxu1 %v1159_v15 }
  0x41   :  { %755 = vmatpush.bf16.msrb.mxu3 %v1175_v16  ;;  %714 = vmatmul.bf16.vlgmr.msrb.gmra.mxu0 %v805_v21 }
  0x42   :  { %762 = vmatpush.bf16.msra.mxu0 %v1190_v10  ;;  %742 = vmatmul.bf16.vlgmr.msrb.gmra.mxu2 %v813_v22 }
  0x43   :  { %728 = vmatmul.bf16.vlgmr.msrb.gmra.mxu1 %v809_v23 }
  0x44   :  { %756 = vmatmul.bf16.vlgmr.msrb.gmra.mxu3 %v817_v24 }
  0x46   :  { %763 = vmatpush.bf16.msra.mxu0 %v1189_v25 }
  0x4a   :  { %764 = vmatpush.bf16.msra.mxu0 %v1188_v26 }
  0x4e   :  { %765 = vmatpush.bf16.msra.mxu0 %v1187_v27 }
  0x52   :  { %766 = vmatpush.bf16.msra.mxu0 %v1186_v28 }
  0x56   :  { %767 = vmatpush.bf16.msra.mxu0 %v1185_v29 }
  0x5a   :  { %768 = vmatpush.bf16.msra.mxu0 %v1184_v30 }
  0x5e   :  { %769 = vmatpush.bf16.msra.mxu0 %v1183_v31 }
  0x61   :  { %770 = vmatmul.bf16.vlgmr.msra.gmra.mxu0 %v821_v34 }
  0x9e   :  { %v659_v35 = vpop.f32.mrf.mxu0 }
  0x9f   :  { %v660_v41 = vadd.f32 %v1196_v39, %v659_v35 }
  0xa0   :  { %v673_v36 = vpop.f32.mrf.mxu1 }
  0xa1   :  { %v674_v44 = vadd.f32 %v673_v36, %v660_v41 }
  0xa5   :  { %v687_v37 = vpop.f32.mrf.mxu2 }
  0xa6   :  { %v661_v38 = vpop.f32.mrf.mxu0  ;;  %v688_v48 = vadd.f32 %v687_v37, %v674_v44 }
  0xa7   :  { %v701_v40 = vpop.f32.mrf.mxu3  ;;  %v662_v46 = vadd.f32 %v1196_v39, %v661_v38 }
  0xa8   :  { %v675_v42 = vpop.f32.mrf.mxu1  ;;  %v702_v51 = vadd.f32 %v701_v40, %v688_v48 }
  0xa9   :  { %v676_v49 = vadd.f32 %v675_v42, %v662_v46 }
  0xad   :  { %v689_v43 = vpop.f32.mrf.mxu2 }
  0xae   :  { %v690_v53 = vadd.f32 %v689_v43, %v676_v49 }
  0xaf   :  { %v703_v47 = vpop.f32.mrf.mxu3 }
  0xb0   :  { %v704_v57 = vadd.f32 %v703_v47, %v690_v53 }
  0xbe   :  { %v715_v45 = vpop.f32.mrf.mxu0 }
  0xbf   :  { %v716_v55 = vadd.f32 %v715_v45, %v702_v51 }
  0xc0   :  { %v729_v50 = vpop.f32.mrf.mxu1 }
  0xc1   :  { %v730_v58 = vadd.f32 %v729_v50, %v716_v55 }
  0xc5   :  { %v743_v52 = vpop.f32.mrf.mxu2 }
  0xc6   :  { %v717_v54 = vpop.f32.mrf.mxu0  ;;  %v744_v63 = vadd.f32 %v743_v52, %v730_v58 }
  0xc7   :  { %v757_v56 = vpop.f32.mrf.mxu3  ;;  %v718_v59 = vadd.f32 %v717_v54, %v704_v57 }
  0xc8   :  { %v731_v60 = vpop.f32.mrf.mxu1  ;;  %v758_v3 = vadd.f32 %v757_v56, %v744_v63 }
  0xc9   :  { %v732_v0 = vadd.f32 %v731_v60, %v718_v59 }
  0xcd   :  { %v745_v61 = vpop.f32.mrf.mxu2 }
  0xce   :  { %v746_v1 = vadd.f32 %v745_v61, %v732_v0 }
  0xcf   :  { %v759_v2 = vpop.f32.mrf.mxu3 }
  0xd0   :  { %v760_v4 = vadd.f32 %v759_v2, %v746_v1 }
  0xde   :  { %v771_v62 = vpop.f32.mrf.mxu0 }
  0xdf   :  { %v772_v5 = vadd.f32 %v771_v62, %v758_v3 }
  0xe1   :  { %v776_v8 = vmax.f32 %v772_v5, 0.0 }
  0xe6   :  { %v773_v6 = vpop.f32.mrf.mxu0 }
  0xe7   :  { %v774_v7 = vadd.f32 %v773_v6, %v760_v4 }
  0xe9   :  { %v777_v9 = vmax.f32 %v774_v7, 0.0 }
  0xeb   :  { %v1194_v10 = vpack.c.bf16 %v777_v9, %v776_v8 }
  0xed   :  { %1195 = vst [vmem:[%s1496_s3] sm:$0xff] %v1194_v10  }

// kernel: fwd.51
= control target key start
LH: loop header
LB: loop body
LE: loop exit
PB: predicated region body
PF: predicated region fallthrough
CT: control target
= control target key end

     0   :  { %s262_s1 = inlined_call_operand.vmem [shape: bf16[128,128], index: 1, kind: input, shape index: {}]   ;;  %s263_s2 = inlined_call_operand.vmem [shape: f32[1,128], index: 2, kind: input, shape index: {}]   ;;  %s264_s0 = inlined_call_operand.vmem [shape: bf16[32,128], index: 0, kind: input, shape index: {}]   ;;  %s265_s3 = inlined_call_operand.vmem [shape: bf16[32,128], index: 3, kind: output, shape index: {}]  }
   0x1   :  { %v182_v0 = vld [vmem:[%s262_s1 + $0x38] sm:$0xff]  ;;  %v181_v1 = vld [vmem:[%s262_s1 + $0x30] sm:$0xff]  ;;  %v180_v2 = vld [vmem:[%s262_s1 + $0x28] sm:$0xff] }
   0x2   :  { %98 = vmatpush.bf16.msra.mxu0 %v182_v0  ;;  %194 = vmatpush.bf16.msra.mxu1 %v182_v0  ;;  %v179_v3 = vld [vmem:[%s262_s1 + $0x20] sm:$0xff]  ;;  %v178_v4 = vld [vmem:[%s262_s1 + $0x18] sm:$0xff]  ;;  %v177_v5 = vld [vmem:[%s262_s1 + $0x10] sm:$0xff] }
   0x3   :  { %v176_v6 = vld [vmem:[%s262_s1 + $0x8] sm:$0xff]  ;;  %v175_v7 = vld [vmem:[%s262_s1] sm:$0xff] }
   0x4   :  { %v173_v8 = vld [vmem:[%s264_s0] sm:$0xff]  ;;  %v174_v9 = vld [vmem:[%s264_s0 + $0x8] sm:$0xff] }
   0x5   :  { %v202_v12 = vld [vmem:[%s263_s2] ss:$0 sm:$0xff] }
   0x6   :  { %99 = vmatpush.bf16.msra.mxu0 %v181_v1  ;;  %195 = vmatpush.bf16.msra.mxu1 %v181_v1 }
   0xa   :  { %100 = vmatpush.bf16.msra.mxu0 %v180_v2  ;;  %196 = vmatpush.bf16.msra.mxu1 %v180_v2 }
   0xe   :  { %101 = vmatpush.bf16.msra.mxu0 %v179_v3  ;;  %197 = vmatpush.bf16.msra.mxu1 %v179_v3 }
  0x12   :  { %102 = vmatpush.bf16.msra.mxu0 %v178_v4  ;;  %198 = vmatpush.bf16.msra.mxu1 %v178_v4 }
  0x16   :  { %103 = vmatpush.bf16.msra.mxu0 %v177_v5  ;;  %199 = vmatpush.bf16.msra.mxu1 %v177_v5 }
  0x1a   :  { %104 = vmatpush.bf16.msra.mxu0 %v176_v6  ;;  %200 = vmatpush.bf16.msra.mxu1 %v176_v6 }
  0x1e   :  { %105 = vmatpush.bf16.msra.mxu0 %v175_v7  ;;  %201 = vmatpush.bf16.msra.mxu1 %v175_v7 }
  0x21   :  { %106 = vmatmul.bf16.vlgmr.msra.gmra.mxu0 %v173_v8  ;;  %111 = vmatmul.bf16.vlgmr.msra.gmra.mxu1 %v174_v9 }
  0x9e   :  { %v107_v10 = vpop.f32.mrf.mxu0  ;;  %v112_v11 = vpop.f32.mrf.mxu1 }
  0x9f   :  { %v108_v13 = vadd.f32 %v202_v12, %v107_v10  ;;  %v113_v14 = vadd.f32 %v202_v12, %v112_v11 }
  0xa1   :  { %v117_v19 = vmax.f32 %v108_v13, 0.0  ;;  %v119_v20 = vmax.f32 %v113_v14, 0.0 }
  0xa6   :  { %v109_v15 = vpop.f32.mrf.mxu0  ;;  %v114_v16 = vpop.f32.mrf.mxu1 }
  0xa7   :  { %v110_v17 = vadd.f32 %v202_v12, %v109_v15  ;;  %v115_v18 = vadd.f32 %v202_v12, %v114_v16 }
  0xa9   :  { %v118_v21 = vmax.f32 %v110_v17, 0.0  ;;  %v120_v22 = vmax.f32 %v115_v18, 0.0 }
  0xab   :  { %v186_v23 = vpack.c.bf16 %v118_v21, %v117_v19  ;;  %v191_v24 = vpack.c.bf16 %v120_v22, %v119_v20 }
  0xad   :  { %187 = vst [vmem:[%s265_s3] sm:$0xff] %v186_v23  }
  0xae   :  { %193 = vst [vmem:[%s265_s3 + $0x8] sm:$0xff] %v191_v24  }

// kernel: fwd.50
= control target key start
LH: loop header
LB: loop body
LE: loop exit
PB: predicated region body
PF: predicated region fallthrough
CT: control target
= control target key end

     0   :  { %s1354_s1 = inlined_call_operand.vmem [shape: bf16[896,128], index: 1, kind: input, shape index: {}]   ;;  %s1355_s2 = inlined_call_operand.vmem [shape: f32[1,128], index: 2, kind: input, shape index: {}]   ;;  %s1356_s0 = inlined_call_operand.vmem [shape: bf16[32,896], index: 0, kind: input, shape index: {}]   ;;  %s1357_s3 = inlined_call_operand.vmem [shape: bf16[32,128], index: 3, kind: output, shape index: {}]  }
   0x1   :  { %v1004_v0 = vld [vmem:[%s1354_s1 + $0x38] sm:$0xff]  ;;  %v1003_v4 = vld [vmem:[%s1354_s1 + $0x30] sm:$0xff]  ;;  %v1002_v8 = vld [vmem:[%s1354_s1 + $0x28] sm:$0xff] }
   0x2   :  { %v1012_v1 = vld [vmem:[%s1354_s1 + $0x78] sm:$0xff]  ;;  %554 = vmatpush.bf16.msra.mxu0 %v1004_v0  ;;  %v1011_v5 = vld [vmem:[%s1354_s1 + $0x70] sm:$0xff]  ;;  %v1010_v9 = vld [vmem:[%s1354_s1 + $0x68] sm:$0xff] }
   0x3   :  { %v1020_v2 = vld [vmem:[%s1354_s1 + $0xb8] sm:$0xff]  ;;  %573 = vmatpush.bf16.msra.mxu1 %v1012_v1  ;;  %v1019_v6 = vld [vmem:[%s1354_s1 + $0xb0] sm:$0xff]  ;;  %v1018_v10 = vld [vmem:[%s1354_s1 + $0xa8] sm:$0xff] }
   0x4   :  { %v1028_v3 = vld [vmem:[%s1354_s1 + $0xf8] sm:$0xff]  ;;  %592 = vmatpush.bf16.msra.mxu2 %v1020_v2  ;;  %v1027_v7 = vld [vmem:[%s1354_s1 + $0xf0] sm:$0xff]  ;;  %v1026_v11 = vld [vmem:[%s1354_s1 + $0xe8] sm:$0xff] }
   0x5   :  { %611 = vmatpush.bf16.msra.mxu3 %v1028_v3  ;;  %v1001_v12 = vld [vmem:[%s1354_s1 + $0x20] sm:$0xff]  ;;  %v1000_v16 = vld [vmem:[%s1354_s1 + $0x18] sm:$0xff]  ;;  %v999_v20 = vld [vmem:[%s1354_s1 + $0x10] sm:$0xff] }
   0x6   :  { %555 = vmatpush.bf16.msra.mxu0 %v1003_v4  ;;  %v1009_v13 = vld [vmem:[%s1354_s1 + $0x60] sm:$0xff]  ;;  %v1008_v17 = vld [vmem:[%s1354_s1 + $0x58] sm:$0xff]  ;;  %v1007_v21 = vld [vmem:[%s1354_s1 + $0x50] sm:$0xff] }
   0x7   :  { %574 = vmatpush.bf16.msra.mxu1 %v1011_v5  ;;  %v1017_v14 = vld [vmem:[%s1354_s1 + $0xa0] sm:$0xff]  ;;  %v1016_v18 = vld [vmem:[%s1354_s1 + $0x98] sm:$0xff]  ;;  %v1015_v22 = vld [vmem:[%s1354_s1 + $0x90] sm:$0xff] }
   0x8   :  { %593 = vmatpush.bf16.msra.mxu2 %v1019_v6  ;;  %v1025_v15 = vld [vmem:[%s1354_s1 + $0xe0] sm:$0xff]  ;;  %v1024_v19 = vld [vmem:[%s1354_s1 + $0xd8] sm:$0xff]  ;;  %v1023_v23 = vld [vmem:[%s1354_s1 + $0xd0] sm:$0xff] }
   0x9   :  { %612 = vmatpush.bf16.msra.mxu3 %v1027_v7  ;;  %v998_v24 = vld [vmem:[%s1354_s1 + $0x8] sm:$0xff]  ;;  %v997_v28 = vld [vmem:[%s1354_s1] sm:$0xff]  ;;  %v986_v33 = vld [vmem:[%s1356_s0 + $0x18] sm:$0xf0] }
   0xa   :  { %556 = vmatpush.bf16.msra.mxu0 %v1002_v8  ;;  %v1006_v25 = vld [vmem:[%s1354_s1 + $0x48] sm:$0xff]  ;;  %v1005_v29 = vld [vmem:[%s1354_s1 + $0x40] sm:$0xff]  ;;  %v1052_v40 = vld [vmem:[%s1354_s1 + $0x1b8] sm:$0xff] }
   0xb   :  { %575 = vmatpush.bf16.msra.mxu1 %v1010_v9  ;;  %v1014_v26 = vld [vmem:[%s1354_s1 + $0x88] sm:$0xff]  ;;  %v1013_v30 = vld [vmem:[%s1354_s1 + $0x80] sm:$0xff]  ;;  %v1036_v41 = vld [vmem:[%s1354_s1 + $0x138] sm:$0xff] }
   0xc   :  { %594 = vmatpush.bf16.msra.mxu2 %v1018_v10  ;;  %v1022_v27 = vld [vmem:[%s1354_s1 + $0xc8] sm:$0xff]  ;;  %v1021_v31 = vld [vmem:[%s1354_s1 + $0xc0] sm:$0xff]  ;;  %v1044_v46 = vld [vmem:[%s1354_s1 + $0x178] sm:$0xff] }
   0xd   :  { %613 = vmatpush.bf16.msra.mxu3 %v1026_v11  ;;  %v705_v32 = vld [vmem:[%s1356_s0] sm:$0xf]  ;;  %v983_v34 = vld [vmem:[%s1356_s0 + $0x4] sm:$0xf]  ;;  %v713_v36 = vld [vmem:[%s1356_s0 + $0x8] sm:$0xf] }
   0xe   :  { %557 = vmatpush.bf16.msra.mxu0 %v1001_v12  ;;  %v707_v35 = vld [vmem:[%s1356_s0 + $0x1c] sm:$0xf0]  ;;  %v987_v37 = vld [vmem:[%s1356_s0 + $0x20] sm:$0xf0]  ;;  %v984_v38 = vld [vmem:[%s1356_s0 + $0xc] sm:$0xf]  ;;  %v706_v42 = vor.u32 %v986_v33, %v705_v32 }
   0xf   :  { %576 = vmatpush.bf16.msra.mxu1 %v1009_v13  ;;  %v715_v39 = vld [vmem:[%s1356_s0 + $0x24] sm:$0xf0]  ;;  %v710_v43 = vor.u32 %v983_v34, %v707_v35  ;;  %v714_v44 = vor.u32 %v987_v37, %v713_v36  ;;  %v1051_v47 = vld [vmem:[%s1354_s1 + $0x1b0] sm:$0xff]  ;;  %v1049_v53 = vld [vmem:[%s1354_s1 + $0x1a0] sm:$0xff] }
  0x10   :  { %595 = vmatpush.bf16.msra.mxu2 %v1017_v14  ;;  %v718_v45 = vor.u32 %v984_v38, %v715_v39  ;;  %v1035_v48 = vld [vmem:[%s1354_s1 + $0x130] sm:$0xff]  ;;  %v1050_v50 = vld [vmem:[%s1354_s1 + $0x1a8] sm:$0xff]  ;;  %v1033_v54 = vld [vmem:[%s1354_s1 + $0x120] sm:$0xff] }
  0x11   :  { %614 = vmatpush.bf16.msra.mxu3 %v1025_v15  ;;  %v1043_v49 = vld [vmem:[%s1354_s1 + $0x170] sm:$0xff]  ;;  %v1034_v51 = vld [vmem:[%s1354_s1 + $0x128] sm:$0xff]  ;;  %v1041_v55 = vld [vmem:[%s1354_s1 + $0x160] sm:$0xff] }
  0x12   :  { %558 = vmatpush.bf16.msra.mxu0 %v1000_v16  ;;  %v1042_v52 = vld [vmem:[%s1354_s1 + $0x168] sm:$0xff]  ;;  %v733_v56 = vld [vmem:[%s1356_s0 + $0x38] sm:$0xf]  ;;  %v993_v57 = vld [vmem:[%s1356_s0 + $0x50] sm:$0xf0] }
  0x13   :  { %577 = vmatpush.bf16.msra.mxu1 %v1008_v17  ;;  %v990_v58 = vld [vmem:[%s1356_s0 + $0x3c] sm:$0xf]  ;;  %v735_v59 = vld [vmem:[%s1356_s0 + $0x54] sm:$0xf0]  ;;  %v741_v60 = vld [vmem:[%s1356_s0 + $0x40] sm:$0xf]  ;;  %v734_v2 = vor.u32 %v993_v57, %v733_v56 }
  0x14   :  { %596 = vmatpush.bf16.msra.mxu2 %v1016_v18  ;;  %v994_v61 = vld [vmem:[%s1356_s0 + $0x58] sm:$0xf0]  ;;  %v991_v62 = vld [vmem:[%s1356_s0 + $0x44] sm:$0xf]  ;;  %v743_v63 = vld [vmem:[%s1356_s0 + $0x5c] sm:$0xf0]  ;;  %v738_v3 = vor.u32 %v990_v58, %v735_v59 }
  0x15   :  { %615 = vmatpush.bf16.msra.mxu3 %v1024_v19  ;;  %v1048_v0 = vld [vmem:[%s1354_s1 + $0x198] sm:$0xff]  ;;  %v742_v4 = vor.u32 %v994_v61, %v741_v60  ;;  %v746_v5 = vor.u32 %v991_v62, %v743_v63  ;;  %v1047_v7 = vld [vmem:[%s1354_s1 + $0x190] sm:$0xff]  ;;  %v1046_v10 = vld [vmem:[%s1354_s1 + $0x188] sm:$0xff] }
  0x16   :  { %559 = vmatpush.bf16.msra.mxu0 %v999_v20  ;;  %v1032_v1 = vld [vmem:[%s1354_s1 + $0x118] sm:$0xff]  ;;  %v1031_v8 = vld [vmem:[%s1354_s1 + $0x110] sm:$0xff]  ;;  %v1030_v11 = vld [vmem:[%s1354_s1 + $0x108] sm:$0xff] }
  0x17   :  { %578 = vmatpush.bf16.msra.mxu1 %v1007_v21  ;;  %v1040_v6 = vld [vmem:[%s1354_s1 + $0x158] sm:$0xff]  ;;  %v1039_v9 = vld [vmem:[%s1354_s1 + $0x150] sm:$0xff]  ;;  %v1038_v12 = vld [vmem:[%s1354_s1 + $0x148] sm:$0xff] }
  0x18   :  { %597 = vmatpush.bf16.msra.mxu2 %v1015_v22  ;;  %v1045_v13 = vld [vmem:[%s1354_s1 + $0x180] sm:$0xff]  ;;  %v721_v16 = vld [vmem:[%s1356_s0 + $0x10] sm:$0xf]  ;;  %v988_v17 = vld [vmem:[%s1356_s0 + $0x28] sm:$0xf0] }
  0x19   :  { %616 = vmatpush.bf16.msra.mxu3 %v1023_v23  ;;  %v1029_v14 = vld [vmem:[%s1354_s1 + $0x100] sm:$0xff]  ;;  %v749_v18 = vld [vmem:[%s1356_s0 + $0x48] sm:$0xf]  ;;  %v985_v20 = vld [vmem:[%s1356_s0 + $0x14] sm:$0xf] }
  0x1a   :  { %560 = vmatpush.bf16.msra.mxu0 %v998_v24  ;;  %v1037_v15 = vld [vmem:[%s1354_s1 + $0x140] sm:$0xff]  ;;  %v723_v21 = vld [vmem:[%s1356_s0 + $0x2c] sm:$0xf0]  ;;  %v729_v22 = vld [vmem:[%s1356_s0 + $0x18] sm:$0xf]  ;;  %v722_v24 = vor.u32 %v988_v17, %v721_v16 }
  0x1b   :  { %579 = vmatpush.bf16.msra.mxu1 %v1006_v25  ;;  %v995_v19 = vld [vmem:[%s1356_s0 + $0x60] sm:$0xf0]  ;;  %v989_v23 = vld [vmem:[%s1356_s0 + $0x30] sm:$0xf0] }
  0x1c   :  { %598 = vmatpush.bf16.msra.mxu2 %v1014_v26  ;;  %v750_v25 = vor.u32 %v995_v19, %v749_v18  ;;  %v726_v26 = vor.u32 %v985_v20, %v723_v21 }
  0x1d   :  { %617 = vmatpush.bf16.msra.mxu3 %v1022_v27  ;;  %v730_v27 = vor.u32 %v989_v23, %v729_v22 }
  0x1e   :  { %561 = vmatpush.bf16.msra.mxu0 %v997_v28  ;;  %v992_v28 = vld [vmem:[%s1356_s0 + $0x4c] sm:$0xf] }
  0x1f   :  { %580 = vmatpush.bf16.msra.mxu1 %v1005_v29  ;;  %v751_v29 = vld [vmem:[%s1356_s0 + $0x64] sm:$0xf0] }
  0x20   :  { %599 = vmatpush.bf16.msra.mxu2 %v1013_v30  ;;  %v757_v30 = vld [vmem:[%s1356_s0 + $0x50] sm:$0xf]  ;;  %v754_v32 = vor.u32 %v992_v28, %v751_v29 }
  0x21   :  { %618 = vmatpush.bf16.msra.mxu3 %v1021_v31  ;;  %562 = vmatmul.bf16.vlgmr.msra.gmra.mxu0 %v706_v42  ;;  %v996_v31 = vld [vmem:[%s1356_s0 + $0x68] sm:$0xf0] }
  0x22   :  { %630 = vmatpush.bf16.msrb.mxu0 %v1036_v41  ;;  %581 = vmatmul.bf16.vlgmr.msra.gmra.mxu1 %v710_v43  ;;  %v758_v33 = vor.u32 %v996_v31, %v757_v30 }
  0x23   :  { %600 = vmatmul.bf16.vlgmr.msra.gmra.mxu2 %v714_v44  ;;  %649 = vmatpush.bf16.msrb.mxu1 %v1044_v46  ;;  %v1072_v44 = vld [vmem:[%s1355_s2] ss:$0 sm:$0xff] }
  0x24   :  { %668 = vmatpush.bf16.msrb.mxu2 %v1052_v40  ;;  %619 = vmatmul.bf16.vlgmr.msra.gmra.mxu3 %v718_v45 }
  0x25   :  { %1064 = vmatpush.bf16.msrb.mxu3 %v1036_v41 }
  0x26   :  { %631 = vmatpush.bf16.msrb.mxu0 %v1035_v48 }
  0x27   :  { %650 = vmatpush.bf16.msrb.mxu1 %v1043_v49 }
  0x28   :  { %669 = vmatpush.bf16.msrb.mxu2 %v1051_v47 }
  0x29   :  { %1065 = vmatpush.bf16.msrb.mxu3 %v1035_v48 }
  0x2a   :  { %632 = vmatpush.bf16.msrb.mxu0 %v1034_v51 }
  0x2b   :  { %651 = vmatpush.bf16.msrb.mxu1 %v1042_v52 }
  0x2c   :  { %670 = vmatpush.bf16.msrb.mxu2 %v1050_v50 }
  0x2d   :  { %1066 = vmatpush.bf16.msrb.mxu3 %v1034_v51 }
  0x2e   :  { %633 = vmatpush.bf16.msrb.mxu0 %v1033_v54 }
  0x2f   :  { %652 = vmatpush.bf16.msrb.mxu1 %v1041_v55 }
  0x30   :  { %671 = vmatpush.bf16.msrb.mxu2 %v1049_v53 }
  0x31   :  { %1067 = vmatpush.bf16.msrb.mxu3 %v1033_v54  ;;  %567 = vmatmul.bf16.gmra.mxu0 %v734_v2 }
  0x32   :  { %634 = vmatpush.bf16.msrb.mxu0 %v1032_v1  ;;  %586 = vmatmul.bf16.gmra.mxu1 %v738_v3 }
  0x33   :  { %605 = vmatmul.bf16.gmra.mxu2 %v742_v4  ;;  %653 = vmatpush.bf16.msrb.mxu1 %v1040_v6 }
  0x34   :  { %672 = vmatpush.bf16.msrb.mxu2 %v1048_v0  ;;  %624 = vmatmul.bf16.gmra.mxu3 %v746_v5 }
  0x35   :  { %1068 = vmatpush.bf16.msrb.mxu3 %v1032_v1 }
  0x36   :  { %635 = vmatpush.bf16.msrb.mxu0 %v1031_v8 }
  0x37   :  { %654 = vmatpush.bf16.msrb.mxu1 %v1039_v9 }
  0x38   :  { %673 = vmatpush.bf16.msrb.mxu2 %v1047_v7 }
  0x39   :  { %1069 = vmatpush.bf16.msrb.mxu3 %v1031_v8 }
  0x3a   :  { %636 = vmatpush.bf16.msrb.mxu0 %v1030_v11 }
  0x3b   :  { %655 = vmatpush.bf16.msrb.mxu1 %v1038_v12 }
  0x3c   :  { %674 = vmatpush.bf16.msrb.mxu2 %v1046_v10 }
  0x3d   :  { %1070 = vmatpush.bf16.msrb.mxu3 %v1030_v11 }
  0x3e   :  { %637 = vmatpush.bf16.msrb.mxu0 %v1029_v14 }
  0x3f   :  { %656 = vmatpush.bf16.msrb.mxu1 %v1037_v15 }
  0x40   :  { %675 = vmatpush.bf16.msrb.mxu2 %v1045_v13 }
  0x41   :  { %1071 = vmatpush.bf16.msrb.mxu3 %v1029_v14  ;;  %638 = vmatmul.bf16.vlgmr.msrb.gmra.mxu0 %v722_v24 }
  0x42   :  { %657 = vmatmul.bf16.vlgmr.msrb.gmra.mxu1 %v726_v26 }
  0x43   :  { %676 = vmatmul.bf16.vlgmr.msrb.gmra.mxu2 %v730_v27 }
  0x44   :  { %643 = vmatmul.bf16.vlgmr.msrb.gmra.mxu3 %v750_v25 }
  0x52   :  { %662 = vmatmul.bf16.gmra.mxu1 %v754_v32 }
  0x53   :  { %681 = vmatmul.bf16.gmra.mxu2 %v758_v33 }
  0x9e   :  { %v563_v34 = vpop.f32.mrf.mxu0 }
  0x9f   :  { %v582_v35 = vpop.f32.mrf.mxu1  ;;  %v564_v48 = vadd.f32 %v1072_v44, %v563_v34 }
  0xa1   :  { %v583_v50 = vadd.f32 %v582_v35, %v564_v48 }
  0xa6   :  { %v601_v36 = vpop.f32.mrf.mxu2  ;;  %v565_v38 = vpop.f32.mrf.mxu0 }
  0xa7   :  { %v620_v37 = vpop.f32.mrf.mxu3  ;;  %v584_v39 = vpop.f32.mrf.mxu1  ;;  %v566_v51 = vadd.f32 %v1072_v44, %v565_v38  ;;  %v602_v55 = vadd.f32 %v601_v36, %v583_v50 }
  0xa9   :  { %v585_v56 = vadd.f32 %v584_v39, %v566_v51  ;;  %v621_v59 = vadd.f32 %v620_v37, %v602_v55 }
  0xae   :  { %v603_v40 = vpop.f32.mrf.mxu2  ;;  %v568_v41 = vpop.f32.mrf.mxu0 }
  0xaf   :  { %v587_v42 = vpop.f32.mrf.mxu1  ;;  %v622_v43 = vpop.f32.mrf.mxu3  ;;  %v604_v57 = vadd.f32 %v603_v40, %v585_v56  ;;  %v569_v2 = vadd.f32 %v1072_v44, %v568_v41 }
  0xb1   :  { %v623_v62 = vadd.f32 %v622_v43, %v604_v57  ;;  %v588_v8 = vadd.f32 %v587_v42, %v569_v2 }
  0xb6   :  { %v606_v45 = vpop.f32.mrf.mxu2  ;;  %v570_v46 = vpop.f32.mrf.mxu0 }
  0xb7   :  { %v589_v47 = vpop.f32.mrf.mxu1  ;;  %v625_v49 = vpop.f32.mrf.mxu3  ;;  %v571_v9 = vadd.f32 %v1072_v44, %v570_v46  ;;  %v607_v14 = vadd.f32 %v606_v45, %v588_v8 }
  0xb9   :  { %v590_v15 = vadd.f32 %v589_v47, %v571_v9  ;;  %v626_v19 = vadd.f32 %v625_v49, %v607_v14 }
  0xbe   :  { %v608_v52 = vpop.f32.mrf.mxu2  ;;  %v639_v53 = vpop.f32.mrf.mxu0 }
  0xbf   :  { %v658_v54 = vpop.f32.mrf.mxu1  ;;  %v627_v58 = vpop.f32.mrf.mxu3  ;;  %v640_v63 = vadd.f32 %v639_v53, %v621_v59  ;;  %v609_v17 = vadd.f32 %v608_v52, %v590_v15 }
  0xc1   :  { %v659_v3 = vadd.f32 %v658_v54, %v640_v63  ;;  %v628_v21 = vadd.f32 %v627_v58, %v609_v17 }
  0xc6   :  { %v677_v60 = vpop.f32.mrf.mxu2  ;;  %v641_v61 = vpop.f32.mrf.mxu0 }
  0xc7   :  { %v660_v0 = vpop.f32.mrf.mxu1  ;;  %v642_v1 = vadd.f32 %v641_v61, %v623_v62  ;;  %v678_v4 = vadd.f32 %v677_v60, %v659_v3  ;;  %v644_v6 = vpop.f32.mrf.mxu3 }
  0xc8   :  { %v645_v22 = vadd.f32 %v644_v6, %v626_v19 }
  0xc9   :  { %v661_v5 = vadd.f32 %v660_v0, %v642_v1  ;;  %v687_v12 = vmax.f32 %v678_v4, 0.0 }
  0xce   :  { %v679_v7 = vpop.f32.mrf.mxu2 }
  0xcf   :  { %v680_v10 = vadd.f32 %v679_v7, %v661_v5  ;;  %v663_v11 = vpop.f32.mrf.mxu1  ;;  %v646_v20 = vpop.f32.mrf.mxu3 }
  0xd0   :  { %v647_v24 = vadd.f32 %v646_v20, %v628_v21  ;;  %v664_v25 = vadd.f32 %v663_v11, %v645_v22 }
  0xd1   :  { %v688_v13 = vmax.f32 %v680_v10, 0.0 }
  0xd3   :  { %v1056_v16 = vpack.c.bf16 %v688_v13, %v687_v12 }
  0xd5   :  { %1057 = vst [vmem:[%s1357_s3] sm:$0xff] %v1056_v16  }
  0xd6   :  { %v682_v18 = vpop.f32.mrf.mxu2 }
  0xd7   :  { %v665_v23 = vpop.f32.mrf.mxu1  ;;  %v683_v26 = vadd.f32 %v682_v18, %v664_v25 }
  0xd8   :  { %v666_v27 = vadd.f32 %v665_v23, %v647_v24 }
  0xd9   :  { %v689_v30 = vmax.f32 %v683_v26, 0.0 }
  0xde   :  { %v684_v28 = vpop.f32.mrf.mxu2 }
  0xdf   :  { %v685_v29 = vadd.f32 %v684_v28, %v666_v27 }
  0xe1   :  { %v690_v31 = vmax.f32 %v685_v29, 0.0 }
  0xe3   :  { %v1061_v32 = vpack.c.bf16 %v690_v31, %v689_v30 }
  0xe5   :  { %1063 = vst [vmem:[%s1357_s3 + $0x8] sm:$0xff] %v1061_v32  }

// kernel: fwd.52
= control target key start
LH: loop header
LB: loop body
LE: loop exit
PB: predicated region body
PF: predicated region fallthrough
CT: control target
= control target key end

     0   :  { %vm201_vm0 = vcmask 261120   ;;  %s544_s1 = inlined_call_operand.vmem [shape: bf16[288,128], index: 1, kind: input, shape index: {}]   ;;  %s545_s0 = inlined_call_operand.vmem [shape: bf16[32,288], index: 0, kind: input, shape index: {}]   ;;  %s546_s2 = inlined_call_operand.vmem [shape: f32[1,128], index: 2, kind: input, shape index: {}]   ;;  %s547_s3 = inlined_call_operand.vmem [shape: bf16[32,128], index: 3, kind: output, shape index: {}]  }
   0x1   :  { %v392_v0 = vld [vmem:[%s544_s1 + $0x38] sm:$0xff]  ;;  %v391_v2 = vld [vmem:[%s544_s1 + $0x30] sm:$0xff]  ;;  %v402_v3 = vld [vmem:[%s544_s1 + $0x88] sm:$0xff] }
   0x2   :  { %v400_v1 = vld [vmem:[%s544_s1 + $0x78] sm:$0xff]  ;;  %208 = vmatpush.bf16.msra.mxu0 %v392_v0  ;;  %414 = vmatpush.bf16.msra.mxu3 %v392_v0  ;;  %v399_v4 = vld [vmem:[%s544_s1 + $0x70] sm:$0xff]  ;;  %v401_v5 = vld [vmem:[%s544_s1 + $0x80] sm:$0xff] }
   0x3   :  { %227 = vmatpush.bf16.msra.mxu1 %v400_v1  ;;  %252 = vmatpush.bf16.msra.mxu2 %v402_v3  ;;  %v291_v6 = vld [vmem:[%s545_s0 + $0x8] sm:$0xf]  ;;  %v381_v7 = vld [vmem:[%s545_s0 + $0x10] sm:$0xf0]  ;;  %v389_v11 = vld [vmem:[%s544_s1 + $0x20] sm:$0xff] }
   0x4   :  { %v390_v8 = vld [vmem:[%s544_s1 + $0x28] sm:$0xff]  ;;  %v292_v10 = vor.u32 %v381_v7, %v291_v6  ;;  %v397_v12 = vld [vmem:[%s544_s1 + $0x60] sm:$0xff]  ;;  %v388_v13 = vld [vmem:[%s544_s1 + $0x18] sm:$0xff] }
   0x5   :  { %v398_v9 = vld [vmem:[%s544_s1 + $0x68] sm:$0xff]  ;;  %v396_v14 = vld [vmem:[%s544_s1 + $0x58] sm:$0xff]  ;;  %v387_v15 = vld [vmem:[%s544_s1 + $0x10] sm:$0xff] }
   0x6   :  { %209 = vmatpush.bf16.msra.mxu0 %v391_v2  ;;  %415 = vmatpush.bf16.msra.mxu3 %v391_v2  ;;  %v395_v16 = vld [vmem:[%s544_s1 + $0x50] sm:$0xff]  ;;  %v303_v17 = vld [vmem:[%s545_s0 + $0x20] sm:$0xf]  ;;  %v384_v18 = vld [vmem:[%s545_s0 + $0x28] sm:$0xf0] }
   0x7   :  { %228 = vmatpush.bf16.msra.mxu1 %v399_v4  ;;  %253 = vmatpush.bf16.msra.mxu2 %v401_v5  ;;  %v386_v19 = vld [vmem:[%s544_s1 + $0x8] sm:$0xff]  ;;  %v304_v21 = vor.u32 %v384_v18, %v303_v17  ;;  %v385_v22 = vld [vmem:[%s544_s1] sm:$0xff]  ;;  %v295_v25 = vld [vmem:[%s545_s0 + $0x18] sm:$0xf] }
   0x8   :  { %v394_v20 = vld [vmem:[%s544_s1 + $0x48] sm:$0xff]  ;;  %v283_v23 = vld [vmem:[%s545_s0] sm:$0xf]  ;;  %v383_v26 = vld [vmem:[%s545_s0 + $0x20] sm:$0xf0] }
   0x9   :  { %v380_v24 = vld [vmem:[%s545_s0 + $0x8] sm:$0xf0]  ;;  %v393_v27 = vld [vmem:[%s544_s1 + $0x40] sm:$0xff]  ;;  %v285_v29 = vld [vmem:[%s545_s0 + $0xc] sm:$0xf0]  ;;  %v296_v31 = vor.u32 %v383_v26, %v295_v25 }
   0xa   :  { %210 = vmatpush.bf16.msra.mxu0 %v390_v8  ;;  %416 = vmatpush.bf16.msra.mxu3 %v390_v8  ;;  %v379_v28 = vld [vmem:[%s545_s0 + $0x4] sm:$0xf]  ;;  %v284_v30 = vor.u32 %v380_v24, %v283_v23  ;;  %v382_v33 = vld [vmem:[%s545_s0 + $0x1c] sm:$0xf]  ;;  %v297_v34 = vld [vmem:[%s545_s0 + $0x24] sm:$0xf0] }
   0xb   :  { %229 = vmatpush.bf16.msra.mxu1 %v398_v9  ;;  %377 = vmatmul.msk.bf16.vlgmr.msra.gmra.mxu2 %vm201_vm0, %v292_v10  ;;  %v288_v32 = vor.u32 %v379_v28, %v285_v29  ;;  %v300_v35 = vor.u32 %v382_v33, %v297_v34  ;;  %v422_v37 = vld [vmem:[%s546_s2] ss:$0 sm:$0xff] }
   0xe   :  { %211 = vmatpush.bf16.msra.mxu0 %v389_v11  ;;  %417 = vmatpush.bf16.msra.mxu3 %v389_v11 }
   0xf   :  { %230 = vmatpush.bf16.msra.mxu1 %v397_v12 }
  0x12   :  { %212 = vmatpush.bf16.msra.mxu0 %v388_v13  ;;  %418 = vmatpush.bf16.msra.mxu3 %v388_v13 }
  0x13   :  { %231 = vmatpush.bf16.msra.mxu1 %v396_v14 }
  0x16   :  { %213 = vmatpush.bf16.msra.mxu0 %v387_v15  ;;  %419 = vmatpush.bf16.msra.mxu3 %v387_v15 }
  0x17   :  { %232 = vmatpush.bf16.msra.mxu1 %v395_v16 }
  0x1a   :  { %214 = vmatpush.bf16.msra.mxu0 %v386_v19  ;;  %420 = vmatpush.bf16.msra.mxu3 %v386_v19 }
  0x1b   :  { %233 = vmatpush.bf16.msra.mxu1 %v394_v20  ;;  %378 = vmatmul.msk.bf16.gmra.mxu2 %vm201_vm0, %v304_v21 }
  0x1e   :  { %215 = vmatpush.bf16.msra.mxu0 %v385_v22  ;;  %421 = vmatpush.bf16.msra.mxu3 %v385_v22 }
  0x1f   :  { %234 = vmatpush.bf16.msra.mxu1 %v393_v27 }
  0x21   :  { %216 = vmatmul.bf16.vlgmr.msra.gmra.mxu0 %v284_v30  ;;  %221 = vmatmul.bf16.vlgmr.msra.gmra.mxu3 %v296_v31 }
  0x22   :  { %235 = vmatmul.bf16.vlgmr.msra.gmra.mxu1 %v288_v32 }
  0x32   :  { %240 = vmatmul.bf16.gmra.mxu1 %v300_v35 }
  0x8e   :  { %v255_v36 = vpop.f32.mrf.mxu2 }
  0x96   :  { %v257_v42 = vpop.f32.mrf.mxu2 }
  0x9e   :  { %v217_v38 = vpop.f32.mrf.mxu0  ;;  %v260_v53 = vpop.f32.mrf.mxu2 }
  0x9f   :  { %v236_v39 = vpop.f32.mrf.mxu1  ;;  %v218_v40 = vadd.f32 %v422_v37, %v217_v38 }
  0xa1   :  { %v237_v41 = vadd.f32 %v236_v39, %v218_v40 }
  0xa3   :  { %v256_v46 = vadd.f32 %v255_v36, %v237_v41 }
  0xa4   :  { %v222_v47 = vpop.f32.mrf.mxu3 }
  0xa5   :  { %v265_v50 = vmax.f32 %v256_v46, 0.0  ;;  %v223_v55 = vadd.f32 %v422_v37, %v222_v47 }
  0xa6   :  { %v219_v43 = vpop.f32.mrf.mxu0  ;;  %v262_v62 = vpop.f32.mrf.mxu2 }
  0xa7   :  { %v220_v44 = vadd.f32 %v422_v37, %v219_v43  ;;  %v238_v45 = vpop.f32.mrf.mxu1 }
  0xa9   :  { %v239_v48 = vadd.f32 %v238_v45, %v220_v44 }
  0xab   :  { %v258_v49 = vadd.f32 %v257_v42, %v239_v48 }
  0xac   :  { %v224_v56 = vpop.f32.mrf.mxu3 }
  0xad   :  { %v266_v51 = vmax.f32 %v258_v49, 0.0  ;;  %v225_v58 = vadd.f32 %v422_v37, %v224_v56 }
  0xaf   :  { %v406_v52 = vpack.c.bf16 %v266_v51, %v265_v50  ;;  %v241_v54 = vpop.f32.mrf.mxu1 }
  0xb0   :  { %v242_v57 = vadd.f32 %v241_v54, %v223_v55 }
  0xb1   :  { %407 = vst [vmem:[%s547_s3] sm:$0xff] %v406_v52  }
  0xb2   :  { %v261_v60 = vadd.f32 %v260_v53, %v242_v57 }
  0xb4   :  { %v267_v0 = vmax.f32 %v261_v60, 0.0 }
  0xb7   :  { %v243_v59 = vpop.f32.mrf.mxu1 }
  0xb8   :  { %v244_v61 = vadd.f32 %v243_v59, %v225_v58 }
  0xba   :  { %v263_v63 = vadd.f32 %v262_v62, %v244_v61 }
  0xbc   :  { %v268_v1 = vmax.f32 %v263_v63, 0.0 }
  0xbe   :  { %v411_v2 = vpack.c.bf16 %v268_v1, %v267_v0 }
  0xc0   :  { %413 = vst [vmem:[%s547_s3 + $0x8] sm:$0xff] %v411_v2  }

// kernel: fwd.53
= control target key start
LH: loop header
LB: loop body
LE: loop exit
PB: predicated region body
PF: predicated region fallthrough
CT: control target
= control target key end

     0   :  { %vm49_vm0 = vcmask 261120   ;;  %s164_s1 = inlined_call_operand.vmem [shape: bf16[32,128], index: 1, kind: input, shape index: {}]   ;;  %s165_s2 = inlined_call_operand.vmem [shape: f32[1,128], index: 2, kind: input, shape index: {}]   ;;  %s166_s0 = inlined_call_operand.vmem [shape: bf16[32,32], index: 0, kind: input, shape index: {}]   ;;  %s167_s3 = inlined_call_operand.vmem [shape: bf16[32,128], index: 3, kind: output, shape index: {}]  }
   0x1   :  { %v108_v0 = vld [vmem:[%s164_s1 + $0x8] sm:$0xff]  ;;  %v107_v1 = vld [vmem:[%s164_s1] sm:$0xff] }
   0x2   :  { %62 = vmatpush.bf16.msra.mxu0 %v108_v0  ;;  %120 = vmatpush.bf16.msra.mxu1 %v108_v0  ;;  %v105_v2 = vld [vmem:[%s166_s0] sm:$0xff]  ;;  %v106_v3 = vld [vmem:[%s166_s0 + $0x8] sm:$0xff] }
   0x3   :  { %v122_v6 = vld [vmem:[%s165_s2] ss:$0 sm:$0xff] }
   0x6   :  { %63 = vmatpush.bf16.msra.mxu0 %v107_v1  ;;  %121 = vmatpush.bf16.msra.mxu1 %v107_v1 }
   0x9   :  { %103 = vmatmul.msk.bf16.vlgmr.msra.gmra.mxu0 %vm49_vm0, %v105_v2  ;;  %104 = vmatmul.msk.bf16.vlgmr.msra.gmra.mxu1 %vm49_vm0, %v106_v3 }
  0x86   :  { %v65_v4 = vpop.f32.mrf.mxu0  ;;  %v70_v5 = vpop.f32.mrf.mxu1 }
  0x87   :  { %v66_v9 = vadd.f32 %v122_v6, %v65_v4  ;;  %v71_v10 = vadd.f32 %v122_v6, %v70_v5 }
  0x8e   :  { %v67_v7 = vpop.f32.mrf.mxu0  ;;  %v72_v8 = vpop.f32.mrf.mxu1 }
  0x8f   :  { %v68_v11 = vadd.f32 %v122_v6, %v67_v7  ;;  %v73_v12 = vadd.f32 %v122_v6, %v72_v8 }
  0x91   :  { %v112_v13 = vpack.c.bf16 %v68_v11, %v66_v9  ;;  %v117_v14 = vpack.c.bf16 %v73_v12, %v71_v10 }
  0x93   :  { %113 = vst [vmem:[%s167_s3] sm:$0xff] %v112_v13  }
  0x94   :  { %119 = vst [vmem:[%s167_s3 + $0x8] sm:$0xff] %v117_v14  }

// kernel: fwd.55
= control target key start
LH: loop header
LB: loop body
LE: loop exit
PB: predicated region body
PF: predicated region fallthrough
CT: control target
= control target key end

     0   :  { %vm42_vm0 = vcmask 261120   ;;  %s121_s1 = inlined_call_operand.vmem [shape: bf16[32,128], index: 1, kind: input, shape index: {}]   ;;  %s122_s2 = inlined_call_operand.vmem [shape: f32[1,128], index: 2, kind: input, shape index: {}]   ;;  %s123_s0 = inlined_call_operand.vmem [shape: bf16[16,32], index: 0, kind: input, shape index: {}]   ;;  %s124_s3 = inlined_call_operand.vmem [shape: f32[16,128], index: 3, kind: output, shape index: {}]  }
   0x1   :  { %v81_v0 = vld [vmem:[%s121_s1 + $0x8] sm:$0xff]  ;;  %v80_v1 = vld [vmem:[%s121_s1] sm:$0xff] }
   0x2   :  { %52 = vmatpush.bf16.msra.mxu0 %v81_v0  ;;  %v79_v2 = vld [vmem:[%s123_s0] sm:$0xff] }
   0x3   :  { %v82_v3 = vld [vmem:[%s122_s2] ss:$0 sm:$0xff] }
   0x6   :  { %53 = vmatpush.bf16.msra.mxu0 %v80_v1 }
   0x9   :  { %78 = vmatmul.msk.bf16.vlgmr.msra.gmra.mxu0 %vm42_vm0, %v79_v2 }
  0x86   :  { %v55_v4 = vpop.f32.mrf.mxu0 }
  0x87   :  { %v56_v5 = vadd.f32 %v82_v3, %v55_v4 }
  0x89   :  { %60 = vst [vmem:[%s124_s3] sm:$0xff] %v56_v5 }
  0x8e   :  { %v57_v6 = vpop.f32.mrf.mxu0 }
  0x8f   :  { %v58_v7 = vadd.f32 %v82_v3, %v57_v6 }
  0x91   :  { %61 = vst [vmem:[%s124_s3 + $0x8] sm:$0xff] %v58_v7 }

// kernel: fwd.54
= control target key start
LH: loop header
LB: loop body
LE: loop exit
PB: predicated region body
PF: predicated region fallthrough
CT: control target
= control target key end

     0   :  { %s214_s1 = inlined_call_operand.vmem [shape: bf16[128,128], index: 1, kind: input, shape index: {}]   ;;  %s215_s2 = inlined_call_operand.vmem [shape: f32[1,128], index: 2, kind: input, shape index: {}]   ;;  %s216_s0 = inlined_call_operand.vmem [shape: bf16[16,128], index: 0, kind: input, shape index: {}]   ;;  %s217_s3 = inlined_call_operand.vmem [shape: f32[16,128], index: 3, kind: output, shape index: {}]  }
   0x1   :  { %v156_v0 = vld [vmem:[%s214_s1 + $0x38] sm:$0xff]  ;;  %v155_v1 = vld [vmem:[%s214_s1 + $0x30] sm:$0xff]  ;;  %v154_v2 = vld [vmem:[%s214_s1 + $0x28] sm:$0xff] }
   0x2   :  { %90 = vmatpush.bf16.msra.mxu0 %v156_v0  ;;  %v153_v3 = vld [vmem:[%s214_s1 + $0x20] sm:$0xff]  ;;  %v152_v4 = vld [vmem:[%s214_s1 + $0x18] sm:$0xff]  ;;  %v151_v5 = vld [vmem:[%s214_s1 + $0x10] sm:$0xff] }
   0x3   :  { %v150_v6 = vld [vmem:[%s214_s1 + $0x8] sm:$0xff]  ;;  %v149_v7 = vld [vmem:[%s214_s1] sm:$0xff] }
   0x4   :  { %v148_v8 = vld [vmem:[%s216_s0] sm:$0xff] }
   0x5   :  { %v157_v9 = vld [vmem:[%s215_s2] ss:$0 sm:$0xff] }
   0x6   :  { %91 = vmatpush.bf16.msra.mxu0 %v155_v1 }
   0xa   :  { %92 = vmatpush.bf16.msra.mxu0 %v154_v2 }
   0xe   :  { %93 = vmatpush.bf16.msra.mxu0 %v153_v3 }
  0x12   :  { %94 = vmatpush.bf16.msra.mxu0 %v152_v4 }
  0x16   :  { %95 = vmatpush.bf16.msra.mxu0 %v151_v5 }
  0x1a   :  { %96 = vmatpush.bf16.msra.mxu0 %v150_v6 }
  0x1e   :  { %97 = vmatpush.bf16.msra.mxu0 %v149_v7 }
  0x21   :  { %98 = vmatmul.bf16.vlgmr.msra.gmra.mxu0 %v148_v8 }
  0x9e   :  { %v99_v10 = vpop.f32.mrf.mxu0 }
  0x9f   :  { %v100_v11 = vadd.f32 %v157_v9, %v99_v10 }
  0xa1   :  { %v104_v12 = vmax.f32 %v100_v11, 0.0 }
  0xa3   :  { %106 = vst [vmem:[%s217_s3] sm:$0xff] %v104_v12 }
  0xa6   :  { %v101_v13 = vpop.f32.mrf.mxu0 }
  0xa7   :  { %v102_v14 = vadd.f32 %v157_v9, %v101_v13 }
  0xa9   :  { %v105_v15 = vmax.f32 %v102_v14, 0.0 }
  0xab   :  { %107 = vst [vmem:[%s217_s3 + $0x8] sm:$0xff] %v105_v15 }

// kernel: fwd.56
= control target key start
LH: loop header
LB: loop body
LE: loop exit
PB: predicated region body
PF: predicated region fallthrough
CT: control target
= control target key end

     0   :  { %s258_s1 = inlined_call_operand.vmem [shape: bf16[128,128], index: 1, kind: input, shape index: {}]   ;;  %s259_s2 = inlined_call_operand.vmem [shape: f32[1,128], index: 2, kind: input, shape index: {}]   ;;  %s260_s0 = inlined_call_operand.vmem [shape: bf16[32,128], index: 0, kind: input, shape index: {}]   ;;  %s261_s3 = inlined_call_operand.vmem [shape: bf16[32,128], index: 3, kind: output, shape index: {}]  }
   0x1   :  { %v178_v0 = vld [vmem:[%s258_s1 + $0x38] sm:$0xff]  ;;  %v177_v1 = vld [vmem:[%s258_s1 + $0x30] sm:$0xff]  ;;  %v176_v2 = vld [vmem:[%s258_s1 + $0x28] sm:$0xff] }
   0x2   :  { %98 = vmatpush.bf16.msra.mxu0 %v178_v0  ;;  %190 = vmatpush.bf16.msra.mxu1 %v178_v0  ;;  %v175_v3 = vld [vmem:[%s258_s1 + $0x20] sm:$0xff]  ;;  %v174_v4 = vld [vmem:[%s258_s1 + $0x18] sm:$0xff]  ;;  %v173_v5 = vld [vmem:[%s258_s1 + $0x10] sm:$0xff] }
   0x3   :  { %v172_v6 = vld [vmem:[%s258_s1 + $0x8] sm:$0xff]  ;;  %v171_v7 = vld [vmem:[%s258_s1] sm:$0xff] }
   0x4   :  { %v169_v8 = vld [vmem:[%s260_s0] sm:$0xff]  ;;  %v170_v9 = vld [vmem:[%s260_s0 + $0x8] sm:$0xff] }
   0x5   :  { %v198_v12 = vld [vmem:[%s259_s2] ss:$0 sm:$0xff] }
   0x6   :  { %99 = vmatpush.bf16.msra.mxu0 %v177_v1  ;;  %191 = vmatpush.bf16.msra.mxu1 %v177_v1 }
   0xa   :  { %100 = vmatpush.bf16.msra.mxu0 %v176_v2  ;;  %192 = vmatpush.bf16.msra.mxu1 %v176_v2 }
   0xe   :  { %101 = vmatpush.bf16.msra.mxu0 %v175_v3  ;;  %193 = vmatpush.bf16.msra.mxu1 %v175_v3 }
  0x12   :  { %102 = vmatpush.bf16.msra.mxu0 %v174_v4  ;;  %194 = vmatpush.bf16.msra.mxu1 %v174_v4 }
  0x16   :  { %103 = vmatpush.bf16.msra.mxu0 %v173_v5  ;;  %195 = vmatpush.bf16.msra.mxu1 %v173_v5 }
  0x1a   :  { %104 = vmatpush.bf16.msra.mxu0 %v172_v6  ;;  %196 = vmatpush.bf16.msra.mxu1 %v172_v6 }
  0x1e   :  { %105 = vmatpush.bf16.msra.mxu0 %v171_v7  ;;  %197 = vmatpush.bf16.msra.mxu1 %v171_v7 }
  0x21   :  { %106 = vmatmul.bf16.vlgmr.msra.gmra.mxu0 %v169_v8  ;;  %111 = vmatmul.bf16.vlgmr.msra.gmra.mxu1 %v170_v9 }
  0x9e   :  { %v107_v10 = vpop.f32.mrf.mxu0  ;;  %v112_v11 = vpop.f32.mrf.mxu1 }
  0x9f   :  { %v108_v15 = vadd.f32 %v198_v12, %v107_v10  ;;  %v113_v16 = vadd.f32 %v198_v12, %v112_v11 }
  0xa6   :  { %v109_v13 = vpop.f32.mrf.mxu0  ;;  %v114_v14 = vpop.f32.mrf.mxu1 }
  0xa7   :  { %v110_v17 = vadd.f32 %v198_v12, %v109_v13  ;;  %v115_v18 = vadd.f32 %v198_v12, %v114_v14 }
  0xa9   :  { %v182_v19 = vpack.c.bf16 %v110_v17, %v108_v15  ;;  %v187_v20 = vpack.c.bf16 %v115_v18, %v113_v16 }
  0xab   :  { %183 = vst [vmem:[%s261_s3] sm:$0xff] %v182_v19  }
  0xac   :  { %189 = vst [vmem:[%s261_s3 + $0x8] sm:$0xff] %v187_v20  }

// kernel: fwd.69
= control target key start
LH: loop header
LB: loop body
LE: loop exit
PB: predicated region body
PF: predicated region fallthrough
CT: control target
= control target key end

     0   :  { %s2598_s1 = inlined_call_operand.vmem [shape: bf16[2048,128], index: 1, kind: input, shape index: {}]   ;;  %s2599_s2 = inlined_call_operand.vmem [shape: f32[1,128], index: 2, kind: input, shape index: {}]   ;;  %s2600_s0 = inlined_call_operand.vmem [shape: bf16[16,2048], index: 0, kind: input, shape index: {}]   ;;  %s2601_s3 = inlined_call_operand.vmem [shape: f32[16,128], index: 3, kind: output, shape index: {}]  }
   0x1   :  { %v1967_v0 = vld [vmem:[%s2598_s1 + $0x38] sm:$0xff]  ;;  %v1966_v4 = vld [vmem:[%s2598_s1 + $0x30] sm:$0xff]  ;;  %v1965_v8 = vld [vmem:[%s2598_s1 + $0x28] sm:$0xff] }
   0x2   :  { %v1975_v1 = vld [vmem:[%s2598_s1 + $0x78] sm:$0xff]  ;;  %1138 = vmatpush.bf16.msra.mxu0 %v1967_v0  ;;  %v1974_v5 = vld [vmem:[%s2598_s1 + $0x70] sm:$0xff]  ;;  %v1973_v9 = vld [vmem:[%s2598_s1 + $0x68] sm:$0xff] }
   0x3   :  { %v1983_v2 = vld [vmem:[%s2598_s1 + $0xb8] sm:$0xff]  ;;  %1152 = vmatpush.bf16.msra.mxu1 %v1975_v1  ;;  %v1982_v6 = vld [vmem:[%s2598_s1 + $0xb0] sm:$0xff]  ;;  %v1981_v10 = vld [vmem:[%s2598_s1 + $0xa8] sm:$0xff] }
   0x4   :  { %v1991_v3 = vld [vmem:[%s2598_s1 + $0xf8] sm:$0xff]  ;;  %1166 = vmatpush.bf16.msra.mxu2 %v1983_v2  ;;  %v1990_v7 = vld [vmem:[%s2598_s1 + $0xf0] sm:$0xff]  ;;  %v1989_v11 = vld [vmem:[%s2598_s1 + $0xe8] sm:$0xff] }
   0x5   :  { %1180 = vmatpush.bf16.msra.mxu3 %v1991_v3  ;;  %v1964_v12 = vld [vmem:[%s2598_s1 + $0x20] sm:$0xff]  ;;  %v1963_v16 = vld [vmem:[%s2598_s1 + $0x18] sm:$0xff]  ;;  %v1962_v20 = vld [vmem:[%s2598_s1 + $0x10] sm:$0xff] }
   0x6   :  { %1139 = vmatpush.bf16.msra.mxu0 %v1966_v4  ;;  %v1972_v13 = vld [vmem:[%s2598_s1 + $0x60] sm:$0xff]  ;;  %v1971_v17 = vld [vmem:[%s2598_s1 + $0x58] sm:$0xff]  ;;  %v1970_v21 = vld [vmem:[%s2598_s1 + $0x50] sm:$0xff] }
   0x7   :  { %1153 = vmatpush.bf16.msra.mxu1 %v1974_v5  ;;  %v1980_v14 = vld [vmem:[%s2598_s1 + $0xa0] sm:$0xff]  ;;  %v1979_v18 = vld [vmem:[%s2598_s1 + $0x98] sm:$0xff]  ;;  %v1978_v22 = vld [vmem:[%s2598_s1 + $0x90] sm:$0xff] }
   0x8   :  { %1167 = vmatpush.bf16.msra.mxu2 %v1982_v6  ;;  %v1988_v15 = vld [vmem:[%s2598_s1 + $0xe0] sm:$0xff]  ;;  %v1987_v19 = vld [vmem:[%s2598_s1 + $0xd8] sm:$0xff]  ;;  %v1986_v23 = vld [vmem:[%s2598_s1 + $0xd0] sm:$0xff] }
   0x9   :  { %1181 = vmatpush.bf16.msra.mxu3 %v1990_v7  ;;  %v1961_v24 = vld [vmem:[%s2598_s1 + $0x8] sm:$0xff]  ;;  %v1960_v28 = vld [vmem:[%s2598_s1] sm:$0xff]  ;;  %v1999_v32 = vld [vmem:[%s2598_s1 + $0x138] sm:$0xff] }
   0xa   :  { %1140 = vmatpush.bf16.msra.mxu0 %v1965_v8  ;;  %v1969_v25 = vld [vmem:[%s2598_s1 + $0x48] sm:$0xff]  ;;  %v1968_v29 = vld [vmem:[%s2598_s1 + $0x40] sm:$0xff]  ;;  %v2007_v33 = vld [vmem:[%s2598_s1 + $0x178] sm:$0xff] }
   0xb   :  { %1154 = vmatpush.bf16.msra.mxu1 %v1973_v9  ;;  %v1977_v26 = vld [vmem:[%s2598_s1 + $0x88] sm:$0xff]  ;;  %v1976_v30 = vld [vmem:[%s2598_s1 + $0x80] sm:$0xff]  ;;  %v2015_v42 = vld [vmem:[%s2598_s1 + $0x1b8] sm:$0xff] }
   0xc   :  { %1168 = vmatpush.bf16.msra.mxu2 %v1981_v10  ;;  %v1985_v27 = vld [vmem:[%s2598_s1 + $0xc8] sm:$0xff]  ;;  %v1984_v31 = vld [vmem:[%s2598_s1 + $0xc0] sm:$0xff]  ;;  %v2023_v43 = vld [vmem:[%s2598_s1 + $0x1f8] sm:$0xff] }
   0xd   :  { %1182 = vmatpush.bf16.msra.mxu3 %v1989_v11  ;;  %v1370_v34 = vld [vmem:[%s2600_s0] sm:$0xf]  ;;  %v1378_v36 = vld [vmem:[%s2600_s0 + $0x8] sm:$0xf]  ;;  %v1944_v38 = vld [vmem:[%s2600_s0 + $0x4] sm:$0xf] }
   0xe   :  { %1141 = vmatpush.bf16.msra.mxu0 %v1964_v12  ;;  %v1952_v35 = vld [vmem:[%s2600_s0 + $0x3c] sm:$0xf0]  ;;  %v1953_v37 = vld [vmem:[%s2600_s0 + $0x44] sm:$0xf0]  ;;  %v1372_v39 = vld [vmem:[%s2600_s0 + $0x40] sm:$0xf0] }
   0xf   :  { %1155 = vmatpush.bf16.msra.mxu1 %v1972_v13  ;;  %v1945_v40 = vld [vmem:[%s2600_s0 + $0xc] sm:$0xf]  ;;  %v1371_v44 = vor.u32 %v1952_v35, %v1370_v34  ;;  %v1379_v45 = vor.u32 %v1953_v37, %v1378_v36  ;;  %v1375_v46 = vor.u32 %v1944_v38, %v1372_v39  ;;  %v1998_v48 = vld [vmem:[%s2598_s1 + $0x130] sm:$0xff]  ;;  %v1996_v56 = vld [vmem:[%s2598_s1 + $0x120] sm:$0xff] }
  0x10   :  { %1169 = vmatpush.bf16.msra.mxu2 %v1980_v14  ;;  %v1380_v41 = vld [vmem:[%s2600_s0 + $0x48] sm:$0xf0]  ;;  %v2006_v49 = vld [vmem:[%s2598_s1 + $0x170] sm:$0xff]  ;;  %v2004_v57 = vld [vmem:[%s2598_s1 + $0x160] sm:$0xff] }
  0x11   :  { %1183 = vmatpush.bf16.msra.mxu3 %v1988_v15  ;;  %v1383_v47 = vor.u32 %v1945_v40, %v1380_v41  ;;  %v2014_v50 = vld [vmem:[%s2598_s1 + $0x1b0] sm:$0xff]  ;;  %v1997_v52 = vld [vmem:[%s2598_s1 + $0x128] sm:$0xff]  ;;  %v2012_v58 = vld [vmem:[%s2598_s1 + $0x1a0] sm:$0xff] }
  0x12   :  { %1142 = vmatpush.bf16.msra.mxu0 %v1963_v16  ;;  %v2022_v51 = vld [vmem:[%s2598_s1 + $0x1f0] sm:$0xff]  ;;  %v2005_v53 = vld [vmem:[%s2598_s1 + $0x168] sm:$0xff]  ;;  %v2020_v59 = vld [vmem:[%s2598_s1 + $0x1e0] sm:$0xff] }
  0x13   :  { %1156 = vmatpush.bf16.msra.mxu1 %v1971_v17  ;;  %v2013_v54 = vld [vmem:[%s2598_s1 + $0x1a8] sm:$0xff]  ;;  %v1995_v60 = vld [vmem:[%s2598_s1 + $0x118] sm:$0xff]  ;;  %v1994_v0 = vld [vmem:[%s2598_s1 + $0x110] sm:$0xff] }
  0x14   :  { %1170 = vmatpush.bf16.msra.mxu2 %v1979_v18  ;;  %v2021_v55 = vld [vmem:[%s2598_s1 + $0x1e8] sm:$0xff]  ;;  %v2003_v61 = vld [vmem:[%s2598_s1 + $0x158] sm:$0xff]  ;;  %v2002_v1 = vld [vmem:[%s2598_s1 + $0x150] sm:$0xff] }
  0x15   :  { %1184 = vmatpush.bf16.msra.mxu3 %v1987_v19  ;;  %v2011_v62 = vld [vmem:[%s2598_s1 + $0x198] sm:$0xff]  ;;  %v2010_v2 = vld [vmem:[%s2598_s1 + $0x190] sm:$0xff]  ;;  %v1993_v4 = vld [vmem:[%s2598_s1 + $0x108] sm:$0xff] }
  0x16   :  { %1143 = vmatpush.bf16.msra.mxu0 %v1962_v20  ;;  %v2019_v63 = vld [vmem:[%s2598_s1 + $0x1d8] sm:$0xff]  ;;  %v2018_v3 = vld [vmem:[%s2598_s1 + $0x1d0] sm:$0xff]  ;;  %v2001_v5 = vld [vmem:[%s2598_s1 + $0x148] sm:$0xff] }
  0x17   :  { %1157 = vmatpush.bf16.msra.mxu1 %v1970_v21  ;;  %v2009_v6 = vld [vmem:[%s2598_s1 + $0x188] sm:$0xff]  ;;  %v1992_v8 = vld [vmem:[%s2598_s1 + $0x100] sm:$0xff]  ;;  %v2031_v12 = vld [vmem:[%s2598_s1 + $0x238] sm:$0xff] }
  0x18   :  { %1171 = vmatpush.bf16.msra.mxu2 %v1978_v22  ;;  %v2017_v7 = vld [vmem:[%s2598_s1 + $0x1c8] sm:$0xff]  ;;  %v2000_v9 = vld [vmem:[%s2598_s1 + $0x140] sm:$0xff]  ;;  %v2039_v13 = vld [vmem:[%s2598_s1 + $0x278] sm:$0xff] }
  0x19   :  { %1185 = vmatpush.bf16.msra.mxu3 %v1986_v23  ;;  %v2008_v10 = vld [vmem:[%s2598_s1 + $0x180] sm:$0xff]  ;;  %v1386_v14 = vld [vmem:[%s2600_s0 + $0x10] sm:$0xf]  ;;  %v1394_v16 = vld [vmem:[%s2600_s0 + $0x18] sm:$0xf] }
  0x1a   :  { %1144 = vmatpush.bf16.msra.mxu0 %v1961_v24  ;;  %v2016_v11 = vld [vmem:[%s2598_s1 + $0x1c0] sm:$0xff]  ;;  %v1954_v15 = vld [vmem:[%s2600_s0 + $0x4c] sm:$0xf0]  ;;  %v1955_v17 = vld [vmem:[%s2600_s0 + $0x54] sm:$0xf0] }
  0x1b   :  { %1158 = vmatpush.bf16.msra.mxu1 %v1969_v25  ;;  %v1946_v18 = vld [vmem:[%s2600_s0 + $0x14] sm:$0xf]  ;;  %v1947_v20 = vld [vmem:[%s2600_s0 + $0x1c] sm:$0xf]  ;;  %v1387_v24 = vor.u32 %v1954_v15, %v1386_v14  ;;  %v1395_v25 = vor.u32 %v1955_v17, %v1394_v16  ;;  %v2045_v34 = vld [vmem:[%s2598_s1 + $0x2a8] sm:$0xff] }
  0x1c   :  { %1172 = vmatpush.bf16.msra.mxu2 %v1977_v26  ;;  %v1388_v19 = vld [vmem:[%s2600_s0 + $0x50] sm:$0xf0]  ;;  %v1396_v21 = vld [vmem:[%s2600_s0 + $0x58] sm:$0xf0]  ;;  %v2053_v35 = vld [vmem:[%s2598_s1 + $0x2e8] sm:$0xff] }
  0x1d   :  { %1186 = vmatpush.bf16.msra.mxu3 %v1985_v27  ;;  %v2047_v22 = vld [vmem:[%s2598_s1 + $0x2b8] sm:$0xff]  ;;  %v1391_v26 = vor.u32 %v1946_v18, %v1388_v19  ;;  %v1399_v27 = vor.u32 %v1947_v20, %v1396_v21  ;;  %v2028_v36 = vld [vmem:[%s2598_s1 + $0x220] sm:$0xff]  ;;  %v2077_v14 = vld [vmem:[%s2598_s1 + $0x3a8] sm:$0xff] }
  0x1e   :  { %1145 = vmatpush.bf16.msra.mxu0 %v1960_v28  ;;  %v2055_v23 = vld [vmem:[%s2598_s1 + $0x2f8] sm:$0xff]  ;;  %v2030_v28 = vld [vmem:[%s2598_s1 + $0x230] sm:$0xff]  ;;  %v2036_v37 = vld [vmem:[%s2598_s1 + $0x260] sm:$0xff] }
  0x1f   :  { %1159 = vmatpush.bf16.msra.mxu1 %v1968_v29  ;;  %v2038_v29 = vld [vmem:[%s2598_s1 + $0x270] sm:$0xff]  ;;  %v2044_v38 = vld [vmem:[%s2598_s1 + $0x2a0] sm:$0xff]  ;;  %v2027_v40 = vld [vmem:[%s2598_s1 + $0x218] sm:$0xff] }
  0x20   :  { %1173 = vmatpush.bf16.msra.mxu2 %v1976_v30  ;;  %v2046_v30 = vld [vmem:[%s2598_s1 + $0x2b0] sm:$0xff]  ;;  %v2052_v39 = vld [vmem:[%s2598_s1 + $0x2e0] sm:$0xff]  ;;  %v2035_v41 = vld [vmem:[%s2598_s1 + $0x258] sm:$0xff] }
  0x21   :  { %1187 = vmatpush.bf16.msra.mxu3 %v1984_v31  ;;  %1146 = vmatmul.bf16.vlgmr.msra.gmra.mxu0 %v1371_v44  ;;  %v2054_v31 = vld [vmem:[%s2598_s1 + $0x2f0] sm:$0xff]  ;;  %v2085_v15 = vld [vmem:[%s2598_s1 + $0x3e8] sm:$0xff]  ;;  %v2060_v16 = vld [vmem:[%s2598_s1 + $0x320] sm:$0xff] }
  0x22   :  { %1194 = vmatpush.bf16.msrb.mxu0 %v1999_v32  ;;  %1160 = vmatmul.bf16.vlgmr.msra.gmra.mxu1 %v1375_v46  ;;  %v2029_v32 = vld [vmem:[%s2598_s1 + $0x228] sm:$0xff]  ;;  %v2026_v44 = vld [vmem:[%s2598_s1 + $0x210] sm:$0xff]  ;;  %v2068_v17 = vld [vmem:[%s2598_s1 + $0x360] sm:$0xff] }
  0x23   :  { %1208 = vmatpush.bf16.msrb.mxu1 %v2007_v33  ;;  %1174 = vmatmul.bf16.vlgmr.msra.gmra.mxu2 %v1379_v45  ;;  %v2037_v33 = vld [vmem:[%s2598_s1 + $0x268] sm:$0xff]  ;;  %v2034_v45 = vld [vmem:[%s2598_s1 + $0x250] sm:$0xff]  ;;  %v2076_v18 = vld [vmem:[%s2598_s1 + $0x3a0] sm:$0xff] }
  0x24   :  { %1222 = vmatpush.bf16.msrb.mxu2 %v2015_v42  ;;  %1188 = vmatmul.bf16.vlgmr.msra.gmra.mxu3 %v1383_v47  ;;  %v2043_v42 = vld [vmem:[%s2598_s1 + $0x298] sm:$0xff]  ;;  %v2042_v46 = vld [vmem:[%s2598_s1 + $0x290] sm:$0xff]  ;;  %v2084_v19 = vld [vmem:[%s2598_s1 + $0x3e0] sm:$0xff] }
  0x25   :  { %1236 = vmatpush.bf16.msrb.mxu3 %v2023_v43  ;;  %v2051_v43 = vld [vmem:[%s2598_s1 + $0x2d8] sm:$0xff]  ;;  %v2050_v47 = vld [vmem:[%s2598_s1 + $0x2d0] sm:$0xff] }
  0x26   :  { %1195 = vmatpush.bf16.msrb.mxu0 %v1998_v48  ;;  %v2025_v48 = vld [vmem:[%s2598_s1 + $0x208] sm:$0xff]  ;;  %v2059_v20 = vld [vmem:[%s2598_s1 + $0x318] sm:$0xff] }
  0x27   :  { %1209 = vmatpush.bf16.msrb.mxu1 %v2006_v49  ;;  %v2033_v49 = vld [vmem:[%s2598_s1 + $0x248] sm:$0xff]  ;;  %v2067_v21 = vld [vmem:[%s2598_s1 + $0x358] sm:$0xff] }
  0x28   :  { %1223 = vmatpush.bf16.msrb.mxu2 %v2014_v50  ;;  %v2041_v50 = vld [vmem:[%s2598_s1 + $0x288] sm:$0xff] }
  0x29   :  { %1237 = vmatpush.bf16.msrb.mxu3 %v2022_v51  ;;  %v2049_v51 = vld [vmem:[%s2598_s1 + $0x2c8] sm:$0xff] }
  0x2a   :  { %1196 = vmatpush.bf16.msrb.mxu0 %v1997_v52  ;;  %v2024_v52 = vld [vmem:[%s2598_s1 + $0x200] sm:$0xff] }
  0x2b   :  { %1210 = vmatpush.bf16.msrb.mxu1 %v2005_v53  ;;  %v2032_v53 = vld [vmem:[%s2598_s1 + $0x240] sm:$0xff] }
  0x2c   :  { %1224 = vmatpush.bf16.msrb.mxu2 %v2013_v54  ;;  %v2040_v54 = vld [vmem:[%s2598_s1 + $0x280] sm:$0xff] }
  0x2d   :  { %1238 = vmatpush.bf16.msrb.mxu3 %v2021_v55  ;;  %v2048_v55 = vld [vmem:[%s2598_s1 + $0x2c0] sm:$0xff] }
  0x2e   :  { %1197 = vmatpush.bf16.msrb.mxu0 %v1996_v56  ;;  %v2063_v56 = vld [vmem:[%s2598_s1 + $0x338] sm:$0xff] }
  0x2f   :  { %1211 = vmatpush.bf16.msrb.mxu1 %v2004_v57  ;;  %v2071_v57 = vld [vmem:[%s2598_s1 + $0x378] sm:$0xff] }
  0x30   :  { %1225 = vmatpush.bf16.msrb.mxu2 %v2012_v58  ;;  %v1402_v58 = vld [vmem:[%s2600_s0 + $0x20] sm:$0xf] }
  0x31   :  { %1239 = vmatpush.bf16.msrb.mxu3 %v2020_v59  ;;  %v1956_v59 = vld [vmem:[%s2600_s0 + $0x5c] sm:$0xf0] }
  0x32   :  { %1198 = vmatpush.bf16.msrb.mxu0 %v1995_v60  ;;  %v1410_v60 = vld [vmem:[%s2600_s0 + $0x28] sm:$0xf] }
  0x33   :  { %1212 = vmatpush.bf16.msrb.mxu1 %v2003_v61  ;;  %v1957_v61 = vld [vmem:[%s2600_s0 + $0x64] sm:$0xf0] }
  0x34   :  { %1226 = vmatpush.bf16.msrb.mxu2 %v2011_v62  ;;  %v1948_v62 = vld [vmem:[%s2600_s0 + $0x24] sm:$0xf] }
  0x35   :  { %1240 = vmatpush.bf16.msrb.mxu3 %v2019_v63  ;;  %v1404_v63 = vld [vmem:[%s2600_s0 + $0x60] sm:$0xf0] }
  0x36   :  { %1199 = vmatpush.bf16.msrb.mxu0 %v1994_v0  ;;  %v1949_v0 = vld [vmem:[%s2600_s0 + $0x2c] sm:$0xf] }
  0x37   :  { %1213 = vmatpush.bf16.msrb.mxu1 %v2002_v1  ;;  %v1412_v1 = vld [vmem:[%s2600_s0 + $0x68] sm:$0xf0] }
  0x38   :  { %1227 = vmatpush.bf16.msrb.mxu2 %v2010_v2  ;;  %v2079_v2 = vld [vmem:[%s2598_s1 + $0x3b8] sm:$0xff] }
  0x39   :  { %1241 = vmatpush.bf16.msrb.mxu3 %v2018_v3  ;;  %v2087_v3 = vld [vmem:[%s2598_s1 + $0x3f8] sm:$0xff] }
  0x3a   :  { %1200 = vmatpush.bf16.msrb.mxu0 %v1993_v4  ;;  %v1403_v4 = vor.u32 %v1956_v59, %v1402_v58 }
  0x3b   :  { %1214 = vmatpush.bf16.msrb.mxu1 %v2001_v5  ;;  %v1411_v5 = vor.u32 %v1957_v61, %v1410_v60 }
  0x3c   :  { %1228 = vmatpush.bf16.msrb.mxu2 %v2009_v6  ;;  %v1407_v6 = vor.u32 %v1948_v62, %v1404_v63 }
  0x3d   :  { %1242 = vmatpush.bf16.msrb.mxu3 %v2017_v7  ;;  %v1415_v7 = vor.u32 %v1949_v0, %v1412_v1 }
  0x3e   :  { %1201 = vmatpush.bf16.msrb.mxu0 %v1992_v8  ;;  %v2062_v8 = vld [vmem:[%s2598_s1 + $0x330] sm:$0xff] }
  0x3f   :  { %1215 = vmatpush.bf16.msrb.mxu1 %v2000_v9  ;;  %v2070_v9 = vld [vmem:[%s2598_s1 + $0x370] sm:$0xff] }
  0x40   :  { %1229 = vmatpush.bf16.msrb.mxu2 %v2008_v10  ;;  %v2078_v10 = vld [vmem:[%s2598_s1 + $0x3b0] sm:$0xff] }
  0x41   :  { %1243 = vmatpush.bf16.msrb.mxu3 %v2016_v11  ;;  %1202 = vmatmul.bf16.vlgmr.msrb.gmra.mxu0 %v1387_v24  ;;  %v2086_v11 = vld [vmem:[%s2598_s1 + $0x3f0] sm:$0xff] }
  0x42   :  { %1250 = vmatpush.bf16.msra.mxu0 %v2031_v12  ;;  %1216 = vmatmul.bf16.vlgmr.msrb.gmra.mxu1 %v1391_v26  ;;  %v2061_v12 = vld [vmem:[%s2598_s1 + $0x328] sm:$0xff]  ;;  %v2058_v24 = vld [vmem:[%s2598_s1 + $0x310] sm:$0xff] }
  0x43   :  { %1264 = vmatpush.bf16.msra.mxu1 %v2039_v13  ;;  %1230 = vmatmul.bf16.vlgmr.msrb.gmra.mxu2 %v1395_v25  ;;  %v2069_v13 = vld [vmem:[%s2598_s1 + $0x368] sm:$0xff]  ;;  %v2066_v25 = vld [vmem:[%s2598_s1 + $0x350] sm:$0xff] }
  0x44   :  { %1278 = vmatpush.bf16.msra.mxu2 %v2047_v22  ;;  %1244 = vmatmul.bf16.vlgmr.msrb.gmra.mxu3 %v1399_v27  ;;  %v2075_v22 = vld [vmem:[%s2598_s1 + $0x398] sm:$0xff]  ;;  %v2074_v26 = vld [vmem:[%s2598_s1 + $0x390] sm:$0xff] }
  0x45   :  { %1292 = vmatpush.bf16.msra.mxu3 %v2055_v23  ;;  %v2083_v23 = vld [vmem:[%s2598_s1 + $0x3d8] sm:$0xff]  ;;  %v2082_v27 = vld [vmem:[%s2598_s1 + $0x3d0] sm:$0xff] }
  0x46   :  { %1251 = vmatpush.bf16.msra.mxu0 %v2030_v28  ;;  %v2057_v28 = vld [vmem:[%s2598_s1 + $0x308] sm:$0xff] }
  0x47   :  { %1265 = vmatpush.bf16.msra.mxu1 %v2038_v29  ;;  %v2065_v29 = vld [vmem:[%s2598_s1 + $0x348] sm:$0xff] }
  0x48   :  { %1279 = vmatpush.bf16.msra.mxu2 %v2046_v30  ;;  %v2073_v30 = vld [vmem:[%s2598_s1 + $0x388] sm:$0xff] }
  0x49   :  { %1293 = vmatpush.bf16.msra.mxu3 %v2054_v31  ;;  %v2081_v31 = vld [vmem:[%s2598_s1 + $0x3c8] sm:$0xff] }
  0x4a   :  { %1252 = vmatpush.bf16.msra.mxu0 %v2029_v32  ;;  %v2056_v32 = vld [vmem:[%s2598_s1 + $0x300] sm:$0xff] }
  0x4b   :  { %1266 = vmatpush.bf16.msra.mxu1 %v2037_v33  ;;  %v2064_v33 = vld [vmem:[%s2598_s1 + $0x340] sm:$0xff] }
  0x4c   :  { %1280 = vmatpush.bf16.msra.mxu2 %v2045_v34  ;;  %v2072_v34 = vld [vmem:[%s2598_s1 + $0x380] sm:$0xff] }
  0x4d   :  { %1294 = vmatpush.bf16.msra.mxu3 %v2053_v35  ;;  %v2080_v35 = vld [vmem:[%s2598_s1 + $0x3c0] sm:$0xff] }
  0x4e   :  { %1253 = vmatpush.bf16.msra.mxu0 %v2028_v36  ;;  %v1418_v36 = vld [vmem:[%s2600_s0 + $0x30] sm:$0xf] }
  0x4f   :  { %1267 = vmatpush.bf16.msra.mxu1 %v2036_v37  ;;  %v1958_v37 = vld [vmem:[%s2600_s0 + $0x6c] sm:$0xf0] }
  0x50   :  { %1281 = vmatpush.bf16.msra.mxu2 %v2044_v38  ;;  %v1950_v38 = vld [vmem:[%s2600_s0 + $0x34] sm:$0xf] }
  0x51   :  { %1295 = vmatpush.bf16.msra.mxu3 %v2052_v39  ;;  %v1420_v39 = vld [vmem:[%s2600_s0 + $0x70] sm:$0xf0] }
  0x52   :  { %1254 = vmatpush.bf16.msra.mxu0 %v2027_v40  ;;  %v1426_v40 = vld [vmem:[%s2600_s0 + $0x38] sm:$0xf] }
  0x53   :  { %1268 = vmatpush.bf16.msra.mxu1 %v2035_v41  ;;  %v1959_v41 = vld [vmem:[%s2600_s0 + $0x74] sm:$0xf0] }
  0x54   :  { %1282 = vmatpush.bf16.msra.mxu2 %v2043_v42  ;;  %v1951_v42 = vld [vmem:[%s2600_s0 + $0x3c] sm:$0xf] }
  0x55   :  { %1296 = vmatpush.bf16.msra.mxu3 %v2051_v43  ;;  %v1428_v43 = vld [vmem:[%s2600_s0 + $0x78] sm:$0xf0] }
  0x56   :  { %1255 = vmatpush.bf16.msra.mxu0 %v2026_v44  ;;  %v1419_v44 = vor.u32 %v1958_v37, %v1418_v36 }
  0x57   :  { %1269 = vmatpush.bf16.msra.mxu1 %v2034_v45  ;;  %v1423_v45 = vor.u32 %v1950_v38, %v1420_v39 }
  0x58   :  { %1283 = vmatpush.bf16.msra.mxu2 %v2042_v46  ;;  %v1427_v46 = vor.u32 %v1959_v41, %v1426_v40 }
  0x59   :  { %1297 = vmatpush.bf16.msra.mxu3 %v2050_v47  ;;  %v1431_v47 = vor.u32 %v1951_v42, %v1428_v43 }
  0x5a   :  { %1256 = vmatpush.bf16.msra.mxu0 %v2025_v48 }
  0x5b   :  { %1270 = vmatpush.bf16.msra.mxu1 %v2033_v49 }
  0x5c   :  { %1284 = vmatpush.bf16.msra.mxu2 %v2041_v50 }
  0x5d   :  { %1298 = vmatpush.bf16.msra.mxu3 %v2049_v51 }
  0x5e   :  { %1257 = vmatpush.bf16.msra.mxu0 %v2024_v52 }
  0x5f   :  { %1271 = vmatpush.bf16.msra.mxu1 %v2032_v53  ;;  %v2088_v53 = vld [vmem:[%s2599_s2] ss:$0 sm:$0xff] }
  0x60   :  { %1285 = vmatpush.bf16.msra.mxu2 %v2040_v54 }
  0x61   :  { %1299 = vmatpush.bf16.msra.mxu3 %v2048_v55  ;;  %1258 = vmatmul.bf16.vlgmr.msra.gmra.mxu0 %v1403_v4 }
  0x62   :  { %1306 = vmatpush.bf16.msrb.mxu0 %v2063_v56  ;;  %1272 = vmatmul.bf16.vlgmr.msra.gmra.mxu1 %v1407_v6 }
  0x63   :  { %1320 = vmatpush.bf16.msrb.mxu1 %v2071_v57  ;;  %1286 = vmatmul.bf16.vlgmr.msra.gmra.mxu2 %v1411_v5 }
  0x64   :  { %1334 = vmatpush.bf16.msrb.mxu2 %v2079_v2  ;;  %1300 = vmatmul.bf16.vlgmr.msra.gmra.mxu3 %v1415_v7 }
  0x65   :  { %1348 = vmatpush.bf16.msrb.mxu3 %v2087_v3 }
  0x66   :  { %1307 = vmatpush.bf16.msrb.mxu0 %v2062_v8 }
  0x67   :  { %1321 = vmatpush.bf16.msrb.mxu1 %v2070_v9 }
  0x68   :  { %1335 = vmatpush.bf16.msrb.mxu2 %v2078_v10 }
  0x69   :  { %1349 = vmatpush.bf16.msrb.mxu3 %v2086_v11 }
  0x6a   :  { %1308 = vmatpush.bf16.msrb.mxu0 %v2061_v12 }
  0x6b   :  { %1322 = vmatpush.bf16.msrb.mxu1 %v2069_v13 }
  0x6c   :  { %1336 = vmatpush.bf16.msrb.mxu2 %v2077_v14 }
  0x6d   :  { %1350 = vmatpush.bf16.msrb.mxu3 %v2085_v15 }
  0x6e   :  { %1309 = vmatpush.bf16.msrb.mxu0 %v2060_v16 }
  0x6f   :  { %1323 = vmatpush.bf16.msrb.mxu1 %v2068_v17 }
  0x70   :  { %1337 = vmatpush.bf16.msrb.mxu2 %v2076_v18 }
  0x71   :  { %1351 = vmatpush.bf16.msrb.mxu3 %v2084_v19 }
  0x72   :  { %1310 = vmatpush.bf16.msrb.mxu0 %v2059_v20 }
  0x73   :  { %1324 = vmatpush.bf16.msrb.mxu1 %v2067_v21 }
  0x74   :  { %1338 = vmatpush.bf16.msrb.mxu2 %v2075_v22 }
  0x75   :  { %1352 = vmatpush.bf16.msrb.mxu3 %v2083_v23 }
  0x76   :  { %1311 = vmatpush.bf16.msrb.mxu0 %v2058_v24 }
  0x77   :  { %1325 = vmatpush.bf16.msrb.mxu1 %v2066_v25 }
  0x78   :  { %1339 = vmatpush.bf16.msrb.mxu2 %v2074_v26 }
  0x79   :  { %1353 = vmatpush.bf16.msrb.mxu3 %v2082_v27 }
  0x7a   :  { %1312 = vmatpush.bf16.msrb.mxu0 %v2057_v28 }
  0x7b   :  { %1326 = vmatpush.bf16.msrb.mxu1 %v2065_v29 }
  0x7c   :  { %1340 = vmatpush.bf16.msrb.mxu2 %v2073_v30 }
  0x7d   :  { %1354 = vmatpush.bf16.msrb.mxu3 %v2081_v31 }
  0x7e   :  { %1313 = vmatpush.bf16.msrb.mxu0 %v2056_v32 }
  0x7f   :  { %1327 = vmatpush.bf16.msrb.mxu1 %v2064_v33 }
  0x80   :  { %1341 = vmatpush.bf16.msrb.mxu2 %v2072_v34 }
  0x81   :  { %1355 = vmatpush.bf16.msrb.mxu3 %v2080_v35  ;;  %1314 = vmatmul.bf16.vlgmr.msrb.gmra.mxu0 %v1419_v44 }
  0x82   :  { %1328 = vmatmul.bf16.vlgmr.msrb.gmra.mxu1 %v1423_v45 }
  0x83   :  { %1342 = vmatmul.bf16.vlgmr.msrb.gmra.mxu2 %v1427_v46 }
  0x84   :  { %1356 = vmatmul.bf16.vlgmr.msrb.gmra.mxu3 %v1431_v47 }
  0x9e   :  { %v1147_v48 = vpop.f32.mrf.mxu0 }
  0x9f   :  { %v1161_v49 = vpop.f32.mrf.mxu1  ;;  %v1148_v55 = vadd.f32 %v2088_v53, %v1147_v48 }
  0xa1   :  { %v1162_v58 = vadd.f32 %v1161_v49, %v1148_v55 }
  0xa6   :  { %v1175_v50 = vpop.f32.mrf.mxu2  ;;  %v1149_v52 = vpop.f32.mrf.mxu0 }
  0xa7   :  { %v1189_v51 = vpop.f32.mrf.mxu3  ;;  %v1163_v54 = vpop.f32.mrf.mxu1  ;;  %v1176_v61 = vadd.f32 %v1175_v50, %v1162_v58  ;;  %v1150_v62 = vadd.f32 %v2088_v53, %v1149_v52 }
  0xa9   :  { %v1190_v1 = vadd.f32 %v1189_v51, %v1176_v61  ;;  %v1164_v2 = vadd.f32 %v1163_v54, %v1150_v62 }
  0xae   :  { %v1177_v56 = vpop.f32.mrf.mxu2 }
  0xaf   :  { %v1191_v57 = vpop.f32.mrf.mxu3  ;;  %v1178_v6 = vadd.f32 %v1177_v56, %v1164_v2 }
  0xb1   :  { %v1192_v10 = vadd.f32 %v1191_v57, %v1178_v6 }
  0xbe   :  { %v1203_v59 = vpop.f32.mrf.mxu0 }
  0xbf   :  { %v1217_v60 = vpop.f32.mrf.mxu1  ;;  %v1204_v4 = vadd.f32 %v1203_v59, %v1190_v1 }
  0xc1   :  { %v1218_v7 = vadd.f32 %v1217_v60, %v1204_v4 }
  0xc6   :  { %v1231_v63 = vpop.f32.mrf.mxu2  ;;  %v1205_v3 = vpop.f32.mrf.mxu0 }
  0xc7   :  { %v1245_v0 = vpop.f32.mrf.mxu3  ;;  %v1219_v5 = vpop.f32.mrf.mxu1  ;;  %v1232_v12 = vadd.f32 %v1231_v63, %v1218_v7  ;;  %v1206_v14 = vadd.f32 %v1205_v3, %v1192_v10 }
  0xc9   :  { %v1246_v15 = vadd.f32 %v1245_v0, %v1232_v12  ;;  %v1220_v18 = vadd.f32 %v1219_v5, %v1206_v14 }
  0xce   :  { %v1233_v8 = vpop.f32.mrf.mxu2 }
  0xcf   :  { %v1247_v9 = vpop.f32.mrf.mxu3  ;;  %v1234_v20 = vadd.f32 %v1233_v8, %v1220_v18 }
  0xd1   :  { %v1248_v24 = vadd.f32 %v1247_v9, %v1234_v20 }
  0xde   :  { %v1259_v11 = vpop.f32.mrf.mxu0 }
  0xdf   :  { %v1273_v13 = vpop.f32.mrf.mxu1  ;;  %v1260_v19 = vadd.f32 %v1259_v11, %v1246_v15 }
  0xe1   :  { %v1274_v22 = vadd.f32 %v1273_v13, %v1260_v19 }
  0xe6   :  { %v1287_v16 = vpop.f32.mrf.mxu2  ;;  %v1261_v21 = vpop.f32.mrf.mxu0 }
  0xe7   :  { %v1301_v17 = vpop.f32.mrf.mxu3  ;;  %v1275_v23 = vpop.f32.mrf.mxu1  ;;  %v1288_v25 = vadd.f32 %v1287_v16, %v1274_v22  ;;  %v1262_v26 = vadd.f32 %v1261_v21, %v1248_v24 }
  0xe9   :  { %v1302_v29 = vadd.f32 %v1301_v17, %v1288_v25  ;;  %v1276_v31 = vadd.f32 %v1275_v23, %v1262_v26 }
  0xee   :  { %v1289_v27 = vpop.f32.mrf.mxu2 }
  0xef   :  { %v1303_v28 = vpop.f32.mrf.mxu3  ;;  %v1290_v34 = vadd.f32 %v1289_v27, %v1276_v31 }
  0xf1   :  { %v1304_v38 = vadd.f32 %v1303_v28, %v1290_v34 }
  0xfe   :  { %v1315_v30 = vpop.f32.mrf.mxu0 }
  0xff   :  { %v1316_v32 = vadd.f32 %v1315_v30, %v1302_v29  ;;  %v1329_v33 = vpop.f32.mrf.mxu1 }
 0x101   :  { %v1330_v35 = vadd.f32 %v1329_v33, %v1316_v32 }
 0x106   :  { %v1343_v36 = vpop.f32.mrf.mxu2  ;;  %v1317_v40 = vpop.f32.mrf.mxu0 }
 0x107   :  { %v1357_v37 = vpop.f32.mrf.mxu3  ;;  %v1344_v39 = vadd.f32 %v1343_v36, %v1330_v35  ;;  %v1318_v42 = vadd.f32 %v1317_v40, %v1304_v38  ;;  %v1331_v43 = vpop.f32.mrf.mxu1 }
 0x109   :  { %v1358_v41 = vadd.f32 %v1357_v37, %v1344_v39  ;;  %v1332_v44 = vadd.f32 %v1331_v43, %v1318_v42 }
 0x10b   :  { %1362 = vst [vmem:[%s2601_s3] sm:$0xff] %v1358_v41 }
 0x10e   :  { %v1345_v45 = vpop.f32.mrf.mxu2 }
 0x10f   :  { %v1346_v46 = vadd.f32 %v1345_v45, %v1332_v44  ;;  %v1359_v47 = vpop.f32.mrf.mxu3 }
 0x111   :  { %v1360_v48 = vadd.f32 %v1359_v47, %v1346_v46 }
 0x113   :  { %1363 = vst [vmem:[%s2601_s3 + $0x8] sm:$0xff] %v1360_v48 }

</bundles_post_ra>
